<compile_context>
chip_gen: v6e
topology: v6e:2x2x1
jax: 0.10.0
libtpu: 0.0.40
codegen_flags: <defaults>
</compile_context>

<pallas_src>
import math

import jax
import jax.numpy as jnp
from jax.experimental import pallas as pl
from jax.experimental.pallas import tpu as pltpu


_COMPILER_PARAMS = pltpu.CompilerParams(
    dimension_semantics=("arbitrary",),
    vmem_limit_bytes=32 * 1024 * 1024,
)


def _full_spec(shape):
    return pl.BlockSpec(shape, lambda i: (0,) * len(shape))


def _bf16_dot(a, b):
    """MXU matmul with bf16 operands, f32 accumulation."""
    return jnp.dot(a.astype(jnp.bfloat16), b.astype(jnp.bfloat16),
                   preferred_element_type=jnp.float32)


# -------------------- fused SelfONN conv kernel --------------------
# out = [tanh]( sum_p W_p @ patches^p + bias [+ residual | + Wd @ ds_patches] )

def make_conv_kernel(q, act, res_mode):
    def body(p_ref, w_ref, b_ref, extra, o_ref):
        p = p_ref[...]                                    # (Cin*K, N*Lout) f32
        pw = p
        acc = _bf16_dot(w_ref[0], pw)                     # (Cout, N*Lout) f32
        for i in range(1, q):
            pw = pw * p                                   # next input power, on the VPU
            acc = acc + _bf16_dot(w_ref[i], pw)
        acc = acc + b_ref[...]                            # (Cout, 1) lane-broadcast
        if res_mode == "add":
            acc = acc + extra[0][...]                     # fused residual add
        elif res_mode == "ds":                            # fused Conv1d(k=1,s=2,bias=False)
            acc = acc + _bf16_dot(extra[1][...], extra[0][...])
        o_ref[...] = jnp.tanh(acc) if act else acc

    if res_mode == "none":
        def kernel(p_ref, w_ref, b_ref, o_ref):
            body(p_ref, w_ref, b_ref, (), o_ref)
    elif res_mode == "add":
        def kernel(p_ref, w_ref, b_ref, r_ref, o_ref):
            body(p_ref, w_ref, b_ref, (r_ref,), o_ref)
    else:
        def kernel(p_ref, w_ref, b_ref, dp_ref, dw_ref, o_ref):
            body(p_ref, w_ref, b_ref, (dp_ref, dw_ref), o_ref)
    return kernel


def _im2col(x, K, stride, padding):
    """x: (C, N, L) -> base-power patches (C*K, N*Lout) (plain-JAX glue)."""
    C, N, L = x.shape
    Lout = (L + 2 * padding - K) // stride + 1
    xp = jnp.pad(x, ((0, 0), (0, 0), (padding, padding)))
    idx = jnp.arange(Lout)[:, None] * stride + jnp.arange(K)[None, :]   # (Lout, K)
    pat = xp[:, :, idx]                                   # (C, N, Lout, K)
    pat = jnp.transpose(pat, (0, 3, 1, 2))                # (C, K, N, Lout)
    return pat.reshape(C * K, N * Lout), Lout


def selfonn_conv(x, wstack, bias, *, K, stride, padding, act, res=None):
    """SelfONN1d ('fast') + bias + optional residual/downsample + optional tanh.

    x:      (Cin, N, L)  channel-major feature map
    wstack: (q, Cout, Cin*K)  per-power conv weights
    res:    None | ("add", residual (Cout, N*Lout)) | ("ds", ds_patches, Wd)
    returns (Cout, N, Lout)
    """
    Cin, N, L = x.shape
    q, Cout, CinK = wstack.shape
    pat, Lout = _im2col(x, K, stride, padding)
    M = N * Lout

    arrays = [pat, wstack, bias.reshape(Cout, 1)]
    specs = [_full_spec((CinK, M)), _full_spec((q, Cout, CinK)), _full_spec((Cout, 1))]
    res_mode = "none"
    if res is not None:
        res_mode = res[0]
        if res_mode == "add":
            arrays.append(res[1])
            specs.append(_full_spec((Cout, M)))
        else:
            dsp, wd = res[1], res[2]
            arrays += [dsp, wd]
            specs += [_full_spec(dsp.shape), _full_spec(wd.shape)]

    out = pl.pallas_call(
        make_conv_kernel(q, act, res_mode),
        out_shape=jax.ShapeDtypeStruct((Cout, M), jnp.float32),
        grid=(1,),
        in_specs=specs,
        out_specs=_full_spec((Cout, M)),
        compiler_params=_COMPILER_PARAMS,
    )(*arrays)
    return out.reshape(Cout, N, Lout)


# -------------------- MaxPool1d(kernel=3, stride=2, padding=1) --------------------

def _maxpool_pair_kernel(xp_ref, o_ref):
    L = o_ref.shape[-1]
    a = xp_ref[:, :, pl.ds(0, L)]
    b = xp_ref[:, :, pl.ds(1, L)]
    o_ref[...] = jnp.maximum(a, b)


def maxpool1d_k3s2p1(x):
    """MaxPool1d(3, 2, 1) on (C, N, L); L assumed even (true for this net)."""
    C, N, L = x.shape
    Lout = (L + 2 - 3) // 2 + 1
    xp = jnp.pad(x, ((0, 0), (0, 0), (1, 0)), constant_values=-jnp.inf)
    pairmax = pl.pallas_call(
        _maxpool_pair_kernel,
        out_shape=jax.ShapeDtypeStruct((C, N, L), jnp.float32),
        grid=(1,),
        in_specs=[_full_spec((C, N, L + 1))],
        out_specs=_full_spec((C, N, L)),
        compiler_params=_COMPILER_PARAMS,
    )(xp)
    # Final non-overlapping stride-2 pair reduction kept as tiny XLA glue
    # (avoids lane-strided loads inside the kernel).
    return pairmax.reshape(C, N, Lout, 2).max(axis=-1)


# -------------------- fused MultiheadAttention + residual + tanh --------------------

def make_attention_kernel(H, Dh):
    scale = 1.0 / math.sqrt(Dh)

    def kernel(id_ref, x_ref, mb_ref, qw_ref, kw_ref, vw_ref,
               qb_ref, kb_ref, vb_ref, wo_ref, bo_ref, o_ref):
        tid = id_ref[...]          # (T, E) identity tokens (query & value source)
        tx = x_ref[...]            # (T, E) conv2 output tokens (key source + residual base)
        mb = mb_ref[...]           # (T, T) additive mask: 0 same-batch, -1e9 otherwise
        acc = jnp.zeros_like(tx)
        for h in range(H):         # static unroll over heads
            qh = _bf16_dot(tid, qw_ref[h]) + qb_ref[h]        # (T, Dh)
            kh = _bf16_dot(tx, kw_ref[h]) + kb_ref[h]
            vh = _bf16_dot(tid, vw_ref[h]) + vb_ref[h]
            s = jnp.dot(qh, kh.T, preferred_element_type=jnp.float32) * scale + mb
            m = jnp.max(s, axis=-1, keepdims=True)
            p = jnp.exp(s - m)
            denom = jnp.sum(p, axis=-1, keepdims=True)
            p = p * pl.reciprocal(denom, approx=True)
            oh = _bf16_dot(p, vh)                             # (T, Dh)
            acc = acc + _bf16_dot(oh, wo_ref[h])              # (T, E)
        o_ref[...] = jnp.tanh(tx + acc + bo_ref[...])         # out += atten; tanh(out)
    return kernel


def attention_block_tail(identity, conv2_out, att):
    """Fused MultiheadAttention(identity, conv2_out, identity) + residual + tanh."""
    C, N, E = identity.shape
    H = att["H"]
    Dh = E // H
    T = C * N
    tid = identity.reshape(T, E)          # token t = c*N + n  (free reshape)
    tx = conv2_out.reshape(T, E)          # same token ordering (free reshape)
    tok_batch = jnp.arange(T, dtype=jnp.int32) % N
    maskbias = jnp.where(tok_batch[:, None] == tok_batch[None, :],
                         0.0, -1e9).astype(jnp.float32)

    out = pl.pallas_call(
        make_attention_kernel(H, Dh),
        out_shape=jax.ShapeDtypeStruct((T, E), jnp.float32),
        grid=(1,),
        in_specs=[_full_spec((T, E)), _full_spec((T, E)), _full_spec((T, T)),
                  _full_spec((H, E, Dh)), _full_spec((H, E, Dh)), _full_spec((H, E, Dh)),
                  _full_spec((H, 1, Dh)), _full_spec((H, 1, Dh)), _full_spec((H, 1, Dh)),
                  _full_spec((H, Dh, E)), _full_spec((1, E))],
        out_specs=_full_spec((T, E)),
        compiler_params=_COMPILER_PARAMS,
    )(tid, tx, maskbias, att["qW"], att["kW"], att["vW"],
      att["qB"], att["kB"], att["vB"], att["woH"], att["bo"])
    return out.reshape(C, N, E)


# -------------------- classification head --------------------

def _head_kernel(x_ref, w_ref, b_ref, o_ref):
    pooled = jnp.mean(x_ref[...], axis=-1)                   # AdaptiveAvgPool1d(1)+Flatten
    logits = jnp.dot(pooled, w_ref[...],
                     preferred_element_type=jnp.float32) + b_ref[...]
    m = jnp.max(logits, axis=-1, keepdims=True)
    z = logits - m
    lse = jnp.log(jnp.sum(jnp.exp(z), axis=-1, keepdims=True))
    o_ref[...] = z - lse                                     # LogSoftmax(dim=1)


def head(x_ncl, w, b):
    N, C, L = x_ncl.shape
    nc = w.shape[1]
    return pl.pallas_call(
        _head_kernel,
        out_shape=jax.ShapeDtypeStruct((N, nc), jnp.float32),
        grid=(1,),
        in_specs=[_full_spec((N, C, L)), _full_spec((C, nc)), _full_spec((1, nc))],
        out_specs=_full_spec((N, nc)),
        compiler_params=_COMPILER_PARAMS,
    )(x_ncl, w, b.reshape(1, nc))


# -------------------- model glue (plain JAX: reshapes / im2col / params) ----

def conv_out_len(L, K, s, p):
    return (L + 2 * p - K) // s + 1


def residual_block(x, p):
    """x: (Cin, N, L) -> (Cout, N, Lout)."""
    Cin, N, L = x.shape
    out = selfonn_conv(x, p["w1"], p["b1"], K=3, stride=p["s1"], padding=1, act=True)
    if p["attention"]:
        out2 = selfonn_conv(out, p["w2"], p["b2"], K=3, stride=1, padding=1, act=False)
        return attention_block_tail(x, out2, p["att"])
    if p["downsample"]:
        ds_patches = x[:, :, ::2].reshape(Cin, -1)   # 1x1 stride-2 conv as in-kernel matmul
        return selfonn_conv(out, p["w2"], p["b2"], K=3, stride=1, padding=1, act=True,
                            res=("ds", ds_patches, p["wd"]))
    return selfonn_conv(out, p["w2"], p["b2"], K=3, stride=1, padding=1, act=True,
                        res=("add", x.reshape(Cin, N * L)))


def selfres_attentio_net_forward(x_ncl, params):
    x = jnp.transpose(x_ncl, (1, 0, 2))                  # internal (C, N, L) layout
    out = selfonn_conv(x, params["conv1_w"], params["conv1_b"],
                       K=7, stride=2, padding=3, act=True)      # conv_block (+Tanh)
    out = maxpool1d_k3s2p1(out)
    for blk in params["blocks"]:
        out = residual_block(out, blk)
    out = jnp.transpose(out, (1, 0, 2))                  # back to (N, C, L) for the head
    return head(out, params["mlp_w"].T, params["mlp_b"])


def _prep_attention_weights(Wqkv, bqkv, Wo, bo, H):
    """Split nn.MultiheadAttention in/out projections per head, pre-transposed."""
    E = Wo.shape[0]
    Dh = E // H

    def per_head_in(W):    # y = x @ W.T; head h takes output cols [h*Dh:(h+1)*Dh]
        return jnp.transpose(W.T.reshape(E, H, Dh), (1, 0, 2))        # (H, E, Dh)

    def per_head_bias(b):
        return b.reshape(H, 1, Dh)

    return {
        "H": H,
        "qW": per_head_in(Wqkv[:E]), "kW": per_head_in(Wqkv[E:2 * E]),
        "vW": per_head_in(Wqkv[2 * E:]),
        "qB": per_head_bias(bqkv[:E]), "kB": per_head_bias(bqkv[E:2 * E]),
        "vB": per_head_bias(bqkv[2 * E:]),
        "woH": Wo.T.reshape(H, Dh, E),
        "bo": bo.reshape(1, E),
    }


def init_params(key, input_ch, in_ft, class_num, q, L_in):
    keys = iter(jax.random.split(key, 64))

    def nrm(shape, scale=0.1):
        return scale * jax.random.normal(next(keys), shape, dtype=jnp.float32)

    def conv_w(cout, cin, K):
        # PyTorch SelfONN1d 'fast' weight (Cout, q*Cin, K) -> per-power (q, Cout, Cin*K)
        w = nrm((cout, q * cin, K))
        return jnp.stack([w[:, p * cin:(p + 1) * cin, :].reshape(cout, cin * K)
                          for p in range(q)])

    params = {"conv1_w": conv_w(in_ft, input_ch, 7), "conv1_b": nrm((in_ft,))}

    L = conv_out_len(L_in, 7, 2, 3)      # conv1
    L = conv_out_len(L, 3, 2, 1)         # maxpool

    cfg = [  # (cin, cout, stride_1, downsample, attention)
        (in_ft, in_ft, 1, False, False),
        (in_ft, in_ft, 1, False, True),
        (in_ft, 2 * in_ft, 2, True, False),
        (2 * in_ft, 2 * in_ft, 1, False, True),
        (2 * in_ft, 4 * in_ft, 2, True, False),
        (4 * in_ft, 4 * in_ft, 1, False, True),
        (4 * in_ft, 8 * in_ft, 2, True, False),
        (8 * in_ft, 8 * in_ft, 1, False, True),
    ]
    blocks = []
    for cin, cout, s1, ds, att in cfg:
        blk = {"s1": s1, "downsample": ds, "attention": att,
               "w1": conv_w(cout, cin, 3), "b1": nrm((cout,)),
               "w2": conv_w(cout, cout, 3), "b2": nrm((cout,))}
        if ds:
            blk["wd"] = nrm((cout, cin, 1)).reshape(cout, cin)
        L = conv_out_len(L, 3, s1, 1)
        if att:
            # TODO(synk): PyTorch builds a *fresh* randomly-initialized
            # nn.MultiheadAttention inside every forward(); here its weights are
            # created once, deterministically.
            E = L
            blk["att"] = _prep_attention_weights(nrm((3 * E, E)), nrm((3 * E,)),
                                                 nrm((E, E)), nrm((E,)), H=2)
        blocks.append(blk)
    params["blocks"] = blocks
    params["mlp_w"] = nrm((class_num, 8 * in_ft))
    params["mlp_b"] = nrm((class_num,))
    return params


if __name__ == "__main__":
    key = jax.random.PRNGKey(0)
    kx, kp = jax.random.split(key)

    input_ch, in_ft, class_num, q_order = 4, 8, 5, 2
    N, L = 2, 128                 # L chosen so every attention embed_dim stays even
    x = jax.random.normal(kx, (N, input_ch, L), dtype=jnp.float32)

    params = init_params(kp, input_ch, in_ft, class_num, q_order, L)

    fwd = jax.jit(lambda inp: selfres_attentio_net_forward(inp, params))
    out = jax.block_until_ready(fwd(x))

    assert out.shape == (N, class_num), out.shape
    assert bool(jnp.all(jnp.isfinite(out)))
    # rows of LogSoftmax output must exp-sum to 1
    assert bool(jnp.allclose(jnp.sum(jnp.exp(out), axis=1), 1.0, atol=1e-4))
    print("KERNEL_OK")
</pallas_src>

<mosaic_0001>
module attributes {stable_mosaic.version = 11 : i64} {
  func.func @_maxpool_pair_kernel(%arg0: i32, %arg1: memref<8x2x65xf32, #tpu.memory_space<vmem>>, %arg2: memref<8x2x64xf32, #tpu.memory_space<vmem>>) attributes {dimension_semantics = [#tpu.dimension_semantics<arbitrary>], iteration_bounds = array<i64: 1>, scalar_prefetch = 0 : i64, scratch_operands = 0 : i64, tpu.core_type = #tpu.core_type<tc>, window_params = [{pipeline_mode = #tpu.pipeline_mode<synchronous>, transform_indices = @transform_0, window_bounds = array<i64: 8, 2, 65>}, {pipeline_mode = #tpu.pipeline_mode<synchronous>, transform_indices = @transform_1, window_bounds = array<i64: 8, 2, 64>}]} {
    %c0 = arith.constant 0 : index
    %c0_0 = arith.constant 0 : index
    %c0_1 = arith.constant 0 : index
    %0 = vector.load %arg1[%c0, %c0_0, %c0_1] : memref<8x2x65xf32, #tpu.memory_space<vmem>>, vector<8x2x64xf32>
    %c0_2 = arith.constant 0 : index
    %c0_3 = arith.constant 0 : index
    %c1 = arith.constant 1 : index
    %1 = vector.load %arg1[%c0_2, %c0_3, %c1] : memref<8x2x65xf32, #tpu.memory_space<vmem>>, vector<8x2x64xf32>
    %2 = arith.maximumf %0, %1 : vector<8x2x64xf32>
    %c0_4 = arith.constant 0 : index
    %c0_5 = arith.constant 0 : index
    %c0_6 = arith.constant 0 : index
    %3 = vector.load %arg2[%c0_4, %c0_5, %c0_6] : memref<8x2x64xf32, #tpu.memory_space<vmem>>, vector<8x2x64xf32>
    tpu.vector_store %arg2[%c0_4, %c0_5, %c0_6], %2 {strides = array<i32>} : memref<8x2x64xf32, #tpu.memory_space<vmem>>, vector<8x2x64xf32>,
    return
  }
  func.func @transform_0(%arg0: i32) -> (i32, i32, i32) {
    %c0_i32 = arith.constant 0 : i32
    %c0_i32_0 = arith.constant 0 : i32
    %c0_i32_1 = arith.constant 0 : i32
    %c0_i32_2 = arith.constant 0 : i32
    return %c0_i32, %c0_i32_0, %c0_i32_1 : i32, i32, i32
  }
  func.func @transform_1(%arg0: i32) -> (i32, i32, i32) {
    %c0_i32 = arith.constant 0 : i32
    %c0_i32_0 = arith.constant 0 : i32
    %c0_i32_1 = arith.constant 0 : i32
    %c0_i32_2 = arith.constant 0 : i32
    return %c0_i32, %c0_i32_0, %c0_i32_1 : i32, i32, i32
  }
}

module attributes {stable_mosaic.version = 11 : i64} {
  func.func @kernel(%arg0: i32, %arg1: memref<28x128xf32, #tpu.memory_space<vmem>>, %arg2: memref<2x8x28xf32, #tpu.memory_space<vmem>>, %arg3: memref<8x1xf32, #tpu.memory_space<vmem>>, %arg4: memref<8x128xf32, #tpu.memory_space<vmem>>) attributes {dimension_semantics = [#tpu.dimension_semantics<arbitrary>], iteration_bounds = array<i64: 1>, scalar_prefetch = 0 : i64, scratch_operands = 0 : i64, tpu.core_type = #tpu.core_type<tc>, window_params = [{pipeline_mode = #tpu.pipeline_mode<synchronous>, transform_indices = @transform_0, window_bounds = array<i64: 28, 128>}, {pipeline_mode = #tpu.pipeline_mode<synchronous>, transform_indices = @transform_1, window_bounds = array<i64: 2, 8, 28>}, {pipeline_mode = #tpu.pipeline_mode<synchronous>, transform_indices = @transform_2, window_bounds = array<i64: 8, 1>}, {pipeline_mode = #tpu.pipeline_mode<synchronous>, transform_indices = @transform_3, window_bounds = array<i64: 8, 128>}]} {
    %c0 = arith.constant 0 : index
    %c0_0 = arith.constant 0 : index
    %0 = vector.load %arg1[%c0, %c0_0] : memref<28x128xf32, #tpu.memory_space<vmem>>, vector<28x128xf32>
    %c0_1 = arith.constant 0 : index
    %c0_2 = arith.constant 0 : index
    %c0_3 = arith.constant 0 : index
    %1 = vector.load %arg2[%c0_1, %c0_2, %c0_3] : memref<2x8x28xf32, #tpu.memory_space<vmem>>, vector<1x8x28xf32>
    %2 = vector.shape_cast %1 : vector<1x8x28xf32> to vector<8x28xf32>
    %3 = arith.truncf %2 : vector<8x28xf32> to vector<8x28xbf16>
    %4 = arith.truncf %0 : vector<28x128xf32> to vector<28x128xbf16>
    %cst = arith.constant dense<0.000000e+00> : vector<8x128xf32>
    %5 = tpu.matmul %3, %4, %cst {dimension_numbers = #tpu.dot_dimension_numbers<[1], [0], [0], [1], [0, 0, 1, 1], [], []>} : vector<8x28xbf16>, vector<28x128xbf16>, vector<8x128xf32> -> vector<8x128xf32>
    %6 = arith.mulf %0, %0 : vector<28x128xf32>
    %c1 = arith.constant 1 : index
    %c0_4 = arith.constant 0 : index
    %c0_5 = arith.constant 0 : index
    %7 = vector.load %arg2[%c1, %c0_4, %c0_5] : memref<2x8x28xf32, #tpu.memory_space<vmem>>, vector<1x8x28xf32>
    %8 = vector.shape_cast %7 : vector<1x8x28xf32> to vector<8x28xf32>
    %9 = arith.truncf %8 : vector<8x28xf32> to vector<8x28xbf16>
    %10 = arith.truncf %6 : vector<28x128xf32> to vector<28x128xbf16>
    %cst_6 = arith.constant dense<0.000000e+00> : vector<8x128xf32>
    %11 = tpu.matmul %9, %10, %cst_6 {dimension_numbers = #tpu.dot_dimension_numbers<[1], [0], [0], [1], [0, 0, 1, 1], [], []>} : vector<8x28xbf16>, vector<28x128xbf16>, vector<8x128xf32> -> vector<8x128xf32>
    %12 = arith.addf %5, %11 : vector<8x128xf32>
    %c0_7 = arith.constant 0 : index
    %c0_8 = arith.constant 0 : index
    %13 = vector.load %arg3[%c0_7, %c0_8] : memref<8x1xf32, #tpu.memory_space<vmem>>, vector<8x1xf32>
    %14 = vector.broadcast %13 : vector<8x1xf32> to vector<8x128xf32>
    %15 = arith.addf %12, %14 : vector<8x128xf32>
    %16 = math.tanh %15 : vector<8x128xf32>
    %c0_9 = arith.constant 0 : index
    %c0_10 = arith.constant 0 : index
    %17 = vector.load %arg4[%c0_9, %c0_10] : memref<8x128xf32, #tpu.memory_space<vmem>>, vector<8x128xf32>
    tpu.vector_store %arg4[%c0_9, %c0_10], %16 {strides = array<i32>} : memref<8x128xf32, #tpu.memory_space<vmem>>, vector<8x128xf32>,
    return
  }
  func.func @transform_0(%arg0: i32) -> (i32, i32) {
    %c0_i32 = arith.constant 0 : i32
    %c0_i32_0 = arith.constant 0 : i32
    %c0_i32_1 = arith.constant 0 : i32
    return %c0_i32, %c0_i32_0 : i32, i32
  }
  func.func @transform_1(%arg0: i32) -> (i32, i32, i32) {
    %c0_i32 = arith.constant 0 : i32
    %c0_i32_0 = arith.constant 0 : i32
    %c0_i32_1 = arith.constant 0 : i32
    %c0_i32_2 = arith.constant 0 : i32
    return %c0_i32, %c0_i32_0, %c0_i32_1 : i32, i32, i32
  }
  func.func @transform_2(%arg0: i32) -> (i32, i32) {
    %c0_i32 = arith.constant 0 : i32
    %c0_i32_0 = arith.constant 0 : i32
    %c0_i32_1 = arith.constant 0 : i32
    return %c0_i32, %c0_i32_0 : i32, i32
  }
  func.func @transform_3(%arg0: i32) -> (i32, i32) {
    %c0_i32 = arith.constant 0 : i32
    %c0_i32_0 = arith.constant 0 : i32
    %c0_i32_1 = arith.constant 0 : i32
    return %c0_i32, %c0_i32_0 : i32, i32
  }
}

module attributes {stable_mosaic.version = 11 : i64} {
  func.func @kernel(%arg0: i32, %arg1: memref<24x64xf32, #tpu.memory_space<vmem>>, %arg2: memref<2x8x24xf32, #tpu.memory_space<vmem>>, %arg3: memref<8x1xf32, #tpu.memory_space<vmem>>, %arg4: memref<8x64xf32, #tpu.memory_space<vmem>>) attributes {dimension_semantics = [#tpu.dimension_semantics<arbitrary>], iteration_bounds = array<i64: 1>, scalar_prefetch = 0 : i64, scratch_operands = 0 : i64, tpu.core_type = #tpu.core_type<tc>, window_params = [{pipeline_mode = #tpu.pipeline_mode<synchronous>, transform_indices = @transform_0, window_bounds = array<i64: 24, 64>}, {pipeline_mode = #tpu.pipeline_mode<synchronous>, transform_indices = @transform_1, window_bounds = array<i64: 2, 8, 24>}, {pipeline_mode = #tpu.pipeline_mode<synchronous>, transform_indices = @transform_2, window_bounds = array<i64: 8, 1>}, {pipeline_mode = #tpu.pipeline_mode<synchronous>, transform_indices = @transform_3, window_bounds = array<i64: 8, 64>}]} {
    %c0 = arith.constant 0 : index
    %c0_0 = arith.constant 0 : index
    %0 = vector.load %arg1[%c0, %c0_0] : memref<24x64xf32, #tpu.memory_space<vmem>>, vector<24x64xf32>
    %c0_1 = arith.constant 0 : index
    %c0_2 = arith.constant 0 : index
    %c0_3 = arith.constant 0 : index
    %1 = vector.load %arg2[%c0_1, %c0_2, %c0_3] : memref<2x8x24xf32, #tpu.memory_space<vmem>>, vector<1x8x24xf32>
    %2 = vector.shape_cast %1 : vector<1x8x24xf32> to vector<8x24xf32>
    %3 = arith.truncf %2 : vector<8x24xf32> to vector<8x24xbf16>
    %4 = arith.truncf %0 : vector<24x64xf32> to vector<24x64xbf16>
    %cst = arith.constant dense<0.000000e+00> : vector<8x64xf32>
    %5 = tpu.matmul %3, %4, %cst {dimension_numbers = #tpu.dot_dimension_numbers<[1], [0], [0], [1], [0, 0, 1, 1], [], []>} : vector<8x24xbf16>, vector<24x64xbf16>, vector<8x64xf32> -> vector<8x64xf32>
    %6 = arith.mulf %0, %0 : vector<24x64xf32>
    %c1 = arith.constant 1 : index
    %c0_4 = arith.constant 0 : index
    %c0_5 = arith.constant 0 : index
    %7 = vector.load %arg2[%c1, %c0_4, %c0_5] : memref<2x8x24xf32, #tpu.memory_space<vmem>>, vector<1x8x24xf32>
    %8 = vector.shape_cast %7 : vector<1x8x24xf32> to vector<8x24xf32>
    %9 = arith.truncf %8 : vector<8x24xf32> to vector<8x24xbf16>
    %10 = arith.truncf %6 : vector<24x64xf32> to vector<24x64xbf16>
    %cst_6 = arith.constant dense<0.000000e+00> : vector<8x64xf32>
    %11 = tpu.matmul %9, %10, %cst_6 {dimension_numbers = #tpu.dot_dimension_numbers<[1], [0], [0], [1], [0, 0, 1, 1], [], []>} : vector<8x24xbf16>, vector<24x64xbf16>, vector<8x64xf32> -> vector<8x64xf32>
    %12 = arith.addf %5, %11 : vector<8x64xf32>
    %c0_7 = arith.constant 0 : index
    %c0_8 = arith.constant 0 : index
    %13 = vector.load %arg3[%c0_7, %c0_8] : memref<8x1xf32, #tpu.memory_space<vmem>>, vector<8x1xf32>
    %14 = vector.broadcast %13 : vector<8x1xf32> to vector<8x64xf32>
    %15 = arith.addf %12, %14 : vector<8x64xf32>
    %16 = math.tanh %15 : vector<8x64xf32>
    %c0_9 = arith.constant 0 : index
    %c0_10 = arith.constant 0 : index
    %17 = vector.load %arg4[%c0_9, %c0_10] : memref<8x64xf32, #tpu.memory_space<vmem>>, vector<8x64xf32>
    tpu.vector_store %arg4[%c0_9, %c0_10], %16 {strides = array<i32>} : memref<8x64xf32, #tpu.memory_space<vmem>>, vector<8x64xf32>,
    return
  }
  func.func @transform_0(%arg0: i32) -> (i32, i32) {
    %c0_i32 = arith.constant 0 : i32
    %c0_i32_0 = arith.constant 0 : i32
    %c0_i32_1 = arith.constant 0 : i32
    return %c0_i32, %c0_i32_0 : i32, i32
  }
  func.func @transform_1(%arg0: i32) -> (i32, i32, i32) {
    %c0_i32 = arith.constant 0 : i32
    %c0_i32_0 = arith.constant 0 : i32
    %c0_i32_1 = arith.constant 0 : i32
    %c0_i32_2 = arith.constant 0 : i32
    return %c0_i32, %c0_i32_0, %c0_i32_1 : i32, i32, i32
  }
  func.func @transform_2(%arg0: i32) -> (i32, i32) {
    %c0_i32 = arith.constant 0 : i32
    %c0_i32_0 = arith.constant 0 : i32
    %c0_i32_1 = arith.constant 0 : i32
    return %c0_i32, %c0_i32_0 : i32, i32
  }
  func.func @transform_3(%arg0: i32) -> (i32, i32) {
    %c0_i32 = arith.constant 0 : i32
    %c0_i32_0 = arith.constant 0 : i32
    %c0_i32_1 = arith.constant 0 : i32
    return %c0_i32, %c0_i32_0 : i32, i32
  }
}

module attributes {stable_mosaic.version = 11 : i64} {
  func.func @kernel(%arg0: i32, %arg1: memref<24x64xf32, #tpu.memory_space<vmem>>, %arg2: memref<2x8x24xf32, #tpu.memory_space<vmem>>, %arg3: memref<8x1xf32, #tpu.memory_space<vmem>>, %arg4: memref<8x64xf32, #tpu.memory_space<vmem>>, %arg5: memref<8x64xf32, #tpu.memory_space<vmem>>) attributes {dimension_semantics = [#tpu.dimension_semantics<arbitrary>], iteration_bounds = array<i64: 1>, scalar_prefetch = 0 : i64, scratch_operands = 0 : i64, tpu.core_type = #tpu.core_type<tc>, window_params = [{pipeline_mode = #tpu.pipeline_mode<synchronous>, transform_indices = @transform_0, window_bounds = array<i64: 24, 64>}, {pipeline_mode = #tpu.pipeline_mode<synchronous>, transform_indices = @transform_1, window_bounds = array<i64: 2, 8, 24>}, {pipeline_mode = #tpu.pipeline_mode<synchronous>, transform_indices = @transform_2, window_bounds = array<i64: 8, 1>}, {pipeline_mode = #tpu.pipeline_mode<synchronous>, transform_indices = @transform_3, window_bounds = array<i64: 8, 64>}, {pipeline_mode = #tpu.pipeline_mode<synchronous>, transform_indices = @transform_4, window_bounds = array<i64: 8, 64>}]} {
    %c0 = arith.constant 0 : index
    %c0_0 = arith.constant 0 : index
    %0 = vector.load %arg1[%c0, %c0_0] : memref<24x64xf32, #tpu.memory_space<vmem>>, vector<24x64xf32>
    %c0_1 = arith.constant 0 : index
    %c0_2 = arith.constant 0 : index
    %c0_3 = arith.constant 0 : index
    %1 = vector.load %arg2[%c0_1, %c0_2, %c0_3] : memref<2x8x24xf32, #tpu.memory_space<vmem>>, vector<1x8x24xf32>
    %2 = vector.shape_cast %1 : vector<1x8x24xf32> to vector<8x24xf32>
    %3 = arith.truncf %2 : vector<8x24xf32> to vector<8x24xbf16>
    %4 = arith.truncf %0 : vector<24x64xf32> to vector<24x64xbf16>
    %cst = arith.constant dense<0.000000e+00> : vector<8x64xf32>
    %5 = tpu.matmul %3, %4, %cst {dimension_numbers = #tpu.dot_dimension_numbers<[1], [0], [0], [1], [0, 0, 1, 1], [], []>} : vector<8x24xbf16>, vector<24x64xbf16>, vector<8x64xf32> -> vector<8x64xf32>
    %6 = arith.mulf %0, %0 : vector<24x64xf32>
    %c1 = arith.constant 1 : index
    %c0_4 = arith.constant 0 : index
    %c0_5 = arith.constant 0 : index
    %7 = vector.load %arg2[%c1, %c0_4, %c0_5] : memref<2x8x24xf32, #tpu.memory_space<vmem>>, vector<1x8x24xf32>
    %8 = vector.shape_cast %7 : vector<1x8x24xf32> to vector<8x24xf32>
    %9 = arith.truncf %8 : vector<8x24xf32> to vector<8x24xbf16>
    %10 = arith.truncf %6 : vector<24x64xf32> to vector<24x64xbf16>
    %cst_6 = arith.constant dense<0.000000e+00> : vector<8x64xf32>
    %11 = tpu.matmul %9, %10, %cst_6 {dimension_numbers = #tpu.dot_dimension_numbers<[1], [0], [0], [1], [0, 0, 1, 1], [], []>} : vector<8x24xbf16>, vector<24x64xbf16>, vector<8x64xf32> -> vector<8x64xf32>
    %12 = arith.addf %5, %11 : vector<8x64xf32>
    %c0_7 = arith.constant 0 : index
    %c0_8 = arith.constant 0 : index
    %13 = vector.load %arg3[%c0_7, %c0_8] : memref<8x1xf32, #tpu.memory_space<vmem>>, vector<8x1xf32>
    %14 = vector.broadcast %13 : vector<8x1xf32> to vector<8x64xf32>
    %15 = arith.addf %12, %14 : vector<8x64xf32>
    %c0_9 = arith.constant 0 : index
    %c0_10 = arith.constant 0 : index
    %16 = vector.load %arg4[%c0_9, %c0_10] : memref<8x64xf32, #tpu.memory_space<vmem>>, vector<8x64xf32>
    %17 = arith.addf %15, %16 : vector<8x64xf32>
    %18 = math.tanh %17 : vector<8x64xf32>
    %c0_11 = arith.constant 0 : index
    %c0_12 = arith.constant 0 : index
    %19 = vector.load %arg5[%c0_11, %c0_12] : memref<8x64xf32, #tpu.memory_space<vmem>>, vector<8x64xf32>
    tpu.vector_store %arg5[%c0_11, %c0_12], %18 {strides = array<i32>} : memref<8x64xf32, #tpu.memory_space<vmem>>, vector<8x64xf32>,
    return
  }
  func.func @transform_0(%arg0: i32) -> (i32, i32) {
    %c0_i32 = arith.constant 0 : i32
    %c0_i32_0 = arith.constant 0 : i32
    %c0_i32_1 = arith.constant 0 : i32
    return %c0_i32, %c0_i32_0 : i32, i32
  }
  func.func @transform_1(%arg0: i32) -> (i32, i32, i32) {
    %c0_i32 = arith.constant 0 : i32
    %c0_i32_0 = arith.constant 0 : i32
    %c0_i32_1 = arith.constant 0 : i32
    %c0_i32_2 = arith.constant 0 : i32
    return %c0_i32, %c0_i32_0, %c0_i32_1 : i32, i32, i32
  }
  func.func @transform_2(%arg0: i32) -> (i32, i32) {
    %c0_i32 = arith.constant 0 : i32
    %c0_i32_0 = arith.constant 0 : i32
    %c0_i32_1 = arith.constant 0 : i32
    return %c0_i32, %c0_i32_0 : i32, i32
  }
  func.func @transform_3(%arg0: i32) -> (i32, i32) {
    %c0_i32 = arith.constant 0 : i32
    %c0_i32_0 = arith.constant 0 : i32
    %c0_i32_1 = arith.constant 0 : i32
    return %c0_i32, %c0_i32_0 : i32, i32
  }
  func.func @transform_4(%arg0: i32) -> (i32, i32) {
    %c0_i32 = arith.constant 0 : i32
    %c0_i32_0 = arith.constant 0 : i32
    %c0_i32_1 = arith.constant 0 : i32
    return %c0_i32, %c0_i32_0 : i32, i32
  }
}

module attributes {stable_mosaic.version = 11 : i64} {
  func.func @kernel(%arg0: i32, %arg1: memref<24x64xf32, #tpu.memory_space<vmem>>, %arg2: memref<2x8x24xf32, #tpu.memory_space<vmem>>, %arg3: memref<8x1xf32, #tpu.memory_space<vmem>>, %arg4: memref<8x64xf32, #tpu.memory_space<vmem>>) attributes {dimension_semantics = [#tpu.dimension_semantics<arbitrary>], iteration_bounds = array<i64: 1>, scalar_prefetch = 0 : i64, scratch_operands = 0 : i64, tpu.core_type = #tpu.core_type<tc>, window_params = [{pipeline_mode = #tpu.pipeline_mode<synchronous>, transform_indices = @transform_0, window_bounds = array<i64: 24, 64>}, {pipeline_mode = #tpu.pipeline_mode<synchronous>, transform_indices = @transform_1, window_bounds = array<i64: 2, 8, 24>}, {pipeline_mode = #tpu.pipeline_mode<synchronous>, transform_indices = @transform_2, window_bounds = array<i64: 8, 1>}, {pipeline_mode = #tpu.pipeline_mode<synchronous>, transform_indices = @transform_3, window_bounds = array<i64: 8, 64>}]} {
    %c0 = arith.constant 0 : index
    %c0_0 = arith.constant 0 : index
    %0 = vector.load %arg1[%c0, %c0_0] : memref<24x64xf32, #tpu.memory_space<vmem>>, vector<24x64xf32>
    %c0_1 = arith.constant 0 : index
    %c0_2 = arith.constant 0 : index
    %c0_3 = arith.constant 0 : index
    %1 = vector.load %arg2[%c0_1, %c0_2, %c0_3] : memref<2x8x24xf32, #tpu.memory_space<vmem>>, vector<1x8x24xf32>
    %2 = vector.shape_cast %1 : vector<1x8x24xf32> to vector<8x24xf32>
    %3 = arith.truncf %2 : vector<8x24xf32> to vector<8x24xbf16>
    %4 = arith.truncf %0 : vector<24x64xf32> to vector<24x64xbf16>
    %cst = arith.constant dense<0.000000e+00> : vector<8x64xf32>
    %5 = tpu.matmul %3, %4, %cst {dimension_numbers = #tpu.dot_dimension_numbers<[1], [0], [0], [1], [0, 0, 1, 1], [], []>} : vector<8x24xbf16>, vector<24x64xbf16>, vector<8x64xf32> -> vector<8x64xf32>
    %6 = arith.mulf %0, %0 : vector<24x64xf32>
    %c1 = arith.constant 1 : index
    %c0_4 = arith.constant 0 : index
    %c0_5 = arith.constant 0 : index
    %7 = vector.load %arg2[%c1, %c0_4, %c0_5] : memref<2x8x24xf32, #tpu.memory_space<vmem>>, vector<1x8x24xf32>
    %8 = vector.shape_cast %7 : vector<1x8x24xf32> to vector<8x24xf32>
    %9 = arith.truncf %8 : vector<8x24xf32> to vector<8x24xbf16>
    %10 = arith.truncf %6 : vector<24x64xf32> to vector<24x64xbf16>
    %cst_6 = arith.constant dense<0.000000e+00> : vector<8x64xf32>
    %11 = tpu.matmul %9, %10, %cst_6 {dimension_numbers = #tpu.dot_dimension_numbers<[1], [0], [0], [1], [0, 0, 1, 1], [], []>} : vector<8x24xbf16>, vector<24x64xbf16>, vector<8x64xf32> -> vector<8x64xf32>
    %12 = arith.addf %5, %11 : vector<8x64xf32>
    %c0_7 = arith.constant 0 : index
    %c0_8 = arith.constant 0 : index
    %13 = vector.load %arg3[%c0_7, %c0_8] : memref<8x1xf32, #tpu.memory_space<vmem>>, vector<8x1xf32>
    %14 = vector.broadcast %13 : vector<8x1xf32> to vector<8x64xf32>
    %15 = arith.addf %12, %14 : vector<8x64xf32>
    %c0_9 = arith.constant 0 : index
    %c0_10 = arith.constant 0 : index
    %16 = vector.load %arg4[%c0_9, %c0_10] : memref<8x64xf32, #tpu.memory_space<vmem>>, vector<8x64xf32>
    tpu.vector_store %arg4[%c0_9, %c0_10], %15 {strides = array<i32>} : memref<8x64xf32, #tpu.memory_space<vmem>>, vector<8x64xf32>,
    return
  }
  func.func @transform_0(%arg0: i32) -> (i32, i32) {
    %c0_i32 = arith.constant 0 : i32
    %c0_i32_0 = arith.constant 0 : i32
    %c0_i32_1 = arith.constant 0 : i32
    return %c0_i32, %c0_i32_0 : i32, i32
  }
  func.func @transform_1(%arg0: i32) -> (i32, i32, i32) {
    %c0_i32 = arith.constant 0 : i32
    %c0_i32_0 = arith.constant 0 : i32
    %c0_i32_1 = arith.constant 0 : i32
    %c0_i32_2 = arith.constant 0 : i32
    return %c0_i32, %c0_i32_0, %c0_i32_1 : i32, i32, i32
  }
  func.func @transform_2(%arg0: i32) -> (i32, i32) {
    %c0_i32 = arith.constant 0 : i32
    %c0_i32_0 = arith.constant 0 : i32
    %c0_i32_1 = arith.constant 0 : i32
    return %c0_i32, %c0_i32_0 : i32, i32
  }
  func.func @transform_3(%arg0: i32) -> (i32, i32) {
    %c0_i32 = arith.constant 0 : i32
    %c0_i32_0 = arith.constant 0 : i32
    %c0_i32_1 = arith.constant 0 : i32
    return %c0_i32, %c0_i32_0 : i32, i32
  }
}

module attributes {stable_mosaic.version = 11 : i64} {
  func.func @kernel(%arg0: i32, %arg1: memref<16x32xf32, #tpu.memory_space<vmem>>, %arg2: memref<16x32xf32, #tpu.memory_space<vmem>>, %arg3: memref<16x16xf32, #tpu.memory_space<vmem>>, %arg4: memref<2x32x16xf32, #tpu.memory_space<vmem>>, %arg5: memref<2x32x16xf32, #tpu.memory_space<vmem>>, %arg6: memref<2x32x16xf32, #tpu.memory_space<vmem>>, %arg7: memref<2x1x16xf32, #tpu.memory_space<vmem>>, %arg8: memref<2x1x16xf32, #tpu.memory_space<vmem>>, %arg9: memref<2x1x16xf32, #tpu.memory_space<vmem>>, %arg10: memref<2x16x32xf32, #tpu.memory_space<vmem>>, %arg11: memref<1x32xf32, #tpu.memory_space<vmem>>, %arg12: memref<16x32xf32, #tpu.memory_space<vmem>>) attributes {dimension_semantics = [#tpu.dimension_semantics<arbitrary>], iteration_bounds = array<i64: 1>, scalar_prefetch = 0 : i64, scratch_operands = 0 : i64, tpu.core_type = #tpu.core_type<tc>, window_params = [{pipeline_mode = #tpu.pipeline_mode<synchronous>, transform_indices = @transform_0, window_bounds = array<i64: 16, 32>}, {pipeline_mode = #tpu.pipeline_mode<synchronous>, transform_indices = @transform_1, window_bounds = array<i64: 16, 32>}, {pipeline_mode = #tpu.pipeline_mode<synchronous>, transform_indices = @transform_2, window_bounds = array<i64: 16, 16>}, {pipeline_mode = #tpu.pipeline_mode<synchronous>, transform_indices = @transform_3, window_bounds = array<i64: 2, 32, 16>}, {pipeline_mode = #tpu.pipeline_mode<synchronous>, transform_indices = @transform_4, window_bounds = array<i64: 2, 32, 16>}, {pipeline_mode = #tpu.pipeline_mode<synchronous>, transform_indices = @transform_5, window_bounds = array<i64: 2, 32, 16>}, {pipeline_mode = #tpu.pipeline_mode<synchronous>, transform_indices = @transform_6, window_bounds = array<i64: 2, 1, 16>}, {pipeline_mode = #tpu.pipeline_mode<synchronous>, transform_indices = @transform_7, window_bounds = array<i64: 2, 1, 16>}, {pipeline_mode = #tpu.pipeline_mode<synchronous>, transform_indices = @transform_8, window_bounds = array<i64: 2, 1, 16>}, {pipeline_mode = #tpu.pipeline_mode<synchronous>, transform_indices = @transform_9, window_bounds = array<i64: 2, 16, 32>}, {pipeline_mode = #tpu.pipeline_mode<synchronous>, transform_indices = @transform_10, window_bounds = array<i64: 1, 32>}, {pipeline_mode = #tpu.pipeline_mode<synchronous>, transform_indices = @transform_11, window_bounds = array<i64: 16, 32>}]} {
    %c0 = arith.constant 0 : index
    %c0_0 = arith.constant 0 : index
    %0 = vector.load %arg1[%c0, %c0_0] : memref<16x32xf32, #tpu.memory_space<vmem>>, vector<16x32xf32>
    %c0_1 = arith.constant 0 : index
    %c0_2 = arith.constant 0 : index
    %1 = vector.load %arg2[%c0_1, %c0_2] : memref<16x32xf32, #tpu.memory_space<vmem>>, vector<16x32xf32>
    %c0_3 = arith.constant 0 : index
    %c0_4 = arith.constant 0 : index
    %2 = vector.load %arg3[%c0_3, %c0_4] : memref<16x16xf32, #tpu.memory_space<vmem>>, vector<16x16xf32>
    %cst = arith.constant 0.000000e+00 : f32
    %3 = vector.broadcast %cst : f32 to vector<16x32xf32>
    %c0_5 = arith.constant 0 : index
    %c0_6 = arith.constant 0 : index
    %c0_7 = arith.constant 0 : index
    %4 = vector.load %arg4[%c0_5, %c0_6, %c0_7] : memref<2x32x16xf32, #tpu.memory_space<vmem>>, vector<1x32x16xf32>
    %5 = vector.shape_cast %4 : vector<1x32x16xf32> to vector<32x16xf32>
    %6 = arith.truncf %0 : vector<16x32xf32> to vector<16x32xbf16>
    %7 = arith.truncf %5 : vector<32x16xf32> to vector<32x16xbf16>
    %cst_8 = arith.constant dense<0.000000e+00> : vector<16x16xf32>
    %8 = tpu.matmul %6, %7, %cst_8 {dimension_numbers = #tpu.dot_dimension_numbers<[1], [0], [0], [1], [0, 0, 1, 1], [], []>} : vector<16x32xbf16>, vector<32x16xbf16>, vector<16x16xf32> -> vector<16x16xf32>
    %c0_9 = arith.constant 0 : index
    %c0_10 = arith.constant 0 : index
    %c0_11 = arith.constant 0 : index
    %9 = vector.load %arg7[%c0_9, %c0_10, %c0_11] : memref<2x1x16xf32, #tpu.memory_space<vmem>>, vector<1x1x16xf32>
    %10 = vector.shape_cast %9 : vector<1x1x16xf32> to vector<1x16xf32>
    %11 = vector.broadcast %10 : vector<1x16xf32> to vector<16x16xf32>
    %12 = arith.addf %8, %11 : vector<16x16xf32>
    %c0_12 = arith.constant 0 : index
    %c0_13 = arith.constant 0 : index
    %c0_14 = arith.constant 0 : index
    %13 = vector.load %arg5[%c0_12, %c0_13, %c0_14] : memref<2x32x16xf32, #tpu.memory_space<vmem>>, vector<1x32x16xf32>
    %14 = vector.shape_cast %13 : vector<1x32x16xf32> to vector<32x16xf32>
    %15 = arith.truncf %1 : vector<16x32xf32> to vector<16x32xbf16>
    %16 = arith.truncf %14 : vector<32x16xf32> to vector<32x16xbf16>
    %cst_15 = arith.constant dense<0.000000e+00> : vector<16x16xf32>
    %17 = tpu.matmul %15, %16, %cst_15 {dimension_numbers = #tpu.dot_dimension_numbers<[1], [0], [0], [1], [0, 0, 1, 1], [], []>} : vector<16x32xbf16>, vector<32x16xbf16>, vector<16x16xf32> -> vector<16x16xf32>
    %c0_16 = arith.constant 0 : index
    %c0_17 = arith.constant 0 : index
    %c0_18 = arith.constant 0 : index
    %18 = vector.load %arg8[%c0_16, %c0_17, %c0_18] : memref<2x1x16xf32, #tpu.memory_space<vmem>>, vector<1x1x16xf32>
    %19 = vector.shape_cast %18 : vector<1x1x16xf32> to vector<1x16xf32>
    %20 = vector.broadcast %19 : vector<1x16xf32> to vector<16x16xf32>
    %21 = arith.addf %17, %20 : vector<16x16xf32>
    %c0_19 = arith.constant 0 : index
    %c0_20 = arith.constant 0 : index
    %c0_21 = arith.constant 0 : index
    %22 = vector.load %arg6[%c0_19, %c0_20, %c0_21] : memref<2x32x16xf32, #tpu.memory_space<vmem>>, vector<1x32x16xf32>
    %23 = vector.shape_cast %22 : vector<1x32x16xf32> to vector<32x16xf32>
    %24 = arith.truncf %0 : vector<16x32xf32> to vector<16x32xbf16>
    %25 = arith.truncf %23 : vector<32x16xf32> to vector<32x16xbf16>
    %cst_22 = arith.constant dense<0.000000e+00> : vector<16x16xf32>
    %26 = tpu.matmul %24, %25, %cst_22 {dimension_numbers = #tpu.dot_dimension_numbers<[1], [0], [0], [1], [0, 0, 1, 1], [], []>} : vector<16x32xbf16>, vector<32x16xbf16>, vector<16x16xf32> -> vector<16x16xf32>
    %c0_23 = arith.constant 0 : index
    %c0_24 = arith.constant 0 : index
    %c0_25 = arith.constant 0 : index
    %27 = vector.load %arg9[%c0_23, %c0_24, %c0_25] : memref<2x1x16xf32, #tpu.memory_space<vmem>>, vector<1x1x16xf32>
    %28 = vector.shape_cast %27 : vector<1x1x16xf32> to vector<1x16xf32>
    %29 = vector.broadcast %28 : vector<1x16xf32> to vector<16x16xf32>
    %30 = arith.addf %26, %29 : vector<16x16xf32>
    %31 = tpu.transpose %21, [1, 0] : vector<16x16xf32> -> vector<16x16xf32>
    %cst_26 = arith.constant dense<0.000000e+00> : vector<16x16xf32>
    %32 = tpu.matmul %12, %31, %cst_26 {dimension_numbers = #tpu.dot_dimension_numbers<[1], [0], [0], [1], [0, 0, 1, 1], [], []>} : vector<16x16xf32>, vector<16x16xf32>, vector<16x16xf32> -> vector<16x16xf32>
    %cst_27 = arith.constant 2.500000e-01 : f32
    %33 = vector.broadcast %cst_27 : f32 to vector<16x16xf32>
    %34 = arith.mulf %32, %33 : vector<16x16xf32>
    %35 = arith.addf %34, %2 : vector<16x16xf32>
    %cst_28 = arith.constant dense<0xFF800000> : vector<16xf32>
    %36 = vector.multi_reduction <maximumf>, %35, %cst_28 [1] : vector<16x16xf32> to vector<16xf32>
    %37 = vector.shape_cast %36 : vector<16xf32> to vector<16x1xf32>
    %38 = vector.broadcast %37 : vector<16x1xf32> to vector<16x16xf32>
    %39 = arith.subf %35, %38 : vector<16x16xf32>
    %40 = math.exp %39 : vector<16x16xf32>
    %cst_29 = arith.constant dense<0.000000e+00> : vector<16xf32>
    %41 = vector.multi_reduction <add>, %40, %cst_29 [1] : vector<16x16xf32> to vector<16xf32>
    %42 = vector.shape_cast %41 : vector<16xf32> to vector<16x1xf32>
    %43 = tpu.reciprocal %42 {approx = true} : vector<16x1xf32> -> vector<16x1xf32>
    %44 = vector.broadcast %43 : vector<16x1xf32> to vector<16x16xf32>
    %45 = arith.mulf %40, %44 : vector<16x16xf32>
    %46 = arith.truncf %45 : vector<16x16xf32> to vector<16x16xbf16>
    %47 = arith.truncf %30 : vector<16x16xf32> to vector<16x16xbf16>
    %cst_30 = arith.constant dense<0.000000e+00> : vector<16x16xf32>
    %48 = tpu.matmul %46, %47, %cst_30 {dimension_numbers = #tpu.dot_dimension_numbers<[1], [0], [0], [1], [0, 0, 1, 1], [], []>} : vector<16x16xbf16>, vector<16x16xbf16>, vector<16x16xf32> -> vector<16x16xf32>
    %c0_31 = arith.constant 0 : index
    %c0_32 = arith.constant 0 : index
    %c0_33 = arith.constant 0 : index
    %49 = vector.load %arg10[%c0_31, %c0_32, %c0_33] : memref<2x16x32xf32, #tpu.memory_space<vmem>>, vector<1x16x32xf32>
    %50 = vector.shape_cast %49 : vector<1x16x32xf32> to vector<16x32xf32>
    %51 = arith.truncf %48 : vector<16x16xf32> to vector<16x16xbf16>
    %52 = arith.truncf %50 : vector<16x32xf32> to vector<16x32xbf16>
    %cst_34 = arith.constant dense<0.000000e+00> : vector<16x32xf32>
    %53 = tpu.matmul %51, %52, %cst_34 {dimension_numbers = #tpu.dot_dimension_numbers<[1], [0], [0], [1], [0, 0, 1, 1], [], []>} : vector<16x16xbf16>, vector<16x32xbf16>, vector<16x32xf32> -> vector<16x32xf32>
    %54 = arith.addf %3, %53 : vector<16x32xf32>
    %c1 = arith.constant 1 : index
    %c0_35 = arith.constant 0 : index
    %c0_36 = arith.constant 0 : index
    %55 = vector.load %arg4[%c1, %c0_35, %c0_36] : memref<2x32x16xf32, #tpu.memory_space<vmem>>, vector<1x32x16xf32>
    %56 = vector.shape_cast %55 : vector<1x32x16xf32> to vector<32x16xf32>
    %57 = arith.truncf %0 : vector<16x32xf32> to vector<16x32xbf16>
    %58 = arith.truncf %56 : vector<32x16xf32> to vector<32x16xbf16>
    %cst_37 = arith.constant dense<0.000000e+00> : vector<16x16xf32>
    %59 = tpu.matmul %57, %58, %cst_37 {dimension_numbers = #tpu.dot_dimension_numbers<[1], [0], [0], [1], [0, 0, 1, 1], [], []>} : vector<16x32xbf16>, vector<32x16xbf16>, vector<16x16xf32> -> vector<16x16xf32>
    %c1_38 = arith.constant 1 : index
    %c0_39 = arith.constant 0 : index
    %c0_40 = arith.constant 0 : index
    %60 = vector.load %arg7[%c1_38, %c0_39, %c0_40] : memref<2x1x16xf32, #tpu.memory_space<vmem>>, vector<1x1x16xf32>
    %61 = vector.shape_cast %60 : vector<1x1x16xf32> to vector<1x16xf32>
    %62 = vector.broadcast %61 : vector<1x16xf32> to vector<16x16xf32>
    %63 = arith.addf %59, %62 : vector<16x16xf32>
    %c1_41 = arith.constant 1 : index
    %c0_42 = arith.constant 0 : index
    %c0_43 = arith.constant 0 : index
    %64 = vector.load %arg5[%c1_41, %c0_42, %c0_43] : memref<2x32x16xf32, #tpu.memory_space<vmem>>, vector<1x32x16xf32>
    %65 = vector.shape_cast %64 : vector<1x32x16xf32> to vector<32x16xf32>
    %66 = arith.truncf %1 : vector<16x32xf32> to vector<16x32xbf16>
    %67 = arith.truncf %65 : vector<32x16xf32> to vector<32x16xbf16>
    %cst_44 = arith.constant dense<0.000000e+00> : vector<16x16xf32>
    %68 = tpu.matmul %66, %67, %cst_44 {dimension_numbers = #tpu.dot_dimension_numbers<[1], [0], [0], [1], [0, 0, 1, 1], [], []>} : vector<16x32xbf16>, vector<32x16xbf16>, vector<16x16xf32> -> vector<16x16xf32>
    %c1_45 = arith.constant 1 : index
    %c0_46 = arith.constant 0 : index
    %c0_47 = arith.constant 0 : index
    %69 = vector.load %arg8[%c1_45, %c0_46, %c0_47] : memref<2x1x16xf32, #tpu.memory_space<vmem>>, vector<1x1x16xf32>
    %70 = vector.shape_cast %69 : vector<1x1x16xf32> to vector<1x16xf32>
    %71 = vector.broadcast %70 : vector<1x16xf32> to vector<16x16xf32>
    %72 = arith.addf %68, %71 : vector<16x16xf32>
    %c1_48 = arith.constant 1 : index
    %c0_49 = arith.constant 0 : index
    %c0_50 = arith.constant 0 : index
    %73 = vector.load %arg6[%c1_48, %c0_49, %c0_50] : memref<2x32x16xf32, #tpu.memory_space<vmem>>, vector<1x32x16xf32>
    %74 = vector.shape_cast %73 : vector<1x32x16xf32> to vector<32x16xf32>
    %75 = arith.truncf %0 : vector<16x32xf32> to vector<16x32xbf16>
    %76 = arith.truncf %74 : vector<32x16xf32> to vector<32x16xbf16>
    %cst_51 = arith.constant dense<0.000000e+00> : vector<16x16xf32>
    %77 = tpu.matmul %75, %76, %cst_51 {dimension_numbers = #tpu.dot_dimension_numbers<[1], [0], [0], [1], [0, 0, 1, 1], [], []>} : vector<16x32xbf16>, vector<32x16xbf16>, vector<16x16xf32> -> vector<16x16xf32>
    %c1_52 = arith.constant 1 : index
    %c0_53 = arith.constant 0 : index
    %c0_54 = arith.constant 0 : index
    %78 = vector.load %arg9[%c1_52, %c0_53, %c0_54] : memref<2x1x16xf32, #tpu.memory_space<vmem>>, vector<1x1x16xf32>
    %79 = vector.shape_cast %78 : vector<1x1x16xf32> to vector<1x16xf32>
    %80 = vector.broadcast %79 : vector<1x16xf32> to vector<16x16xf32>
    %81 = arith.addf %77, %80 : vector<16x16xf32>
    %82 = tpu.transpose %72, [1, 0] : vector<16x16xf32> -> vector<16x16xf32>
    %cst_55 = arith.constant dense<0.000000e+00> : vector<16x16xf32>
    %83 = tpu.matmul %63, %82, %cst_55 {dimension_numbers = #tpu.dot_dimension_numbers<[1], [0], [0], [1], [0, 0, 1, 1], [], []>} : vector<16x16xf32>, vector<16x16xf32>, vector<16x16xf32> -> vector<16x16xf32>
    %cst_56 = arith.constant 2.500000e-01 : f32
    %84 = vector.broadcast %cst_56 : f32 to vector<16x16xf32>
    %85 = arith.mulf %83, %84 : vector<16x16xf32>
    %86 = arith.addf %85, %2 : vector<16x16xf32>
    %cst_57 = arith.constant dense<0xFF800000> : vector<16xf32>
    %87 = vector.multi_reduction <maximumf>, %86, %cst_57 [1] : vector<16x16xf32> to vector<16xf32>
    %88 = vector.shape_cast %87 : vector<16xf32> to vector<16x1xf32>
    %89 = vector.broadcast %88 : vector<16x1xf32> to vector<16x16xf32>
    %90 = arith.subf %86, %89 : vector<16x16xf32>
    %91 = math.exp %90 : vector<16x16xf32>
    %cst_58 = arith.constant dense<0.000000e+00> : vector<16xf32>
    %92 = vector.multi_reduction <add>, %91, %cst_58 [1] : vector<16x16xf32> to vector<16xf32>
    %93 = vector.shape_cast %92 : vector<16xf32> to vector<16x1xf32>
    %94 = tpu.reciprocal %93 {approx = true} : vector<16x1xf32> -> vector<16x1xf32>
    %95 = vector.broadcast %94 : vector<16x1xf32> to vector<16x16xf32>
    %96 = arith.mulf %91, %95 : vector<16x16xf32>
    %97 = arith.truncf %96 : vector<16x16xf32> to vector<16x16xbf16>
    %98 = arith.truncf %81 : vector<16x16xf32> to vector<16x16xbf16>
    %cst_59 = arith.constant dense<0.000000e+00> : vector<16x16xf32>
    %99 = tpu.matmul %97, %98, %cst_59 {dimension_numbers = #tpu.dot_dimension_numbers<[1], [0], [0], [1], [0, 0, 1, 1], [], []>} : vector<16x16xbf16>, vector<16x16xbf16>, vector<16x16xf32> -> vector<16x16xf32>
    %c1_60 = arith.constant 1 : index
    %c0_61 = arith.constant 0 : index
    %c0_62 = arith.constant 0 : index
    %100 = vector.load %arg10[%c1_60, %c0_61, %c0_62] : memref<2x16x32xf32, #tpu.memory_space<vmem>>, vector<1x16x32xf32>
    %101 = vector.shape_cast %100 : vector<1x16x32xf32> to vector<16x32xf32>
    %102 = arith.truncf %99 : vector<16x16xf32> to vector<16x16xbf16>
    %103 = arith.truncf %101 : vector<16x32xf32> to vector<16x32xbf16>
    %cst_63 = arith.constant dense<0.000000e+00> : vector<16x32xf32>
    %104 = tpu.matmul %102, %103, %cst_63 {dimension_numbers = #tpu.dot_dimension_numbers<[1], [0], [0], [1], [0, 0, 1, 1], [], []>} : vector<16x16xbf16>, vector<16x32xbf16>, vector<16x32xf32> -> vector<16x32xf32>
    %105 = arith.addf %54, %104 : vector<16x32xf32>
    %106 = arith.addf %1, %105 : vector<16x32xf32>
    %c0_64 = arith.constant 0 : index
    %c0_65 = arith.constant 0 : index
    %107 = vector.load %arg11[%c0_64, %c0_65] : memref<1x32xf32, #tpu.memory_space<vmem>>, vector<1x32xf32>
    %108 = vector.broadcast %107 : vector<1x32xf32> to vector<16x32xf32>
    %109 = arith.addf %106, %108 : vector<16x32xf32>
    %110 = math.tanh %109 : vector<16x32xf32>
    %c0_66 = arith.constant 0 : index
    %c0_67 = arith.constant 0 : index
    %111 = vector.load %arg12[%c0_66, %c0_67] : memref<16x32xf32, #tpu.memory_space<vmem>>, vector<16x32xf32>
    tpu.vector_store %arg12[%c0_66, %c0_67], %110 {strides = array<i32>} : memref<16x32xf32, #tpu.memory_space<vmem>>, vector<16x32xf32>,
    return
  }
  func.func @transform_0(%arg0: i32) -> (i32, i32) {
    %c0_i32 = arith.constant 0 : i32
    %c0_i32_0 = arith.constant 0 : i32
    %c0_i32_1 = arith.constant 0 : i32
    return %c0_i32, %c0_i32_0 : i32, i32
  }
  func.func @transform_1(%arg0: i32) -> (i32, i32) {
    %c0_i32 = arith.constant 0 : i32
    %c0_i32_0 = arith.constant 0 : i32
    %c0_i32_1 = arith.constant 0 : i32
    return %c0_i32, %c0_i32_0 : i32, i32
  }
  func.func @transform_2(%arg0: i32) -> (i32, i32) {
    %c0_i32 = arith.constant 0 : i32
    %c0_i32_0 = arith.constant 0 : i32
    %c0_i32_1 = arith.constant 0 : i32
    return %c0_i32, %c0_i32_0 : i32, i32
  }
  func.func @transform_3(%arg0: i32) -> (i32, i32, i32) {
    %c0_i32 = arith.constant 0 : i32
    %c0_i32_0 = arith.constant 0 : i32
    %c0_i32_1 = arith.constant 0 : i32
    %c0_i32_2 = arith.constant 0 : i32
    return %c0_i32, %c0_i32_0, %c0_i32_1 : i32, i32, i32
  }
  func.func @transform_4(%arg0: i32) -> (i32, i32, i32) {
    %c0_i32 = arith.constant 0 : i32
    %c0_i32_0 = arith.constant 0 : i32
    %c0_i32_1 = arith.constant 0 : i32
    %c0_i32_2 = arith.constant 0 : i32
    return %c0_i32, %c0_i32_0, %c0_i32_1 : i32, i32, i32
  }
  func.func @transform_5(%arg0: i32) -> (i32, i32, i32) {
    %c0_i32 = arith.constant 0 : i32
    %c0_i32_0 = arith.constant 0 : i32
    %c0_i32_1 = arith.constant 0 : i32
    %c0_i32_2 = arith.constant 0 : i32
    return %c0_i32, %c0_i32_0, %c0_i32_1 : i32, i32, i32
  }
  func.func @transform_6(%arg0: i32) -> (i32, i32, i32) {
    %c0_i32 = arith.constant 0 : i32
    %c0_i32_0 = arith.constant 0 : i32
    %c0_i32_1 = arith.constant 0 : i32
    %c0_i32_2 = arith.constant 0 : i32
    return %c0_i32, %c0_i32_0, %c0_i32_1 : i32, i32, i32
  }
  func.func @transform_7(%arg0: i32) -> (i32, i32, i32) {
    %c0_i32 = arith.constant 0 : i32
    %c0_i32_0 = arith.constant 0 : i32
    %c0_i32_1 = arith.constant 0 : i32
    %c0_i32_2 = arith.constant 0 : i32
    return %c0_i32, %c0_i32_0, %c0_i32_1 : i32, i32, i32
  }
  func.func @transform_8(%arg0: i32) -> (i32, i32, i32) {
    %c0_i32 = arith.constant 0 : i32
    %c0_i32_0 = arith.constant 0 : i32
    %c0_i32_1 = arith.constant 0 : i32
    %c0_i32_2 = arith.constant 0 : i32
    return %c0_i32, %c0_i32_0, %c0_i32_1 : i32, i32, i32
  }
  func.func @transform_9(%arg0: i32) -> (i32, i32, i32) {
    %c0_i32 = arith.constant 0 : i32
    %c0_i32_0 = arith.constant 0 : i32
    %c0_i32_1 = arith.constant 0 : i32
    %c0_i32_2 = arith.constant 0 : i32
    return %c0_i32, %c0_i32_0, %c0_i32_1 : i32, i32, i32
  }
  func.func @transform_10(%arg0: i32) -> (i32, i32) {
    %c0_i32 = arith.constant 0 : i32
    %c0_i32_0 = arith.constant 0 : i32
    %c0_i32_1 = arith.constant 0 : i32
    return %c0_i32, %c0_i32_0 : i32, i32
  }
  func.func @transform_11(%arg0: i32) -> (i32, i32) {
    %c0_i32 = arith.constant 0 : i32
    %c0_i32_0 = arith.constant 0 : i32
    %c0_i32_1 = arith.constant 0 : i32
    return %c0_i32, %c0_i32_0 : i32, i32
  }
}

module attributes {stable_mosaic.version = 11 : i64} {
  func.func @kernel(%arg0: i32, %arg1: memref<24x32xf32, #tpu.memory_space<vmem>>, %arg2: memref<2x16x24xf32, #tpu.memory_space<vmem>>, %arg3: memref<16x1xf32, #tpu.memory_space<vmem>>, %arg4: memref<16x32xf32, #tpu.memory_space<vmem>>) attributes {dimension_semantics = [#tpu.dimension_semantics<arbitrary>], iteration_bounds = array<i64: 1>, scalar_prefetch = 0 : i64, scratch_operands = 0 : i64, tpu.core_type = #tpu.core_type<tc>, window_params = [{pipeline_mode = #tpu.pipeline_mode<synchronous>, transform_indices = @transform_0, window_bounds = array<i64: 24, 32>}, {pipeline_mode = #tpu.pipeline_mode<synchronous>, transform_indices = @transform_1, window_bounds = array<i64: 2, 16, 24>}, {pipeline_mode = #tpu.pipeline_mode<synchronous>, transform_indices = @transform_2, window_bounds = array<i64: 16, 1>}, {pipeline_mode = #tpu.pipeline_mode<synchronous>, transform_indices = @transform_3, window_bounds = array<i64: 16, 32>}]} {
    %c0 = arith.constant 0 : index
    %c0_0 = arith.constant 0 : index
    %0 = vector.load %arg1[%c0, %c0_0] : memref<24x32xf32, #tpu.memory_space<vmem>>, vector<24x32xf32>
    %c0_1 = arith.constant 0 : index
    %c0_2 = arith.constant 0 : index
    %c0_3 = arith.constant 0 : index
    %1 = vector.load %arg2[%c0_1, %c0_2, %c0_3] : memref<2x16x24xf32, #tpu.memory_space<vmem>>, vector<1x16x24xf32>
    %2 = vector.shape_cast %1 : vector<1x16x24xf32> to vector<16x24xf32>
    %3 = arith.truncf %2 : vector<16x24xf32> to vector<16x24xbf16>
    %4 = arith.truncf %0 : vector<24x32xf32> to vector<24x32xbf16>
    %cst = arith.constant dense<0.000000e+00> : vector<16x32xf32>
    %5 = tpu.matmul %3, %4, %cst {dimension_numbers = #tpu.dot_dimension_numbers<[1], [0], [0], [1], [0, 0, 1, 1], [], []>} : vector<16x24xbf16>, vector<24x32xbf16>, vector<16x32xf32> -> vector<16x32xf32>
    %6 = arith.mulf %0, %0 : vector<24x32xf32>
    %c1 = arith.constant 1 : index
    %c0_4 = arith.constant 0 : index
    %c0_5 = arith.constant 0 : index
    %7 = vector.load %arg2[%c1, %c0_4, %c0_5] : memref<2x16x24xf32, #tpu.memory_space<vmem>>, vector<1x16x24xf32>
    %8 = vector.shape_cast %7 : vector<1x16x24xf32> to vector<16x24xf32>
    %9 = arith.truncf %8 : vector<16x24xf32> to vector<16x24xbf16>
    %10 = arith.truncf %6 : vector<24x32xf32> to vector<24x32xbf16>
    %cst_6 = arith.constant dense<0.000000e+00> : vector<16x32xf32>
    %11 = tpu.matmul %9, %10, %cst_6 {dimension_numbers = #tpu.dot_dimension_numbers<[1], [0], [0], [1], [0, 0, 1, 1], [], []>} : vector<16x24xbf16>, vector<24x32xbf16>, vector<16x32xf32> -> vector<16x32xf32>
    %12 = arith.addf %5, %11 : vector<16x32xf32>
    %c0_7 = arith.constant 0 : index
    %c0_8 = arith.constant 0 : index
    %13 = vector.load %arg3[%c0_7, %c0_8] : memref<16x1xf32, #tpu.memory_space<vmem>>, vector<16x1xf32>
    %14 = vector.broadcast %13 : vector<16x1xf32> to vector<16x32xf32>
    %15 = arith.addf %12, %14 : vector<16x32xf32>
    %16 = math.tanh %15 : vector<16x32xf32>
    %c0_9 = arith.constant 0 : index
    %c0_10 = arith.constant 0 : index
    %17 = vector.load %arg4[%c0_9, %c0_10] : memref<16x32xf32, #tpu.memory_space<vmem>>, vector<16x32xf32>
    tpu.vector_store %arg4[%c0_9, %c0_10], %16 {strides = array<i32>} : memref<16x32xf32, #tpu.memory_space<vmem>>, vector<16x32xf32>,
    return
  }
  func.func @transform_0(%arg0: i32) -> (i32, i32) {
    %c0_i32 = arith.constant 0 : i32
    %c0_i32_0 = arith.constant 0 : i32
    %c0_i32_1 = arith.constant 0 : i32
    return %c0_i32, %c0_i32_0 : i32, i32
  }
  func.func @transform_1(%arg0: i32) -> (i32, i32, i32) {
    %c0_i32 = arith.constant 0 : i32
    %c0_i32_0 = arith.constant 0 : i32
    %c0_i32_1 = arith.constant 0 : i32
    %c0_i32_2 = arith.constant 0 : i32
    return %c0_i32, %c0_i32_0, %c0_i32_1 : i32, i32, i32
  }
  func.func @transform_2(%arg0: i32) -> (i32, i32) {
    %c0_i32 = arith.constant 0 : i32
    %c0_i32_0 = arith.constant 0 : i32
    %c0_i32_1 = arith.constant 0 : i32
    return %c0_i32, %c0_i32_0 : i32, i32
  }
  func.func @transform_3(%arg0: i32) -> (i32, i32) {
    %c0_i32 = arith.constant 0 : i32
    %c0_i32_0 = arith.constant 0 : i32
    %c0_i32_1 = arith.constant 0 : i32
    return %c0_i32, %c0_i32_0 : i32, i32
  }
}

module attributes {stable_mosaic.version = 11 : i64} {
  func.func @kernel(%arg0: i32, %arg1: memref<48x32xf32, #tpu.memory_space<vmem>>, %arg2: memref<2x16x48xf32, #tpu.memory_space<vmem>>, %arg3: memref<16x1xf32, #tpu.memory_space<vmem>>, %arg4: memref<16x32xf32, #tpu.memory_space<vmem>>) attributes {dimension_semantics = [#tpu.dimension_semantics<arbitrary>], iteration_bounds = array<i64: 1>, scalar_prefetch = 0 : i64, scratch_operands = 0 : i64, tpu.core_type = #tpu.core_type<tc>, window_params = [{pipeline_mode = #tpu.pipeline_mode<synchronous>, transform_indices = @transform_0, window_bounds = array<i64: 48, 32>}, {pipeline_mode = #tpu.pipeline_mode<synchronous>, transform_indices = @transform_1, window_bounds = array<i64: 2, 16, 48>}, {pipeline_mode = #tpu.pipeline_mode<synchronous>, transform_indices = @transform_2, window_bounds = array<i64: 16, 1>}, {pipeline_mode = #tpu.pipeline_mode<synchronous>, transform_indices = @transform_3, window_bounds = array<i64: 16, 32>}]} {
    %c0 = arith.constant 0 : index
    %c0_0 = arith.constant 0 : index
    %0 = vector.load %arg1[%c0, %c0_0] : memref<48x32xf32, #tpu.memory_space<vmem>>, vector<48x32xf32>
    %c0_1 = arith.constant 0 : index
    %c0_2 = arith.constant 0 : index
    %c0_3 = arith.constant 0 : index
    %1 = vector.load %arg2[%c0_1, %c0_2, %c0_3] : memref<2x16x48xf32, #tpu.memory_space<vmem>>, vector<1x16x48xf32>
    %2 = vector.shape_cast %1 : vector<1x16x48xf32> to vector<16x48xf32>
    %3 = arith.truncf %2 : vector<16x48xf32> to vector<16x48xbf16>
    %4 = arith.truncf %0 : vector<48x32xf32> to vector<48x32xbf16>
    %cst = arith.constant dense<0.000000e+00> : vector<16x32xf32>
    %5 = tpu.matmul %3, %4, %cst {dimension_numbers = #tpu.dot_dimension_numbers<[1], [0], [0], [1], [0, 0, 1, 1], [], []>} : vector<16x48xbf16>, vector<48x32xbf16>, vector<16x32xf32> -> vector<16x32xf32>
    %6 = arith.mulf %0, %0 : vector<48x32xf32>
    %c1 = arith.constant 1 : index
    %c0_4 = arith.constant 0 : index
    %c0_5 = arith.constant 0 : index
    %7 = vector.load %arg2[%c1, %c0_4, %c0_5] : memref<2x16x48xf32, #tpu.memory_space<vmem>>, vector<1x16x48xf32>
    %8 = vector.shape_cast %7 : vector<1x16x48xf32> to vector<16x48xf32>
    %9 = arith.truncf %8 : vector<16x48xf32> to vector<16x48xbf16>
    %10 = arith.truncf %6 : vector<48x32xf32> to vector<48x32xbf16>
    %cst_6 = arith.constant dense<0.000000e+00> : vector<16x32xf32>
    %11 = tpu.matmul %9, %10, %cst_6 {dimension_numbers = #tpu.dot_dimension_numbers<[1], [0], [0], [1], [0, 0, 1, 1], [], []>} : vector<16x48xbf16>, vector<48x32xbf16>, vector<16x32xf32> -> vector<16x32xf32>
    %12 = arith.addf %5, %11 : vector<16x32xf32>
    %c0_7 = arith.constant 0 : index
    %c0_8 = arith.constant 0 : index
    %13 = vector.load %arg3[%c0_7, %c0_8] : memref<16x1xf32, #tpu.memory_space<vmem>>, vector<16x1xf32>
    %14 = vector.broadcast %13 : vector<16x1xf32> to vector<16x32xf32>
    %15 = arith.addf %12, %14 : vector<16x32xf32>
    %16 = math.tanh %15 : vector<16x32xf32>
    %c0_9 = arith.constant 0 : index
    %c0_10 = arith.constant 0 : index
    %17 = vector.load %arg4[%c0_9, %c0_10] : memref<16x32xf32, #tpu.memory_space<vmem>>, vector<16x32xf32>
    tpu.vector_store %arg4[%c0_9, %c0_10], %16 {strides = array<i32>} : memref<16x32xf32, #tpu.memory_space<vmem>>, vector<16x32xf32>,
    return
  }
  func.func @transform_0(%arg0: i32) -> (i32, i32) {
    %c0_i32 = arith.constant 0 : i32
    %c0_i32_0 = arith.constant 0 : i32
    %c0_i32_1 = arith.constant 0 : i32
    return %c0_i32, %c0_i32_0 : i32, i32
  }
  func.func @transform_1(%arg0: i32) -> (i32, i32, i32) {
    %c0_i32 = arith.constant 0 : i32
    %c0_i32_0 = arith.constant 0 : i32
    %c0_i32_1 = arith.constant 0 : i32
    %c0_i32_2 = arith.constant 0 : i32
    return %c0_i32, %c0_i32_0, %c0_i32_1 : i32, i32, i32
  }
  func.func @transform_2(%arg0: i32) -> (i32, i32) {
    %c0_i32 = arith.constant 0 : i32
    %c0_i32_0 = arith.constant 0 : i32
    %c0_i32_1 = arith.constant 0 : i32
    return %c0_i32, %c0_i32_0 : i32, i32
  }
  func.func @transform_3(%arg0: i32) -> (i32, i32) {
    %c0_i32 = arith.constant 0 : i32
    %c0_i32_0 = arith.constant 0 : i32
    %c0_i32_1 = arith.constant 0 : i32
    return %c0_i32, %c0_i32_0 : i32, i32
  }
}

module attributes {stable_mosaic.version = 11 : i64} {
  func.func @kernel(%arg0: i32, %arg1: memref<48x32xf32, #tpu.memory_space<vmem>>, %arg2: memref<2x16x48xf32, #tpu.memory_space<vmem>>, %arg3: memref<16x1xf32, #tpu.memory_space<vmem>>, %arg4: memref<8x32xf32, #tpu.memory_space<vmem>>, %arg5: memref<16x8xf32, #tpu.memory_space<vmem>>, %arg6: memref<16x32xf32, #tpu.memory_space<vmem>>) attributes {dimension_semantics = [#tpu.dimension_semantics<arbitrary>], iteration_bounds = array<i64: 1>, scalar_prefetch = 0 : i64, scratch_operands = 0 : i64, tpu.core_type = #tpu.core_type<tc>, window_params = [{pipeline_mode = #tpu.pipeline_mode<synchronous>, transform_indices = @transform_0, window_bounds = array<i64: 48, 32>}, {pipeline_mode = #tpu.pipeline_mode<synchronous>, transform_indices = @transform_1, window_bounds = array<i64: 2, 16, 48>}, {pipeline_mode = #tpu.pipeline_mode<synchronous>, transform_indices = @transform_2, window_bounds = array<i64: 16, 1>}, {pipeline_mode = #tpu.pipeline_mode<synchronous>, transform_indices = @transform_3, window_bounds = array<i64: 8, 32>}, {pipeline_mode = #tpu.pipeline_mode<synchronous>, transform_indices = @transform_4, window_bounds = array<i64: 16, 8>}, {pipeline_mode = #tpu.pipeline_mode<synchronous>, transform_indices = @transform_5, window_bounds = array<i64: 16, 32>}]} {
    %c0 = arith.constant 0 : index
    %c0_0 = arith.constant 0 : index
    %0 = vector.load %arg1[%c0, %c0_0] : memref<48x32xf32, #tpu.memory_space<vmem>>, vector<48x32xf32>
    %c0_1 = arith.constant 0 : index
    %c0_2 = arith.constant 0 : index
    %c0_3 = arith.constant 0 : index
    %1 = vector.load %arg2[%c0_1, %c0_2, %c0_3] : memref<2x16x48xf32, #tpu.memory_space<vmem>>, vector<1x16x48xf32>
    %2 = vector.shape_cast %1 : vector<1x16x48xf32> to vector<16x48xf32>
    %3 = arith.truncf %2 : vector<16x48xf32> to vector<16x48xbf16>
    %4 = arith.truncf %0 : vector<48x32xf32> to vector<48x32xbf16>
    %cst = arith.constant dense<0.000000e+00> : vector<16x32xf32>
    %5 = tpu.matmul %3, %4, %cst {dimension_numbers = #tpu.dot_dimension_numbers<[1], [0], [0], [1], [0, 0, 1, 1], [], []>} : vector<16x48xbf16>, vector<48x32xbf16>, vector<16x32xf32> -> vector<16x32xf32>
    %6 = arith.mulf %0, %0 : vector<48x32xf32>
    %c1 = arith.constant 1 : index
    %c0_4 = arith.constant 0 : index
    %c0_5 = arith.constant 0 : index
    %7 = vector.load %arg2[%c1, %c0_4, %c0_5] : memref<2x16x48xf32, #tpu.memory_space<vmem>>, vector<1x16x48xf32>
    %8 = vector.shape_cast %7 : vector<1x16x48xf32> to vector<16x48xf32>
    %9 = arith.truncf %8 : vector<16x48xf32> to vector<16x48xbf16>
    %10 = arith.truncf %6 : vector<48x32xf32> to vector<48x32xbf16>
    %cst_6 = arith.constant dense<0.000000e+00> : vector<16x32xf32>
    %11 = tpu.matmul %9, %10, %cst_6 {dimension_numbers = #tpu.dot_dimension_numbers<[1], [0], [0], [1], [0, 0, 1, 1], [], []>} : vector<16x48xbf16>, vector<48x32xbf16>, vector<16x32xf32> -> vector<16x32xf32>
    %12 = arith.addf %5, %11 : vector<16x32xf32>
    %c0_7 = arith.constant 0 : index
    %c0_8 = arith.constant 0 : index
    %13 = vector.load %arg3[%c0_7, %c0_8] : memref<16x1xf32, #tpu.memory_space<vmem>>, vector<16x1xf32>
    %14 = vector.broadcast %13 : vector<16x1xf32> to vector<16x32xf32>
    %15 = arith.addf %12, %14 : vector<16x32xf32>
    %c0_9 = arith.constant 0 : index
    %c0_10 = arith.constant 0 : index
    %16 = vector.load %arg5[%c0_9, %c0_10] : memref<16x8xf32, #tpu.memory_space<vmem>>, vector<16x8xf32>
    %c0_11 = arith.constant 0 : index
    %c0_12 = arith.constant 0 : index
    %17 = vector.load %arg4[%c0_11, %c0_12] : memref<8x32xf32, #tpu.memory_space<vmem>>, vector<8x32xf32>
    %18 = arith.truncf %16 : vector<16x8xf32> to vector<16x8xbf16>
    %19 = arith.truncf %17 : vector<8x32xf32> to vector<8x32xbf16>
    %cst_13 = arith.constant dense<0.000000e+00> : vector<16x32xf32>
    %20 = tpu.matmul %18, %19, %cst_13 {dimension_numbers = #tpu.dot_dimension_numbers<[1], [0], [0], [1], [0, 0, 1, 1], [], []>} : vector<16x8xbf16>, vector<8x32xbf16>, vector<16x32xf32> -> vector<16x32xf32>
    %21 = arith.addf %15, %20 : vector<16x32xf32>
    %22 = math.tanh %21 : vector<16x32xf32>
    %c0_14 = arith.constant 0 : index
    %c0_15 = arith.constant 0 : index
    %23 = vector.load %arg6[%c0_14, %c0_15] : memref<16x32xf32, #tpu.memory_space<vmem>>, vector<16x32xf32>
    tpu.vector_store %arg6[%c0_14, %c0_15], %22 {strides = array<i32>} : memref<16x32xf32, #tpu.memory_space<vmem>>, vector<16x32xf32>,
    return
  }
  func.func @transform_0(%arg0: i32) -> (i32, i32) {
    %c0_i32 = arith.constant 0 : i32
    %c0_i32_0 = arith.constant 0 : i32
    %c0_i32_1 = arith.constant 0 : i32
    return %c0_i32, %c0_i32_0 : i32, i32
  }
  func.func @transform_1(%arg0: i32) -> (i32, i32, i32) {
    %c0_i32 = arith.constant 0 : i32
    %c0_i32_0 = arith.constant 0 : i32
    %c0_i32_1 = arith.constant 0 : i32
    %c0_i32_2 = arith.constant 0 : i32
    return %c0_i32, %c0_i32_0, %c0_i32_1 : i32, i32, i32
  }
  func.func @transform_2(%arg0: i32) -> (i32, i32) {
    %c0_i32 = arith.constant 0 : i32
    %c0_i32_0 = arith.constant 0 : i32
    %c0_i32_1 = arith.constant 0 : i32
    return %c0_i32, %c0_i32_0 : i32, i32
  }
  func.func @transform_3(%arg0: i32) -> (i32, i32) {
    %c0_i32 = arith.constant 0 : i32
    %c0_i32_0 = arith.constant 0 : i32
    %c0_i32_1 = arith.constant 0 : i32
    return %c0_i32, %c0_i32_0 : i32, i32
  }
  func.func @transform_4(%arg0: i32) -> (i32, i32) {
    %c0_i32 = arith.constant 0 : i32
    %c0_i32_0 = arith.constant 0 : i32
    %c0_i32_1 = arith.constant 0 : i32
    return %c0_i32, %c0_i32_0 : i32, i32
  }
  func.func @transform_5(%arg0: i32) -> (i32, i32) {
    %c0_i32 = arith.constant 0 : i32
    %c0_i32_0 = arith.constant 0 : i32
    %c0_i32_1 = arith.constant 0 : i32
    return %c0_i32, %c0_i32_0 : i32, i32
  }
}

module attributes {stable_mosaic.version = 11 : i64} {
  func.func @kernel(%arg0: i32, %arg1: memref<48x32xf32, #tpu.memory_space<vmem>>, %arg2: memref<2x16x48xf32, #tpu.memory_space<vmem>>, %arg3: memref<16x1xf32, #tpu.memory_space<vmem>>, %arg4: memref<16x32xf32, #tpu.memory_space<vmem>>) attributes {dimension_semantics = [#tpu.dimension_semantics<arbitrary>], iteration_bounds = array<i64: 1>, scalar_prefetch = 0 : i64, scratch_operands = 0 : i64, tpu.core_type = #tpu.core_type<tc>, window_params = [{pipeline_mode = #tpu.pipeline_mode<synchronous>, transform_indices = @transform_0, window_bounds = array<i64: 48, 32>}, {pipeline_mode = #tpu.pipeline_mode<synchronous>, transform_indices = @transform_1, window_bounds = array<i64: 2, 16, 48>}, {pipeline_mode = #tpu.pipeline_mode<synchronous>, transform_indices = @transform_2, window_bounds = array<i64: 16, 1>}, {pipeline_mode = #tpu.pipeline_mode<synchronous>, transform_indices = @transform_3, window_bounds = array<i64: 16, 32>}]} {
    %c0 = arith.constant 0 : index
    %c0_0 = arith.constant 0 : index
    %0 = vector.load %arg1[%c0, %c0_0] : memref<48x32xf32, #tpu.memory_space<vmem>>, vector<48x32xf32>
    %c0_1 = arith.constant 0 : index
    %c0_2 = arith.constant 0 : index
    %c0_3 = arith.constant 0 : index
    %1 = vector.load %arg2[%c0_1, %c0_2, %c0_3] : memref<2x16x48xf32, #tpu.memory_space<vmem>>, vector<1x16x48xf32>
    %2 = vector.shape_cast %1 : vector<1x16x48xf32> to vector<16x48xf32>
    %3 = arith.truncf %2 : vector<16x48xf32> to vector<16x48xbf16>
    %4 = arith.truncf %0 : vector<48x32xf32> to vector<48x32xbf16>
    %cst = arith.constant dense<0.000000e+00> : vector<16x32xf32>
    %5 = tpu.matmul %3, %4, %cst {dimension_numbers = #tpu.dot_dimension_numbers<[1], [0], [0], [1], [0, 0, 1, 1], [], []>} : vector<16x48xbf16>, vector<48x32xbf16>, vector<16x32xf32> -> vector<16x32xf32>
    %6 = arith.mulf %0, %0 : vector<48x32xf32>
    %c1 = arith.constant 1 : index
    %c0_4 = arith.constant 0 : index
    %c0_5 = arith.constant 0 : index
    %7 = vector.load %arg2[%c1, %c0_4, %c0_5] : memref<2x16x48xf32, #tpu.memory_space<vmem>>, vector<1x16x48xf32>
    %8 = vector.shape_cast %7 : vector<1x16x48xf32> to vector<16x48xf32>
    %9 = arith.truncf %8 : vector<16x48xf32> to vector<16x48xbf16>
    %10 = arith.truncf %6 : vector<48x32xf32> to vector<48x32xbf16>
    %cst_6 = arith.constant dense<0.000000e+00> : vector<16x32xf32>
    %11 = tpu.matmul %9, %10, %cst_6 {dimension_numbers = #tpu.dot_dimension_numbers<[1], [0], [0], [1], [0, 0, 1, 1], [], []>} : vector<16x48xbf16>, vector<48x32xbf16>, vector<16x32xf32> -> vector<16x32xf32>
    %12 = arith.addf %5, %11 : vector<16x32xf32>
    %c0_7 = arith.constant 0 : index
    %c0_8 = arith.constant 0 : index
    %13 = vector.load %arg3[%c0_7, %c0_8] : memref<16x1xf32, #tpu.memory_space<vmem>>, vector<16x1xf32>
    %14 = vector.broadcast %13 : vector<16x1xf32> to vector<16x32xf32>
    %15 = arith.addf %12, %14 : vector<16x32xf32>
    %c0_9 = arith.constant 0 : index
    %c0_10 = arith.constant 0 : index
    %16 = vector.load %arg4[%c0_9, %c0_10] : memref<16x32xf32, #tpu.memory_space<vmem>>, vector<16x32xf32>
    tpu.vector_store %arg4[%c0_9, %c0_10], %15 {strides = array<i32>} : memref<16x32xf32, #tpu.memory_space<vmem>>, vector<16x32xf32>,
    return
  }
  func.func @transform_0(%arg0: i32) -> (i32, i32) {
    %c0_i32 = arith.constant 0 : i32
    %c0_i32_0 = arith.constant 0 : i32
    %c0_i32_1 = arith.constant 0 : i32
    return %c0_i32, %c0_i32_0 : i32, i32
  }
  func.func @transform_1(%arg0: i32) -> (i32, i32, i32) {
    %c0_i32 = arith.constant 0 : i32
    %c0_i32_0 = arith.constant 0 : i32
    %c0_i32_1 = arith.constant 0 : i32
    %c0_i32_2 = arith.constant 0 : i32
    return %c0_i32, %c0_i32_0, %c0_i32_1 : i32, i32, i32
  }
  func.func @transform_2(%arg0: i32) -> (i32, i32) {
    %c0_i32 = arith.constant 0 : i32
    %c0_i32_0 = arith.constant 0 : i32
    %c0_i32_1 = arith.constant 0 : i32
    return %c0_i32, %c0_i32_0 : i32, i32
  }
  func.func @transform_3(%arg0: i32) -> (i32, i32) {
    %c0_i32 = arith.constant 0 : i32
    %c0_i32_0 = arith.constant 0 : i32
    %c0_i32_1 = arith.constant 0 : i32
    return %c0_i32, %c0_i32_0 : i32, i32
  }
}

module attributes {stable_mosaic.version = 11 : i64} {
  func.func @kernel(%arg0: i32, %arg1: memref<32x16xf32, #tpu.memory_space<vmem>>, %arg2: memref<32x16xf32, #tpu.memory_space<vmem>>, %arg3: memref<32x32xf32, #tpu.memory_space<vmem>>, %arg4: memref<2x16x8xf32, #tpu.memory_space<vmem>>, %arg5: memref<2x16x8xf32, #tpu.memory_space<vmem>>, %arg6: memref<2x16x8xf32, #tpu.memory_space<vmem>>, %arg7: memref<2x1x8xf32, #tpu.memory_space<vmem>>, %arg8: memref<2x1x8xf32, #tpu.memory_space<vmem>>, %arg9: memref<2x1x8xf32, #tpu.memory_space<vmem>>, %arg10: memref<2x8x16xf32, #tpu.memory_space<vmem>>, %arg11: memref<1x16xf32, #tpu.memory_space<vmem>>, %arg12: memref<32x16xf32, #tpu.memory_space<vmem>>) attributes {dimension_semantics = [#tpu.dimension_semantics<arbitrary>], iteration_bounds = array<i64: 1>, scalar_prefetch = 0 : i64, scratch_operands = 0 : i64, tpu.core_type = #tpu.core_type<tc>, window_params = [{pipeline_mode = #tpu.pipeline_mode<synchronous>, transform_indices = @transform_0, window_bounds = array<i64: 32, 16>}, {pipeline_mode = #tpu.pipeline_mode<synchronous>, transform_indices = @transform_1, window_bounds = array<i64: 32, 16>}, {pipeline_mode = #tpu.pipeline_mode<synchronous>, transform_indices = @transform_2, window_bounds = array<i64: 32, 32>}, {pipeline_mode = #tpu.pipeline_mode<synchronous>, transform_indices = @transform_3, window_bounds = array<i64: 2, 16, 8>}, {pipeline_mode = #tpu.pipeline_mode<synchronous>, transform_indices = @transform_4, window_bounds = array<i64: 2, 16, 8>}, {pipeline_mode = #tpu.pipeline_mode<synchronous>, transform_indices = @transform_5, window_bounds = array<i64: 2, 16, 8>}, {pipeline_mode = #tpu.pipeline_mode<synchronous>, transform_indices = @transform_6, window_bounds = array<i64: 2, 1, 8>}, {pipeline_mode = #tpu.pipeline_mode<synchronous>, transform_indices = @transform_7, window_bounds = array<i64: 2, 1, 8>}, {pipeline_mode = #tpu.pipeline_mode<synchronous>, transform_indices = @transform_8, window_bounds = array<i64: 2, 1, 8>}, {pipeline_mode = #tpu.pipeline_mode<synchronous>, transform_indices = @transform_9, window_bounds = array<i64: 2, 8, 16>}, {pipeline_mode = #tpu.pipeline_mode<synchronous>, transform_indices = @transform_10, window_bounds = array<i64: 1, 16>}, {pipeline_mode = #tpu.pipeline_mode<synchronous>, transform_indices = @transform_11, window_bounds = array<i64: 32, 16>}]} {
    %c0 = arith.constant 0 : index
    %c0_0 = arith.constant 0 : index
    %0 = vector.load %arg1[%c0, %c0_0] : memref<32x16xf32, #tpu.memory_space<vmem>>, vector<32x16xf32>
    %c0_1 = arith.constant 0 : index
    %c0_2 = arith.constant 0 : index
    %1 = vector.load %arg2[%c0_1, %c0_2] : memref<32x16xf32, #tpu.memory_space<vmem>>, vector<32x16xf32>
    %c0_3 = arith.constant 0 : index
    %c0_4 = arith.constant 0 : index
    %2 = vector.load %arg3[%c0_3, %c0_4] : memref<32x32xf32, #tpu.memory_space<vmem>>, vector<32x32xf32>
    %cst = arith.constant 0.000000e+00 : f32
    %3 = vector.broadcast %cst : f32 to vector<32x16xf32>
    %c0_5 = arith.constant 0 : index
    %c0_6 = arith.constant 0 : index
    %c0_7 = arith.constant 0 : index
    %4 = vector.load %arg4[%c0_5, %c0_6, %c0_7] : memref<2x16x8xf32, #tpu.memory_space<vmem>>, vector<1x16x8xf32>
    %5 = vector.shape_cast %4 : vector<1x16x8xf32> to vector<16x8xf32>
    %6 = arith.truncf %0 : vector<32x16xf32> to vector<32x16xbf16>
    %7 = arith.truncf %5 : vector<16x8xf32> to vector<16x8xbf16>
    %cst_8 = arith.constant dense<0.000000e+00> : vector<32x8xf32>
    %8 = tpu.matmul %6, %7, %cst_8 {dimension_numbers = #tpu.dot_dimension_numbers<[1], [0], [0], [1], [0, 0, 1, 1], [], []>} : vector<32x16xbf16>, vector<16x8xbf16>, vector<32x8xf32> -> vector<32x8xf32>
    %c0_9 = arith.constant 0 : index
    %c0_10 = arith.constant 0 : index
    %c0_11 = arith.constant 0 : index
    %9 = vector.load %arg7[%c0_9, %c0_10, %c0_11] : memref<2x1x8xf32, #tpu.memory_space<vmem>>, vector<1x1x8xf32>
    %10 = vector.shape_cast %9 : vector<1x1x8xf32> to vector<1x8xf32>
    %11 = vector.broadcast %10 : vector<1x8xf32> to vector<32x8xf32>
    %12 = arith.addf %8, %11 : vector<32x8xf32>
    %c0_12 = arith.constant 0 : index
    %c0_13 = arith.constant 0 : index
    %c0_14 = arith.constant 0 : index
    %13 = vector.load %arg5[%c0_12, %c0_13, %c0_14] : memref<2x16x8xf32, #tpu.memory_space<vmem>>, vector<1x16x8xf32>
    %14 = vector.shape_cast %13 : vector<1x16x8xf32> to vector<16x8xf32>
    %15 = arith.truncf %1 : vector<32x16xf32> to vector<32x16xbf16>
    %16 = arith.truncf %14 : vector<16x8xf32> to vector<16x8xbf16>
    %cst_15 = arith.constant dense<0.000000e+00> : vector<32x8xf32>
    %17 = tpu.matmul %15, %16, %cst_15 {dimension_numbers = #tpu.dot_dimension_numbers<[1], [0], [0], [1], [0, 0, 1, 1], [], []>} : vector<32x16xbf16>, vector<16x8xbf16>, vector<32x8xf32> -> vector<32x8xf32>
    %c0_16 = arith.constant 0 : index
    %c0_17 = arith.constant 0 : index
    %c0_18 = arith.constant 0 : index
    %18 = vector.load %arg8[%c0_16, %c0_17, %c0_18] : memref<2x1x8xf32, #tpu.memory_space<vmem>>, vector<1x1x8xf32>
    %19 = vector.shape_cast %18 : vector<1x1x8xf32> to vector<1x8xf32>
    %20 = vector.broadcast %19 : vector<1x8xf32> to vector<32x8xf32>
    %21 = arith.addf %17, %20 : vector<32x8xf32>
    %c0_19 = arith.constant 0 : index
    %c0_20 = arith.constant 0 : index
    %c0_21 = arith.constant 0 : index
    %22 = vector.load %arg6[%c0_19, %c0_20, %c0_21] : memref<2x16x8xf32, #tpu.memory_space<vmem>>, vector<1x16x8xf32>
    %23 = vector.shape_cast %22 : vector<1x16x8xf32> to vector<16x8xf32>
    %24 = arith.truncf %0 : vector<32x16xf32> to vector<32x16xbf16>
    %25 = arith.truncf %23 : vector<16x8xf32> to vector<16x8xbf16>
    %cst_22 = arith.constant dense<0.000000e+00> : vector<32x8xf32>
    %26 = tpu.matmul %24, %25, %cst_22 {dimension_numbers = #tpu.dot_dimension_numbers<[1], [0], [0], [1], [0, 0, 1, 1], [], []>} : vector<32x16xbf16>, vector<16x8xbf16>, vector<32x8xf32> -> vector<32x8xf32>
    %c0_23 = arith.constant 0 : index
    %c0_24 = arith.constant 0 : index
    %c0_25 = arith.constant 0 : index
    %27 = vector.load %arg9[%c0_23, %c0_24, %c0_25] : memref<2x1x8xf32, #tpu.memory_space<vmem>>, vector<1x1x8xf32>
    %28 = vector.shape_cast %27 : vector<1x1x8xf32> to vector<1x8xf32>
    %29 = vector.broadcast %28 : vector<1x8xf32> to vector<32x8xf32>
    %30 = arith.addf %26, %29 : vector<32x8xf32>
    %31 = tpu.transpose %21, [1, 0] : vector<32x8xf32> -> vector<8x32xf32>
    %cst_26 = arith.constant dense<0.000000e+00> : vector<32x32xf32>
    %32 = tpu.matmul %12, %31, %cst_26 {dimension_numbers = #tpu.dot_dimension_numbers<[1], [0], [0], [1], [0, 0, 1, 1], [], []>} : vector<32x8xf32>, vector<8x32xf32>, vector<32x32xf32> -> vector<32x32xf32>
    %cst_27 = arith.constant 0.353553385 : f32
    %33 = vector.broadcast %cst_27 : f32 to vector<32x32xf32>
    %34 = arith.mulf %32, %33 : vector<32x32xf32>
    %35 = arith.addf %34, %2 : vector<32x32xf32>
    %cst_28 = arith.constant dense<0xFF800000> : vector<32xf32>
    %36 = vector.multi_reduction <maximumf>, %35, %cst_28 [1] : vector<32x32xf32> to vector<32xf32>
    %37 = vector.shape_cast %36 : vector<32xf32> to vector<32x1xf32>
    %38 = vector.broadcast %37 : vector<32x1xf32> to vector<32x32xf32>
    %39 = arith.subf %35, %38 : vector<32x32xf32>
    %40 = math.exp %39 : vector<32x32xf32>
    %cst_29 = arith.constant dense<0.000000e+00> : vector<32xf32>
    %41 = vector.multi_reduction <add>, %40, %cst_29 [1] : vector<32x32xf32> to vector<32xf32>
    %42 = vector.shape_cast %41 : vector<32xf32> to vector<32x1xf32>
    %43 = tpu.reciprocal %42 {approx = true} : vector<32x1xf32> -> vector<32x1xf32>
    %44 = vector.broadcast %43 : vector<32x1xf32> to vector<32x32xf32>
    %45 = arith.mulf %40, %44 : vector<32x32xf32>
    %46 = arith.truncf %45 : vector<32x32xf32> to vector<32x32xbf16>
    %47 = arith.truncf %30 : vector<32x8xf32> to vector<32x8xbf16>
    %cst_30 = arith.constant dense<0.000000e+00> : vector<32x8xf32>
    %48 = tpu.matmul %46, %47, %cst_30 {dimension_numbers = #tpu.dot_dimension_numbers<[1], [0], [0], [1], [0, 0, 1, 1], [], []>} : vector<32x32xbf16>, vector<32x8xbf16>, vector<32x8xf32> -> vector<32x8xf32>
    %c0_31 = arith.constant 0 : index
    %c0_32 = arith.constant 0 : index
    %c0_33 = arith.constant 0 : index
    %49 = vector.load %arg10[%c0_31, %c0_32, %c0_33] : memref<2x8x16xf32, #tpu.memory_space<vmem>>, vector<1x8x16xf32>
    %50 = vector.shape_cast %49 : vector<1x8x16xf32> to vector<8x16xf32>
    %51 = arith.truncf %48 : vector<32x8xf32> to vector<32x8xbf16>
    %52 = arith.truncf %50 : vector<8x16xf32> to vector<8x16xbf16>
    %cst_34 = arith.constant dense<0.000000e+00> : vector<32x16xf32>
    %53 = tpu.matmul %51, %52, %cst_34 {dimension_numbers = #tpu.dot_dimension_numbers<[1], [0], [0], [1], [0, 0, 1, 1], [], []>} : vector<32x8xbf16>, vector<8x16xbf16>, vector<32x16xf32> -> vector<32x16xf32>
    %54 = arith.addf %3, %53 : vector<32x16xf32>
    %c1 = arith.constant 1 : index
    %c0_35 = arith.constant 0 : index
    %c0_36 = arith.constant 0 : index
    %55 = vector.load %arg4[%c1, %c0_35, %c0_36] : memref<2x16x8xf32, #tpu.memory_space<vmem>>, vector<1x16x8xf32>
    %56 = vector.shape_cast %55 : vector<1x16x8xf32> to vector<16x8xf32>
    %57 = arith.truncf %0 : vector<32x16xf32> to vector<32x16xbf16>
    %58 = arith.truncf %56 : vector<16x8xf32> to vector<16x8xbf16>
    %cst_37 = arith.constant dense<0.000000e+00> : vector<32x8xf32>
    %59 = tpu.matmul %57, %58, %cst_37 {dimension_numbers = #tpu.dot_dimension_numbers<[1], [0], [0], [1], [0, 0, 1, 1], [], []>} : vector<32x16xbf16>, vector<16x8xbf16>, vector<32x8xf32> -> vector<32x8xf32>
    %c1_38 = arith.constant 1 : index
    %c0_39 = arith.constant 0 : index
    %c0_40 = arith.constant 0 : index
    %60 = vector.load %arg7[%c1_38, %c0_39, %c0_40] : memref<2x1x8xf32, #tpu.memory_space<vmem>>, vector<1x1x8xf32>
    %61 = vector.shape_cast %60 : vector<1x1x8xf32> to vector<1x8xf32>
    %62 = vector.broadcast %61 : vector<1x8xf32> to vector<32x8xf32>
    %63 = arith.addf %59, %62 : vector<32x8xf32>
    %c1_41 = arith.constant 1 : index
    %c0_42 = arith.constant 0 : index
    %c0_43 = arith.constant 0 : index
    %64 = vector.load %arg5[%c1_41, %c0_42, %c0_43] : memref<2x16x8xf32, #tpu.memory_space<vmem>>, vector<1x16x8xf32>
    %65 = vector.shape_cast %64 : vector<1x16x8xf32> to vector<16x8xf32>
    %66 = arith.truncf %1 : vector<32x16xf32> to vector<32x16xbf16>
    %67 = arith.truncf %65 : vector<16x8xf32> to vector<16x8xbf16>
    %cst_44 = arith.constant dense<0.000000e+00> : vector<32x8xf32>
    %68 = tpu.matmul %66, %67, %cst_44 {dimension_numbers = #tpu.dot_dimension_numbers<[1], [0], [0], [1], [0, 0, 1, 1], [], []>} : vector<32x16xbf16>, vector<16x8xbf16>, vector<32x8xf32> -> vector<32x8xf32>
    %c1_45 = arith.constant 1 : index
    %c0_46 = arith.constant 0 : index
    %c0_47 = arith.constant 0 : index
    %69 = vector.load %arg8[%c1_45, %c0_46, %c0_47] : memref<2x1x8xf32, #tpu.memory_space<vmem>>, vector<1x1x8xf32>
    %70 = vector.shape_cast %69 : vector<1x1x8xf32> to vector<1x8xf32>
    %71 = vector.broadcast %70 : vector<1x8xf32> to vector<32x8xf32>
    %72 = arith.addf %68, %71 : vector<32x8xf32>
    %c1_48 = arith.constant 1 : index
    %c0_49 = arith.constant 0 : index
    %c0_50 = arith.constant 0 : index
    %73 = vector.load %arg6[%c1_48, %c0_49, %c0_50] : memref<2x16x8xf32, #tpu.memory_space<vmem>>, vector<1x16x8xf32>
    %74 = vector.shape_cast %73 : vector<1x16x8xf32> to vector<16x8xf32>
    %75 = arith.truncf %0 : vector<32x16xf32> to vector<32x16xbf16>
    %76 = arith.truncf %74 : vector<16x8xf32> to vector<16x8xbf16>
    %cst_51 = arith.constant dense<0.000000e+00> : vector<32x8xf32>
    %77 = tpu.matmul %75, %76, %cst_51 {dimension_numbers = #tpu.dot_dimension_numbers<[1], [0], [0], [1], [0, 0, 1, 1], [], []>} : vector<32x16xbf16>, vector<16x8xbf16>, vector<32x8xf32> -> vector<32x8xf32>
    %c1_52 = arith.constant 1 : index
    %c0_53 = arith.constant 0 : index
    %c0_54 = arith.constant 0 : index
    %78 = vector.load %arg9[%c1_52, %c0_53, %c0_54] : memref<2x1x8xf32, #tpu.memory_space<vmem>>, vector<1x1x8xf32>
    %79 = vector.shape_cast %78 : vector<1x1x8xf32> to vector<1x8xf32>
    %80 = vector.broadcast %79 : vector<1x8xf32> to vector<32x8xf32>
    %81 = arith.addf %77, %80 : vector<32x8xf32>
    %82 = tpu.transpose %72, [1, 0] : vector<32x8xf32> -> vector<8x32xf32>
    %cst_55 = arith.constant dense<0.000000e+00> : vector<32x32xf32>
    %83 = tpu.matmul %63, %82, %cst_55 {dimension_numbers = #tpu.dot_dimension_numbers<[1], [0], [0], [1], [0, 0, 1, 1], [], []>} : vector<32x8xf32>, vector<8x32xf32>, vector<32x32xf32> -> vector<32x32xf32>
    %cst_56 = arith.constant 0.353553385 : f32
    %84 = vector.broadcast %cst_56 : f32 to vector<32x32xf32>
    %85 = arith.mulf %83, %84 : vector<32x32xf32>
    %86 = arith.addf %85, %2 : vector<32x32xf32>
    %cst_57 = arith.constant dense<0xFF800000> : vector<32xf32>
    %87 = vector.multi_reduction <maximumf>, %86, %cst_57 [1] : vector<32x32xf32> to vector<32xf32>
    %88 = vector.shape_cast %87 : vector<32xf32> to vector<32x1xf32>
    %89 = vector.broadcast %88 : vector<32x1xf32> to vector<32x32xf32>
    %90 = arith.subf %86, %89 : vector<32x32xf32>
    %91 = math.exp %90 : vector<32x32xf32>
    %cst_58 = arith.constant dense<0.000000e+00> : vector<32xf32>
    %92 = vector.multi_reduction <add>, %91, %cst_58 [1] : vector<32x32xf32> to vector<32xf32>
    %93 = vector.shape_cast %92 : vector<32xf32> to vector<32x1xf32>
    %94 = tpu.reciprocal %93 {approx = true} : vector<32x1xf32> -> vector<32x1xf32>
    %95 = vector.broadcast %94 : vector<32x1xf32> to vector<32x32xf32>
    %96 = arith.mulf %91, %95 : vector<32x32xf32>
    %97 = arith.truncf %96 : vector<32x32xf32> to vector<32x32xbf16>
    %98 = arith.truncf %81 : vector<32x8xf32> to vector<32x8xbf16>
    %cst_59 = arith.constant dense<0.000000e+00> : vector<32x8xf32>
    %99 = tpu.matmul %97, %98, %cst_59 {dimension_numbers = #tpu.dot_dimension_numbers<[1], [0], [0], [1], [0, 0, 1, 1], [], []>} : vector<32x32xbf16>, vector<32x8xbf16>, vector<32x8xf32> -> vector<32x8xf32>
    %c1_60 = arith.constant 1 : index
    %c0_61 = arith.constant 0 : index
    %c0_62 = arith.constant 0 : index
    %100 = vector.load %arg10[%c1_60, %c0_61, %c0_62] : memref<2x8x16xf32, #tpu.memory_space<vmem>>, vector<1x8x16xf32>
    %101 = vector.shape_cast %100 : vector<1x8x16xf32> to vector<8x16xf32>
    %102 = arith.truncf %99 : vector<32x8xf32> to vector<32x8xbf16>
    %103 = arith.truncf %101 : vector<8x16xf32> to vector<8x16xbf16>
    %cst_63 = arith.constant dense<0.000000e+00> : vector<32x16xf32>
    %104 = tpu.matmul %102, %103, %cst_63 {dimension_numbers = #tpu.dot_dimension_numbers<[1], [0], [0], [1], [0, 0, 1, 1], [], []>} : vector<32x8xbf16>, vector<8x16xbf16>, vector<32x16xf32> -> vector<32x16xf32>
    %105 = arith.addf %54, %104 : vector<32x16xf32>
    %106 = arith.addf %1, %105 : vector<32x16xf32>
    %c0_64 = arith.constant 0 : index
    %c0_65 = arith.constant 0 : index
    %107 = vector.load %arg11[%c0_64, %c0_65] : memref<1x16xf32, #tpu.memory_space<vmem>>, vector<1x16xf32>
    %108 = vector.broadcast %107 : vector<1x16xf32> to vector<32x16xf32>
    %109 = arith.addf %106, %108 : vector<32x16xf32>
    %110 = math.tanh %109 : vector<32x16xf32>
    %c0_66 = arith.constant 0 : index
    %c0_67 = arith.constant 0 : index
    %111 = vector.load %arg12[%c0_66, %c0_67] : memref<32x16xf32, #tpu.memory_space<vmem>>, vector<32x16xf32>
    tpu.vector_store %arg12[%c0_66, %c0_67], %110 {strides = array<i32>} : memref<32x16xf32, #tpu.memory_space<vmem>>, vector<32x16xf32>,
    return
  }
  func.func @transform_0(%arg0: i32) -> (i32, i32) {
    %c0_i32 = arith.constant 0 : i32
    %c0_i32_0 = arith.constant 0 : i32
    %c0_i32_1 = arith.constant 0 : i32
    return %c0_i32, %c0_i32_0 : i32, i32
  }
  func.func @transform_1(%arg0: i32) -> (i32, i32) {
    %c0_i32 = arith.constant 0 : i32
    %c0_i32_0 = arith.constant 0 : i32
    %c0_i32_1 = arith.constant 0 : i32
    return %c0_i32, %c0_i32_0 : i32, i32
  }
  func.func @transform_2(%arg0: i32) -> (i32, i32) {
    %c0_i32 = arith.constant 0 : i32
    %c0_i32_0 = arith.constant 0 : i32
    %c0_i32_1 = arith.constant 0 : i32
    return %c0_i32, %c0_i32_0 : i32, i32
  }
  func.func @transform_3(%arg0: i32) -> (i32, i32, i32) {
    %c0_i32 = arith.constant 0 : i32
    %c0_i32_0 = arith.constant 0 : i32
    %c0_i32_1 = arith.constant 0 : i32
    %c0_i32_2 = arith.constant 0 : i32
    return %c0_i32, %c0_i32_0, %c0_i32_1 : i32, i32, i32
  }
  func.func @transform_4(%arg0: i32) -> (i32, i32, i32) {
    %c0_i32 = arith.constant 0 : i32
    %c0_i32_0 = arith.constant 0 : i32
    %c0_i32_1 = arith.constant 0 : i32
    %c0_i32_2 = arith.constant 0 : i32
    return %c0_i32, %c0_i32_0, %c0_i32_1 : i32, i32, i32
  }
  func.func @transform_5(%arg0: i32) -> (i32, i32, i32) {
    %c0_i32 = arith.constant 0 : i32
    %c0_i32_0 = arith.constant 0 : i32
    %c0_i32_1 = arith.constant 0 : i32
    %c0_i32_2 = arith.constant 0 : i32
    return %c0_i32, %c0_i32_0, %c0_i32_1 : i32, i32, i32
  }
  func.func @transform_6(%arg0: i32) -> (i32, i32, i32) {
    %c0_i32 = arith.constant 0 : i32
    %c0_i32_0 = arith.constant 0 : i32
    %c0_i32_1 = arith.constant 0 : i32
    %c0_i32_2 = arith.constant 0 : i32
    return %c0_i32, %c0_i32_0, %c0_i32_1 : i32, i32, i32
  }
  func.func @transform_7(%arg0: i32) -> (i32, i32, i32) {
    %c0_i32 = arith.constant 0 : i32
    %c0_i32_0 = arith.constant 0 : i32
    %c0_i32_1 = arith.constant 0 : i32
    %c0_i32_2 = arith.constant 0 : i32
    return %c0_i32, %c0_i32_0, %c0_i32_1 : i32, i32, i32
  }
  func.func @transform_8(%arg0: i32) -> (i32, i32, i32) {
    %c0_i32 = arith.constant 0 : i32
    %c0_i32_0 = arith.constant 0 : i32
    %c0_i32_1 = arith.constant 0 : i32
    %c0_i32_2 = arith.constant 0 : i32
    return %c0_i32, %c0_i32_0, %c0_i32_1 : i32, i32, i32
  }
  func.func @transform_9(%arg0: i32) -> (i32, i32, i32) {
    %c0_i32 = arith.constant 0 : i32
    %c0_i32_0 = arith.constant 0 : i32
    %c0_i32_1 = arith.constant 0 : i32
    %c0_i32_2 = arith.constant 0 : i32
    return %c0_i32, %c0_i32_0, %c0_i32_1 : i32, i32, i32
  }
  func.func @transform_10(%arg0: i32) -> (i32, i32) {
    %c0_i32 = arith.constant 0 : i32
    %c0_i32_0 = arith.constant 0 : i32
    %c0_i32_1 = arith.constant 0 : i32
    return %c0_i32, %c0_i32_0 : i32, i32
  }
  func.func @transform_11(%arg0: i32) -> (i32, i32) {
    %c0_i32 = arith.constant 0 : i32
    %c0_i32_0 = arith.constant 0 : i32
    %c0_i32_1 = arith.constant 0 : i32
    return %c0_i32, %c0_i32_0 : i32, i32
  }
}

module attributes {stable_mosaic.version = 11 : i64} {
  func.func @kernel(%arg0: i32, %arg1: memref<48x16xf32, #tpu.memory_space<vmem>>, %arg2: memref<2x32x48xf32, #tpu.memory_space<vmem>>, %arg3: memref<32x1xf32, #tpu.memory_space<vmem>>, %arg4: memref<32x16xf32, #tpu.memory_space<vmem>>) attributes {dimension_semantics = [#tpu.dimension_semantics<arbitrary>], iteration_bounds = array<i64: 1>, scalar_prefetch = 0 : i64, scratch_operands = 0 : i64, tpu.core_type = #tpu.core_type<tc>, window_params = [{pipeline_mode = #tpu.pipeline_mode<synchronous>, transform_indices = @transform_0, window_bounds = array<i64: 48, 16>}, {pipeline_mode = #tpu.pipeline_mode<synchronous>, transform_indices = @transform_1, window_bounds = array<i64: 2, 32, 48>}, {pipeline_mode = #tpu.pipeline_mode<synchronous>, transform_indices = @transform_2, window_bounds = array<i64: 32, 1>}, {pipeline_mode = #tpu.pipeline_mode<synchronous>, transform_indices = @transform_3, window_bounds = array<i64: 32, 16>}]} {
    %c0 = arith.constant 0 : index
    %c0_0 = arith.constant 0 : index
    %0 = vector.load %arg1[%c0, %c0_0] : memref<48x16xf32, #tpu.memory_space<vmem>>, vector<48x16xf32>
    %c0_1 = arith.constant 0 : index
    %c0_2 = arith.constant 0 : index
    %c0_3 = arith.constant 0 : index
    %1 = vector.load %arg2[%c0_1, %c0_2, %c0_3] : memref<2x32x48xf32, #tpu.memory_space<vmem>>, vector<1x32x48xf32>
    %2 = vector.shape_cast %1 : vector<1x32x48xf32> to vector<32x48xf32>
    %3 = arith.truncf %2 : vector<32x48xf32> to vector<32x48xbf16>
    %4 = arith.truncf %0 : vector<48x16xf32> to vector<48x16xbf16>
    %cst = arith.constant dense<0.000000e+00> : vector<32x16xf32>
    %5 = tpu.matmul %3, %4, %cst {dimension_numbers = #tpu.dot_dimension_numbers<[1], [0], [0], [1], [0, 0, 1, 1], [], []>} : vector<32x48xbf16>, vector<48x16xbf16>, vector<32x16xf32> -> vector<32x16xf32>
    %6 = arith.mulf %0, %0 : vector<48x16xf32>
    %c1 = arith.constant 1 : index
    %c0_4 = arith.constant 0 : index
    %c0_5 = arith.constant 0 : index
    %7 = vector.load %arg2[%c1, %c0_4, %c0_5] : memref<2x32x48xf32, #tpu.memory_space<vmem>>, vector<1x32x48xf32>
    %8 = vector.shape_cast %7 : vector<1x32x48xf32> to vector<32x48xf32>
    %9 = arith.truncf %8 : vector<32x48xf32> to vector<32x48xbf16>
    %10 = arith.truncf %6 : vector<48x16xf32> to vector<48x16xbf16>
    %cst_6 = arith.constant dense<0.000000e+00> : vector<32x16xf32>
    %11 = tpu.matmul %9, %10, %cst_6 {dimension_numbers = #tpu.dot_dimension_numbers<[1], [0], [0], [1], [0, 0, 1, 1], [], []>} : vector<32x48xbf16>, vector<48x16xbf16>, vector<32x16xf32> -> vector<32x16xf32>
    %12 = arith.addf %5, %11 : vector<32x16xf32>
    %c0_7 = arith.constant 0 : index
    %c0_8 = arith.constant 0 : index
    %13 = vector.load %arg3[%c0_7, %c0_8] : memref<32x1xf32, #tpu.memory_space<vmem>>, vector<32x1xf32>
    %14 = vector.broadcast %13 : vector<32x1xf32> to vector<32x16xf32>
    %15 = arith.addf %12, %14 : vector<32x16xf32>
    %16 = math.tanh %15 : vector<32x16xf32>
    %c0_9 = arith.constant 0 : index
    %c0_10 = arith.constant 0 : index
    %17 = vector.load %arg4[%c0_9, %c0_10] : memref<32x16xf32, #tpu.memory_space<vmem>>, vector<32x16xf32>
    tpu.vector_store %arg4[%c0_9, %c0_10], %16 {strides = array<i32>} : memref<32x16xf32, #tpu.memory_space<vmem>>, vector<32x16xf32>,
    return
  }
  func.func @transform_0(%arg0: i32) -> (i32, i32) {
    %c0_i32 = arith.constant 0 : i32
    %c0_i32_0 = arith.constant 0 : i32
    %c0_i32_1 = arith.constant 0 : i32
    return %c0_i32, %c0_i32_0 : i32, i32
  }
  func.func @transform_1(%arg0: i32) -> (i32, i32, i32) {
    %c0_i32 = arith.constant 0 : i32
    %c0_i32_0 = arith.constant 0 : i32
    %c0_i32_1 = arith.constant 0 : i32
    %c0_i32_2 = arith.constant 0 : i32
    return %c0_i32, %c0_i32_0, %c0_i32_1 : i32, i32, i32
  }
  func.func @transform_2(%arg0: i32) -> (i32, i32) {
    %c0_i32 = arith.constant 0 : i32
    %c0_i32_0 = arith.constant 0 : i32
    %c0_i32_1 = arith.constant 0 : i32
    return %c0_i32, %c0_i32_0 : i32, i32
  }
  func.func @transform_3(%arg0: i32) -> (i32, i32) {
    %c0_i32 = arith.constant 0 : i32
    %c0_i32_0 = arith.constant 0 : i32
    %c0_i32_1 = arith.constant 0 : i32
    return %c0_i32, %c0_i32_0 : i32, i32
  }
}

module attributes {stable_mosaic.version = 11 : i64} {
  func.func @kernel(%arg0: i32, %arg1: memref<96x16xf32, #tpu.memory_space<vmem>>, %arg2: memref<2x32x96xf32, #tpu.memory_space<vmem>>, %arg3: memref<32x1xf32, #tpu.memory_space<vmem>>, %arg4: memref<32x16xf32, #tpu.memory_space<vmem>>) attributes {dimension_semantics = [#tpu.dimension_semantics<arbitrary>], iteration_bounds = array<i64: 1>, scalar_prefetch = 0 : i64, scratch_operands = 0 : i64, tpu.core_type = #tpu.core_type<tc>, window_params = [{pipeline_mode = #tpu.pipeline_mode<synchronous>, transform_indices = @transform_0, window_bounds = array<i64: 96, 16>}, {pipeline_mode = #tpu.pipeline_mode<synchronous>, transform_indices = @transform_1, window_bounds = array<i64: 2, 32, 96>}, {pipeline_mode = #tpu.pipeline_mode<synchronous>, transform_indices = @transform_2, window_bounds = array<i64: 32, 1>}, {pipeline_mode = #tpu.pipeline_mode<synchronous>, transform_indices = @transform_3, window_bounds = array<i64: 32, 16>}]} {
    %c0 = arith.constant 0 : index
    %c0_0 = arith.constant 0 : index
    %0 = vector.load %arg1[%c0, %c0_0] : memref<96x16xf32, #tpu.memory_space<vmem>>, vector<96x16xf32>
    %c0_1 = arith.constant 0 : index
    %c0_2 = arith.constant 0 : index
    %c0_3 = arith.constant 0 : index
    %1 = vector.load %arg2[%c0_1, %c0_2, %c0_3] : memref<2x32x96xf32, #tpu.memory_space<vmem>>, vector<1x32x96xf32>
    %2 = vector.shape_cast %1 : vector<1x32x96xf32> to vector<32x96xf32>
    %3 = arith.truncf %2 : vector<32x96xf32> to vector<32x96xbf16>
    %4 = arith.truncf %0 : vector<96x16xf32> to vector<96x16xbf16>
    %cst = arith.constant dense<0.000000e+00> : vector<32x16xf32>
    %5 = tpu.matmul %3, %4, %cst {dimension_numbers = #tpu.dot_dimension_numbers<[1], [0], [0], [1], [0, 0, 1, 1], [], []>} : vector<32x96xbf16>, vector<96x16xbf16>, vector<32x16xf32> -> vector<32x16xf32>
    %6 = arith.mulf %0, %0 : vector<96x16xf32>
    %c1 = arith.constant 1 : index
    %c0_4 = arith.constant 0 : index
    %c0_5 = arith.constant 0 : index
    %7 = vector.load %arg2[%c1, %c0_4, %c0_5] : memref<2x32x96xf32, #tpu.memory_space<vmem>>, vector<1x32x96xf32>
    %8 = vector.shape_cast %7 : vector<1x32x96xf32> to vector<32x96xf32>
    %9 = arith.truncf %8 : vector<32x96xf32> to vector<32x96xbf16>
    %10 = arith.truncf %6 : vector<96x16xf32> to vector<96x16xbf16>
    %cst_6 = arith.constant dense<0.000000e+00> : vector<32x16xf32>
    %11 = tpu.matmul %9, %10, %cst_6 {dimension_numbers = #tpu.dot_dimension_numbers<[1], [0], [0], [1], [0, 0, 1, 1], [], []>} : vector<32x96xbf16>, vector<96x16xbf16>, vector<32x16xf32> -> vector<32x16xf32>
    %12 = arith.addf %5, %11 : vector<32x16xf32>
    %c0_7 = arith.constant 0 : index
    %c0_8 = arith.constant 0 : index
    %13 = vector.load %arg3[%c0_7, %c0_8] : memref<32x1xf32, #tpu.memory_space<vmem>>, vector<32x1xf32>
    %14 = vector.broadcast %13 : vector<32x1xf32> to vector<32x16xf32>
    %15 = arith.addf %12, %14 : vector<32x16xf32>
    %16 = math.tanh %15 : vector<32x16xf32>
    %c0_9 = arith.constant 0 : index
    %c0_10 = arith.constant 0 : index
    %17 = vector.load %arg4[%c0_9, %c0_10] : memref<32x16xf32, #tpu.memory_space<vmem>>, vector<32x16xf32>
    tpu.vector_store %arg4[%c0_9, %c0_10], %16 {strides = array<i32>} : memref<32x16xf32, #tpu.memory_space<vmem>>, vector<32x16xf32>,
    return
  }
  func.func @transform_0(%arg0: i32) -> (i32, i32) {
    %c0_i32 = arith.constant 0 : i32
    %c0_i32_0 = arith.constant 0 : i32
    %c0_i32_1 = arith.constant 0 : i32
    return %c0_i32, %c0_i32_0 : i32, i32
  }
  func.func @transform_1(%arg0: i32) -> (i32, i32, i32) {
    %c0_i32 = arith.constant 0 : i32
    %c0_i32_0 = arith.constant 0 : i32
    %c0_i32_1 = arith.constant 0 : i32
    %c0_i32_2 = arith.constant 0 : i32
    return %c0_i32, %c0_i32_0, %c0_i32_1 : i32, i32, i32
  }
  func.func @transform_2(%arg0: i32) -> (i32, i32) {
    %c0_i32 = arith.constant 0 : i32
    %c0_i32_0 = arith.constant 0 : i32
    %c0_i32_1 = arith.constant 0 : i32
    return %c0_i32, %c0_i32_0 : i32, i32
  }
  func.func @transform_3(%arg0: i32) -> (i32, i32) {
    %c0_i32 = arith.constant 0 : i32
    %c0_i32_0 = arith.constant 0 : i32
    %c0_i32_1 = arith.constant 0 : i32
    return %c0_i32, %c0_i32_0 : i32, i32
  }
}

module attributes {stable_mosaic.version = 11 : i64} {
  func.func @kernel(%arg0: i32, %arg1: memref<96x16xf32, #tpu.memory_space<vmem>>, %arg2: memref<2x32x96xf32, #tpu.memory_space<vmem>>, %arg3: memref<32x1xf32, #tpu.memory_space<vmem>>, %arg4: memref<16x16xf32, #tpu.memory_space<vmem>>, %arg5: memref<32x16xf32, #tpu.memory_space<vmem>>, %arg6: memref<32x16xf32, #tpu.memory_space<vmem>>) attributes {dimension_semantics = [#tpu.dimension_semantics<arbitrary>], iteration_bounds = array<i64: 1>, scalar_prefetch = 0 : i64, scratch_operands = 0 : i64, tpu.core_type = #tpu.core_type<tc>, window_params = [{pipeline_mode = #tpu.pipeline_mode<synchronous>, transform_indices = @transform_0, window_bounds = array<i64: 96, 16>}, {pipeline_mode = #tpu.pipeline_mode<synchronous>, transform_indices = @transform_1, window_bounds = array<i64: 2, 32, 96>}, {pipeline_mode = #tpu.pipeline_mode<synchronous>, transform_indices = @transform_2, window_bounds = array<i64: 32, 1>}, {pipeline_mode = #tpu.pipeline_mode<synchronous>, transform_indices = @transform_3, window_bounds = array<i64: 16, 16>}, {pipeline_mode = #tpu.pipeline_mode<synchronous>, transform_indices = @transform_4, window_bounds = array<i64: 32, 16>}, {pipeline_mode = #tpu.pipeline_mode<synchronous>, transform_indices = @transform_5, window_bounds = array<i64: 32, 16>}]} {
    %c0 = arith.constant 0 : index
    %c0_0 = arith.constant 0 : index
    %0 = vector.load %arg1[%c0, %c0_0] : memref<96x16xf32, #tpu.memory_space<vmem>>, vector<96x16xf32>
    %c0_1 = arith.constant 0 : index
    %c0_2 = arith.constant 0 : index
    %c0_3 = arith.constant 0 : index
    %1 = vector.load %arg2[%c0_1, %c0_2, %c0_3] : memref<2x32x96xf32, #tpu.memory_space<vmem>>, vector<1x32x96xf32>
    %2 = vector.shape_cast %1 : vector<1x32x96xf32> to vector<32x96xf32>
    %3 = arith.truncf %2 : vector<32x96xf32> to vector<32x96xbf16>
    %4 = arith.truncf %0 : vector<96x16xf32> to vector<96x16xbf16>
    %cst = arith.constant dense<0.000000e+00> : vector<32x16xf32>
    %5 = tpu.matmul %3, %4, %cst {dimension_numbers = #tpu.dot_dimension_numbers<[1], [0], [0], [1], [0, 0, 1, 1], [], []>} : vector<32x96xbf16>, vector<96x16xbf16>, vector<32x16xf32> -> vector<32x16xf32>
    %6 = arith.mulf %0, %0 : vector<96x16xf32>
    %c1 = arith.constant 1 : index
    %c0_4 = arith.constant 0 : index
    %c0_5 = arith.constant 0 : index
    %7 = vector.load %arg2[%c1, %c0_4, %c0_5] : memref<2x32x96xf32, #tpu.memory_space<vmem>>, vector<1x32x96xf32>
    %8 = vector.shape_cast %7 : vector<1x32x96xf32> to vector<32x96xf32>
    %9 = arith.truncf %8 : vector<32x96xf32> to vector<32x96xbf16>
    %10 = arith.truncf %6 : vector<96x16xf32> to vector<96x16xbf16>
    %cst_6 = arith.constant dense<0.000000e+00> : vector<32x16xf32>
    %11 = tpu.matmul %9, %10, %cst_6 {dimension_numbers = #tpu.dot_dimension_numbers<[1], [0], [0], [1], [0, 0, 1, 1], [], []>} : vector<32x96xbf16>, vector<96x16xbf16>, vector<32x16xf32> -> vector<32x16xf32>
    %12 = arith.addf %5, %11 : vector<32x16xf32>
    %c0_7 = arith.constant 0 : index
    %c0_8 = arith.constant 0 : index
    %13 = vector.load %arg3[%c0_7, %c0_8] : memref<32x1xf32, #tpu.memory_space<vmem>>, vector<32x1xf32>
    %14 = vector.broadcast %13 : vector<32x1xf32> to vector<32x16xf32>
    %15 = arith.addf %12, %14 : vector<32x16xf32>
    %c0_9 = arith.constant 0 : index
    %c0_10 = arith.constant 0 : index
    %16 = vector.load %arg5[%c0_9, %c0_10] : memref<32x16xf32, #tpu.memory_space<vmem>>, vector<32x16xf32>
    %c0_11 = arith.constant 0 : index
    %c0_12 = arith.constant 0 : index
    %17 = vector.load %arg4[%c0_11, %c0_12] : memref<16x16xf32, #tpu.memory_space<vmem>>, vector<16x16xf32>
    %18 = arith.truncf %16 : vector<32x16xf32> to vector<32x16xbf16>
    %19 = arith.truncf %17 : vector<16x16xf32> to vector<16x16xbf16>
    %cst_13 = arith.constant dense<0.000000e+00> : vector<32x16xf32>
    %20 = tpu.matmul %18, %19, %cst_13 {dimension_numbers = #tpu.dot_dimension_numbers<[1], [0], [0], [1], [0, 0, 1, 1], [], []>} : vector<32x16xbf16>, vector<16x16xbf16>, vector<32x16xf32> -> vector<32x16xf32>
    %21 = arith.addf %15, %20 : vector<32x16xf32>
    %22 = math.tanh %21 : vector<32x16xf32>
    %c0_14 = arith.constant 0 : index
    %c0_15 = arith.constant 0 : index
    %23 = vector.load %arg6[%c0_14, %c0_15] : memref<32x16xf32, #tpu.memory_space<vmem>>, vector<32x16xf32>
    tpu.vector_store %arg6[%c0_14, %c0_15], %22 {strides = array<i32>} : memref<32x16xf32, #tpu.memory_space<vmem>>, vector<32x16xf32>,
    return
  }
  func.func @transform_0(%arg0: i32) -> (i32, i32) {
    %c0_i32 = arith.constant 0 : i32
    %c0_i32_0 = arith.constant 0 : i32
    %c0_i32_1 = arith.constant 0 : i32
    return %c0_i32, %c0_i32_0 : i32, i32
  }
  func.func @transform_1(%arg0: i32) -> (i32, i32, i32) {
    %c0_i32 = arith.constant 0 : i32
    %c0_i32_0 = arith.constant 0 : i32
    %c0_i32_1 = arith.constant 0 : i32
    %c0_i32_2 = arith.constant 0 : i32
    return %c0_i32, %c0_i32_0, %c0_i32_1 : i32, i32, i32
  }
  func.func @transform_2(%arg0: i32) -> (i32, i32) {
    %c0_i32 = arith.constant 0 : i32
    %c0_i32_0 = arith.constant 0 : i32
    %c0_i32_1 = arith.constant 0 : i32
    return %c0_i32, %c0_i32_0 : i32, i32
  }
  func.func @transform_3(%arg0: i32) -> (i32, i32) {
    %c0_i32 = arith.constant 0 : i32
    %c0_i32_0 = arith.constant 0 : i32
    %c0_i32_1 = arith.constant 0 : i32
    return %c0_i32, %c0_i32_0 : i32, i32
  }
  func.func @transform_4(%arg0: i32) -> (i32, i32) {
    %c0_i32 = arith.constant 0 : i32
    %c0_i32_0 = arith.constant 0 : i32
    %c0_i32_1 = arith.constant 0 : i32
    return %c0_i32, %c0_i32_0 : i32, i32
  }
  func.func @transform_5(%arg0: i32) -> (i32, i32) {
    %c0_i32 = arith.constant 0 : i32
    %c0_i32_0 = arith.constant 0 : i32
    %c0_i32_1 = arith.constant 0 : i32
    return %c0_i32, %c0_i32_0 : i32, i32
  }
}

module attributes {stable_mosaic.version = 11 : i64} {
  func.func @kernel(%arg0: i32, %arg1: memref<96x16xf32, #tpu.memory_space<vmem>>, %arg2: memref<2x32x96xf32, #tpu.memory_space<vmem>>, %arg3: memref<32x1xf32, #tpu.memory_space<vmem>>, %arg4: memref<32x16xf32, #tpu.memory_space<vmem>>) attributes {dimension_semantics = [#tpu.dimension_semantics<arbitrary>], iteration_bounds = array<i64: 1>, scalar_prefetch = 0 : i64, scratch_operands = 0 : i64, tpu.core_type = #tpu.core_type<tc>, window_params = [{pipeline_mode = #tpu.pipeline_mode<synchronous>, transform_indices = @transform_0, window_bounds = array<i64: 96, 16>}, {pipeline_mode = #tpu.pipeline_mode<synchronous>, transform_indices = @transform_1, window_bounds = array<i64: 2, 32, 96>}, {pipeline_mode = #tpu.pipeline_mode<synchronous>, transform_indices = @transform_2, window_bounds = array<i64: 32, 1>}, {pipeline_mode = #tpu.pipeline_mode<synchronous>, transform_indices = @transform_3, window_bounds = array<i64: 32, 16>}]} {
    %c0 = arith.constant 0 : index
    %c0_0 = arith.constant 0 : index
    %0 = vector.load %arg1[%c0, %c0_0] : memref<96x16xf32, #tpu.memory_space<vmem>>, vector<96x16xf32>
    %c0_1 = arith.constant 0 : index
    %c0_2 = arith.constant 0 : index
    %c0_3 = arith.constant 0 : index
    %1 = vector.load %arg2[%c0_1, %c0_2, %c0_3] : memref<2x32x96xf32, #tpu.memory_space<vmem>>, vector<1x32x96xf32>
    %2 = vector.shape_cast %1 : vector<1x32x96xf32> to vector<32x96xf32>
    %3 = arith.truncf %2 : vector<32x96xf32> to vector<32x96xbf16>
    %4 = arith.truncf %0 : vector<96x16xf32> to vector<96x16xbf16>
    %cst = arith.constant dense<0.000000e+00> : vector<32x16xf32>
    %5 = tpu.matmul %3, %4, %cst {dimension_numbers = #tpu.dot_dimension_numbers<[1], [0], [0], [1], [0, 0, 1, 1], [], []>} : vector<32x96xbf16>, vector<96x16xbf16>, vector<32x16xf32> -> vector<32x16xf32>
    %6 = arith.mulf %0, %0 : vector<96x16xf32>
    %c1 = arith.constant 1 : index
    %c0_4 = arith.constant 0 : index
    %c0_5 = arith.constant 0 : index
    %7 = vector.load %arg2[%c1, %c0_4, %c0_5] : memref<2x32x96xf32, #tpu.memory_space<vmem>>, vector<1x32x96xf32>
    %8 = vector.shape_cast %7 : vector<1x32x96xf32> to vector<32x96xf32>
    %9 = arith.truncf %8 : vector<32x96xf32> to vector<32x96xbf16>
    %10 = arith.truncf %6 : vector<96x16xf32> to vector<96x16xbf16>
    %cst_6 = arith.constant dense<0.000000e+00> : vector<32x16xf32>
    %11 = tpu.matmul %9, %10, %cst_6 {dimension_numbers = #tpu.dot_dimension_numbers<[1], [0], [0], [1], [0, 0, 1, 1], [], []>} : vector<32x96xbf16>, vector<96x16xbf16>, vector<32x16xf32> -> vector<32x16xf32>
    %12 = arith.addf %5, %11 : vector<32x16xf32>
    %c0_7 = arith.constant 0 : index
    %c0_8 = arith.constant 0 : index
    %13 = vector.load %arg3[%c0_7, %c0_8] : memref<32x1xf32, #tpu.memory_space<vmem>>, vector<32x1xf32>
    %14 = vector.broadcast %13 : vector<32x1xf32> to vector<32x16xf32>
    %15 = arith.addf %12, %14 : vector<32x16xf32>
    %c0_9 = arith.constant 0 : index
    %c0_10 = arith.constant 0 : index
    %16 = vector.load %arg4[%c0_9, %c0_10] : memref<32x16xf32, #tpu.memory_space<vmem>>, vector<32x16xf32>
    tpu.vector_store %arg4[%c0_9, %c0_10], %15 {strides = array<i32>} : memref<32x16xf32, #tpu.memory_space<vmem>>, vector<32x16xf32>,
    return
  }
  func.func @transform_0(%arg0: i32) -> (i32, i32) {
    %c0_i32 = arith.constant 0 : i32
    %c0_i32_0 = arith.constant 0 : i32
    %c0_i32_1 = arith.constant 0 : i32
    return %c0_i32, %c0_i32_0 : i32, i32
  }
  func.func @transform_1(%arg0: i32) -> (i32, i32, i32) {
    %c0_i32 = arith.constant 0 : i32
    %c0_i32_0 = arith.constant 0 : i32
    %c0_i32_1 = arith.constant 0 : i32
    %c0_i32_2 = arith.constant 0 : i32
    return %c0_i32, %c0_i32_0, %c0_i32_1 : i32, i32, i32
  }
  func.func @transform_2(%arg0: i32) -> (i32, i32) {
    %c0_i32 = arith.constant 0 : i32
    %c0_i32_0 = arith.constant 0 : i32
    %c0_i32_1 = arith.constant 0 : i32
    return %c0_i32, %c0_i32_0 : i32, i32
  }
  func.func @transform_3(%arg0: i32) -> (i32, i32) {
    %c0_i32 = arith.constant 0 : i32
    %c0_i32_0 = arith.constant 0 : i32
    %c0_i32_1 = arith.constant 0 : i32
    return %c0_i32, %c0_i32_0 : i32, i32
  }
}

module attributes {stable_mosaic.version = 11 : i64} {
  func.func @kernel(%arg0: i32, %arg1: memref<64x8xf32, #tpu.memory_space<vmem>>, %arg2: memref<64x8xf32, #tpu.memory_space<vmem>>, %arg3: memref<64x64xf32, #tpu.memory_space<vmem>>, %arg4: memref<2x8x4xf32, #tpu.memory_space<vmem>>, %arg5: memref<2x8x4xf32, #tpu.memory_space<vmem>>, %arg6: memref<2x8x4xf32, #tpu.memory_space<vmem>>, %arg7: memref<2x1x4xf32, #tpu.memory_space<vmem>>, %arg8: memref<2x1x4xf32, #tpu.memory_space<vmem>>, %arg9: memref<2x1x4xf32, #tpu.memory_space<vmem>>, %arg10: memref<2x4x8xf32, #tpu.memory_space<vmem>>, %arg11: memref<1x8xf32, #tpu.memory_space<vmem>>, %arg12: memref<64x8xf32, #tpu.memory_space<vmem>>) attributes {dimension_semantics = [#tpu.dimension_semantics<arbitrary>], iteration_bounds = array<i64: 1>, scalar_prefetch = 0 : i64, scratch_operands = 0 : i64, tpu.core_type = #tpu.core_type<tc>, window_params = [{pipeline_mode = #tpu.pipeline_mode<synchronous>, transform_indices = @transform_0, window_bounds = array<i64: 64, 8>}, {pipeline_mode = #tpu.pipeline_mode<synchronous>, transform_indices = @transform_1, window_bounds = array<i64: 64, 8>}, {pipeline_mode = #tpu.pipeline_mode<synchronous>, transform_indices = @transform_2, window_bounds = array<i64: 64, 64>}, {pipeline_mode = #tpu.pipeline_mode<synchronous>, transform_indices = @transform_3, window_bounds = array<i64: 2, 8, 4>}, {pipeline_mode = #tpu.pipeline_mode<synchronous>, transform_indices = @transform_4, window_bounds = array<i64: 2, 8, 4>}, {pipeline_mode = #tpu.pipeline_mode<synchronous>, transform_indices = @transform_5, window_bounds = array<i64: 2, 8, 4>}, {pipeline_mode = #tpu.pipeline_mode<synchronous>, transform_indices = @transform_6, window_bounds = array<i64: 2, 1, 4>}, {pipeline_mode = #tpu.pipeline_mode<synchronous>, transform_indices = @transform_7, window_bounds = array<i64: 2, 1, 4>}, {pipeline_mode = #tpu.pipeline_mode<synchronous>, transform_indices = @transform_8, window_bounds = array<i64: 2, 1, 4>}, {pipeline_mode = #tpu.pipeline_mode<synchronous>, transform_indices = @transform_9, window_bounds = array<i64: 2, 4, 8>}, {pipeline_mode = #tpu.pipeline_mode<synchronous>, transform_indices = @transform_10, window_bounds = array<i64: 1, 8>}, {pipeline_mode = #tpu.pipeline_mode<synchronous>, transform_indices = @transform_11, window_bounds = array<i64: 64, 8>}]} {
    %c0 = arith.constant 0 : index
    %c0_0 = arith.constant 0 : index
    %0 = vector.load %arg1[%c0, %c0_0] : memref<64x8xf32, #tpu.memory_space<vmem>>, vector<64x8xf32>
    %c0_1 = arith.constant 0 : index
    %c0_2 = arith.constant 0 : index
    %1 = vector.load %arg2[%c0_1, %c0_2] : memref<64x8xf32, #tpu.memory_space<vmem>>, vector<64x8xf32>
    %c0_3 = arith.constant 0 : index
    %c0_4 = arith.constant 0 : index
    %2 = vector.load %arg3[%c0_3, %c0_4] : memref<64x64xf32, #tpu.memory_space<vmem>>, vector<64x64xf32>
    %cst = arith.constant 0.000000e+00 : f32
    %3 = vector.broadcast %cst : f32 to vector<64x8xf32>
    %c0_5 = arith.constant 0 : index
    %c0_6 = arith.constant 0 : index
    %c0_7 = arith.constant 0 : index
    %4 = vector.load %arg4[%c0_5, %c0_6, %c0_7] : memref<2x8x4xf32, #tpu.memory_space<vmem>>, vector<1x8x4xf32>
    %5 = vector.shape_cast %4 : vector<1x8x4xf32> to vector<8x4xf32>
    %6 = arith.truncf %0 : vector<64x8xf32> to vector<64x8xbf16>
    %7 = arith.truncf %5 : vector<8x4xf32> to vector<8x4xbf16>
    %cst_8 = arith.constant dense<0.000000e+00> : vector<64x4xf32>
    %8 = tpu.matmul %6, %7, %cst_8 {dimension_numbers = #tpu.dot_dimension_numbers<[1], [0], [0], [1], [0, 0, 1, 1], [], []>} : vector<64x8xbf16>, vector<8x4xbf16>, vector<64x4xf32> -> vector<64x4xf32>
    %c0_9 = arith.constant 0 : index
    %c0_10 = arith.constant 0 : index
    %c0_11 = arith.constant 0 : index
    %9 = vector.load %arg7[%c0_9, %c0_10, %c0_11] : memref<2x1x4xf32, #tpu.memory_space<vmem>>, vector<1x1x4xf32>
    %10 = vector.shape_cast %9 : vector<1x1x4xf32> to vector<1x4xf32>
    %11 = vector.broadcast %10 : vector<1x4xf32> to vector<64x4xf32>
    %12 = arith.addf %8, %11 : vector<64x4xf32>
    %c0_12 = arith.constant 0 : index
    %c0_13 = arith.constant 0 : index
    %c0_14 = arith.constant 0 : index
    %13 = vector.load %arg5[%c0_12, %c0_13, %c0_14] : memref<2x8x4xf32, #tpu.memory_space<vmem>>, vector<1x8x4xf32>
    %14 = vector.shape_cast %13 : vector<1x8x4xf32> to vector<8x4xf32>
    %15 = arith.truncf %1 : vector<64x8xf32> to vector<64x8xbf16>
    %16 = arith.truncf %14 : vector<8x4xf32> to vector<8x4xbf16>
    %cst_15 = arith.constant dense<0.000000e+00> : vector<64x4xf32>
    %17 = tpu.matmul %15, %16, %cst_15 {dimension_numbers = #tpu.dot_dimension_numbers<[1], [0], [0], [1], [0, 0, 1, 1], [], []>} : vector<64x8xbf16>, vector<8x4xbf16>, vector<64x4xf32> -> vector<64x4xf32>
    %c0_16 = arith.constant 0 : index
    %c0_17 = arith.constant 0 : index
    %c0_18 = arith.constant 0 : index
    %18 = vector.load %arg8[%c0_16, %c0_17, %c0_18] : memref<2x1x4xf32, #tpu.memory_space<vmem>>, vector<1x1x4xf32>
    %19 = vector.shape_cast %18 : vector<1x1x4xf32> to vector<1x4xf32>
    %20 = vector.broadcast %19 : vector<1x4xf32> to vector<64x4xf32>
    %21 = arith.addf %17, %20 : vector<64x4xf32>
    %c0_19 = arith.constant 0 : index
    %c0_20 = arith.constant 0 : index
    %c0_21 = arith.constant 0 : index
    %22 = vector.load %arg6[%c0_19, %c0_20, %c0_21] : memref<2x8x4xf32, #tpu.memory_space<vmem>>, vector<1x8x4xf32>
    %23 = vector.shape_cast %22 : vector<1x8x4xf32> to vector<8x4xf32>
    %24 = arith.truncf %0 : vector<64x8xf32> to vector<64x8xbf16>
    %25 = arith.truncf %23 : vector<8x4xf32> to vector<8x4xbf16>
    %cst_22 = arith.constant dense<0.000000e+00> : vector<64x4xf32>
    %26 = tpu.matmul %24, %25, %cst_22 {dimension_numbers = #tpu.dot_dimension_numbers<[1], [0], [0], [1], [0, 0, 1, 1], [], []>} : vector<64x8xbf16>, vector<8x4xbf16>, vector<64x4xf32> -> vector<64x4xf32>
    %c0_23 = arith.constant 0 : index
    %c0_24 = arith.constant 0 : index
    %c0_25 = arith.constant 0 : index
    %27 = vector.load %arg9[%c0_23, %c0_24, %c0_25] : memref<2x1x4xf32, #tpu.memory_space<vmem>>, vector<1x1x4xf32>
    %28 = vector.shape_cast %27 : vector<1x1x4xf32> to vector<1x4xf32>
    %29 = vector.broadcast %28 : vector<1x4xf32> to vector<64x4xf32>
    %30 = arith.addf %26, %29 : vector<64x4xf32>
    %31 = tpu.transpose %21, [1, 0] : vector<64x4xf32> -> vector<4x64xf32>
    %cst_26 = arith.constant dense<0.000000e+00> : vector<64x64xf32>
    %32 = tpu.matmul %12, %31, %cst_26 {dimension_numbers = #tpu.dot_dimension_numbers<[1], [0], [0], [1], [0, 0, 1, 1], [], []>} : vector<64x4xf32>, vector<4x64xf32>, vector<64x64xf32> -> vector<64x64xf32>
    %cst_27 = arith.constant 5.000000e-01 : f32
    %33 = vector.broadcast %cst_27 : f32 to vector<64x64xf32>
    %34 = arith.mulf %32, %33 : vector<64x64xf32>
    %35 = arith.addf %34, %2 : vector<64x64xf32>
    %cst_28 = arith.constant dense<0xFF800000> : vector<64xf32>
    %36 = vector.multi_reduction <maximumf>, %35, %cst_28 [1] : vector<64x64xf32> to vector<64xf32>
    %37 = vector.shape_cast %36 : vector<64xf32> to vector<64x1xf32>
    %38 = vector.broadcast %37 : vector<64x1xf32> to vector<64x64xf32>
    %39 = arith.subf %35, %38 : vector<64x64xf32>
    %40 = math.exp %39 : vector<64x64xf32>
    %cst_29 = arith.constant dense<0.000000e+00> : vector<64xf32>
    %41 = vector.multi_reduction <add>, %40, %cst_29 [1] : vector<64x64xf32> to vector<64xf32>
    %42 = vector.shape_cast %41 : vector<64xf32> to vector<64x1xf32>
    %43 = tpu.reciprocal %42 {approx = true} : vector<64x1xf32> -> vector<64x1xf32>
    %44 = vector.broadcast %43 : vector<64x1xf32> to vector<64x64xf32>
    %45 = arith.mulf %40, %44 : vector<64x64xf32>
    %46 = arith.truncf %45 : vector<64x64xf32> to vector<64x64xbf16>
    %47 = arith.truncf %30 : vector<64x4xf32> to vector<64x4xbf16>
    %cst_30 = arith.constant dense<0.000000e+00> : vector<64x4xf32>
    %48 = tpu.matmul %46, %47, %cst_30 {dimension_numbers = #tpu.dot_dimension_numbers<[1], [0], [0], [1], [0, 0, 1, 1], [], []>} : vector<64x64xbf16>, vector<64x4xbf16>, vector<64x4xf32> -> vector<64x4xf32>
    %c0_31 = arith.constant 0 : index
    %c0_32 = arith.constant 0 : index
    %c0_33 = arith.constant 0 : index
    %49 = vector.load %arg10[%c0_31, %c0_32, %c0_33] : memref<2x4x8xf32, #tpu.memory_space<vmem>>, vector<1x4x8xf32>
    %50 = vector.shape_cast %49 : vector<1x4x8xf32> to vector<4x8xf32>
    %51 = arith.truncf %48 : vector<64x4xf32> to vector<64x4xbf16>
    %52 = arith.truncf %50 : vector<4x8xf32> to vector<4x8xbf16>
    %cst_34 = arith.constant dense<0.000000e+00> : vector<64x8xf32>
    %53 = tpu.matmul %51, %52, %cst_34 {dimension_numbers = #tpu.dot_dimension_numbers<[1], [0], [0], [1], [0, 0, 1, 1], [], []>} : vector<64x4xbf16>, vector<4x8xbf16>, vector<64x8xf32> -> vector<64x8xf32>
    %54 = arith.addf %3, %53 : vector<64x8xf32>
    %c1 = arith.constant 1 : index
    %c0_35 = arith.constant 0 : index
    %c0_36 = arith.constant 0 : index
    %55 = vector.load %arg4[%c1, %c0_35, %c0_36] : memref<2x8x4xf32, #tpu.memory_space<vmem>>, vector<1x8x4xf32>
    %56 = vector.shape_cast %55 : vector<1x8x4xf32> to vector<8x4xf32>
    %57 = arith.truncf %0 : vector<64x8xf32> to vector<64x8xbf16>
    %58 = arith.truncf %56 : vector<8x4xf32> to vector<8x4xbf16>
    %cst_37 = arith.constant dense<0.000000e+00> : vector<64x4xf32>
    %59 = tpu.matmul %57, %58, %cst_37 {dimension_numbers = #tpu.dot_dimension_numbers<[1], [0], [0], [1], [0, 0, 1, 1], [], []>} : vector<64x8xbf16>, vector<8x4xbf16>, vector<64x4xf32> -> vector<64x4xf32>
    %c1_38 = arith.constant 1 : index
    %c0_39 = arith.constant 0 : index
    %c0_40 = arith.constant 0 : index
    %60 = vector.load %arg7[%c1_38, %c0_39, %c0_40] : memref<2x1x4xf32, #tpu.memory_space<vmem>>, vector<1x1x4xf32>
    %61 = vector.shape_cast %60 : vector<1x1x4xf32> to vector<1x4xf32>
    %62 = vector.broadcast %61 : vector<1x4xf32> to vector<64x4xf32>
    %63 = arith.addf %59, %62 : vector<64x4xf32>
    %c1_41 = arith.constant 1 : index
    %c0_42 = arith.constant 0 : index
    %c0_43 = arith.constant 0 : index
    %64 = vector.load %arg5[%c1_41, %c0_42, %c0_43] : memref<2x8x4xf32, #tpu.memory_space<vmem>>, vector<1x8x4xf32>
    %65 = vector.shape_cast %64 : vector<1x8x4xf32> to vector<8x4xf32>
    %66 = arith.truncf %1 : vector<64x8xf32> to vector<64x8xbf16>
    %67 = arith.truncf %65 : vector<8x4xf32> to vector<8x4xbf16>
    %cst_44 = arith.constant dense<0.000000e+00> : vector<64x4xf32>
    %68 = tpu.matmul %66, %67, %cst_44 {dimension_numbers = #tpu.dot_dimension_numbers<[1], [0], [0], [1], [0, 0, 1, 1], [], []>} : vector<64x8xbf16>, vector<8x4xbf16>, vector<64x4xf32> -> vector<64x4xf32>
    %c1_45 = arith.constant 1 : index
    %c0_46 = arith.constant 0 : index
    %c0_47 = arith.constant 0 : index
    %69 = vector.load %arg8[%c1_45, %c0_46, %c0_47] : memref<2x1x4xf32, #tpu.memory_space<vmem>>, vector<1x1x4xf32>
    %70 = vector.shape_cast %69 : vector<1x1x4xf32> to vector<1x4xf32>
    %71 = vector.broadcast %70 : vector<1x4xf32> to vector<64x4xf32>
    %72 = arith.addf %68, %71 : vector<64x4xf32>
    %c1_48 = arith.constant 1 : index
    %c0_49 = arith.constant 0 : index
    %c0_50 = arith.constant 0 : index
    %73 = vector.load %arg6[%c1_48, %c0_49, %c0_50] : memref<2x8x4xf32, #tpu.memory_space<vmem>>, vector<1x8x4xf32>
    %74 = vector.shape_cast %73 : vector<1x8x4xf32> to vector<8x4xf32>
    %75 = arith.truncf %0 : vector<64x8xf32> to vector<64x8xbf16>
    %76 = arith.truncf %74 : vector<8x4xf32> to vector<8x4xbf16>
    %cst_51 = arith.constant dense<0.000000e+00> : vector<64x4xf32>
    %77 = tpu.matmul %75, %76, %cst_51 {dimension_numbers = #tpu.dot_dimension_numbers<[1], [0], [0], [1], [0, 0, 1, 1], [], []>} : vector<64x8xbf16>, vector<8x4xbf16>, vector<64x4xf32> -> vector<64x4xf32>
    %c1_52 = arith.constant 1 : index
    %c0_53 = arith.constant 0 : index
    %c0_54 = arith.constant 0 : index
    %78 = vector.load %arg9[%c1_52, %c0_53, %c0_54] : memref<2x1x4xf32, #tpu.memory_space<vmem>>, vector<1x1x4xf32>
    %79 = vector.shape_cast %78 : vector<1x1x4xf32> to vector<1x4xf32>
    %80 = vector.broadcast %79 : vector<1x4xf32> to vector<64x4xf32>
    %81 = arith.addf %77, %80 : vector<64x4xf32>
    %82 = tpu.transpose %72, [1, 0] : vector<64x4xf32> -> vector<4x64xf32>
    %cst_55 = arith.constant dense<0.000000e+00> : vector<64x64xf32>
    %83 = tpu.matmul %63, %82, %cst_55 {dimension_numbers = #tpu.dot_dimension_numbers<[1], [0], [0], [1], [0, 0, 1, 1], [], []>} : vector<64x4xf32>, vector<4x64xf32>, vector<64x64xf32> -> vector<64x64xf32>
    %cst_56 = arith.constant 5.000000e-01 : f32
    %84 = vector.broadcast %cst_56 : f32 to vector<64x64xf32>
    %85 = arith.mulf %83, %84 : vector<64x64xf32>
    %86 = arith.addf %85, %2 : vector<64x64xf32>
    %cst_57 = arith.constant dense<0xFF800000> : vector<64xf32>
    %87 = vector.multi_reduction <maximumf>, %86, %cst_57 [1] : vector<64x64xf32> to vector<64xf32>
    %88 = vector.shape_cast %87 : vector<64xf32> to vector<64x1xf32>
    %89 = vector.broadcast %88 : vector<64x1xf32> to vector<64x64xf32>
    %90 = arith.subf %86, %89 : vector<64x64xf32>
    %91 = math.exp %90 : vector<64x64xf32>
    %cst_58 = arith.constant dense<0.000000e+00> : vector<64xf32>
    %92 = vector.multi_reduction <add>, %91, %cst_58 [1] : vector<64x64xf32> to vector<64xf32>
    %93 = vector.shape_cast %92 : vector<64xf32> to vector<64x1xf32>
    %94 = tpu.reciprocal %93 {approx = true} : vector<64x1xf32> -> vector<64x1xf32>
    %95 = vector.broadcast %94 : vector<64x1xf32> to vector<64x64xf32>
    %96 = arith.mulf %91, %95 : vector<64x64xf32>
    %97 = arith.truncf %96 : vector<64x64xf32> to vector<64x64xbf16>
    %98 = arith.truncf %81 : vector<64x4xf32> to vector<64x4xbf16>
    %cst_59 = arith.constant dense<0.000000e+00> : vector<64x4xf32>
    %99 = tpu.matmul %97, %98, %cst_59 {dimension_numbers = #tpu.dot_dimension_numbers<[1], [0], [0], [1], [0, 0, 1, 1], [], []>} : vector<64x64xbf16>, vector<64x4xbf16>, vector<64x4xf32> -> vector<64x4xf32>
    %c1_60 = arith.constant 1 : index
    %c0_61 = arith.constant 0 : index
    %c0_62 = arith.constant 0 : index
    %100 = vector.load %arg10[%c1_60, %c0_61, %c0_62] : memref<2x4x8xf32, #tpu.memory_space<vmem>>, vector<1x4x8xf32>
    %101 = vector.shape_cast %100 : vector<1x4x8xf32> to vector<4x8xf32>
    %102 = arith.truncf %99 : vector<64x4xf32> to vector<64x4xbf16>
    %103 = arith.truncf %101 : vector<4x8xf32> to vector<4x8xbf16>
    %cst_63 = arith.constant dense<0.000000e+00> : vector<64x8xf32>
    %104 = tpu.matmul %102, %103, %cst_63 {dimension_numbers = #tpu.dot_dimension_numbers<[1], [0], [0], [1], [0, 0, 1, 1], [], []>} : vector<64x4xbf16>, vector<4x8xbf16>, vector<64x8xf32> -> vector<64x8xf32>
    %105 = arith.addf %54, %104 : vector<64x8xf32>
    %106 = arith.addf %1, %105 : vector<64x8xf32>
    %c0_64 = arith.constant 0 : index
    %c0_65 = arith.constant 0 : index
    %107 = vector.load %arg11[%c0_64, %c0_65] : memref<1x8xf32, #tpu.memory_space<vmem>>, vector<1x8xf32>
    %108 = vector.broadcast %107 : vector<1x8xf32> to vector<64x8xf32>
    %109 = arith.addf %106, %108 : vector<64x8xf32>
    %110 = math.tanh %109 : vector<64x8xf32>
    %c0_66 = arith.constant 0 : index
    %c0_67 = arith.constant 0 : index
    %111 = vector.load %arg12[%c0_66, %c0_67] : memref<64x8xf32, #tpu.memory_space<vmem>>, vector<64x8xf32>
    tpu.vector_store %arg12[%c0_66, %c0_67], %110 {strides = array<i32>} : memref<64x8xf32, #tpu.memory_space<vmem>>, vector<64x8xf32>,
    return
  }
  func.func @transform_0(%arg0: i32) -> (i32, i32) {
    %c0_i32 = arith.constant 0 : i32
    %c0_i32_0 = arith.constant 0 : i32
    %c0_i32_1 = arith.constant 0 : i32
    return %c0_i32, %c0_i32_0 : i32, i32
  }
  func.func @transform_1(%arg0: i32) -> (i32, i32) {
    %c0_i32 = arith.constant 0 : i32
    %c0_i32_0 = arith.constant 0 : i32
    %c0_i32_1 = arith.constant 0 : i32
    return %c0_i32, %c0_i32_0 : i32, i32
  }
  func.func @transform_2(%arg0: i32) -> (i32, i32) {
    %c0_i32 = arith.constant 0 : i32
    %c0_i32_0 = arith.constant 0 : i32
    %c0_i32_1 = arith.constant 0 : i32
    return %c0_i32, %c0_i32_0 : i32, i32
  }
  func.func @transform_3(%arg0: i32) -> (i32, i32, i32) {
    %c0_i32 = arith.constant 0 : i32
    %c0_i32_0 = arith.constant 0 : i32
    %c0_i32_1 = arith.constant 0 : i32
    %c0_i32_2 = arith.constant 0 : i32
    return %c0_i32, %c0_i32_0, %c0_i32_1 : i32, i32, i32
  }
  func.func @transform_4(%arg0: i32) -> (i32, i32, i32) {
    %c0_i32 = arith.constant 0 : i32
    %c0_i32_0 = arith.constant 0 : i32
    %c0_i32_1 = arith.constant 0 : i32
    %c0_i32_2 = arith.constant 0 : i32
    return %c0_i32, %c0_i32_0, %c0_i32_1 : i32, i32, i32
  }
  func.func @transform_5(%arg0: i32) -> (i32, i32, i32) {
    %c0_i32 = arith.constant 0 : i32
    %c0_i32_0 = arith.constant 0 : i32
    %c0_i32_1 = arith.constant 0 : i32
    %c0_i32_2 = arith.constant 0 : i32
    return %c0_i32, %c0_i32_0, %c0_i32_1 : i32, i32, i32
  }
  func.func @transform_6(%arg0: i32) -> (i32, i32, i32) {
    %c0_i32 = arith.constant 0 : i32
    %c0_i32_0 = arith.constant 0 : i32
    %c0_i32_1 = arith.constant 0 : i32
    %c0_i32_2 = arith.constant 0 : i32
    return %c0_i32, %c0_i32_0, %c0_i32_1 : i32, i32, i32
  }
  func.func @transform_7(%arg0: i32) -> (i32, i32, i32) {
    %c0_i32 = arith.constant 0 : i32
    %c0_i32_0 = arith.constant 0 : i32
    %c0_i32_1 = arith.constant 0 : i32
    %c0_i32_2 = arith.constant 0 : i32
    return %c0_i32, %c0_i32_0, %c0_i32_1 : i32, i32, i32
  }
  func.func @transform_8(%arg0: i32) -> (i32, i32, i32) {
    %c0_i32 = arith.constant 0 : i32
    %c0_i32_0 = arith.constant 0 : i32
    %c0_i32_1 = arith.constant 0 : i32
    %c0_i32_2 = arith.constant 0 : i32
    return %c0_i32, %c0_i32_0, %c0_i32_1 : i32, i32, i32
  }
  func.func @transform_9(%arg0: i32) -> (i32, i32, i32) {
    %c0_i32 = arith.constant 0 : i32
    %c0_i32_0 = arith.constant 0 : i32
    %c0_i32_1 = arith.constant 0 : i32
    %c0_i32_2 = arith.constant 0 : i32
    return %c0_i32, %c0_i32_0, %c0_i32_1 : i32, i32, i32
  }
  func.func @transform_10(%arg0: i32) -> (i32, i32) {
    %c0_i32 = arith.constant 0 : i32
    %c0_i32_0 = arith.constant 0 : i32
    %c0_i32_1 = arith.constant 0 : i32
    return %c0_i32, %c0_i32_0 : i32, i32
  }
  func.func @transform_11(%arg0: i32) -> (i32, i32) {
    %c0_i32 = arith.constant 0 : i32
    %c0_i32_0 = arith.constant 0 : i32
    %c0_i32_1 = arith.constant 0 : i32
    return %c0_i32, %c0_i32_0 : i32, i32
  }
}

module attributes {stable_mosaic.version = 11 : i64} {
  func.func @kernel(%arg0: i32, %arg1: memref<96x8xf32, #tpu.memory_space<vmem>>, %arg2: memref<2x64x96xf32, #tpu.memory_space<vmem>>, %arg3: memref<64x1xf32, #tpu.memory_space<vmem>>, %arg4: memref<64x8xf32, #tpu.memory_space<vmem>>) attributes {dimension_semantics = [#tpu.dimension_semantics<arbitrary>], iteration_bounds = array<i64: 1>, scalar_prefetch = 0 : i64, scratch_operands = 0 : i64, tpu.core_type = #tpu.core_type<tc>, window_params = [{pipeline_mode = #tpu.pipeline_mode<synchronous>, transform_indices = @transform_0, window_bounds = array<i64: 96, 8>}, {pipeline_mode = #tpu.pipeline_mode<synchronous>, transform_indices = @transform_1, window_bounds = array<i64: 2, 64, 96>}, {pipeline_mode = #tpu.pipeline_mode<synchronous>, transform_indices = @transform_2, window_bounds = array<i64: 64, 1>}, {pipeline_mode = #tpu.pipeline_mode<synchronous>, transform_indices = @transform_3, window_bounds = array<i64: 64, 8>}]} {
    %c0 = arith.constant 0 : index
    %c0_0 = arith.constant 0 : index
    %0 = vector.load %arg1[%c0, %c0_0] : memref<96x8xf32, #tpu.memory_space<vmem>>, vector<96x8xf32>
    %c0_1 = arith.constant 0 : index
    %c0_2 = arith.constant 0 : index
    %c0_3 = arith.constant 0 : index
    %1 = vector.load %arg2[%c0_1, %c0_2, %c0_3] : memref<2x64x96xf32, #tpu.memory_space<vmem>>, vector<1x64x96xf32>
    %2 = vector.shape_cast %1 : vector<1x64x96xf32> to vector<64x96xf32>
    %3 = arith.truncf %2 : vector<64x96xf32> to vector<64x96xbf16>
    %4 = arith.truncf %0 : vector<96x8xf32> to vector<96x8xbf16>
    %cst = arith.constant dense<0.000000e+00> : vector<64x8xf32>
    %5 = tpu.matmul %3, %4, %cst {dimension_numbers = #tpu.dot_dimension_numbers<[1], [0], [0], [1], [0, 0, 1, 1], [], []>} : vector<64x96xbf16>, vector<96x8xbf16>, vector<64x8xf32> -> vector<64x8xf32>
    %6 = arith.mulf %0, %0 : vector<96x8xf32>
    %c1 = arith.constant 1 : index
    %c0_4 = arith.constant 0 : index
    %c0_5 = arith.constant 0 : index
    %7 = vector.load %arg2[%c1, %c0_4, %c0_5] : memref<2x64x96xf32, #tpu.memory_space<vmem>>, vector<1x64x96xf32>
    %8 = vector.shape_cast %7 : vector<1x64x96xf32> to vector<64x96xf32>
    %9 = arith.truncf %8 : vector<64x96xf32> to vector<64x96xbf16>
    %10 = arith.truncf %6 : vector<96x8xf32> to vector<96x8xbf16>
    %cst_6 = arith.constant dense<0.000000e+00> : vector<64x8xf32>
    %11 = tpu.matmul %9, %10, %cst_6 {dimension_numbers = #tpu.dot_dimension_numbers<[1], [0], [0], [1], [0, 0, 1, 1], [], []>} : vector<64x96xbf16>, vector<96x8xbf16>, vector<64x8xf32> -> vector<64x8xf32>
    %12 = arith.addf %5, %11 : vector<64x8xf32>
    %c0_7 = arith.constant 0 : index
    %c0_8 = arith.constant 0 : index
    %13 = vector.load %arg3[%c0_7, %c0_8] : memref<64x1xf32, #tpu.memory_space<vmem>>, vector<64x1xf32>
    %14 = vector.broadcast %13 : vector<64x1xf32> to vector<64x8xf32>
    %15 = arith.addf %12, %14 : vector<64x8xf32>
    %16 = math.tanh %15 : vector<64x8xf32>
    %c0_9 = arith.constant 0 : index
    %c0_10 = arith.constant 0 : index
    %17 = vector.load %arg4[%c0_9, %c0_10] : memref<64x8xf32, #tpu.memory_space<vmem>>, vector<64x8xf32>
    tpu.vector_store %arg4[%c0_9, %c0_10], %16 {strides = array<i32>} : memref<64x8xf32, #tpu.memory_space<vmem>>, vector<64x8xf32>,
    return
  }
  func.func @transform_0(%arg0: i32) -> (i32, i32) {
    %c0_i32 = arith.constant 0 : i32
    %c0_i32_0 = arith.constant 0 : i32
    %c0_i32_1 = arith.constant 0 : i32
    return %c0_i32, %c0_i32_0 : i32, i32
  }
  func.func @transform_1(%arg0: i32) -> (i32, i32, i32) {
    %c0_i32 = arith.constant 0 : i32
    %c0_i32_0 = arith.constant 0 : i32
    %c0_i32_1 = arith.constant 0 : i32
    %c0_i32_2 = arith.constant 0 : i32
    return %c0_i32, %c0_i32_0, %c0_i32_1 : i32, i32, i32
  }
  func.func @transform_2(%arg0: i32) -> (i32, i32) {
    %c0_i32 = arith.constant 0 : i32
    %c0_i32_0 = arith.constant 0 : i32
    %c0_i32_1 = arith.constant 0 : i32
    return %c0_i32, %c0_i32_0 : i32, i32
  }
  func.func @transform_3(%arg0: i32) -> (i32, i32) {
    %c0_i32 = arith.constant 0 : i32
    %c0_i32_0 = arith.constant 0 : i32
    %c0_i32_1 = arith.constant 0 : i32
    return %c0_i32, %c0_i32_0 : i32, i32
  }
}

module attributes {stable_mosaic.version = 11 : i64} {
  func.func @kernel(%arg0: i32, %arg1: memref<192x8xf32, #tpu.memory_space<vmem>>, %arg2: memref<2x64x192xf32, #tpu.memory_space<vmem>>, %arg3: memref<64x1xf32, #tpu.memory_space<vmem>>, %arg4: memref<64x8xf32, #tpu.memory_space<vmem>>) attributes {dimension_semantics = [#tpu.dimension_semantics<arbitrary>], iteration_bounds = array<i64: 1>, scalar_prefetch = 0 : i64, scratch_operands = 0 : i64, tpu.core_type = #tpu.core_type<tc>, window_params = [{pipeline_mode = #tpu.pipeline_mode<synchronous>, transform_indices = @transform_0, window_bounds = array<i64: 192, 8>}, {pipeline_mode = #tpu.pipeline_mode<synchronous>, transform_indices = @transform_1, window_bounds = array<i64: 2, 64, 192>}, {pipeline_mode = #tpu.pipeline_mode<synchronous>, transform_indices = @transform_2, window_bounds = array<i64: 64, 1>}, {pipeline_mode = #tpu.pipeline_mode<synchronous>, transform_indices = @transform_3, window_bounds = array<i64: 64, 8>}]} {
    %c0 = arith.constant 0 : index
    %c0_0 = arith.constant 0 : index
    %0 = vector.load %arg1[%c0, %c0_0] : memref<192x8xf32, #tpu.memory_space<vmem>>, vector<192x8xf32>
    %c0_1 = arith.constant 0 : index
    %c0_2 = arith.constant 0 : index
    %c0_3 = arith.constant 0 : index
    %1 = vector.load %arg2[%c0_1, %c0_2, %c0_3] : memref<2x64x192xf32, #tpu.memory_space<vmem>>, vector<1x64x192xf32>
    %2 = vector.shape_cast %1 : vector<1x64x192xf32> to vector<64x192xf32>
    %3 = arith.truncf %2 : vector<64x192xf32> to vector<64x192xbf16>
    %4 = arith.truncf %0 : vector<192x8xf32> to vector<192x8xbf16>
    %cst = arith.constant dense<0.000000e+00> : vector<64x8xf32>
    %5 = tpu.matmul %3, %4, %cst {dimension_numbers = #tpu.dot_dimension_numbers<[1], [0], [0], [1], [0, 0, 1, 1], [], []>} : vector<64x192xbf16>, vector<192x8xbf16>, vector<64x8xf32> -> vector<64x8xf32>
    %6 = arith.mulf %0, %0 : vector<192x8xf32>
    %c1 = arith.constant 1 : index
    %c0_4 = arith.constant 0 : index
    %c0_5 = arith.constant 0 : index
    %7 = vector.load %arg2[%c1, %c0_4, %c0_5] : memref<2x64x192xf32, #tpu.memory_space<vmem>>, vector<1x64x192xf32>
    %8 = vector.shape_cast %7 : vector<1x64x192xf32> to vector<64x192xf32>
    %9 = arith.truncf %8 : vector<64x192xf32> to vector<64x192xbf16>
    %10 = arith.truncf %6 : vector<192x8xf32> to vector<192x8xbf16>
    %cst_6 = arith.constant dense<0.000000e+00> : vector<64x8xf32>
    %11 = tpu.matmul %9, %10, %cst_6 {dimension_numbers = #tpu.dot_dimension_numbers<[1], [0], [0], [1], [0, 0, 1, 1], [], []>} : vector<64x192xbf16>, vector<192x8xbf16>, vector<64x8xf32> -> vector<64x8xf32>
    %12 = arith.addf %5, %11 : vector<64x8xf32>
    %c0_7 = arith.constant 0 : index
    %c0_8 = arith.constant 0 : index
    %13 = vector.load %arg3[%c0_7, %c0_8] : memref<64x1xf32, #tpu.memory_space<vmem>>, vector<64x1xf32>
    %14 = vector.broadcast %13 : vector<64x1xf32> to vector<64x8xf32>
    %15 = arith.addf %12, %14 : vector<64x8xf32>
    %c0_9 = arith.constant 0 : index
    %c0_10 = arith.constant 0 : index
    %16 = vector.load %arg4[%c0_9, %c0_10] : memref<64x8xf32, #tpu.memory_space<vmem>>, vector<64x8xf32>
    tpu.vector_store %arg4[%c0_9, %c0_10], %15 {strides = array<i32>} : memref<64x8xf32, #tpu.memory_space<vmem>>, vector<64x8xf32>,
    return
  }
  func.func @transform_0(%arg0: i32) -> (i32, i32) {
    %c0_i32 = arith.constant 0 : i32
    %c0_i32_0 = arith.constant 0 : i32
    %c0_i32_1 = arith.constant 0 : i32
    return %c0_i32, %c0_i32_0 : i32, i32
  }
  func.func @transform_1(%arg0: i32) -> (i32, i32, i32) {
    %c0_i32 = arith.constant 0 : i32
    %c0_i32_0 = arith.constant 0 : i32
    %c0_i32_1 = arith.constant 0 : i32
    %c0_i32_2 = arith.constant 0 : i32
    return %c0_i32, %c0_i32_0, %c0_i32_1 : i32, i32, i32
  }
  func.func @transform_2(%arg0: i32) -> (i32, i32) {
    %c0_i32 = arith.constant 0 : i32
    %c0_i32_0 = arith.constant 0 : i32
    %c0_i32_1 = arith.constant 0 : i32
    return %c0_i32, %c0_i32_0 : i32, i32
  }
  func.func @transform_3(%arg0: i32) -> (i32, i32) {
    %c0_i32 = arith.constant 0 : i32
    %c0_i32_0 = arith.constant 0 : i32
    %c0_i32_1 = arith.constant 0 : i32
    return %c0_i32, %c0_i32_0 : i32, i32
  }
}

module attributes {stable_mosaic.version = 11 : i64} {
  func.func @kernel(%arg0: i32, %arg1: memref<192x8xf32, #tpu.memory_space<vmem>>, %arg2: memref<2x64x192xf32, #tpu.memory_space<vmem>>, %arg3: memref<64x1xf32, #tpu.memory_space<vmem>>, %arg4: memref<32x8xf32, #tpu.memory_space<vmem>>, %arg5: memref<64x32xf32, #tpu.memory_space<vmem>>, %arg6: memref<64x8xf32, #tpu.memory_space<vmem>>) attributes {dimension_semantics = [#tpu.dimension_semantics<arbitrary>], iteration_bounds = array<i64: 1>, scalar_prefetch = 0 : i64, scratch_operands = 0 : i64, tpu.core_type = #tpu.core_type<tc>, window_params = [{pipeline_mode = #tpu.pipeline_mode<synchronous>, transform_indices = @transform_0, window_bounds = array<i64: 192, 8>}, {pipeline_mode = #tpu.pipeline_mode<synchronous>, transform_indices = @transform_1, window_bounds = array<i64: 2, 64, 192>}, {pipeline_mode = #tpu.pipeline_mode<synchronous>, transform_indices = @transform_2, window_bounds = array<i64: 64, 1>}, {pipeline_mode = #tpu.pipeline_mode<synchronous>, transform_indices = @transform_3, window_bounds = array<i64: 32, 8>}, {pipeline_mode = #tpu.pipeline_mode<synchronous>, transform_indices = @transform_4, window_bounds = array<i64: 64, 32>}, {pipeline_mode = #tpu.pipeline_mode<synchronous>, transform_indices = @transform_5, window_bounds = array<i64: 64, 8>}]} {
    %c0 = arith.constant 0 : index
    %c0_0 = arith.constant 0 : index
    %0 = vector.load %arg1[%c0, %c0_0] : memref<192x8xf32, #tpu.memory_space<vmem>>, vector<192x8xf32>
    %c0_1 = arith.constant 0 : index
    %c0_2 = arith.constant 0 : index
    %c0_3 = arith.constant 0 : index
    %1 = vector.load %arg2[%c0_1, %c0_2, %c0_3] : memref<2x64x192xf32, #tpu.memory_space<vmem>>, vector<1x64x192xf32>
    %2 = vector.shape_cast %1 : vector<1x64x192xf32> to vector<64x192xf32>
    %3 = arith.truncf %2 : vector<64x192xf32> to vector<64x192xbf16>
    %4 = arith.truncf %0 : vector<192x8xf32> to vector<192x8xbf16>
    %cst = arith.constant dense<0.000000e+00> : vector<64x8xf32>
    %5 = tpu.matmul %3, %4, %cst {dimension_numbers = #tpu.dot_dimension_numbers<[1], [0], [0], [1], [0, 0, 1, 1], [], []>} : vector<64x192xbf16>, vector<192x8xbf16>, vector<64x8xf32> -> vector<64x8xf32>
    %6 = arith.mulf %0, %0 : vector<192x8xf32>
    %c1 = arith.constant 1 : index
    %c0_4 = arith.constant 0 : index
    %c0_5 = arith.constant 0 : index
    %7 = vector.load %arg2[%c1, %c0_4, %c0_5] : memref<2x64x192xf32, #tpu.memory_space<vmem>>, vector<1x64x192xf32>
    %8 = vector.shape_cast %7 : vector<1x64x192xf32> to vector<64x192xf32>
    %9 = arith.truncf %8 : vector<64x192xf32> to vector<64x192xbf16>
    %10 = arith.truncf %6 : vector<192x8xf32> to vector<192x8xbf16>
    %cst_6 = arith.constant dense<0.000000e+00> : vector<64x8xf32>
    %11 = tpu.matmul %9, %10, %cst_6 {dimension_numbers = #tpu.dot_dimension_numbers<[1], [0], [0], [1], [0, 0, 1, 1], [], []>} : vector<64x192xbf16>, vector<192x8xbf16>, vector<64x8xf32> -> vector<64x8xf32>
    %12 = arith.addf %5, %11 : vector<64x8xf32>
    %c0_7 = arith.constant 0 : index
    %c0_8 = arith.constant 0 : index
    %13 = vector.load %arg3[%c0_7, %c0_8] : memref<64x1xf32, #tpu.memory_space<vmem>>, vector<64x1xf32>
    %14 = vector.broadcast %13 : vector<64x1xf32> to vector<64x8xf32>
    %15 = arith.addf %12, %14 : vector<64x8xf32>
    %c0_9 = arith.constant 0 : index
    %c0_10 = arith.constant 0 : index
    %16 = vector.load %arg5[%c0_9, %c0_10] : memref<64x32xf32, #tpu.memory_space<vmem>>, vector<64x32xf32>
    %c0_11 = arith.constant 0 : index
    %c0_12 = arith.constant 0 : index
    %17 = vector.load %arg4[%c0_11, %c0_12] : memref<32x8xf32, #tpu.memory_space<vmem>>, vector<32x8xf32>
    %18 = arith.truncf %16 : vector<64x32xf32> to vector<64x32xbf16>
    %19 = arith.truncf %17 : vector<32x8xf32> to vector<32x8xbf16>
    %cst_13 = arith.constant dense<0.000000e+00> : vector<64x8xf32>
    %20 = tpu.matmul %18, %19, %cst_13 {dimension_numbers = #tpu.dot_dimension_numbers<[1], [0], [0], [1], [0, 0, 1, 1], [], []>} : vector<64x32xbf16>, vector<32x8xbf16>, vector<64x8xf32> -> vector<64x8xf32>
    %21 = arith.addf %15, %20 : vector<64x8xf32>
    %22 = math.tanh %21 : vector<64x8xf32>
    %c0_14 = arith.constant 0 : index
    %c0_15 = arith.constant 0 : index
    %23 = vector.load %arg6[%c0_14, %c0_15] : memref<64x8xf32, #tpu.memory_space<vmem>>, vector<64x8xf32>
    tpu.vector_store %arg6[%c0_14, %c0_15], %22 {strides = array<i32>} : memref<64x8xf32, #tpu.memory_space<vmem>>, vector<64x8xf32>,
    return
  }
  func.func @transform_0(%arg0: i32) -> (i32, i32) {
    %c0_i32 = arith.constant 0 : i32
    %c0_i32_0 = arith.constant 0 : i32
    %c0_i32_1 = arith.constant 0 : i32
    return %c0_i32, %c0_i32_0 : i32, i32
  }
  func.func @transform_1(%arg0: i32) -> (i32, i32, i32) {
    %c0_i32 = arith.constant 0 : i32
    %c0_i32_0 = arith.constant 0 : i32
    %c0_i32_1 = arith.constant 0 : i32
    %c0_i32_2 = arith.constant 0 : i32
    return %c0_i32, %c0_i32_0, %c0_i32_1 : i32, i32, i32
  }
  func.func @transform_2(%arg0: i32) -> (i32, i32) {
    %c0_i32 = arith.constant 0 : i32
    %c0_i32_0 = arith.constant 0 : i32
    %c0_i32_1 = arith.constant 0 : i32
    return %c0_i32, %c0_i32_0 : i32, i32
  }
  func.func @transform_3(%arg0: i32) -> (i32, i32) {
    %c0_i32 = arith.constant 0 : i32
    %c0_i32_0 = arith.constant 0 : i32
    %c0_i32_1 = arith.constant 0 : i32
    return %c0_i32, %c0_i32_0 : i32, i32
  }
  func.func @transform_4(%arg0: i32) -> (i32, i32) {
    %c0_i32 = arith.constant 0 : i32
    %c0_i32_0 = arith.constant 0 : i32
    %c0_i32_1 = arith.constant 0 : i32
    return %c0_i32, %c0_i32_0 : i32, i32
  }
  func.func @transform_5(%arg0: i32) -> (i32, i32) {
    %c0_i32 = arith.constant 0 : i32
    %c0_i32_0 = arith.constant 0 : i32
    %c0_i32_1 = arith.constant 0 : i32
    return %c0_i32, %c0_i32_0 : i32, i32
  }
}

module attributes {stable_mosaic.version = 11 : i64} {
  func.func @kernel(%arg0: i32, %arg1: memref<192x8xf32, #tpu.memory_space<vmem>>, %arg2: memref<2x64x192xf32, #tpu.memory_space<vmem>>, %arg3: memref<64x1xf32, #tpu.memory_space<vmem>>, %arg4: memref<64x8xf32, #tpu.memory_space<vmem>>) attributes {dimension_semantics = [#tpu.dimension_semantics<arbitrary>], iteration_bounds = array<i64: 1>, scalar_prefetch = 0 : i64, scratch_operands = 0 : i64, tpu.core_type = #tpu.core_type<tc>, window_params = [{pipeline_mode = #tpu.pipeline_mode<synchronous>, transform_indices = @transform_0, window_bounds = array<i64: 192, 8>}, {pipeline_mode = #tpu.pipeline_mode<synchronous>, transform_indices = @transform_1, window_bounds = array<i64: 2, 64, 192>}, {pipeline_mode = #tpu.pipeline_mode<synchronous>, transform_indices = @transform_2, window_bounds = array<i64: 64, 1>}, {pipeline_mode = #tpu.pipeline_mode<synchronous>, transform_indices = @transform_3, window_bounds = array<i64: 64, 8>}]} {
    %c0 = arith.constant 0 : index
    %c0_0 = arith.constant 0 : index
    %0 = vector.load %arg1[%c0, %c0_0] : memref<192x8xf32, #tpu.memory_space<vmem>>, vector<192x8xf32>
    %c0_1 = arith.constant 0 : index
    %c0_2 = arith.constant 0 : index
    %c0_3 = arith.constant 0 : index
    %1 = vector.load %arg2[%c0_1, %c0_2, %c0_3] : memref<2x64x192xf32, #tpu.memory_space<vmem>>, vector<1x64x192xf32>
    %2 = vector.shape_cast %1 : vector<1x64x192xf32> to vector<64x192xf32>
    %3 = arith.truncf %2 : vector<64x192xf32> to vector<64x192xbf16>
    %4 = arith.truncf %0 : vector<192x8xf32> to vector<192x8xbf16>
    %cst = arith.constant dense<0.000000e+00> : vector<64x8xf32>
    %5 = tpu.matmul %3, %4, %cst {dimension_numbers = #tpu.dot_dimension_numbers<[1], [0], [0], [1], [0, 0, 1, 1], [], []>} : vector<64x192xbf16>, vector<192x8xbf16>, vector<64x8xf32> -> vector<64x8xf32>
    %6 = arith.mulf %0, %0 : vector<192x8xf32>
    %c1 = arith.constant 1 : index
    %c0_4 = arith.constant 0 : index
    %c0_5 = arith.constant 0 : index
    %7 = vector.load %arg2[%c1, %c0_4, %c0_5] : memref<2x64x192xf32, #tpu.memory_space<vmem>>, vector<1x64x192xf32>
    %8 = vector.shape_cast %7 : vector<1x64x192xf32> to vector<64x192xf32>
    %9 = arith.truncf %8 : vector<64x192xf32> to vector<64x192xbf16>
    %10 = arith.truncf %6 : vector<192x8xf32> to vector<192x8xbf16>
    %cst_6 = arith.constant dense<0.000000e+00> : vector<64x8xf32>
    %11 = tpu.matmul %9, %10, %cst_6 {dimension_numbers = #tpu.dot_dimension_numbers<[1], [0], [0], [1], [0, 0, 1, 1], [], []>} : vector<64x192xbf16>, vector<192x8xbf16>, vector<64x8xf32> -> vector<64x8xf32>
    %12 = arith.addf %5, %11 : vector<64x8xf32>
    %c0_7 = arith.constant 0 : index
    %c0_8 = arith.constant 0 : index
    %13 = vector.load %arg3[%c0_7, %c0_8] : memref<64x1xf32, #tpu.memory_space<vmem>>, vector<64x1xf32>
    %14 = vector.broadcast %13 : vector<64x1xf32> to vector<64x8xf32>
    %15 = arith.addf %12, %14 : vector<64x8xf32>
    %16 = math.tanh %15 : vector<64x8xf32>
    %c0_9 = arith.constant 0 : index
    %c0_10 = arith.constant 0 : index
    %17 = vector.load %arg4[%c0_9, %c0_10] : memref<64x8xf32, #tpu.memory_space<vmem>>, vector<64x8xf32>
    tpu.vector_store %arg4[%c0_9, %c0_10], %16 {strides = array<i32>} : memref<64x8xf32, #tpu.memory_space<vmem>>, vector<64x8xf32>,
    return
  }
  func.func @transform_0(%arg0: i32) -> (i32, i32) {
    %c0_i32 = arith.constant 0 : i32
    %c0_i32_0 = arith.constant 0 : i32
    %c0_i32_1 = arith.constant 0 : i32
    return %c0_i32, %c0_i32_0 : i32, i32
  }
  func.func @transform_1(%arg0: i32) -> (i32, i32, i32) {
    %c0_i32 = arith.constant 0 : i32
    %c0_i32_0 = arith.constant 0 : i32
    %c0_i32_1 = arith.constant 0 : i32
    %c0_i32_2 = arith.constant 0 : i32
    return %c0_i32, %c0_i32_0, %c0_i32_1 : i32, i32, i32
  }
  func.func @transform_2(%arg0: i32) -> (i32, i32) {
    %c0_i32 = arith.constant 0 : i32
    %c0_i32_0 = arith.constant 0 : i32
    %c0_i32_1 = arith.constant 0 : i32
    return %c0_i32, %c0_i32_0 : i32, i32
  }
  func.func @transform_3(%arg0: i32) -> (i32, i32) {
    %c0_i32 = arith.constant 0 : i32
    %c0_i32_0 = arith.constant 0 : i32
    %c0_i32_1 = arith.constant 0 : i32
    return %c0_i32, %c0_i32_0 : i32, i32
  }
}

module attributes {stable_mosaic.version = 11 : i64} {
  func.func @kernel(%arg0: i32, %arg1: memref<128x4xf32, #tpu.memory_space<vmem>>, %arg2: memref<128x4xf32, #tpu.memory_space<vmem>>, %arg3: memref<128x128xf32, #tpu.memory_space<vmem>>, %arg4: memref<2x4x2xf32, #tpu.memory_space<vmem>>, %arg5: memref<2x4x2xf32, #tpu.memory_space<vmem>>, %arg6: memref<2x4x2xf32, #tpu.memory_space<vmem>>, %arg7: memref<2x1x2xf32, #tpu.memory_space<vmem>>, %arg8: memref<2x1x2xf32, #tpu.memory_space<vmem>>, %arg9: memref<2x1x2xf32, #tpu.memory_space<vmem>>, %arg10: memref<2x2x4xf32, #tpu.memory_space<vmem>>, %arg11: memref<1x4xf32, #tpu.memory_space<vmem>>, %arg12: memref<128x4xf32, #tpu.memory_space<vmem>>) attributes {dimension_semantics = [#tpu.dimension_semantics<arbitrary>], iteration_bounds = array<i64: 1>, scalar_prefetch = 0 : i64, scratch_operands = 0 : i64, tpu.core_type = #tpu.core_type<tc>, window_params = [{pipeline_mode = #tpu.pipeline_mode<synchronous>, transform_indices = @transform_0, window_bounds = array<i64: 128, 4>}, {pipeline_mode = #tpu.pipeline_mode<synchronous>, transform_indices = @transform_1, window_bounds = array<i64: 128, 4>}, {pipeline_mode = #tpu.pipeline_mode<synchronous>, transform_indices = @transform_2, window_bounds = array<i64: 128, 128>}, {pipeline_mode = #tpu.pipeline_mode<synchronous>, transform_indices = @transform_3, window_bounds = array<i64: 2, 4, 2>}, {pipeline_mode = #tpu.pipeline_mode<synchronous>, transform_indices = @transform_4, window_bounds = array<i64: 2, 4, 2>}, {pipeline_mode = #tpu.pipeline_mode<synchronous>, transform_indices = @transform_5, window_bounds = array<i64: 2, 4, 2>}, {pipeline_mode = #tpu.pipeline_mode<synchronous>, transform_indices = @transform_6, window_bounds = array<i64: 2, 1, 2>}, {pipeline_mode = #tpu.pipeline_mode<synchronous>, transform_indices = @transform_7, window_bounds = array<i64: 2, 1, 2>}, {pipeline_mode = #tpu.pipeline_mode<synchronous>, transform_indices = @transform_8, window_bounds = array<i64: 2, 1, 2>}, {pipeline_mode = #tpu.pipeline_mode<synchronous>, transform_indices = @transform_9, window_bounds = array<i64: 2, 2, 4>}, {pipeline_mode = #tpu.pipeline_mode<synchronous>, transform_indices = @transform_10, window_bounds = array<i64: 1, 4>}, {pipeline_mode = #tpu.pipeline_mode<synchronous>, transform_indices = @transform_11, window_bounds = array<i64: 128, 4>}]} {
    %c0 = arith.constant 0 : index
    %c0_0 = arith.constant 0 : index
    %0 = vector.load %arg1[%c0, %c0_0] : memref<128x4xf32, #tpu.memory_space<vmem>>, vector<128x4xf32>
    %c0_1 = arith.constant 0 : index
    %c0_2 = arith.constant 0 : index
    %1 = vector.load %arg2[%c0_1, %c0_2] : memref<128x4xf32, #tpu.memory_space<vmem>>, vector<128x4xf32>
    %c0_3 = arith.constant 0 : index
    %c0_4 = arith.constant 0 : index
    %2 = vector.load %arg3[%c0_3, %c0_4] : memref<128x128xf32, #tpu.memory_space<vmem>>, vector<128x128xf32>
    %cst = arith.constant 0.000000e+00 : f32
    %3 = vector.broadcast %cst : f32 to vector<128x4xf32>
    %c0_5 = arith.constant 0 : index
    %c0_6 = arith.constant 0 : index
    %c0_7 = arith.constant 0 : index
    %4 = vector.load %arg4[%c0_5, %c0_6, %c0_7] : memref<2x4x2xf32, #tpu.memory_space<vmem>>, vector<1x4x2xf32>
    %5 = vector.shape_cast %4 : vector<1x4x2xf32> to vector<4x2xf32>
    %6 = arith.truncf %0 : vector<128x4xf32> to vector<128x4xbf16>
    %7 = arith.truncf %5 : vector<4x2xf32> to vector<4x2xbf16>
    %cst_8 = arith.constant dense<0.000000e+00> : vector<128x2xf32>
    %8 = tpu.matmul %6, %7, %cst_8 {dimension_numbers = #tpu.dot_dimension_numbers<[1], [0], [0], [1], [0, 0, 1, 1], [], []>} : vector<128x4xbf16>, vector<4x2xbf16>, vector<128x2xf32> -> vector<128x2xf32>
    %c0_9 = arith.constant 0 : index
    %c0_10 = arith.constant 0 : index
    %c0_11 = arith.constant 0 : index
    %9 = vector.load %arg7[%c0_9, %c0_10, %c0_11] : memref<2x1x2xf32, #tpu.memory_space<vmem>>, vector<1x1x2xf32>
    %10 = vector.shape_cast %9 : vector<1x1x2xf32> to vector<1x2xf32>
    %11 = vector.broadcast %10 : vector<1x2xf32> to vector<128x2xf32>
    %12 = arith.addf %8, %11 : vector<128x2xf32>
    %c0_12 = arith.constant 0 : index
    %c0_13 = arith.constant 0 : index
    %c0_14 = arith.constant 0 : index
    %13 = vector.load %arg5[%c0_12, %c0_13, %c0_14] : memref<2x4x2xf32, #tpu.memory_space<vmem>>, vector<1x4x2xf32>
    %14 = vector.shape_cast %13 : vector<1x4x2xf32> to vector<4x2xf32>
    %15 = arith.truncf %1 : vector<128x4xf32> to vector<128x4xbf16>
    %16 = arith.truncf %14 : vector<4x2xf32> to vector<4x2xbf16>
    %cst_15 = arith.constant dense<0.000000e+00> : vector<128x2xf32>
    %17 = tpu.matmul %15, %16, %cst_15 {dimension_numbers = #tpu.dot_dimension_numbers<[1], [0], [0], [1], [0, 0, 1, 1], [], []>} : vector<128x4xbf16>, vector<4x2xbf16>, vector<128x2xf32> -> vector<128x2xf32>
    %c0_16 = arith.constant 0 : index
    %c0_17 = arith.constant 0 : index
    %c0_18 = arith.constant 0 : index
    %18 = vector.load %arg8[%c0_16, %c0_17, %c0_18] : memref<2x1x2xf32, #tpu.memory_space<vmem>>, vector<1x1x2xf32>
    %19 = vector.shape_cast %18 : vector<1x1x2xf32> to vector<1x2xf32>
    %20 = vector.broadcast %19 : vector<1x2xf32> to vector<128x2xf32>
    %21 = arith.addf %17, %20 : vector<128x2xf32>
    %c0_19 = arith.constant 0 : index
    %c0_20 = arith.constant 0 : index
    %c0_21 = arith.constant 0 : index
    %22 = vector.load %arg6[%c0_19, %c0_20, %c0_21] : memref<2x4x2xf32, #tpu.memory_space<vmem>>, vector<1x4x2xf32>
    %23 = vector.shape_cast %22 : vector<1x4x2xf32> to vector<4x2xf32>
    %24 = arith.truncf %0 : vector<128x4xf32> to vector<128x4xbf16>
    %25 = arith.truncf %23 : vector<4x2xf32> to vector<4x2xbf16>
    %cst_22 = arith.constant dense<0.000000e+00> : vector<128x2xf32>
    %26 = tpu.matmul %24, %25, %cst_22 {dimension_numbers = #tpu.dot_dimension_numbers<[1], [0], [0], [1], [0, 0, 1, 1], [], []>} : vector<128x4xbf16>, vector<4x2xbf16>, vector<128x2xf32> -> vector<128x2xf32>
    %c0_23 = arith.constant 0 : index
    %c0_24 = arith.constant 0 : index
    %c0_25 = arith.constant 0 : index
    %27 = vector.load %arg9[%c0_23, %c0_24, %c0_25] : memref<2x1x2xf32, #tpu.memory_space<vmem>>, vector<1x1x2xf32>
    %28 = vector.shape_cast %27 : vector<1x1x2xf32> to vector<1x2xf32>
    %29 = vector.broadcast %28 : vector<1x2xf32> to vector<128x2xf32>
    %30 = arith.addf %26, %29 : vector<128x2xf32>
    %31 = tpu.transpose %21, [1, 0] : vector<128x2xf32> -> vector<2x128xf32>
    %cst_26 = arith.constant dense<0.000000e+00> : vector<128x128xf32>
    %32 = tpu.matmul %12, %31, %cst_26 {dimension_numbers = #tpu.dot_dimension_numbers<[1], [0], [0], [1], [0, 0, 1, 1], [], []>} : vector<128x2xf32>, vector<2x128xf32>, vector<128x128xf32> -> vector<128x128xf32>
    %cst_27 = arith.constant 0.707106769 : f32
    %33 = vector.broadcast %cst_27 : f32 to vector<128x128xf32>
    %34 = arith.mulf %32, %33 : vector<128x128xf32>
    %35 = arith.addf %34, %2 : vector<128x128xf32>
    %cst_28 = arith.constant dense<0xFF800000> : vector<128xf32>
    %36 = vector.multi_reduction <maximumf>, %35, %cst_28 [1] : vector<128x128xf32> to vector<128xf32>
    %37 = vector.shape_cast %36 : vector<128xf32> to vector<128x1xf32>
    %38 = vector.broadcast %37 : vector<128x1xf32> to vector<128x128xf32>
    %39 = arith.subf %35, %38 : vector<128x128xf32>
    %40 = math.exp %39 : vector<128x128xf32>
    %cst_29 = arith.constant dense<0.000000e+00> : vector<128xf32>
    %41 = vector.multi_reduction <add>, %40, %cst_29 [1] : vector<128x128xf32> to vector<128xf32>
    %42 = vector.shape_cast %41 : vector<128xf32> to vector<128x1xf32>
    %43 = tpu.reciprocal %42 {approx = true} : vector<128x1xf32> -> vector<128x1xf32>
    %44 = vector.broadcast %43 : vector<128x1xf32> to vector<128x128xf32>
    %45 = arith.mulf %40, %44 : vector<128x128xf32>
    %46 = arith.truncf %45 : vector<128x128xf32> to vector<128x128xbf16>
    %47 = arith.truncf %30 : vector<128x2xf32> to vector<128x2xbf16>
    %cst_30 = arith.constant dense<0.000000e+00> : vector<128x2xf32>
    %48 = tpu.matmul %46, %47, %cst_30 {dimension_numbers = #tpu.dot_dimension_numbers<[1], [0], [0], [1], [0, 0, 1, 1], [], []>} : vector<128x128xbf16>, vector<128x2xbf16>, vector<128x2xf32> -> vector<128x2xf32>
    %c0_31 = arith.constant 0 : index
    %c0_32 = arith.constant 0 : index
    %c0_33 = arith.constant 0 : index
    %49 = vector.load %arg10[%c0_31, %c0_32, %c0_33] : memref<2x2x4xf32, #tpu.memory_space<vmem>>, vector<1x2x4xf32>
    %50 = vector.shape_cast %49 : vector<1x2x4xf32> to vector<2x4xf32>
    %51 = arith.truncf %48 : vector<128x2xf32> to vector<128x2xbf16>
    %52 = arith.truncf %50 : vector<2x4xf32> to vector<2x4xbf16>
    %cst_34 = arith.constant dense<0.000000e+00> : vector<128x4xf32>
    %53 = tpu.matmul %51, %52, %cst_34 {dimension_numbers = #tpu.dot_dimension_numbers<[1], [0], [0], [1], [0, 0, 1, 1], [], []>} : vector<128x2xbf16>, vector<2x4xbf16>, vector<128x4xf32> -> vector<128x4xf32>
    %54 = arith.addf %3, %53 : vector<128x4xf32>
    %c1 = arith.constant 1 : index
    %c0_35 = arith.constant 0 : index
    %c0_36 = arith.constant 0 : index
    %55 = vector.load %arg4[%c1, %c0_35, %c0_36] : memref<2x4x2xf32, #tpu.memory_space<vmem>>, vector<1x4x2xf32>
    %56 = vector.shape_cast %55 : vector<1x4x2xf32> to vector<4x2xf32>
    %57 = arith.truncf %0 : vector<128x4xf32> to vector<128x4xbf16>
    %58 = arith.truncf %56 : vector<4x2xf32> to vector<4x2xbf16>
    %cst_37 = arith.constant dense<0.000000e+00> : vector<128x2xf32>
    %59 = tpu.matmul %57, %58, %cst_37 {dimension_numbers = #tpu.dot_dimension_numbers<[1], [0], [0], [1], [0, 0, 1, 1], [], []>} : vector<128x4xbf16>, vector<4x2xbf16>, vector<128x2xf32> -> vector<128x2xf32>
    %c1_38 = arith.constant 1 : index
    %c0_39 = arith.constant 0 : index
    %c0_40 = arith.constant 0 : index
    %60 = vector.load %arg7[%c1_38, %c0_39, %c0_40] : memref<2x1x2xf32, #tpu.memory_space<vmem>>, vector<1x1x2xf32>
    %61 = vector.shape_cast %60 : vector<1x1x2xf32> to vector<1x2xf32>
    %62 = vector.broadcast %61 : vector<1x2xf32> to vector<128x2xf32>
    %63 = arith.addf %59, %62 : vector<128x2xf32>
    %c1_41 = arith.constant 1 : index
    %c0_42 = arith.constant 0 : index
    %c0_43 = arith.constant 0 : index
    %64 = vector.load %arg5[%c1_41, %c0_42, %c0_43] : memref<2x4x2xf32, #tpu.memory_space<vmem>>, vector<1x4x2xf32>
    %65 = vector.shape_cast %64 : vector<1x4x2xf32> to vector<4x2xf32>
    %66 = arith.truncf %1 : vector<128x4xf32> to vector<128x4xbf16>
    %67 = arith.truncf %65 : vector<4x2xf32> to vector<4x2xbf16>
    %cst_44 = arith.constant dense<0.000000e+00> : vector<128x2xf32>
    %68 = tpu.matmul %66, %67, %cst_44 {dimension_numbers = #tpu.dot_dimension_numbers<[1], [0], [0], [1], [0, 0, 1, 1], [], []>} : vector<128x4xbf16>, vector<4x2xbf16>, vector<128x2xf32> -> vector<128x2xf32>
    %c1_45 = arith.constant 1 : index
    %c0_46 = arith.constant 0 : index
    %c0_47 = arith.constant 0 : index
    %69 = vector.load %arg8[%c1_45, %c0_46, %c0_47] : memref<2x1x2xf32, #tpu.memory_space<vmem>>, vector<1x1x2xf32>
    %70 = vector.shape_cast %69 : vector<1x1x2xf32> to vector<1x2xf32>
    %71 = vector.broadcast %70 : vector<1x2xf32> to vector<128x2xf32>
    %72 = arith.addf %68, %71 : vector<128x2xf32>
    %c1_48 = arith.constant 1 : index
    %c0_49 = arith.constant 0 : index
    %c0_50 = arith.constant 0 : index
    %73 = vector.load %arg6[%c1_48, %c0_49, %c0_50] : memref<2x4x2xf32, #tpu.memory_space<vmem>>, vector<1x4x2xf32>
    %74 = vector.shape_cast %73 : vector<1x4x2xf32> to vector<4x2xf32>
    %75 = arith.truncf %0 : vector<128x4xf32> to vector<128x4xbf16>
    %76 = arith.truncf %74 : vector<4x2xf32> to vector<4x2xbf16>
    %cst_51 = arith.constant dense<0.000000e+00> : vector<128x2xf32>
    %77 = tpu.matmul %75, %76, %cst_51 {dimension_numbers = #tpu.dot_dimension_numbers<[1], [0], [0], [1], [0, 0, 1, 1], [], []>} : vector<128x4xbf16>, vector<4x2xbf16>, vector<128x2xf32> -> vector<128x2xf32>
    %c1_52 = arith.constant 1 : index
    %c0_53 = arith.constant 0 : index
    %c0_54 = arith.constant 0 : index
    %78 = vector.load %arg9[%c1_52, %c0_53, %c0_54] : memref<2x1x2xf32, #tpu.memory_space<vmem>>, vector<1x1x2xf32>
    %79 = vector.shape_cast %78 : vector<1x1x2xf32> to vector<1x2xf32>
    %80 = vector.broadcast %79 : vector<1x2xf32> to vector<128x2xf32>
    %81 = arith.addf %77, %80 : vector<128x2xf32>
    %82 = tpu.transpose %72, [1, 0] : vector<128x2xf32> -> vector<2x128xf32>
    %cst_55 = arith.constant dense<0.000000e+00> : vector<128x128xf32>
    %83 = tpu.matmul %63, %82, %cst_55 {dimension_numbers = #tpu.dot_dimension_numbers<[1], [0], [0], [1], [0, 0, 1, 1], [], []>} : vector<128x2xf32>, vector<2x128xf32>, vector<128x128xf32> -> vector<128x128xf32>
    %cst_56 = arith.constant 0.707106769 : f32
    %84 = vector.broadcast %cst_56 : f32 to vector<128x128xf32>
    %85 = arith.mulf %83, %84 : vector<128x128xf32>
    %86 = arith.addf %85, %2 : vector<128x128xf32>
    %cst_57 = arith.constant dense<0xFF800000> : vector<128xf32>
    %87 = vector.multi_reduction <maximumf>, %86, %cst_57 [1] : vector<128x128xf32> to vector<128xf32>
    %88 = vector.shape_cast %87 : vector<128xf32> to vector<128x1xf32>
    %89 = vector.broadcast %88 : vector<128x1xf32> to vector<128x128xf32>
    %90 = arith.subf %86, %89 : vector<128x128xf32>
    %91 = math.exp %90 : vector<128x128xf32>
    %cst_58 = arith.constant dense<0.000000e+00> : vector<128xf32>
    %92 = vector.multi_reduction <add>, %91, %cst_58 [1] : vector<128x128xf32> to vector<128xf32>
    %93 = vector.shape_cast %92 : vector<128xf32> to vector<128x1xf32>
    %94 = tpu.reciprocal %93 {approx = true} : vector<128x1xf32> -> vector<128x1xf32>
    %95 = vector.broadcast %94 : vector<128x1xf32> to vector<128x128xf32>
    %96 = arith.mulf %91, %95 : vector<128x128xf32>
    %97 = arith.truncf %96 : vector<128x128xf32> to vector<128x128xbf16>
    %98 = arith.truncf %81 : vector<128x2xf32> to vector<128x2xbf16>
    %cst_59 = arith.constant dense<0.000000e+00> : vector<128x2xf32>
    %99 = tpu.matmul %97, %98, %cst_59 {dimension_numbers = #tpu.dot_dimension_numbers<[1], [0], [0], [1], [0, 0, 1, 1], [], []>} : vector<128x128xbf16>, vector<128x2xbf16>, vector<128x2xf32> -> vector<128x2xf32>
    %c1_60 = arith.constant 1 : index
    %c0_61 = arith.constant 0 : index
    %c0_62 = arith.constant 0 : index
    %100 = vector.load %arg10[%c1_60, %c0_61, %c0_62] : memref<2x2x4xf32, #tpu.memory_space<vmem>>, vector<1x2x4xf32>
    %101 = vector.shape_cast %100 : vector<1x2x4xf32> to vector<2x4xf32>
    %102 = arith.truncf %99 : vector<128x2xf32> to vector<128x2xbf16>
    %103 = arith.truncf %101 : vector<2x4xf32> to vector<2x4xbf16>
    %cst_63 = arith.constant dense<0.000000e+00> : vector<128x4xf32>
    %104 = tpu.matmul %102, %103, %cst_63 {dimension_numbers = #tpu.dot_dimension_numbers<[1], [0], [0], [1], [0, 0, 1, 1], [], []>} : vector<128x2xbf16>, vector<2x4xbf16>, vector<128x4xf32> -> vector<128x4xf32>
    %105 = arith.addf %54, %104 : vector<128x4xf32>
    %106 = arith.addf %1, %105 : vector<128x4xf32>
    %c0_64 = arith.constant 0 : index
    %c0_65 = arith.constant 0 : index
    %107 = vector.load %arg11[%c0_64, %c0_65] : memref<1x4xf32, #tpu.memory_space<vmem>>, vector<1x4xf32>
    %108 = vector.broadcast %107 : vector<1x4xf32> to vector<128x4xf32>
    %109 = arith.addf %106, %108 : vector<128x4xf32>
    %110 = math.tanh %109 : vector<128x4xf32>
    %c0_66 = arith.constant 0 : index
    %c0_67 = arith.constant 0 : index
    %111 = vector.load %arg12[%c0_66, %c0_67] : memref<128x4xf32, #tpu.memory_space<vmem>>, vector<128x4xf32>
    tpu.vector_store %arg12[%c0_66, %c0_67], %110 {strides = array<i32>} : memref<128x4xf32, #tpu.memory_space<vmem>>, vector<128x4xf32>,
    return
  }
  func.func @transform_0(%arg0: i32) -> (i32, i32) {
    %c0_i32 = arith.constant 0 : i32
    %c0_i32_0 = arith.constant 0 : i32
    %c0_i32_1 = arith.constant 0 : i32
    return %c0_i32, %c0_i32_0 : i32, i32
  }
  func.func @transform_1(%arg0: i32) -> (i32, i32) {
    %c0_i32 = arith.constant 0 : i32
    %c0_i32_0 = arith.constant 0 : i32
    %c0_i32_1 = arith.constant 0 : i32
    return %c0_i32, %c0_i32_0 : i32, i32
  }
  func.func @transform_2(%arg0: i32) -> (i32, i32) {
    %c0_i32 = arith.constant 0 : i32
    %c0_i32_0 = arith.constant 0 : i32
    %c0_i32_1 = arith.constant 0 : i32
    return %c0_i32, %c0_i32_0 : i32, i32
  }
  func.func @transform_3(%arg0: i32) -> (i32, i32, i32) {
    %c0_i32 = arith.constant 0 : i32
    %c0_i32_0 = arith.constant 0 : i32
    %c0_i32_1 = arith.constant 0 : i32
    %c0_i32_2 = arith.constant 0 : i32
    return %c0_i32, %c0_i32_0, %c0_i32_1 : i32, i32, i32
  }
  func.func @transform_4(%arg0: i32) -> (i32, i32, i32) {
    %c0_i32 = arith.constant 0 : i32
    %c0_i32_0 = arith.constant 0 : i32
    %c0_i32_1 = arith.constant 0 : i32
    %c0_i32_2 = arith.constant 0 : i32
    return %c0_i32, %c0_i32_0, %c0_i32_1 : i32, i32, i32
  }
  func.func @transform_5(%arg0: i32) -> (i32, i32, i32) {
    %c0_i32 = arith.constant 0 : i32
    %c0_i32_0 = arith.constant 0 : i32
    %c0_i32_1 = arith.constant 0 : i32
    %c0_i32_2 = arith.constant 0 : i32
    return %c0_i32, %c0_i32_0, %c0_i32_1 : i32, i32, i32
  }
  func.func @transform_6(%arg0: i32) -> (i32, i32, i32) {
    %c0_i32 = arith.constant 0 : i32
    %c0_i32_0 = arith.constant 0 : i32
    %c0_i32_1 = arith.constant 0 : i32
    %c0_i32_2 = arith.constant 0 : i32
    return %c0_i32, %c0_i32_0, %c0_i32_1 : i32, i32, i32
  }
  func.func @transform_7(%arg0: i32) -> (i32, i32, i32) {
    %c0_i32 = arith.constant 0 : i32
    %c0_i32_0 = arith.constant 0 : i32
    %c0_i32_1 = arith.constant 0 : i32
    %c0_i32_2 = arith.constant 0 : i32
    return %c0_i32, %c0_i32_0, %c0_i32_1 : i32, i32, i32
  }
  func.func @transform_8(%arg0: i32) -> (i32, i32, i32) {
    %c0_i32 = arith.constant 0 : i32
    %c0_i32_0 = arith.constant 0 : i32
    %c0_i32_1 = arith.constant 0 : i32
    %c0_i32_2 = arith.constant 0 : i32
    return %c0_i32, %c0_i32_0, %c0_i32_1 : i32, i32, i32
  }
  func.func @transform_9(%arg0: i32) -> (i32, i32, i32) {
    %c0_i32 = arith.constant 0 : i32
    %c0_i32_0 = arith.constant 0 : i32
    %c0_i32_1 = arith.constant 0 : i32
    %c0_i32_2 = arith.constant 0 : i32
    return %c0_i32, %c0_i32_0, %c0_i32_1 : i32, i32, i32
  }
  func.func @transform_10(%arg0: i32) -> (i32, i32) {
    %c0_i32 = arith.constant 0 : i32
    %c0_i32_0 = arith.constant 0 : i32
    %c0_i32_1 = arith.constant 0 : i32
    return %c0_i32, %c0_i32_0 : i32, i32
  }
  func.func @transform_11(%arg0: i32) -> (i32, i32) {
    %c0_i32 = arith.constant 0 : i32
    %c0_i32_0 = arith.constant 0 : i32
    %c0_i32_1 = arith.constant 0 : i32
    return %c0_i32, %c0_i32_0 : i32, i32
  }
}

module attributes {stable_mosaic.version = 11 : i64} {
  func.func @_head_kernel(%arg0: i32, %arg1: memref<2x64x4xf32, #tpu.memory_space<vmem>>, %arg2: memref<64x5xf32, #tpu.memory_space<vmem>>, %arg3: memref<1x5xf32, #tpu.memory_space<vmem>>, %arg4: memref<2x5xf32, #tpu.memory_space<vmem>>) attributes {dimension_semantics = [#tpu.dimension_semantics<arbitrary>], iteration_bounds = array<i64: 1>, scalar_prefetch = 0 : i64, scratch_operands = 0 : i64, tpu.core_type = #tpu.core_type<tc>, window_params = [{pipeline_mode = #tpu.pipeline_mode<synchronous>, transform_indices = @transform_0, window_bounds = array<i64: 2, 64, 4>}, {pipeline_mode = #tpu.pipeline_mode<synchronous>, transform_indices = @transform_1, window_bounds = array<i64: 64, 5>}, {pipeline_mode = #tpu.pipeline_mode<synchronous>, transform_indices = @transform_2, window_bounds = array<i64: 1, 5>}, {pipeline_mode = #tpu.pipeline_mode<synchronous>, transform_indices = @transform_3, window_bounds = array<i64: 2, 5>}]} {
    %c0 = arith.constant 0 : index
    %c0_0 = arith.constant 0 : index
    %c0_1 = arith.constant 0 : index
    %0 = vector.load %arg1[%c0, %c0_0, %c0_1] : memref<2x64x4xf32, #tpu.memory_space<vmem>>, vector<2x64x4xf32>
    %cst = arith.constant dense<0.000000e+00> : vector<2x64xf32>
    %1 = vector.multi_reduction <add>, %0, %cst [2] : vector<2x64x4xf32> to vector<2x64xf32>
    %cst_2 = arith.constant 4.000000e+00 : f32
    %2 = vector.broadcast %cst_2 : f32 to vector<2x64xf32>
    %3 = arith.divf %1, %2 : vector<2x64xf32>
    %c0_3 = arith.constant 0 : index
    %c0_4 = arith.constant 0 : index
    %4 = vector.load %arg2[%c0_3, %c0_4] : memref<64x5xf32, #tpu.memory_space<vmem>>, vector<64x5xf32>
    %cst_5 = arith.constant dense<0.000000e+00> : vector<2x5xf32>
    %5 = tpu.matmul %3, %4, %cst_5 {dimension_numbers = #tpu.dot_dimension_numbers<[1], [0], [0], [1], [0, 0, 1, 1], [], []>} : vector<2x64xf32>, vector<64x5xf32>, vector<2x5xf32> -> vector<2x5xf32>
    %c0_6 = arith.constant 0 : index
    %c0_7 = arith.constant 0 : index
    %6 = vector.load %arg3[%c0_6, %c0_7] : memref<1x5xf32, #tpu.memory_space<vmem>>, vector<1x5xf32>
    %7 = vector.broadcast %6 : vector<1x5xf32> to vector<2x5xf32>
    %8 = arith.addf %5, %7 : vector<2x5xf32>
    %cst_8 = arith.constant dense<0xFF800000> : vector<2xf32>
    %9 = vector.multi_reduction <maximumf>, %8, %cst_8 [1] : vector<2x5xf32> to vector<2xf32>
    %10 = vector.shape_cast %9 : vector<2xf32> to vector<2x1xf32>
    %11 = vector.broadcast %10 : vector<2x1xf32> to vector<2x5xf32>
    %12 = arith.subf %8, %11 : vector<2x5xf32>
    %13 = math.exp %12 : vector<2x5xf32>
    %cst_9 = arith.constant dense<0.000000e+00> : vector<2xf32>
    %14 = vector.multi_reduction <add>, %13, %cst_9 [1] : vector<2x5xf32> to vector<2xf32>
    %15 = vector.shape_cast %14 : vector<2xf32> to vector<2x1xf32>
    %16 = math.log %15 : vector<2x1xf32>
    %17 = vector.broadcast %16 : vector<2x1xf32> to vector<2x5xf32>
    %18 = arith.subf %12, %17 : vector<2x5xf32>
    %c0_10 = arith.constant 0 : index
    %c0_11 = arith.constant 0 : index
    %19 = vector.load %arg4[%c0_10, %c0_11] : memref<2x5xf32, #tpu.memory_space<vmem>>, vector<2x5xf32>
    tpu.vector_store %arg4[%c0_10, %c0_11], %18 {strides = array<i32>} : memref<2x5xf32, #tpu.memory_space<vmem>>, vector<2x5xf32>,
    return
  }
  func.func @transform_0(%arg0: i32) -> (i32, i32, i32) {
    %c0_i32 = arith.constant 0 : i32
    %c0_i32_0 = arith.constant 0 : i32
    %c0_i32_1 = arith.constant 0 : i32
    %c0_i32_2 = arith.constant 0 : i32
    return %c0_i32, %c0_i32_0, %c0_i32_1 : i32, i32, i32
  }
  func.func @transform_1(%arg0: i32) -> (i32, i32) {
    %c0_i32 = arith.constant 0 : i32
    %c0_i32_0 = arith.constant 0 : i32
    %c0_i32_1 = arith.constant 0 : i32
    return %c0_i32, %c0_i32_0 : i32, i32
  }
  func.func @transform_2(%arg0: i32) -> (i32, i32) {
    %c0_i32 = arith.constant 0 : i32
    %c0_i32_0 = arith.constant 0 : i32
    %c0_i32_1 = arith.constant 0 : i32
    return %c0_i32, %c0_i32_0 : i32, i32
  }
  func.func @transform_3(%arg0: i32) -> (i32, i32) {
    %c0_i32 = arith.constant 0 : i32
    %c0_i32_0 = arith.constant 0 : i32
    %c0_i32_1 = arith.constant 0 : i32
    return %c0_i32, %c0_i32_0 : i32, i32
  }
}

</mosaic_0001>

<bundles_post_ra>
// kernel: _lambda_.24
= control target key start
LH: loop header
LB: loop body
LE: loop exit
PB: predicated region body
PF: predicated region fallthrough
CT: control target
= control target key end

     0   :  { %s70_s10 = smov 127   ;;  %vm56_vm0 = vcmask 517120   ;;  %s137_s0 = inlined_call_operand.vmem [shape: f32[8,2,65], index: 0, kind: input, shape index: {}]   ;;  %s138_s1 = inlined_call_operand.vmem [shape: f32[8,2,64], index: 1, kind: output, shape index: {}]  }
   0x1   :  { %v10_v0 = vld [vmem:[%s137_s0 + $0x4] sm:$0x3]  ;;  %v8_v1 = vld [vmem:[%s137_s0] sm:$0x3]  ;;  %v11_v2 = vld [vmem:[%s137_s0 + $0x6] sm:$0x3] }
   0x2   :  { %28 = vrot.lane.b32.xlu1 %v10_v0, %s70_s10  ;;  %24 = vrot.lane.b32.xlu0 %v8_v1, %s70_s10  ;;  %v9_v3 = vld [vmem:[%s137_s0 + $0x2] sm:$0x3]  ;;  %v13_v4 = vld [vmem:[%s137_s0 + $0xa] sm:$0x3] }
   0x3   :  { %v12_v5 = vld [vmem:[%s137_s0 + $0x8] sm:$0x3]  ;;  %v15_v6 = vld [vmem:[%s137_s0 + $0xe] sm:$0x3]  ;;  %v14_v7 = vld [vmem:[%s137_s0 + $0xc] sm:$0x3] }
   0x6   :  { %30 = vrot.lane.b32.xlu1 %v11_v2, %s70_s10  ;;  %26 = vrot.lane.b32.xlu0 %v9_v3, %s70_s10 }
   0xa   :  { %34 = vrot.lane.b32.xlu1 %v13_v4, %s70_s10  ;;  %32 = vrot.lane.b32.xlu0 %v12_v5, %s70_s10 }
   0xe   :  { %38 = vrot.lane.b32.xlu1 %v15_v6, %s70_s10  ;;  %36 = vrot.lane.b32.xlu0 %v14_v7, %s70_s10 }
  0x74   :  { %v29_v8 = vpop.permute.xlu1 %28  ;;  %v25_v9 = vpop.permute.xlu0 %24 }
  0x75   :  { %v50_v10 = vmax.f32 %v10_v0, %v29_v8  ;;  %v48_v11 = vmax.f32 %v8_v1, %v25_v9 }
  0x77   :  { %59 = vst.msk [vmem:[%s138_s1 + $0x4] sm:$0x3] %vm56_vm0, %v50_v10  ;;  %57 = vst.msk [vmem:[%s138_s1] sm:$0x3] %vm56_vm0, %v48_v11 }
  0x78   :  { %v31_v12 = vpop.permute.xlu1 %30  ;;  %v27_v13 = vpop.permute.xlu0 %26 }
  0x79   :  { %v51_v14 = vmax.f32 %v11_v2, %v31_v12  ;;  %v49_v15 = vmax.f32 %v9_v3, %v27_v13 }
  0x7b   :  { %60 = vst.msk [vmem:[%s138_s1 + $0x6] sm:$0x3] %vm56_vm0, %v51_v14  ;;  %58 = vst.msk [vmem:[%s138_s1 + $0x2] sm:$0x3] %vm56_vm0, %v49_v15 }
  0x7c   :  { %v35_v16 = vpop.permute.xlu1 %34  ;;  %v33_v17 = vpop.permute.xlu0 %32 }
  0x7d   :  { %v53_v18 = vmax.f32 %v13_v4, %v35_v16  ;;  %v52_v19 = vmax.f32 %v12_v5, %v33_v17 }
  0x7f   :  { %62 = vst.msk [vmem:[%s138_s1 + $0xa] sm:$0x3] %vm56_vm0, %v53_v18  ;;  %61 = vst.msk [vmem:[%s138_s1 + $0x8] sm:$0x3] %vm56_vm0, %v52_v19 }
  0x80   :  { %v39_v20 = vpop.permute.xlu1 %38  ;;  %v37_v21 = vpop.permute.xlu0 %36 }
  0x81   :  { %v55_v22 = vmax.f32 %v15_v6, %v39_v20  ;;  %v54_v23 = vmax.f32 %v14_v7, %v37_v21 }
  0x83   :  { %64 = vst.msk [vmem:[%s138_s1 + $0xe] sm:$0x3] %vm56_vm0, %v55_v22  ;;  %63 = vst.msk [vmem:[%s138_s1 + $0xc] sm:$0x3] %vm56_vm0, %v54_v23 }

// kernel: _lambda_.23
= control target key start
LH: loop header
LB: loop body
LE: loop exit
PB: predicated region body
PF: predicated region fallthrough
CT: control target
= control target key end

     0   :  { %v170_v0 = vmov 0.0   ;;  %vm36_vm0 = vcmask 1045504   ;;  %vm171_vm1 = vmmov 0   ;;  %v172_v13 = vmov 0   ;;  %s219_s0 = inlined_call_operand.vmem [shape: f32[28,128], index: 0, kind: input, shape index: {}]   ;;  %s220_s2 = inlined_call_operand.vmem [shape: f32[8,1], index: 2, kind: input, shape index: {}]   ;;  %s221_s1 = inlined_call_operand.vmem [shape: f32[2,8,28], index: 1, kind: input, shape index: {}]   ;;  %s222_s3 = inlined_call_operand.vmem [shape: f32[8,128], index: 3, kind: output, shape index: {}]  }
   0x1   :  { %156 = vmatprep.subr.bf16.mxu1 %v170_v0  ;;  %v17_v1 = vld [vmem:[%s219_s0 + $0x10] sm:$0xff]  ;;  %v18_v2 = vld [vmem:[%s219_s0 + $0x18] sm:$0xf]  ;;  %148 = vmatprep.subr.bf16.mxu0 %v170_v0  ;;  %v15_v3 = vld [vmem:[%s219_s0] sm:$0xff]  ;;  %vm32_vm2 = vcmask 228352  }
   0x2   :  { %v22_v4 = vpack.c.bf16 %v18_v2, %v17_v1  ;;  %v25_v5 = vmul.f32 %v17_v1, %v17_v1  ;;  %v26_v6 = vmul.f32 %v18_v2, %v18_v2  ;;  %v16_v7 = vld [vmem:[%s219_s0 + $0x8] sm:$0xff]  ;;  %160 = vmatprep.mubr.msk.bf16.mxu1 %vm171_vm1, %v170_v0  ;;  %v23_v8 = vmul.f32 %v15_v3, %v15_v3  ;;  %v126_v10 = vld [vmem:[%s220_s2] sm:$0xff] }
   0x3   :  { %v24_v9 = vmul.f32 %v16_v7, %v16_v7  ;;  %152 = vmatprep.mubr.msk.bf16.mxu0 %vm171_vm1, %v170_v0  ;;  %167 = vset.pattern.permute.xlu0 %v172_v13  ;;  %v21_v14 = vpack.c.bf16 %v16_v7, %v15_v3  ;;  %v19_v15 = vld [vmem:[%s221_s1] sm:$0xff]  ;;  %v139_v18 = vld [vmem:[%s221_s1 + $0x8] sm:$0xff] }
   0x4   :  { %v84_v11 = vsel %vm36_vm0, %v22_v4, 0  ;;  %v31_v12 = vpack.c.bf16 %v26_v6, %v25_v5  ;;  %129 = vperm.xlu0 %167, %v126_v10   ;;  %v20_v19 = vpack.c.bf16 %v19_v15, %v19_v15  ;;  %v29_v20 = vpack.c.bf16 %v139_v18, %v139_v18 }
   0x5   :  { %157 = vmatpush3.bf16.msra.mxu1 %v84_v11  ;;  %v30_v17 = vpack.c.bf16 %v24_v9, %v23_v8 }
   0x6   :  { %v38_v16 = vsel %vm36_vm0, %v31_v12, 0  ;;  %158 = vmatprep.subr.bf16.mxu1 %v170_v0 }
   0x7   :  { %149 = vmatpush3.bf16.msra.mxu0 %v38_v16 }
   0x8   :  { %150 = vmatprep.subr.bf16.mxu0 %v170_v0 }
   0x9   :  { %159 = vmatpush3.bf16.msra.mxu1 %v21_v14 }
   0xb   :  { %151 = vmatpush3.bf16.msra.mxu0 %v30_v17 }
   0xc   :  { %161 = vmatmul.mubr.msk.bf16.vlgmr.msra.gmra.mxu1 %vm32_vm2, %v20_v19 }
   0xe   :  { %153 = vmatmul.mubr.msk.bf16.vlgmr.msra.gmra.mxu0 %vm32_vm2, %v29_v20 }
  0x7f   :  { %v130_v22 = vpop.permute.xlu0 %129 }
  0xcc   :  { %v120_v21 = vpop.f32.mrf.mxu1 }
  0xce   :  { %v74_v23 = vpop.f32.mrf.mxu0  ;;  %v162_v24 = vpop.f32.mrf.mxu1 }
  0xcf   :  { %v121_v25 = vadd.f32 %v120_v21, %v74_v23 }
  0xd0   :  { %v154_v26 = vpop.f32.mrf.mxu0  ;;  %v123_v27 = vpop.f32.mrf.mxu1 }
  0xd1   :  { %v132_v28 = vadd.f32 %v130_v22, %v121_v25 }
  0xd2   :  { %v77_v29 = vpop.f32.mrf.mxu0  ;;  %v163_v30 = vpop.f32.mrf.mxu1 }
  0xd3   :  { %168 = vtanh.f32 %v132_v28 }
  0xd4   :  { %v155_v31 = vpop.f32.mrf.mxu0 }
  0xe0   :  { %v169_v32 = vpop.eup %168 }
  0xe1   :  { %134 = vst [vmem:[%s222_s3] sm:$0xff] %v169_v32 }

// kernel: _lambda_.25
= control target key start
LH: loop header
LB: loop body
LE: loop exit
PB: predicated region body
PF: predicated region fallthrough
CT: control target
= control target key end

     0   :  { %v169_v0 = vmov 0.0   ;;  %vm34_vm0 = vcmask 1043456   ;;  %vm170_vm1 = vmmov 0   ;;  %v171_v9 = vmov 0   ;;  %s215_s0 = inlined_call_operand.vmem [shape: f32[24,64], index: 0, kind: input, shape index: {}]   ;;  %s216_s2 = inlined_call_operand.vmem [shape: f32[8,1], index: 2, kind: input, shape index: {}]   ;;  %s217_s1 = inlined_call_operand.vmem [shape: f32[2,8,24], index: 1, kind: input, shape index: {}]   ;;  %s218_s3 = inlined_call_operand.vmem [shape: f32[8,64], index: 3, kind: output, shape index: {}]  }
   0x1   :  { %155 = vmatprep.subr.bf16.mxu1 %v169_v0  ;;  %v17_v1 = vld [vmem:[%s215_s0 + $0x10] sm:$0xff]  ;;  %147 = vmatprep.subr.bf16.mxu0 %v169_v0  ;;  %v15_v2 = vld [vmem:[%s215_s0] sm:$0xff]  ;;  %v16_v3 = vld [vmem:[%s215_s0 + $0x8] sm:$0xff]  ;;  %vm30_vm2 = vcmask 195584   ;;  %vm132_vm3 = vcmask 523264  }
   0x2   :  { %v21_v4 = vpack.c.bf16 %v17_v1, %v17_v1  ;;  %v24_v5 = vmul.f32 %v17_v1, %v17_v1  ;;  %159 = vmatprep.mubr.msk.bf16.mxu1 %vm170_vm1, %v169_v0  ;;  %v124_v6 = vld [vmem:[%s216_s2] sm:$0xff]  ;;  %v22_v7 = vmul.f32 %v15_v2, %v15_v2  ;;  %v23_v8 = vmul.f32 %v16_v3, %v16_v3  ;;  %v138_v16 = vld [vmem:[%s217_s1 + $0x8] sm:$0xff] }
   0x3   :  { %151 = vmatprep.mubr.msk.bf16.mxu0 %vm170_vm1, %v169_v0  ;;  %166 = vset.pattern.permute.xlu0 %v171_v9  ;;  %v20_v12 = vpack.c.bf16 %v16_v3, %v15_v2  ;;  %v18_v13 = vld [vmem:[%s217_s1] sm:$0xff]  ;;  %v27_v18 = vpack.c.bf16 %v138_v16, %v138_v16 }
   0x4   :  { %v82_v10 = vsel %vm34_vm0, %v21_v4, 0  ;;  %v29_v11 = vpack.c.bf16 %v24_v5, %v24_v5  ;;  %127 = vperm.xlu0 %166, %v124_v6   ;;  %v28_v15 = vpack.c.bf16 %v23_v8, %v22_v7  ;;  %v19_v17 = vpack.c.bf16 %v18_v13, %v18_v13 }
   0x5   :  { %156 = vmatpush3.bf16.msra.mxu1 %v82_v10 }
   0x6   :  { %v36_v14 = vsel %vm34_vm0, %v29_v11, 0  ;;  %157 = vmatprep.subr.bf16.mxu1 %v169_v0 }
   0x7   :  { %148 = vmatpush3.bf16.msra.mxu0 %v36_v14 }
   0x8   :  { %149 = vmatprep.subr.bf16.mxu0 %v169_v0 }
   0x9   :  { %158 = vmatpush3.bf16.msra.mxu1 %v20_v12 }
   0xb   :  { %150 = vmatpush3.bf16.msra.mxu0 %v28_v15 }
   0xc   :  { %160 = vmatmul.mubr.msk.bf16.vlgmr.msra.gmra.mxu1 %vm30_vm2, %v19_v17 }
   0xe   :  { %152 = vmatmul.mubr.msk.bf16.vlgmr.msra.gmra.mxu0 %vm30_vm2, %v27_v18 }
  0x7f   :  { %v128_v20 = vpop.permute.xlu0 %127 }
  0xcc   :  { %v118_v19 = vpop.f32.mrf.mxu1 }
  0xce   :  { %v72_v21 = vpop.f32.mrf.mxu0  ;;  %v161_v22 = vpop.f32.mrf.mxu1 }
  0xcf   :  { %v119_v23 = vadd.f32 %v118_v19, %v72_v21 }
  0xd0   :  { %v153_v24 = vpop.f32.mrf.mxu0  ;;  %v121_v25 = vpop.f32.mrf.mxu1 }
  0xd1   :  { %v130_v26 = vadd.f32 %v128_v20, %v119_v23 }
  0xd2   :  { %v75_v27 = vpop.f32.mrf.mxu0  ;;  %v162_v28 = vpop.f32.mrf.mxu1 }
  0xd3   :  { %167 = vtanh.f32 %v130_v26 }
  0xd4   :  { %v154_v29 = vpop.f32.mrf.mxu0 }
  0xe0   :  { %v168_v30 = vpop.eup %167 }
  0xe1   :  { %133 = vst.msk [vmem:[%s218_s3] sm:$0xff] %vm132_vm3, %v168_v30 }

// kernel: _lambda_.26
= control target key start
LH: loop header
LB: loop body
LE: loop exit
PB: predicated region body
PF: predicated region fallthrough
CT: control target
= control target key end

     0   :  { %v174_v0 = vmov 0.0   ;;  %vm37_vm0 = vcmask 1043456   ;;  %vm175_vm1 = vmmov 0   ;;  %v176_v9 = vmov 0   ;;  %s228_s0 = inlined_call_operand.vmem [shape: f32[24,64], index: 0, kind: input, shape index: {}]   ;;  %s229_s2 = inlined_call_operand.vmem [shape: f32[8,1], index: 2, kind: input, shape index: {}]   ;;  %s230_s1 = inlined_call_operand.vmem [shape: f32[2,8,24], index: 1, kind: input, shape index: {}]   ;;  %s231_s3 = inlined_call_operand.vmem [shape: f32[8,64], index: 3, kind: input, shape index: {}]   ;;  %s232_s4 = inlined_call_operand.vmem [shape: f32[8,64], index: 4, kind: output, shape index: {}]  }
   0x1   :  { %160 = vmatprep.subr.bf16.mxu1 %v174_v0  ;;  %v20_v1 = vld [vmem:[%s228_s0 + $0x10] sm:$0xff]  ;;  %152 = vmatprep.subr.bf16.mxu0 %v174_v0  ;;  %v18_v2 = vld [vmem:[%s228_s0] sm:$0xff]  ;;  %v19_v3 = vld [vmem:[%s228_s0 + $0x8] sm:$0xff]  ;;  %vm33_vm2 = vcmask 195584   ;;  %vm137_vm3 = vcmask 523264  }
   0x2   :  { %v24_v4 = vpack.c.bf16 %v20_v1, %v20_v1  ;;  %v27_v5 = vmul.f32 %v20_v1, %v20_v1  ;;  %164 = vmatprep.mubr.msk.bf16.mxu1 %vm175_vm1, %v174_v0  ;;  %v127_v6 = vld [vmem:[%s229_s2] sm:$0xff]  ;;  %v25_v7 = vmul.f32 %v18_v2, %v18_v2  ;;  %v26_v8 = vmul.f32 %v19_v3, %v19_v3  ;;  %v143_v16 = vld [vmem:[%s230_s1 + $0x8] sm:$0xff] }
   0x3   :  { %156 = vmatprep.mubr.msk.bf16.mxu0 %vm175_vm1, %v174_v0  ;;  %171 = vset.pattern.permute.xlu0 %v176_v9  ;;  %v23_v12 = vpack.c.bf16 %v19_v3, %v18_v2  ;;  %v21_v13 = vld [vmem:[%s230_s1] sm:$0xff]  ;;  %v30_v18 = vpack.c.bf16 %v143_v16, %v143_v16 }
   0x4   :  { %v85_v10 = vsel %vm37_vm0, %v24_v4, 0  ;;  %v32_v11 = vpack.c.bf16 %v27_v5, %v27_v5  ;;  %130 = vperm.xlu0 %171, %v127_v6   ;;  %v31_v15 = vpack.c.bf16 %v26_v8, %v25_v7  ;;  %v22_v17 = vpack.c.bf16 %v21_v13, %v21_v13  ;;  %v134_v24 = vld [vmem:[%s231_s3] sm:$0xff] }
   0x5   :  { %161 = vmatpush3.bf16.msra.mxu1 %v85_v10 }
   0x6   :  { %v39_v14 = vsel %vm37_vm0, %v32_v11, 0  ;;  %162 = vmatprep.subr.bf16.mxu1 %v174_v0 }
   0x7   :  { %153 = vmatpush3.bf16.msra.mxu0 %v39_v14 }
   0x8   :  { %154 = vmatprep.subr.bf16.mxu0 %v174_v0 }
   0x9   :  { %163 = vmatpush3.bf16.msra.mxu1 %v23_v12 }
   0xb   :  { %155 = vmatpush3.bf16.msra.mxu0 %v31_v15 }
   0xc   :  { %165 = vmatmul.mubr.msk.bf16.vlgmr.msra.gmra.mxu1 %vm33_vm2, %v22_v17 }
   0xe   :  { %157 = vmatmul.mubr.msk.bf16.vlgmr.msra.gmra.mxu0 %vm33_vm2, %v30_v18 }
  0x7f   :  { %v131_v20 = vpop.permute.xlu0 %130 }
  0xcc   :  { %v121_v19 = vpop.f32.mrf.mxu1 }
  0xce   :  { %v75_v21 = vpop.f32.mrf.mxu0  ;;  %v166_v22 = vpop.f32.mrf.mxu1 }
  0xcf   :  { %v122_v23 = vadd.f32 %v121_v19, %v75_v21 }
  0xd0   :  { %v158_v25 = vpop.f32.mrf.mxu0  ;;  %v124_v26 = vpop.f32.mrf.mxu1 }
  0xd1   :  { %v133_v27 = vadd.f32 %v131_v20, %v122_v23 }
  0xd2   :  { %v78_v28 = vpop.f32.mrf.mxu0  ;;  %v167_v29 = vpop.f32.mrf.mxu1 }
  0xd3   :  { %v135_v30 = vadd.f32 %v134_v24, %v133_v27 }
  0xd4   :  { %v159_v31 = vpop.f32.mrf.mxu0 }
  0xd5   :  { %172 = vtanh.f32 %v135_v30 }
  0xe2   :  { %v173_v32 = vpop.eup %172 }
  0xe3   :  { %138 = vst.msk [vmem:[%s232_s4] sm:$0xff] %vm137_vm3, %v173_v32 }

// kernel: _lambda_.28
= control target key start
LH: loop header
LB: loop body
LE: loop exit
PB: predicated region body
PF: predicated region fallthrough
CT: control target
= control target key end

     0   :  { %v166_v0 = vmov 0.0   ;;  %vm34_vm0 = vcmask 1043456   ;;  %vm167_vm1 = vmmov 0   ;;  %v168_v9 = vmov 0   ;;  %s212_s0 = inlined_call_operand.vmem [shape: f32[24,64], index: 0, kind: input, shape index: {}]   ;;  %s213_s2 = inlined_call_operand.vmem [shape: f32[8,1], index: 2, kind: input, shape index: {}]   ;;  %s214_s1 = inlined_call_operand.vmem [shape: f32[2,8,24], index: 1, kind: input, shape index: {}]   ;;  %s215_s3 = inlined_call_operand.vmem [shape: f32[8,64], index: 3, kind: output, shape index: {}]  }
   0x1   :  { %154 = vmatprep.subr.bf16.mxu1 %v166_v0  ;;  %v17_v1 = vld [vmem:[%s212_s0 + $0x10] sm:$0xff]  ;;  %146 = vmatprep.subr.bf16.mxu0 %v166_v0  ;;  %v15_v2 = vld [vmem:[%s212_s0] sm:$0xff]  ;;  %v16_v3 = vld [vmem:[%s212_s0 + $0x8] sm:$0xff]  ;;  %vm30_vm2 = vcmask 195584   ;;  %vm131_vm3 = vcmask 523264  }
   0x2   :  { %v21_v4 = vpack.c.bf16 %v17_v1, %v17_v1  ;;  %v24_v5 = vmul.f32 %v17_v1, %v17_v1  ;;  %158 = vmatprep.mubr.msk.bf16.mxu1 %vm167_vm1, %v166_v0  ;;  %v124_v6 = vld [vmem:[%s213_s2] sm:$0xff]  ;;  %v22_v7 = vmul.f32 %v15_v2, %v15_v2  ;;  %v23_v8 = vmul.f32 %v16_v3, %v16_v3  ;;  %v137_v16 = vld [vmem:[%s214_s1 + $0x8] sm:$0xff] }
   0x3   :  { %150 = vmatprep.mubr.msk.bf16.mxu0 %vm167_vm1, %v166_v0  ;;  %165 = vset.pattern.permute.xlu0 %v168_v9  ;;  %v20_v12 = vpack.c.bf16 %v16_v3, %v15_v2  ;;  %v18_v13 = vld [vmem:[%s214_s1] sm:$0xff]  ;;  %v27_v18 = vpack.c.bf16 %v137_v16, %v137_v16 }
   0x4   :  { %v82_v10 = vsel %vm34_vm0, %v21_v4, 0  ;;  %v29_v11 = vpack.c.bf16 %v24_v5, %v24_v5  ;;  %127 = vperm.xlu0 %165, %v124_v6   ;;  %v28_v15 = vpack.c.bf16 %v23_v8, %v22_v7  ;;  %v19_v17 = vpack.c.bf16 %v18_v13, %v18_v13 }
   0x5   :  { %155 = vmatpush3.bf16.msra.mxu1 %v82_v10 }
   0x6   :  { %v36_v14 = vsel %vm34_vm0, %v29_v11, 0  ;;  %156 = vmatprep.subr.bf16.mxu1 %v166_v0 }
   0x7   :  { %147 = vmatpush3.bf16.msra.mxu0 %v36_v14 }
   0x8   :  { %148 = vmatprep.subr.bf16.mxu0 %v166_v0 }
   0x9   :  { %157 = vmatpush3.bf16.msra.mxu1 %v20_v12 }
   0xb   :  { %149 = vmatpush3.bf16.msra.mxu0 %v28_v15 }
   0xc   :  { %159 = vmatmul.mubr.msk.bf16.vlgmr.msra.gmra.mxu1 %vm30_vm2, %v19_v17 }
   0xe   :  { %151 = vmatmul.mubr.msk.bf16.vlgmr.msra.gmra.mxu0 %vm30_vm2, %v27_v18 }
  0x7f   :  { %v128_v20 = vpop.permute.xlu0 %127 }
  0xcc   :  { %v118_v19 = vpop.f32.mrf.mxu1 }
  0xce   :  { %v72_v21 = vpop.f32.mrf.mxu0  ;;  %v160_v22 = vpop.f32.mrf.mxu1 }
  0xcf   :  { %v119_v23 = vadd.f32 %v118_v19, %v72_v21 }
  0xd0   :  { %v152_v24 = vpop.f32.mrf.mxu0  ;;  %v121_v25 = vpop.f32.mrf.mxu1 }
  0xd1   :  { %v130_v26 = vadd.f32 %v128_v20, %v119_v23 }
  0xd2   :  { %v75_v27 = vpop.f32.mrf.mxu0  ;;  %v161_v28 = vpop.f32.mrf.mxu1 }
  0xd3   :  { %132 = vst.msk [vmem:[%s215_s3] sm:$0xff] %vm131_vm3, %v130_v26 }
  0xd4   :  { %v153_v29 = vpop.f32.mrf.mxu0 }

// kernel: _lambda_.30
= control target key start
LH: loop header
LB: loop body
LE: loop exit
PB: predicated region body
PF: predicated region fallthrough
CT: control target
= control target key end

     0   :  { %v185_v0 = vmov 0.0   ;;  %vm36_vm0 = vcmask 1043456   ;;  %vm186_vm1 = vmmov 0   ;;  %v187_v8 = vmov 0   ;;  %s243_s0 = inlined_call_operand.vmem [shape: f32[24,32], index: 0, kind: input, shape index: {}]   ;;  %s244_s2 = inlined_call_operand.vmem [shape: f32[16,1], index: 2, kind: input, shape index: {}]   ;;  %s245_s1 = inlined_call_operand.vmem [shape: f32[2,16,24], index: 1, kind: input, shape index: {}]   ;;  %s246_s3 = inlined_call_operand.vmem [shape: f32[16,32], index: 3, kind: output, shape index: {}]  }
   0x1   :  { %169 = vmatprep.subr.bf16.mxu1 %v185_v0  ;;  %v17_v1 = vld [vmem:[%s243_s0 + $0x10] sm:$0xff]  ;;  %161 = vmatprep.subr.bf16.mxu0 %v185_v0  ;;  %v15_v2 = vld [vmem:[%s243_s0] sm:$0xff]  ;;  %v16_v3 = vld [vmem:[%s243_s0 + $0x8] sm:$0xff]  ;;  %vm32_vm2 = vcmask 195584   ;;  %vm144_vm3 = vcmask 261120  }
   0x2   :  { %v22_v4 = vpack.c.bf16 %v17_v1, %v17_v1  ;;  %v25_v5 = vmul.f32 %v17_v1, %v17_v1  ;;  %173 = vmatprep.mubr.msk.bf16.mxu1 %vm186_vm1, %v185_v0  ;;  %v23_v6 = vmul.f32 %v15_v2, %v15_v2  ;;  %v24_v7 = vmul.f32 %v16_v3, %v16_v3  ;;  %v128_v9 = vld [vmem:[%s244_s2] sm:$0xff]  ;;  %v19_v14 = vld [vmem:[%s245_s1 + $0x8] sm:$0xff]  ;;  %v151_v18 = vld [vmem:[%s245_s1 + $0x10] sm:$0xff] }
   0x3   :  { %165 = vmatprep.mubr.msk.bf16.mxu0 %vm186_vm1, %v185_v0  ;;  %180 = vset.pattern.permute.xlu0 %v187_v8  ;;  %v21_v12 = vpack.c.bf16 %v16_v3, %v15_v2  ;;  %v18_v13 = vld [vmem:[%s245_s1] sm:$0xff]  ;;  %v129_v15 = vld [vmem:[%s244_s2 + $0x8] sm:$0xff]  ;;  %v152_v19 = vld [vmem:[%s245_s1 + $0x18] sm:$0xff] }
   0x4   :  { %v85_v10 = vsel %vm36_vm0, %v22_v4, 0  ;;  %v31_v11 = vpack.c.bf16 %v25_v5, %v25_v5  ;;  %132 = vperm.xlu0 %180, %v128_v9   ;;  %v30_v17 = vpack.c.bf16 %v24_v7, %v23_v6  ;;  %v20_v20 = vpack.c.bf16 %v19_v14, %v18_v13 }
   0x5   :  { %170 = vmatpush3.bf16.msra.mxu1 %v85_v10  ;;  %v29_v21 = vpack.c.bf16 %v152_v19, %v151_v18 }
   0x6   :  { %v38_v16 = vsel %vm36_vm0, %v31_v11, 0  ;;  %171 = vmatprep.subr.bf16.mxu1 %v185_v0 }
   0x7   :  { %162 = vmatpush3.bf16.msra.mxu0 %v38_v16 }
   0x8   :  { %163 = vmatprep.subr.bf16.mxu0 %v185_v0  ;;  %137 = vperm.xlu0 %180, %v129_v15  }
   0x9   :  { %172 = vmatpush3.bf16.msra.mxu1 %v21_v12 }
   0xb   :  { %164 = vmatpush3.bf16.msra.mxu0 %v30_v17 }
   0xc   :  { %174 = vmatmul.mubr.msk.bf16.vlgmr.msra.gmra.mxu1 %vm32_vm2, %v20_v20 }
   0xe   :  { %166 = vmatmul.mubr.msk.bf16.vlgmr.msra.gmra.mxu0 %vm32_vm2, %v29_v21 }
  0x7f   :  { %v133_v23 = vpop.permute.xlu0 %132 }
  0x83   :  { %v138_v33 = vpop.permute.xlu0 %137 }
  0xcc   :  { %v121_v22 = vpop.f32.mrf.mxu1 }
  0xce   :  { %v74_v24 = vpop.f32.mrf.mxu0  ;;  %v175_v25 = vpop.f32.mrf.mxu1 }
  0xcf   :  { %v122_v26 = vadd.f32 %v121_v22, %v74_v24 }
  0xd0   :  { %v167_v27 = vpop.f32.mrf.mxu0  ;;  %v124_v28 = vpop.f32.mrf.mxu1 }
  0xd1   :  { %v140_v29 = vadd.f32 %v133_v23, %v122_v26 }
  0xd2   :  { %v77_v30 = vpop.f32.mrf.mxu0  ;;  %v176_v31 = vpop.f32.mrf.mxu1 }
  0xd3   :  { %181 = vtanh.f32 %v140_v29  ;;  %v125_v32 = vadd.f32 %v124_v28, %v77_v30 }
  0xd4   :  { %v168_v34 = vpop.f32.mrf.mxu0 }
  0xd5   :  { %v141_v35 = vadd.f32 %v138_v33, %v125_v32 }
  0xd7   :  { %183 = vtanh.f32 %v141_v35 }
  0xe0   :  { %v182_v36 = vpop.eup %181 }
  0xe1   :  { %145 = vst.msk [vmem:[%s246_s3] sm:$0xff] %vm144_vm3, %v182_v36 }
  0xe4   :  { %v184_v37 = vpop.eup %183 }
  0xe5   :  { %146 = vst.msk [vmem:[%s246_s3 + $0x8] sm:$0xff] %vm144_vm3, %v184_v37 }

// kernel: _lambda_.29
= control target key start
LH: loop header
LB: loop body
LE: loop exit
PB: predicated region body
PF: predicated region fallthrough
CT: control target
= control target key end

     0   :  { %v1003_v0 = vmov 0.0   ;;  %vm1004_vm0 = vmmov 0   ;;  %vm59_vm1 = vcmask 261120   ;;  %vm216_vm2 = vcmask 130048   ;;  %s1297_s4 = inlined_call_operand.vmem [shape: f32[2,32,16], index: 4, kind: input, shape index: {}]   ;;  %s1298_s3 = inlined_call_operand.vmem [shape: f32[2,32,16], index: 3, kind: input, shape index: {}]   ;;  %s1299_s1 = inlined_call_operand.vmem [shape: f32[16,32], index: 1, kind: input, shape index: {}]   ;;  %s1300_s0 = inlined_call_operand.vmem [shape: f32[16,32], index: 0, kind: input, shape index: {}]   ;;  %s1301_s6 = inlined_call_operand.vmem [shape: f32[2,1,16], index: 6, kind: input, shape index: {}]   ;;  %s1302_s7 = inlined_call_operand.vmem [shape: f32[2,1,16], index: 7, kind: input, shape index: {}]   ;;  %s1303_s5 = inlined_call_operand.vmem [shape: f32[2,32,16], index: 5, kind: input, shape index: {}]   ;;  %s1304_s2 = inlined_call_operand.vmem [shape: f32[16,16], index: 2, kind: input, shape index: {}]   ;;  %s1305_s8 = inlined_call_operand.vmem [shape: f32[2,1,16], index: 8, kind: input, shape index: {}]   ;;  %s1306_s9 = inlined_call_operand.vmem [shape: f32[2,16,32], index: 9, kind: input, shape index: {}]   ;;  %s1307_s10 = inlined_call_operand.vmem [shape: f32[1,32], index: 10, kind: input, shape index: {}]   ;;  %s1308_s11 = inlined_call_operand.vmem [shape: f32[16,32], index: 11, kind: output, shape index: {}]  }
   0x1   :  { %903 = vmatprep.subr.bf16.mxu1 %v1003_v0  ;;  %v106_v1 = vld [vmem:[%s1297_s4 + $0x10] sm:$0xff]  ;;  %v107_v2 = vld [vmem:[%s1297_s4 + $0x18] sm:$0xff]  ;;  %895 = vmatprep.subr.bf16.mxu0 %v1003_v0  ;;  %v104_v6 = vld [vmem:[%s1297_s4] sm:$0xff] }
   0x2   :  { %v47_v3 = vld [vmem:[%s1298_s3 + $0x10] sm:$0xff]  ;;  %v110_v4 = vpack.c.bf16 %v107_v2, %v106_v1  ;;  %v48_v5 = vld [vmem:[%s1298_s3 + $0x18] sm:$0xff]  ;;  %v105_v7 = vld [vmem:[%s1297_s4 + $0x8] sm:$0xff]  ;;  %907 = vmatprep.mubr.msk.bf16.mxu1 %vm1004_vm0, %v1003_v0  ;;  %899 = vmatprep.mubr.msk.bf16.mxu0 %vm1004_vm0, %v1003_v0 }
   0x3   :  { %v51_v8 = vpack.c.bf16 %v48_v5, %v47_v3  ;;  %v45_v9 = vld [vmem:[%s1298_s3] sm:$0xff]  ;;  %v46_v10 = vld [vmem:[%s1298_s3 + $0x8] sm:$0xff]  ;;  %v109_v11 = vpack.c.bf16 %v105_v7, %v104_v6  ;;  %v164_v33 = vld [vmem:[%s1303_s5 + $0x10] sm:$0xff] }
   0x4   :  { %904 = vmatpush3.bf16.msra.mxu1 %v110_v4  ;;  %v1098_v12 = vld [vmem:[%s1299_s1] sm:$0xff]  ;;  %v1103_v13 = vld [vmem:[%s1299_s1 + $0x8] sm:$0xff]  ;;  %v50_v14 = vpack.c.bf16 %v46_v10, %v45_v9  ;;  %v165_v34 = vld [vmem:[%s1303_s5 + $0x18] sm:$0xff] }
   0x5   :  { %896 = vmatpush3.bf16.msra.mxu0 %v51_v8  ;;  %905 = vmatprep.subr.bf16.mxu1 %v1003_v0  ;;  %v39_v15 = vld [vmem:[%s1300_s0] sm:$0xff]  ;;  %v40_v16 = vld [vmem:[%s1300_s0 + $0x8] sm:$0xff]  ;;  %v1115_v17 = vpack.c.bf16 %v1103_v13, %v1098_v12  ;;  %v167_v36 = vpack.c.bf16 %v165_v34, %v164_v33  ;;  %v832_v4 = vld [vmem:[%s1298_s3 + $0x30] sm:$0xff] }
   0x6   :  { %897 = vmatprep.subr.bf16.mxu0 %v1003_v0  ;;  %v1117_v18 = vpack.c.bf16 %v40_v16, %v39_v15  ;;  %v819_v19 = vld [vmem:[%s1301_s6] ss:$0 sm:$0xff]  ;;  %v163_v37 = vld [vmem:[%s1303_s5 + $0x8] sm:$0xff]  ;;  %v833_v5 = vld [vmem:[%s1298_s3 + $0x38] sm:$0xff] }
   0x7   :  { %v821_v25 = vld [vmem:[%s1302_s7] ss:$0 sm:$0xff]  ;;  %v1167_v44 = vld [vmem:[%s1304_s2 + $0x8] sm:$0xff]  ;;  %v386_v6 = vpack.c.bf16 %v833_v5, %v832_v4  ;;  %v839_v15 = vld [vmem:[%s1297_s4 + $0x30] sm:$0xff] }
   0x8   :  { %906 = vmatpush3.bf16.msra.mxu1 %v109_v11  ;;  %v162_v35 = vld [vmem:[%s1303_s5] sm:$0xff]  ;;  %v831_v8 = vld [vmem:[%s1298_s3 + $0x28] sm:$0xff]  ;;  %v840_v16 = vld [vmem:[%s1297_s4 + $0x38] sm:$0xff] }
   0x9   :  { %898 = vmatpush3.bf16.msra.mxu0 %v50_v14  ;;  %v166_v38 = vpack.c.bf16 %v163_v37, %v162_v35  ;;  %v1162_v41 = vld [vmem:[%s1304_s2] sm:$0xff] }
   0xa   :  { %911 = vmatprep.subr.bf16.mxu0 %v1003_v0  ;;  %v823_v60 = vld [vmem:[%s1305_s8] ss:$0 sm:$0xff] }
   0xb   :  { %908 = vmatmul.mubr.msk.bf16.vlgmr.msra.gmra.mxu1 %vm59_vm1, %v1115_v17  ;;  %v830_v7 = vld [vmem:[%s1298_s3 + $0x20] sm:$0xff] }
   0xc   :  { %900 = vmatmul.mubr.msk.bf16.vlgmr.msra.gmra.mxu0 %vm59_vm1, %v1117_v18  ;;  %v385_v9 = vpack.c.bf16 %v831_v8, %v830_v7  ;;  %v849_v7 = vld [vmem:[%s1305_s8 + $0x1] ss:$0 sm:$0xff] }
   0xd   :  { %915 = vmatprep.mubr.msk.bf16.mxu0 %vm1004_vm0, %v1003_v0  ;;  %912 = vmatpush3.bf16.msra.mxu0 %v167_v36 }
   0xe   :  { %913 = vmatprep.subr.bf16.mxu0 %v1003_v0 }
  0x11   :  { %914 = vmatpush3.bf16.msra.mxu0 %v166_v38 }
  0x12   :  { %932 = vmatprep.subr.bf16.mxu0 %v1003_v0 }
  0x14   :  { %916 = vmatmul.mubr.msk.bf16.vlgmr.msra.gmra.mxu0 %vm59_vm1, %v1117_v18 }
  0x15   :  { %936 = vmatprep.mubr.msk.bf16.mxu0 %vm1004_vm0, %v1003_v0  ;;  %933 = vmatpush3.bf16.msra.mxu0 %v386_v6 }
  0x16   :  { %934 = vmatprep.subr.bf16.mxu0 %v1003_v0 }
  0x19   :  { %935 = vmatpush3.bf16.msra.mxu0 %v385_v9 }
  0x1a   :  { %948 = vmatprep.subr.bf16.mxu0 %v1003_v0 }
  0x1c   :  { %937 = vmatmul.mubr.msk.bf16.vlgmr.msra.gmra.mxu0 %vm59_vm1, %v1117_v18 }
  0x1d   :  { %952 = vmatprep.mubr.msk.bf16.mxu0 %vm1004_vm0, %v1003_v0 }
  0xcb   :  { %v155_v20 = vpop.f32.mrf.mxu1 }
  0xcc   :  { %v97_v21 = vpop.f32.mrf.mxu0  ;;  %v156_v30 = vadd.f32 %v821_v25, %v155_v20 }
  0xcd   :  { %v98_v22 = vadd.f32 %v819_v19, %v97_v21  ;;  %v909_v23 = vpop.f32.mrf.mxu1 }
  0xce   :  { %v901_v24 = vpop.f32.mrf.mxu0 }
  0xcf   :  { %v158_v26 = vpop.f32.mrf.mxu1  ;;  %923 = vmatprep.mubr.msk.f32.mxu1 %vm216_vm2, %v98_v22  ;;  %v442_v22 = vpack.c.bf16 %v840_v16, %v839_v15  ;;  %v837_v24 = vld [vmem:[%s1297_s4 + $0x20] sm:$0xff] }
  0xd0   :  { %v159_v27 = vadd.f32 %v821_v25, %v158_v26  ;;  %v100_v28 = vpop.f32.mrf.mxu0  ;;  %v838_v25 = vld [vmem:[%s1297_s4 + $0x28] sm:$0xff] }
  0xd1   :  { %v910_v29 = vpop.f32.mrf.mxu1  ;;  %v101_v32 = vadd.f32 %v819_v19, %v100_v28  ;;  %v441_v26 = vpack.c.bf16 %v838_v25, %v837_v24 }
  0xd2   :  { %919 = vmatprep.subr.msk.mxu1 %vm216_vm2, %v159_v27  ;;  %v902_v31 = vpop.f32.mrf.mxu0 }
  0xd3   :  { %920 = vmatpush3.xpose.msk.msra.mxu1 %vm216_vm2, %v159_v27  ;;  %v835_v27 = vld [vmem:[%s1301_s6 + $0x1] ss:$0 sm:$0xff] }
  0xd4   :  { %921 = vmatprep.subr.msk.mxu1 %vm216_vm2, %v156_v30  ;;  %v209_v59 = vpop.f32.mrf.mxu0 }
  0xd5   :  { %v210_v62 = vadd.f32 %v823_v60, %v209_v59 }
  0xd6   :  { %v917_v61 = vpop.f32.mrf.mxu0 }
  0xd7   :  { %922 = vmatpush3.xpose.msk.msra.mxu1 %vm216_vm2, %v156_v30 }
  0xd8   :  { %926 = vmatprep.subr.bf16.mxu1 %v1003_v0  ;;  %v212_v63 = vpop.f32.mrf.mxu0 }
  0xd9   :  { %v213_v1 = vadd.f32 %v823_v60, %v212_v63 }
  0xda   :  { %924 = vmatmul.mubr.msk.f32.vlgmr.msra.gmra.mxu1 %vm216_vm2, %v101_v32  ;;  %v918_v2 = vpop.f32.mrf.mxu0 }
  0xdb   :  { %928 = vmatprep.mubr.msk.bf16.mxu1 %vm1004_vm0, %v1003_v0  ;;  %v331_v3 = vpack.c.bf16 %v213_v1, %v210_v62 }
  0xdc   :  { %v429_v28 = vpop.f32.mrf.mxu0 }
  0xdd   :  { %927 = vmatpush3.bf16.msra.mxu1 %v331_v3  ;;  %v430_v29 = vadd.f32 %v835_v27, %v429_v28  ;;  %v857_v28 = vld [vmem:[%s1306_s9 + $0x18] sm:$0xff] }
  0xde   :  { %940 = vmatprep.subr.bf16.mxu1 %v1003_v0  ;;  %v938_v30 = vpop.f32.mrf.mxu0 }
  0xe0   :  { %v432_v31 = vpop.f32.mrf.mxu0 }
  0xe1   :  { %v433_v32 = vadd.f32 %v835_v27, %v432_v31  ;;  %v856_v27 = vld [vmem:[%s1306_s9 + $0x10] sm:$0xff] }
  0xe2   :  { %v939_v33 = vpop.f32.mrf.mxu0 }
 0x19a   :  { %v925_v39 = vpop.f32.mrf.mxu1 }
 0x19b   :  { %v305_v42 = vmul.f32 0.25, %v925_v39 }
 0x19c   :  { %v295_v40 = vpop.f32.mrf.mxu1 }
 0x19d   :  { %v304_v43 = vmul.f32 0.25, %v295_v40  ;;  %v307_v47 = vadd.f32 %v305_v42, %v1167_v44  ;;  %v842_v40 = vld [vmem:[%s1302_s7 + $0x1] ss:$0 sm:$0xff] }
 0x19f   :  { %v306_v45 = vadd.f32 %v304_v43, %v1162_v41  ;;  %v311_v48 = vsel %vm216_vm2, %v307_v47, -inf }
 0x1a1   :  { %v308_v46 = vsel %vm216_vm2, %v306_v45, -inf }
 0x1a2   :  { %309 = vmax.xlane.f32.xlu0 %v308_v46 }
 0x1a6   :  { %312 = vmax.xlane.f32.xlu0 %v311_v48  ;;  %v847_v48 = vld [vmem:[%s1303_s5 + $0x38] sm:$0xff] }
 0x22b   :  { %v310_v49 = vpop.xlane.xlu0 %309 }
 0x22c   :  { %v314_v50 = vsub.f32 %v306_v45, %v310_v49  ;;  %v844_v49 = vld [vmem:[%s1303_s5 + $0x20] sm:$0xff] }
 0x22e   :  { %v316_v51 = vmul.f32 1.442695, %v314_v50 }
 0x22f   :  { %v313_v52 = vpop.xlane.xlu0 %312 }
 0x230   :  { %983 = vpow2.f32 %v316_v51  ;;  %v315_v53 = vsub.f32 %v307_v47, %v313_v52  ;;  %v846_v47 = vld [vmem:[%s1303_s5 + $0x30] sm:$0xff]  ;;  %v845_v51 = vld [vmem:[%s1303_s5 + $0x28] sm:$0xff] }
 0x231   :  { %v498_v50 = vpack.c.bf16 %v847_v48, %v846_v47  ;;  %v497_v52 = vpack.c.bf16 %v845_v51, %v844_v49 }
 0x232   :  { %v318_v54 = vmul.f32 1.442695, %v315_v53 }
 0x233   :  { %949 = vmatpush3.bf16.msra.mxu0 %v498_v50 }
 0x234   :  { %985 = vpow2.f32 %v318_v54  ;;  %950 = vmatprep.subr.bf16.mxu0 %v1003_v0 }
 0x237   :  { %951 = vmatpush3.bf16.msra.mxu0 %v497_v52 }
 0x238   :  { %963 = vmatprep.subr.bf16.mxu0 %v1003_v0 }
 0x23a   :  { %953 = vmatmul.mubr.msk.bf16.vlgmr.msra.gmra.mxu0 %vm59_vm1, %v1117_v18 }
 0x23b   :  { %965 = vmatprep.mubr.msk.bf16.mxu0 %vm1004_vm0, %v1003_v0 }
 0x23d   :  { %v984_v55 = vpop.eup %983 }
 0x23e   :  { %v320_v56 = vsel %vm216_vm2, %v984_v55, 0.0 }
 0x23f   :  { %321 = vadd.xlane.f32.xlu1 %v320_v56 }
 0x241   :  { %v986_v57 = vpop.eup %985 }
 0x242   :  { %v323_v58 = vsel %vm216_vm2, %v986_v57, 0.0 }
 0x243   :  { %324 = vadd.xlane.f32.xlu1 %v323_v58 }
 0x2c8   :  { %v322_v10 = vpop.xlane.xlu1 %321 }
 0x2c9   :  { %987 = vrcp.f32 %v322_v10 }
 0x2cc   :  { %v325_v11 = vpop.xlane.xlu1 %324 }
 0x2cd   :  { %989 = vrcp.f32 %v325_v11 }
 0x2d6   :  { %v988_v14 = vpop.eup %987 }
 0x2d7   :  { %v328_v20 = vmul.f32 %v988_v14, %v984_v55 }
 0x2da   :  { %v990_v19 = vpop.eup %989 }
 0x2db   :  { %v329_v21 = vmul.f32 %v990_v19, %v986_v57 }
 0x2dd   :  { %v330_v23 = vpack.c.bf16 %v329_v21, %v328_v20  ;;  %v376_v20 = vld [vmem:[%s1306_s9] sm:$0xff]  ;;  %v377_v21 = vld [vmem:[%s1306_s9 + $0x8] sm:$0xff] }
 0x2de   :  { %v379_v25 = vpack.c.bf16 %v377_v21, %v376_v20 }
 0x2df   :  { %929 = vmatmul.mubr.msk.bf16.vlgmr.msra.gmra.mxu1 %vm216_vm2, %v330_v23 }
 0x2e0   :  { %941 = vmatpush3.bf16.msra.mxu1 %v442_v22  ;;  %944 = vmatprep.mubr.msk.bf16.mxu1 %vm1004_vm0, %v1003_v0 }
 0x2e1   :  { %942 = vmatprep.subr.bf16.mxu1 %v1003_v0 }
 0x2e4   :  { %943 = vmatpush3.bf16.msra.mxu1 %v441_v26 }
 0x2e7   :  { %945 = vmatmul.mubr.msk.bf16.vlgmr.msra.gmra.mxu1 %vm59_vm1, %v1115_v17 }
 0x2e8   :  { %960 = vmatprep.mubr.msk.f32.mxu1 %vm216_vm2, %v430_v29  ;;  %v711_v29 = vpack.c.bf16 %v857_v28, %v856_v27 }
 0x2fa   :  { %v541_v61 = vpop.f32.mrf.mxu0 }
 0x2fb   :  { %v542_v9 = vadd.f32 %v849_v7, %v541_v61 }
 0x2fc   :  { %v954_v62 = vpop.f32.mrf.mxu0 }
 0x2fe   :  { %v544_v8 = vpop.f32.mrf.mxu0 }
 0x2ff   :  { %v545_v11 = vadd.f32 %v849_v7, %v544_v8 }
 0x300   :  { %v955_v10 = vpop.f32.mrf.mxu0 }
 0x301   :  { %v662_v14 = vpack.c.bf16 %v545_v11, %v542_v9 }
 0x303   :  { %964 = vmatpush3.bf16.msra.mxu0 %v662_v14 }
 0x304   :  { %975 = vmatprep.subr.bf16.mxu0 %v1003_v0 }
 0x39f   :  { %v1219_v34 = vpop.f32.mrf.mxu1 }
 0x3a1   :  { %v930_v35 = vpop.f32.mrf.mxu1 }
 0x3a3   :  { %v1221_v36 = vpop.f32.mrf.mxu1 }
 0x3a4   :  { %v378_v17 = vpack.c.bf16 %v1221_v36, %v1219_v34 }
 0x3a5   :  { %v931_v37 = vpop.f32.mrf.mxu1 }
 0x3a7   :  { %v485_v38 = vpop.f32.mrf.mxu1 }
 0x3a8   :  { %v486_v46 = vadd.f32 %v842_v40, %v485_v38 }
 0x3a9   :  { %v946_v39 = vpop.f32.mrf.mxu1 }
 0x3aa   :  { %v860_v39 = vld [vmem:[%s1307_s10] ss:$0 sm:$0xff] }
 0x3ab   :  { %v488_v42 = vpop.f32.mrf.mxu1 }
 0x3ac   :  { %v489_v43 = vadd.f32 %v842_v40, %v488_v42 }
 0x3ad   :  { %v947_v45 = vpop.f32.mrf.mxu1 }
 0x3ae   :  { %956 = vmatprep.subr.msk.mxu1 %vm216_vm2, %v489_v43 }
 0x3af   :  { %957 = vmatpush3.xpose.msk.msra.mxu1 %vm216_vm2, %v489_v43 }
 0x3b0   :  { %958 = vmatprep.subr.msk.mxu1 %vm216_vm2, %v486_v46 }
 0x3b3   :  { %959 = vmatpush3.xpose.msk.msra.mxu1 %vm216_vm2, %v486_v46 }
 0x3b4   :  { %969 = vmatprep.subr.bf16.mxu1 %v1003_v0 }
 0x3b6   :  { %961 = vmatmul.mubr.msk.f32.vlgmr.msra.gmra.mxu1 %vm216_vm2, %v433_v32 }
 0x3b7   :  { %971 = vmatprep.mubr.msk.bf16.mxu1 %vm1004_vm0, %v1003_v0  ;;  %970 = vmatpush3.bf16.msra.mxu1 %v711_v29 }
 0x476   :  { %v962_v53 = vpop.f32.mrf.mxu1 }
 0x477   :  { %v636_v54 = vmul.f32 0.25, %v962_v53 }
 0x478   :  { %v626_v55 = vpop.f32.mrf.mxu1 }
 0x479   :  { %v635_v56 = vmul.f32 0.25, %v626_v55  ;;  %v638_v57 = vadd.f32 %v636_v54, %v1167_v44 }
 0x47b   :  { %v642_v58 = vsel %vm216_vm2, %v638_v57, -inf  ;;  %v637_v59 = vadd.f32 %v635_v56, %v1162_v41 }
 0x47c   :  { %643 = vmax.xlane.f32.xlu1 %v642_v58 }
 0x47d   :  { %v639_v60 = vsel %vm216_vm2, %v637_v59, -inf }
 0x47e   :  { %640 = vmax.xlane.f32.xlu0 %v639_v60 }
 0x505   :  { %v644_v18 = vpop.xlane.xlu1 %643 }
 0x506   :  { %v646_v63 = vsub.f32 %v638_v57, %v644_v18 }
 0x507   :  { %v641_v1 = vpop.xlane.xlu0 %640 }
 0x508   :  { %v649_v2 = vmul.f32 1.442695, %v646_v63  ;;  %v645_v3 = vsub.f32 %v637_v59, %v641_v1 }
 0x50a   :  { %991 = vpow2.f32 %v649_v2  ;;  %v647_v4 = vmul.f32 1.442695, %v645_v3 }
 0x50c   :  { %993 = vpow2.f32 %v647_v4 }
 0x517   :  { %v992_v5 = vpop.eup %991 }
 0x518   :  { %v654_v44 = vsel %vm216_vm2, %v992_v5, 0.0 }
 0x519   :  { %v994_v6 = vpop.eup %993  ;;  %655 = vadd.xlane.f32.xlu1 %v654_v44 }
 0x51a   :  { %v651_v41 = vsel %vm216_vm2, %v994_v6, 0.0 }
 0x51b   :  { %652 = vadd.xlane.f32.xlu0 %v651_v41 }
 0x5a2   :  { %v656_v15 = vpop.xlane.xlu1 %655 }
 0x5a3   :  { %995 = vrcp.f32 %v656_v15 }
 0x5a4   :  { %v653_v16 = vpop.xlane.xlu0 %652 }
 0x5a5   :  { %997 = vrcp.f32 %v653_v16 }
 0x5b0   :  { %v996_v19 = vpop.eup %995 }
 0x5b1   :  { %v660_v23 = vmul.f32 %v996_v19, %v992_v5 }
 0x5b2   :  { %v998_v22 = vpop.eup %997 }
 0x5b3   :  { %v659_v24 = vmul.f32 %v998_v22, %v994_v6 }
 0x5b5   :  { %v661_v26 = vpack.c.bf16 %v660_v23, %v659_v24 }
 0x5b7   :  { %966 = vmatmul.mubr.msk.bf16.vlgmr.msra.gmra.mxu0 %vm216_vm2, %v661_v26 }
 0x5b8   :  { %976 = vmatpush3.bf16.msra.mxu0 %v379_v25  ;;  %977 = vmatprep.mubr.msk.bf16.mxu0 %vm1004_vm0, %v1003_v0 }
 0x5bf   :  { %978 = vmatmul.mubr.msk.bf16.vlgmr.msra.gmra.mxu0 %vm216_vm2, %v378_v17 }
 0x677   :  { %v700_v30 = vpop.f32.mrf.mxu0 }
 0x679   :  { %v967_v31 = vpop.f32.mrf.mxu0 }
 0x67b   :  { %v703_v32 = vpop.f32.mrf.mxu0 }
 0x67c   :  { %v710_v33 = vpack.c.bf16 %v703_v32, %v700_v30 }
 0x67d   :  { %v968_v0 = vpop.f32.mrf.mxu0 }
 0x67e   :  { %972 = vmatmul.mubr.msk.bf16.vlgmr.msra.gmra.mxu1 %vm216_vm2, %v710_v33 }
 0x67f   :  { %v793_v34 = vpop.f32.mrf.mxu0 }
 0x681   :  { %v979_v35 = vpop.f32.mrf.mxu0 }
 0x683   :  { %v796_v36 = vpop.f32.mrf.mxu0 }
 0x685   :  { %v980_v17 = vpop.f32.mrf.mxu0 }
 0x73e   :  { %v749_v37 = vpop.f32.mrf.mxu1 }
 0x73f   :  { %v794_v38 = vadd.f32 %v793_v34, %v749_v37 }
 0x740   :  { %v973_v40 = vpop.f32.mrf.mxu1 }
 0x741   :  { %v800_v42 = vadd.f32 %v794_v38, %v1098_v12 }
 0x742   :  { %v752_v43 = vpop.f32.mrf.mxu1 }
 0x743   :  { %v809_v45 = vadd.f32 %v860_v39, %v800_v42  ;;  %v797_v46 = vadd.f32 %v796_v36, %v752_v43 }
 0x744   :  { %v974_v47 = vpop.f32.mrf.mxu1 }
 0x745   :  { %999 = vtanh.f32 %v809_v45  ;;  %v801_v48 = vadd.f32 %v797_v46, %v1103_v13 }
 0x747   :  { %v810_v49 = vadd.f32 %v860_v39, %v801_v48 }
 0x749   :  { %1001 = vtanh.f32 %v810_v49 }
 0x752   :  { %v1000_v50 = vpop.eup %999 }
 0x753   :  { %813 = vst.msk [vmem:[%s1308_s11] sm:$0xff] %vm59_vm1, %v1000_v50 }
 0x756   :  { %v1002_v51 = vpop.eup %1001 }
 0x757   :  { %814 = vst.msk [vmem:[%s1308_s11 + $0x8] sm:$0xff] %vm59_vm1, %v1002_v51 }

// kernel: _lambda_.32
= control target key start
LH: loop header
LB: loop body
LE: loop exit
PB: predicated region body
PF: predicated region fallthrough
CT: control target
= control target key end

     0   :  { %v192_v0 = vmov 0.0   ;;  %vm193_vm0 = vmmov 0   ;;  %v194_v14 = vmov 0   ;;  %vm40_vm1 = vcmask 392192   ;;  %s257_s0 = inlined_call_operand.vmem [shape: f32[48,32], index: 0, kind: input, shape index: {}]   ;;  %s258_s2 = inlined_call_operand.vmem [shape: f32[16,1], index: 2, kind: input, shape index: {}]   ;;  %s259_s1 = inlined_call_operand.vmem [shape: f32[2,16,48], index: 1, kind: input, shape index: {}]   ;;  %s260_s3 = inlined_call_operand.vmem [shape: f32[16,32], index: 3, kind: output, shape index: {}]  }
   0x1   :  { %174 = vmatprep.subr.bf16.mxu1 %v192_v0  ;;  %v19_v1 = vld [vmem:[%s257_s0 + $0x20] sm:$0xff]  ;;  %v20_v2 = vld [vmem:[%s257_s0 + $0x28] sm:$0xff]  ;;  %164 = vmatprep.subr.bf16.mxu0 %v192_v0  ;;  %v17_v3 = vld [vmem:[%s257_s0 + $0x10] sm:$0xff]  ;;  %vm145_vm2 = vcmask 261120  }
   0x2   :  { %v26_v4 = vpack.c.bf16 %v20_v2, %v19_v1  ;;  %v31_v5 = vmul.f32 %v19_v1, %v19_v1  ;;  %v32_v6 = vmul.f32 %v20_v2, %v20_v2  ;;  %v18_v7 = vld [vmem:[%s257_s0 + $0x18] sm:$0xff]  ;;  %v29_v8 = vmul.f32 %v17_v3, %v17_v3  ;;  %180 = vmatprep.mubr.msk.bf16.mxu1 %vm193_vm0, %v192_v0  ;;  %v15_v10 = vld [vmem:[%s257_s0] sm:$0xff]  ;;  %v16_v11 = vld [vmem:[%s257_s0 + $0x8] sm:$0xff] }
   0x3   :  { %v30_v9 = vmul.f32 %v18_v7, %v18_v7  ;;  %170 = vmatprep.mubr.msk.bf16.mxu0 %vm193_vm0, %v192_v0  ;;  %v25_v13 = vpack.c.bf16 %v18_v7, %v17_v3  ;;  %187 = vset.pattern.permute.xlu0 %v194_v14  ;;  %v129_v15 = vld [vmem:[%s258_s2] sm:$0xff]  ;;  %v27_v17 = vmul.f32 %v15_v10, %v15_v10  ;;  %v130_v19 = vld [vmem:[%s258_s2 + $0x8] sm:$0xff]  ;;  %v152_v24 = vld [vmem:[%s259_s1 + $0x10] sm:$0xff] }
   0x4   :  { %175 = vmatpush3.bf16.msra.mxu1 %v26_v4  ;;  %v39_v12 = vpack.c.bf16 %v32_v6, %v31_v5  ;;  %133 = vperm.xlu0 %187, %v129_v15   ;;  %v28_v18 = vmul.f32 %v16_v11, %v16_v11  ;;  %v24_v20 = vpack.c.bf16 %v16_v11, %v15_v10  ;;  %v21_v21 = vld [vmem:[%s259_s1] sm:$0xff]  ;;  %v22_v22 = vld [vmem:[%s259_s1 + $0x8] sm:$0xff]  ;;  %v153_v25 = vld [vmem:[%s259_s1 + $0x18] sm:$0xff] }
   0x5   :  { %176 = vmatprep.subr.bf16.mxu1 %v192_v0  ;;  %v38_v16 = vpack.c.bf16 %v30_v9, %v29_v8  ;;  %v23_v26 = vpack.c.bf16 %v22_v22, %v21_v21  ;;  %v36_v27 = vpack.c.bf16 %v153_v25, %v152_v24 }
   0x6   :  { %165 = vmatpush3.bf16.msra.mxu0 %v39_v12  ;;  %v37_v23 = vpack.c.bf16 %v28_v18, %v27_v17 }
   0x7   :  { %166 = vmatprep.subr.bf16.mxu0 %v192_v0 }
   0x8   :  { %177 = vmatpush3.bf16.msra.mxu1 %v25_v13  ;;  %138 = vperm.xlu0 %187, %v130_v19  }
   0x9   :  { %178 = vmatprep.subr.bf16.mxu1 %v192_v0 }
   0xa   :  { %167 = vmatpush3.bf16.msra.mxu0 %v38_v16 }
   0xb   :  { %168 = vmatprep.subr.bf16.mxu0 %v192_v0 }
   0xc   :  { %179 = vmatpush3.bf16.msra.mxu1 %v24_v20 }
   0xe   :  { %169 = vmatpush3.bf16.msra.mxu0 %v37_v23 }
   0xf   :  { %181 = vmatmul.mubr.msk.bf16.vlgmr.msra.gmra.mxu1 %vm40_vm1, %v23_v26 }
  0x11   :  { %171 = vmatmul.mubr.msk.bf16.vlgmr.msra.gmra.mxu0 %vm40_vm1, %v36_v27 }
  0x7f   :  { %v134_v29 = vpop.permute.xlu0 %133 }
  0x83   :  { %v139_v39 = vpop.permute.xlu0 %138 }
  0xcf   :  { %v122_v28 = vpop.f32.mrf.mxu1 }
  0xd1   :  { %v78_v30 = vpop.f32.mrf.mxu0  ;;  %v182_v31 = vpop.f32.mrf.mxu1 }
  0xd2   :  { %v123_v32 = vadd.f32 %v122_v28, %v78_v30 }
  0xd3   :  { %v172_v33 = vpop.f32.mrf.mxu0  ;;  %v125_v34 = vpop.f32.mrf.mxu1 }
  0xd4   :  { %v141_v35 = vadd.f32 %v134_v29, %v123_v32 }
  0xd5   :  { %v81_v36 = vpop.f32.mrf.mxu0  ;;  %v183_v37 = vpop.f32.mrf.mxu1 }
  0xd6   :  { %188 = vtanh.f32 %v141_v35  ;;  %v126_v38 = vadd.f32 %v125_v34, %v81_v36 }
  0xd7   :  { %v173_v40 = vpop.f32.mrf.mxu0 }
  0xd8   :  { %v142_v41 = vadd.f32 %v139_v39, %v126_v38 }
  0xda   :  { %190 = vtanh.f32 %v142_v41 }
  0xe3   :  { %v189_v42 = vpop.eup %188 }
  0xe4   :  { %146 = vst.msk [vmem:[%s260_s3] sm:$0xff] %vm145_vm2, %v189_v42 }
  0xe7   :  { %v191_v43 = vpop.eup %190 }
  0xe8   :  { %147 = vst.msk [vmem:[%s260_s3 + $0x8] sm:$0xff] %vm145_vm2, %v191_v43 }

// kernel: _lambda_.33
= control target key start
LH: loop header
LB: loop body
LE: loop exit
PB: predicated region body
PF: predicated region fallthrough
CT: control target
= control target key end

     0   :  { %v186_v0 = vmov 0.0   ;;  %vm187_vm0 = vmmov 0   ;;  %v188_v14 = vmov 0   ;;  %vm40_vm1 = vcmask 392192   ;;  %s251_s0 = inlined_call_operand.vmem [shape: f32[48,32], index: 0, kind: input, shape index: {}]   ;;  %s252_s2 = inlined_call_operand.vmem [shape: f32[16,1], index: 2, kind: input, shape index: {}]   ;;  %s253_s1 = inlined_call_operand.vmem [shape: f32[2,16,48], index: 1, kind: input, shape index: {}]   ;;  %s254_s3 = inlined_call_operand.vmem [shape: f32[16,32], index: 3, kind: output, shape index: {}]  }
   0x1   :  { %172 = vmatprep.subr.bf16.mxu1 %v186_v0  ;;  %v19_v1 = vld [vmem:[%s251_s0 + $0x20] sm:$0xff]  ;;  %v20_v2 = vld [vmem:[%s251_s0 + $0x28] sm:$0xff]  ;;  %162 = vmatprep.subr.bf16.mxu0 %v186_v0  ;;  %v17_v3 = vld [vmem:[%s251_s0 + $0x10] sm:$0xff]  ;;  %vm143_vm2 = vcmask 261120  }
   0x2   :  { %v26_v4 = vpack.c.bf16 %v20_v2, %v19_v1  ;;  %v31_v5 = vmul.f32 %v19_v1, %v19_v1  ;;  %v32_v6 = vmul.f32 %v20_v2, %v20_v2  ;;  %v18_v7 = vld [vmem:[%s251_s0 + $0x18] sm:$0xff]  ;;  %v29_v8 = vmul.f32 %v17_v3, %v17_v3  ;;  %178 = vmatprep.mubr.msk.bf16.mxu1 %vm187_vm0, %v186_v0  ;;  %v15_v10 = vld [vmem:[%s251_s0] sm:$0xff]  ;;  %v16_v11 = vld [vmem:[%s251_s0 + $0x8] sm:$0xff] }
   0x3   :  { %v30_v9 = vmul.f32 %v18_v7, %v18_v7  ;;  %168 = vmatprep.mubr.msk.bf16.mxu0 %vm187_vm0, %v186_v0  ;;  %v25_v13 = vpack.c.bf16 %v18_v7, %v17_v3  ;;  %185 = vset.pattern.permute.xlu0 %v188_v14  ;;  %v129_v15 = vld [vmem:[%s252_s2] sm:$0xff]  ;;  %v27_v17 = vmul.f32 %v15_v10, %v15_v10  ;;  %v130_v19 = vld [vmem:[%s252_s2 + $0x8] sm:$0xff]  ;;  %v150_v24 = vld [vmem:[%s253_s1 + $0x10] sm:$0xff] }
   0x4   :  { %173 = vmatpush3.bf16.msra.mxu1 %v26_v4  ;;  %v39_v12 = vpack.c.bf16 %v32_v6, %v31_v5  ;;  %133 = vperm.xlu0 %185, %v129_v15   ;;  %v28_v18 = vmul.f32 %v16_v11, %v16_v11  ;;  %v24_v20 = vpack.c.bf16 %v16_v11, %v15_v10  ;;  %v21_v21 = vld [vmem:[%s253_s1] sm:$0xff]  ;;  %v22_v22 = vld [vmem:[%s253_s1 + $0x8] sm:$0xff]  ;;  %v151_v25 = vld [vmem:[%s253_s1 + $0x18] sm:$0xff] }
   0x5   :  { %174 = vmatprep.subr.bf16.mxu1 %v186_v0  ;;  %v38_v16 = vpack.c.bf16 %v30_v9, %v29_v8  ;;  %v23_v26 = vpack.c.bf16 %v22_v22, %v21_v21  ;;  %v36_v27 = vpack.c.bf16 %v151_v25, %v150_v24 }
   0x6   :  { %163 = vmatpush3.bf16.msra.mxu0 %v39_v12  ;;  %v37_v23 = vpack.c.bf16 %v28_v18, %v27_v17 }
   0x7   :  { %164 = vmatprep.subr.bf16.mxu0 %v186_v0 }
   0x8   :  { %175 = vmatpush3.bf16.msra.mxu1 %v25_v13  ;;  %138 = vperm.xlu0 %185, %v130_v19  }
   0x9   :  { %176 = vmatprep.subr.bf16.mxu1 %v186_v0 }
   0xa   :  { %165 = vmatpush3.bf16.msra.mxu0 %v38_v16 }
   0xb   :  { %166 = vmatprep.subr.bf16.mxu0 %v186_v0 }
   0xc   :  { %177 = vmatpush3.bf16.msra.mxu1 %v24_v20 }
   0xe   :  { %167 = vmatpush3.bf16.msra.mxu0 %v37_v23 }
   0xf   :  { %179 = vmatmul.mubr.msk.bf16.vlgmr.msra.gmra.mxu1 %vm40_vm1, %v23_v26 }
  0x11   :  { %169 = vmatmul.mubr.msk.bf16.vlgmr.msra.gmra.mxu0 %vm40_vm1, %v36_v27 }
  0x7f   :  { %v134_v29 = vpop.permute.xlu0 %133 }
  0x83   :  { %v139_v39 = vpop.permute.xlu0 %138 }
  0xcf   :  { %v122_v28 = vpop.f32.mrf.mxu1 }
  0xd1   :  { %v78_v30 = vpop.f32.mrf.mxu0  ;;  %v180_v31 = vpop.f32.mrf.mxu1 }
  0xd2   :  { %v123_v32 = vadd.f32 %v122_v28, %v78_v30 }
  0xd3   :  { %v170_v33 = vpop.f32.mrf.mxu0  ;;  %v125_v34 = vpop.f32.mrf.mxu1 }
  0xd4   :  { %v141_v35 = vadd.f32 %v134_v29, %v123_v32 }
  0xd5   :  { %v81_v36 = vpop.f32.mrf.mxu0  ;;  %v181_v37 = vpop.f32.mrf.mxu1 }
  0xd6   :  { %144 = vst.msk [vmem:[%s254_s3] sm:$0xff] %vm143_vm2, %v141_v35  ;;  %v126_v38 = vadd.f32 %v125_v34, %v81_v36 }
  0xd7   :  { %v171_v40 = vpop.f32.mrf.mxu0 }
  0xd8   :  { %v142_v41 = vadd.f32 %v139_v39, %v126_v38 }
  0xda   :  { %145 = vst.msk [vmem:[%s254_s3 + $0x8] sm:$0xff] %vm143_vm2, %v142_v41 }

// kernel: _lambda_.31
= control target key start
LH: loop header
LB: loop body
LE: loop exit
PB: predicated region body
PF: predicated region fallthrough
CT: control target
= control target key end

     0   :  { %v263_v0 = vmov 0.0   ;;  %vm264_vm0 = vmmov 0   ;;  %v265_v14 = vmov 0   ;;  %vm46_vm1 = vcmask 392192   ;;  %s350_s0 = inlined_call_operand.vmem [shape: f32[48,32], index: 0, kind: input, shape index: {}]   ;;  %s351_s2 = inlined_call_operand.vmem [shape: f32[16,1], index: 2, kind: input, shape index: {}]   ;;  %s352_s1 = inlined_call_operand.vmem [shape: f32[2,16,48], index: 1, kind: input, shape index: {}]   ;;  %s353_s3 = inlined_call_operand.vmem [shape: f32[8,32], index: 3, kind: input, shape index: {}]   ;;  %s354_s4 = inlined_call_operand.vmem [shape: f32[16,8], index: 4, kind: input, shape index: {}]   ;;  %s355_s5 = inlined_call_operand.vmem [shape: f32[16,32], index: 5, kind: output, shape index: {}]  }
   0x1   :  { %239 = vmatprep.subr.bf16.mxu1 %v263_v0  ;;  %229 = vmatprep.subr.bf16.mxu0 %v263_v0  ;;  %v25_v1 = vld [vmem:[%s350_s0 + $0x20] sm:$0xff]  ;;  %v26_v2 = vld [vmem:[%s350_s0 + $0x28] sm:$0xff]  ;;  %v23_v3 = vld [vmem:[%s350_s0 + $0x10] sm:$0xff]  ;;  %vm158_vm2 = vcmask 1043456   ;;  %vm154_vm3 = vcmask 64512   ;;  %vm207_vm4 = vcmask 261120  }
   0x2   :  { %v32_v4 = vpack.c.bf16 %v26_v2, %v25_v1  ;;  %v37_v5 = vmul.f32 %v25_v1, %v25_v1  ;;  %v38_v6 = vmul.f32 %v26_v2, %v26_v2  ;;  %v24_v7 = vld [vmem:[%s350_s0 + $0x18] sm:$0xff]  ;;  %v35_v8 = vmul.f32 %v23_v3, %v23_v3  ;;  %245 = vmatprep.mubr.msk.bf16.mxu1 %vm264_vm0, %v263_v0  ;;  %v21_v10 = vld [vmem:[%s350_s0] sm:$0xff]  ;;  %v22_v11 = vld [vmem:[%s350_s0 + $0x8] sm:$0xff] }
   0x3   :  { %v36_v9 = vmul.f32 %v24_v7, %v24_v7  ;;  %235 = vmatprep.mubr.msk.bf16.mxu0 %vm264_vm0, %v263_v0  ;;  %v31_v13 = vpack.c.bf16 %v24_v7, %v23_v3  ;;  %258 = vset.pattern.permute.xlu0 %v265_v14  ;;  %v135_v15 = vld [vmem:[%s351_s2] sm:$0xff]  ;;  %v33_v17 = vmul.f32 %v21_v10, %v21_v10  ;;  %v136_v19 = vld [vmem:[%s351_s2 + $0x8] sm:$0xff]  ;;  %v214_v25 = vld [vmem:[%s352_s1 + $0x10] sm:$0xff] }
   0x4   :  { %240 = vmatpush3.bf16.msra.mxu1 %v32_v4  ;;  %v45_v12 = vpack.c.bf16 %v38_v6, %v37_v5  ;;  %v34_v18 = vmul.f32 %v22_v11, %v22_v11  ;;  %139 = vperm.xlu0 %258, %v135_v15   ;;  %v30_v20 = vpack.c.bf16 %v22_v11, %v21_v10  ;;  %v27_v21 = vld [vmem:[%s352_s1] sm:$0xff]  ;;  %v28_v22 = vld [vmem:[%s352_s1 + $0x8] sm:$0xff]  ;;  %v215_v26 = vld [vmem:[%s352_s1 + $0x18] sm:$0xff] }
   0x5   :  { %241 = vmatprep.subr.bf16.mxu1 %v263_v0  ;;  %v44_v16 = vpack.c.bf16 %v36_v9, %v35_v8  ;;  %v151_v23 = vld [vmem:[%s353_s3] sm:$0xff]  ;;  %v29_v27 = vpack.c.bf16 %v28_v22, %v27_v21  ;;  %v42_v29 = vpack.c.bf16 %v215_v26, %v214_v25  ;;  %v150_v32 = vld [vmem:[%s354_s4 + $0x8] sm:$0xff] }
   0x6   :  { %230 = vmatpush3.bf16.msra.mxu0 %v45_v12  ;;  %v43_v24 = vpack.c.bf16 %v34_v18, %v33_v17  ;;  %v153_v28 = vpack.c.bf16 %v151_v23, %v151_v23  ;;  %v149_v31 = vld [vmem:[%s354_s4] sm:$0xff] }
   0x7   :  { %231 = vmatprep.subr.bf16.mxu0 %v263_v0  ;;  %v152_v33 = vpack.c.bf16 %v150_v32, %v149_v31 }
   0x8   :  { %242 = vmatpush3.bf16.msra.mxu1 %v31_v13  ;;  %144 = vperm.xlu0 %258, %v136_v19   ;;  %v160_v30 = vsel %vm158_vm2, %v153_v28, 0 }
   0x9   :  { %243 = vmatprep.subr.bf16.mxu1 %v263_v0 }
   0xa   :  { %232 = vmatpush3.bf16.msra.mxu0 %v44_v16 }
   0xb   :  { %233 = vmatprep.subr.bf16.mxu0 %v263_v0 }
   0xc   :  { %244 = vmatpush3.bf16.msra.mxu1 %v30_v20 }
   0xe   :  { %234 = vmatpush3.bf16.msra.mxu0 %v43_v24 }
   0xf   :  { %246 = vmatmul.mubr.msk.bf16.vlgmr.msra.gmra.mxu1 %vm46_vm1, %v29_v27  ;;  %249 = vmatprep.subr.bf16.mxu0 %v263_v0 }
  0x11   :  { %236 = vmatmul.mubr.msk.bf16.vlgmr.msra.gmra.mxu0 %vm46_vm1, %v42_v29 }
  0x12   :  { %250 = vmatpush3.bf16.msra.mxu0 %v160_v30  ;;  %251 = vmatprep.mubr.msk.bf16.mxu0 %vm264_vm0, %v263_v0 }
  0x19   :  { %252 = vmatmul.mubr.msk.bf16.vlgmr.msra.gmra.mxu0 %vm154_vm3, %v152_v33 }
  0x7f   :  { %v140_v37 = vpop.permute.xlu0 %139 }
  0x83   :  { %v145_v46 = vpop.permute.xlu0 %144 }
  0xcf   :  { %v128_v34 = vpop.f32.mrf.mxu1 }
  0xd1   :  { %v84_v35 = vpop.f32.mrf.mxu0  ;;  %v247_v36 = vpop.f32.mrf.mxu1 }
  0xd2   :  { %v129_v40 = vadd.f32 %v128_v34, %v84_v35 }
  0xd3   :  { %v237_v38 = vpop.f32.mrf.mxu0  ;;  %v131_v39 = vpop.f32.mrf.mxu1 }
  0xd4   :  { %v147_v44 = vadd.f32 %v140_v37, %v129_v40 }
  0xd5   :  { %v87_v41 = vpop.f32.mrf.mxu0  ;;  %v248_v42 = vpop.f32.mrf.mxu1 }
  0xd6   :  { %v132_v45 = vadd.f32 %v131_v39, %v87_v41 }
  0xd7   :  { %v238_v43 = vpop.f32.mrf.mxu0 }
  0xd8   :  { %v148_v50 = vadd.f32 %v145_v46, %v132_v45 }
  0xd9   :  { %v196_v47 = vpop.f32.mrf.mxu0 }
  0xda   :  { %v203_v48 = vadd.f32 %v196_v47, %v147_v44 }
  0xdb   :  { %v253_v49 = vpop.f32.mrf.mxu0 }
  0xdc   :  { %259 = vtanh.f32 %v203_v48 }
  0xdd   :  { %v199_v51 = vpop.f32.mrf.mxu0 }
  0xde   :  { %v204_v52 = vadd.f32 %v199_v51, %v148_v50 }
  0xdf   :  { %v254_v53 = vpop.f32.mrf.mxu0 }
  0xe0   :  { %261 = vtanh.f32 %v204_v52 }
  0xe9   :  { %v260_v54 = vpop.eup %259 }
  0xea   :  { %208 = vst.msk [vmem:[%s355_s5] sm:$0xff] %vm207_vm4, %v260_v54 }
  0xed   :  { %v262_v55 = vpop.eup %261 }
  0xee   :  { %209 = vst.msk [vmem:[%s355_s5 + $0x8] sm:$0xff] %vm207_vm4, %v262_v55 }

// kernel: _lambda_.35
= control target key start
LH: loop header
LB: loop body
LE: loop exit
PB: predicated region body
PF: predicated region fallthrough
CT: control target
= control target key end

     0   :  { %v247_v3 = vmov 0   ;;  %vm46_vm0 = vcmask 392192   ;;  %vm189_vm1 = vcmask 130048   ;;  %s338_s0 = inlined_call_operand.vmem [shape: f32[48,16], index: 0, kind: input, shape index: {}]   ;;  %s339_s1 = inlined_call_operand.vmem [shape: f32[2,32,48], index: 1, kind: input, shape index: {}]   ;;  %s340_s2 = inlined_call_operand.vmem [shape: f32[32,1], index: 2, kind: input, shape index: {}]   ;;  %s341_s3 = inlined_call_operand.vmem [shape: f32[32,16], index: 3, kind: output, shape index: {}]  }
   0x1   :  { %v19_v0 = vld [vmem:[%s338_s0 + $0x20] sm:$0xff]  ;;  %v20_v1 = vld [vmem:[%s338_s0 + $0x28] sm:$0xff]  ;;  %v17_v2 = vld [vmem:[%s338_s0 + $0x10] sm:$0xff]  ;;  %238 = vset.pattern.permute.xlu1 %v247_v3  ;;  %237 = vset.pattern.permute.xlu0 %v247_v3 }
   0x2   :  { %v29_v4 = vpack.c.bf16 %v20_v1, %v19_v0  ;;  %v34_v5 = vmul.f32 %v19_v0, %v19_v0  ;;  %v35_v6 = vmul.f32 %v20_v1, %v20_v1  ;;  %v18_v7 = vld [vmem:[%s338_s0 + $0x18] sm:$0xff]  ;;  %v32_v8 = vmul.f32 %v17_v2, %v17_v2  ;;  %v15_v9 = vld [vmem:[%s338_s0] sm:$0xff]  ;;  %v16_v10 = vld [vmem:[%s338_s0 + $0x8] sm:$0xff] }
   0x3   :  { %v28_v11 = vpack.c.bf16 %v18_v7, %v17_v2  ;;  %v33_v12 = vmul.f32 %v18_v7, %v18_v7  ;;  %v21_v13 = vld [vmem:[%s339_s1] sm:$0xff]  ;;  %v22_v14 = vld [vmem:[%s339_s1 + $0x8] sm:$0xff]  ;;  %v30_v16 = vmul.f32 %v15_v9, %v15_v9  ;;  %v31_v17 = vmul.f32 %v16_v10, %v16_v10  ;;  %v159_v24 = vld [vmem:[%s340_s2 + $0x10] sm:$0xff] }
   0x4   :  { %226 = vmatprep.subr.bf16.mxu1 %v29_v4  ;;  %v45_v15 = vpack.c.bf16 %v35_v6, %v34_v5  ;;  %v25_v18 = vpack.c.bf16 %v22_v14, %v21_v13  ;;  %v198_v19 = vld [vmem:[%s339_s1 + $0x20] sm:$0xff]  ;;  %v199_v20 = vld [vmem:[%s339_s1 + $0x28] sm:$0xff]  ;;  %v27_v23 = vpack.c.bf16 %v16_v10, %v15_v9  ;;  %v23_v27 = vld [vmem:[%s339_s1 + $0x10] sm:$0xff]  ;;  %173 = vperm.xlu1 %238, %v159_v24  }
   0x5   :  { %227 = vmatpush3.bf16.msra.mxu1 %v29_v4  ;;  %v44_v21 = vpack.c.bf16 %v33_v12, %v32_v8  ;;  %v41_v22 = vpack.c.bf16 %v199_v20, %v198_v19  ;;  %v157_v25 = vld [vmem:[%s340_s2] sm:$0xff]  ;;  %v43_v26 = vpack.c.bf16 %v31_v17, %v30_v16  ;;  %v24_v28 = vld [vmem:[%s339_s1 + $0x18] sm:$0xff]  ;;  %v200_v30 = vld [vmem:[%s339_s1 + $0x30] sm:$0xff] }
   0x6   :  { %216 = vmatprep.subr.bf16.mxu0 %v45_v15  ;;  %228 = vmatprep.subr.bf16.mxu1 %v28_v11  ;;  %v160_v29 = vld [vmem:[%s340_s2 + $0x18] sm:$0xff]  ;;  %v158_v32 = vld [vmem:[%s340_s2 + $0x8] sm:$0xff]  ;;  %v26_v33 = vpack.c.bf16 %v24_v28, %v23_v27 }
   0x7   :  { %217 = vmatpush3.bf16.msra.mxu0 %v45_v15  ;;  %232 = vmatprep.mubr.msk.bf16.mxu1 %vm46_vm0, %v25_v18  ;;  %v201_v31 = vld [vmem:[%s339_s1 + $0x38] sm:$0xff] }
   0x8   :  { %218 = vmatprep.subr.bf16.mxu0 %v44_v21  ;;  %222 = vmatprep.mubr.msk.bf16.mxu0 %vm46_vm0, %v41_v22  ;;  %v42_v34 = vpack.c.bf16 %v201_v31, %v200_v30 }
   0x9   :  { %229 = vmatpush3.bf16.msra.mxu1 %v28_v11  ;;  %163 = vperm.xlu0 %237, %v157_v25  }
   0xa   :  { %230 = vmatprep.subr.bf16.mxu1 %v27_v23  ;;  %178 = vperm.xlu1 %238, %v160_v29  }
   0xb   :  { %219 = vmatpush3.bf16.msra.mxu0 %v44_v21 }
   0xc   :  { %220 = vmatprep.subr.bf16.mxu0 %v43_v26 }
   0xd   :  { %231 = vmatpush3.bf16.msra.mxu1 %v27_v23  ;;  %168 = vperm.xlu0 %237, %v158_v32  }
   0xf   :  { %221 = vmatpush3.bf16.msra.mxu0 %v43_v26 }
  0x10   :  { %233 = vmatmul.mubr.msk.bf16.vlgmr.msra.gmra.mxu1 %vm46_vm0, %v26_v33 }
  0x12   :  { %223 = vmatmul.mubr.msk.bf16.vlgmr.msra.gmra.mxu0 %vm46_vm0, %v42_v34 }
  0x7f   :  { %v174_v36 = vpop.permute.xlu1 %173 }
  0x84   :  { %v164_v39 = vpop.permute.xlu0 %163 }
  0x85   :  { %v179_v47 = vpop.permute.xlu1 %178 }
  0x88   :  { %v169_v53 = vpop.permute.xlu0 %168 }
  0xd0   :  { %v234_v35 = vpop.f32.mrf.mxu1 }
  0xd2   :  { %v224_v37 = vpop.f32.mrf.mxu0  ;;  %v142_v38 = vpop.f32.mrf.mxu1 }
  0xd3   :  { %v151_v40 = vadd.f32 %v234_v35, %v224_v37 }
  0xd4   :  { %v87_v41 = vpop.f32.mrf.mxu0  ;;  %v235_v42 = vpop.f32.mrf.mxu1 }
  0xd5   :  { %v183_v43 = vadd.f32 %v174_v36, %v151_v40  ;;  %v143_v44 = vadd.f32 %v142_v38, %v87_v41 }
  0xd6   :  { %v225_v45 = vpop.f32.mrf.mxu0  ;;  %v145_v49 = vpop.f32.mrf.mxu1 }
  0xd7   :  { %239 = vtanh.f32 %v183_v43  ;;  %v181_v46 = vadd.f32 %v164_v39, %v143_v44  ;;  %v154_v48 = vadd.f32 %v235_v42, %v225_v45 }
  0xd8   :  { %v90_v50 = vpop.f32.mrf.mxu0 }
  0xd9   :  { %241 = vtanh.f32 %v181_v46  ;;  %v184_v51 = vadd.f32 %v179_v47, %v154_v48  ;;  %v146_v52 = vadd.f32 %v145_v49, %v90_v50 }
  0xdb   :  { %243 = vtanh.f32 %v184_v51  ;;  %v182_v54 = vadd.f32 %v169_v53, %v146_v52 }
  0xdd   :  { %245 = vtanh.f32 %v182_v54 }
  0xe4   :  { %v240_v55 = vpop.eup %239 }
  0xe5   :  { %192 = vst.msk [vmem:[%s341_s3 + $0x10] sm:$0xff] %vm189_vm1, %v240_v55 }
  0xe6   :  { %v242_v56 = vpop.eup %241 }
  0xe7   :  { %190 = vst.msk [vmem:[%s341_s3] sm:$0xff] %vm189_vm1, %v242_v56 }
  0xe8   :  { %v244_v57 = vpop.eup %243 }
  0xe9   :  { %193 = vst.msk [vmem:[%s341_s3 + $0x18] sm:$0xff] %vm189_vm1, %v244_v57 }
  0xea   :  { %v246_v58 = vpop.eup %245 }
  0xeb   :  { %191 = vst.msk [vmem:[%s341_s3 + $0x8] sm:$0xff] %vm189_vm1, %v246_v58 }

// kernel: _lambda_.34
= control target key start
LH: loop header
LB: loop body
LE: loop exit
PB: predicated region body
PF: predicated region fallthrough
CT: control target
= control target key end

     0   :  { %vm63_vm0 = vcmask 130048   ;;  %vm245_vm1 = vcmask 64512   ;;  %vm363_vm2 = vcmask 261120   ;;  %vm885_vm3 = vcmask 1043456   ;;  %s1545_s4 = inlined_call_operand.vmem [shape: f32[2,16,8], index: 4, kind: input, shape index: {}]   ;;  %s1546_s1 = inlined_call_operand.vmem [shape: f32[32,16], index: 1, kind: input, shape index: {}]   ;;  %s1547_s3 = inlined_call_operand.vmem [shape: f32[2,16,8], index: 3, kind: input, shape index: {}]   ;;  %s1548_s0 = inlined_call_operand.vmem [shape: f32[32,16], index: 0, kind: input, shape index: {}]   ;;  %s1549_s6 = inlined_call_operand.vmem [shape: f32[2,1,8], index: 6, kind: input, shape index: {}]   ;;  %s1550_s7 = inlined_call_operand.vmem [shape: f32[2,1,8], index: 7, kind: input, shape index: {}]   ;;  %s1551_s5 = inlined_call_operand.vmem [shape: f32[2,16,8], index: 5, kind: input, shape index: {}]   ;;  %s1552_s2 = inlined_call_operand.vmem [shape: f32[32,32], index: 2, kind: input, shape index: {}]   ;;  %s1553_s8 = inlined_call_operand.vmem [shape: f32[2,1,8], index: 8, kind: input, shape index: {}]   ;;  %s1554_s9 = inlined_call_operand.vmem [shape: f32[2,8,16], index: 9, kind: input, shape index: {}]   ;;  %s1555_s10 = inlined_call_operand.vmem [shape: f32[1,16], index: 10, kind: input, shape index: {}]   ;;  %s1556_s11 = inlined_call_operand.vmem [shape: f32[32,16], index: 11, kind: output, shape index: {}]  }
   0x1   :  { %v119_v0 = vld [vmem:[%s1545_s4] sm:$0xff]  ;;  %v120_v1 = vld [vmem:[%s1545_s4 + $0x8] sm:$0xff]  ;;  %v1337_v5 = vld [vmem:[%s1546_s1 + $0x10] sm:$0xff] }
   0x2   :  { %v1327_v2 = vld [vmem:[%s1546_s1] sm:$0xff]  ;;  %v123_v3 = vpack.c.bf16 %v120_v1, %v119_v0  ;;  %v1332_v4 = vld [vmem:[%s1546_s1 + $0x8] sm:$0xff]  ;;  %v1342_v6 = vld [vmem:[%s1546_s1 + $0x18] sm:$0xff] }
   0x3   :  { %v121_v7 = vpack.c.bf16 %v1332_v4, %v1327_v2  ;;  %v51_v8 = vld [vmem:[%s1547_s3] sm:$0xff]  ;;  %v52_v9 = vld [vmem:[%s1547_s3 + $0x8] sm:$0xff]  ;;  %v1357_v11 = vpack.c.bf16 %v1342_v6, %v1337_v5  ;;  %v41_v14 = vld [vmem:[%s1548_s0 + $0x10] sm:$0xff] }
   0x4   :  { %v39_v10 = vld [vmem:[%s1548_s0] sm:$0xff]  ;;  %1130 = vmatprep.subr.bf16.mxu1 %v123_v3  ;;  %v55_v12 = vpack.c.bf16 %v52_v9, %v51_v8  ;;  %v40_v13 = vld [vmem:[%s1548_s0 + $0x8] sm:$0xff]  ;;  %v42_v15 = vld [vmem:[%s1548_s0 + $0x18] sm:$0xff] }
   0x5   :  { %1131 = vmatpush3.bf16.msra.mxu1 %v123_v3  ;;  %1132 = vmatprep.mubr.msk.bf16.mxu1 %vm63_vm0, %v121_v7  ;;  %v1369_v16 = vpack.c.bf16 %v40_v13, %v39_v10  ;;  %v1371_v17 = vpack.c.bf16 %v42_v15, %v41_v14  ;;  %v1023_v21 = vld [vmem:[%s1549_s6] ss:$0 sm:$0xff]  ;;  %v187_v37 = vld [vmem:[%s1551_s5 + $0x8] sm:$0xff]  ;;  %v1422_v48 = vld [vmem:[%s1552_s2 + $0x10] sm:$0xff] }
   0x6   :  { %1124 = vmatprep.subr.bf16.mxu0 %v55_v12  ;;  %v1026_v22 = vld [vmem:[%s1550_s7] ss:$0 sm:$0xff]  ;;  %v1416_v45 = vld [vmem:[%s1552_s2 + $0x8] sm:$0xff]  ;;  %v1429_v53 = vld [vmem:[%s1552_s2 + $0x18] sm:$0xff] }
   0x7   :  { %1125 = vmatpush3.bf16.msra.mxu0 %v55_v12  ;;  %1126 = vmatprep.mubr.msk.bf16.mxu0 %vm63_vm0, %v1369_v16  ;;  %v186_v36 = vld [vmem:[%s1551_s5] sm:$0xff]  ;;  %v1048_v59 = vld [vmem:[%s1545_s4 + $0x10] sm:$0xff]  ;;  %v1049_v60 = vld [vmem:[%s1545_s4 + $0x18] sm:$0xff] }
   0x8   :  { %1133 = vmatmul.mubr.msk.bf16.vlgmr.msra.gmra.mxu1 %vm63_vm0, %v1357_v11  ;;  %v188_v38 = vpack.c.bf16 %v187_v37, %v186_v36  ;;  %v1411_v41 = vld [vmem:[%s1552_s2] sm:$0xff]  ;;  %v535_v61 = vpack.c.bf16 %v1049_v60, %v1048_v59  ;;  %v1043_v36 = vld [vmem:[%s1547_s3 + $0x18] sm:$0xff] }
   0xa   :  { %1127 = vmatmul.mubr.msk.bf16.vlgmr.msra.gmra.mxu0 %vm63_vm0, %v1371_v17  ;;  %1136 = vmatprep.subr.bf16.mxu0 %v188_v38 }
   0xb   :  { %1138 = vmatprep.mubr.msk.bf16.mxu0 %vm63_vm0, %v1369_v16  ;;  %1137 = vmatpush3.bf16.msra.mxu0 %v188_v38 }
  0x12   :  { %1139 = vmatmul.mubr.msk.bf16.vlgmr.msra.gmra.mxu0 %vm63_vm0, %v1371_v17 }
  0xc8   :  { %v1134_v18 = vpop.f32.mrf.mxu1 }
  0xc9   :  { %v180_v27 = vadd.f32 %v1134_v18, %v1026_v22 }
  0xca   :  { %v171_v19 = vpop.f32.mrf.mxu1  ;;  %v1128_v20 = vpop.f32.mrf.mxu0 }
  0xcb   :  { %v172_v31 = vadd.f32 %v1026_v22, %v171_v19  ;;  %v113_v34 = vadd.f32 %v1128_v20, %v1023_v21 }
  0xcc   :  { %v1135_v23 = vpop.f32.mrf.mxu1  ;;  %v104_v24 = vpop.f32.mrf.mxu0 }
  0xcd   :  { %v183_v25 = vadd.f32 %v1135_v23, %v1026_v22  ;;  %v105_v26 = vadd.f32 %v1023_v21, %v104_v24 }
  0xce   :  { %v174_v28 = vpop.f32.mrf.mxu1  ;;  %v1129_v30 = vpop.f32.mrf.mxu0 }
  0xcf   :  { %1142 = vmatprep.subr.msk.mxu1 %vm245_vm1, %v183_v25  ;;  %1150 = vmatprep.mubr.msk.f32.mxu1 %vm245_vm1, %v105_v26  ;;  %v175_v29 = vadd.f32 %v1026_v22, %v174_v28  ;;  %v116_v35 = vadd.f32 %v1129_v30, %v1023_v21 }
  0xd0   :  { %1143 = vmatpush3.xpose.msk.msra.mxu1 %vm245_vm1, %v183_v25  ;;  %v107_v32 = vpop.f32.mrf.mxu0  ;;  %v1029_v25 = vld [vmem:[%s1553_s8] ss:$0 sm:$0xff] }
  0xd1   :  { %1144 = vmatprep.subr.msk.mxu1 %vm245_vm1, %v180_v27  ;;  %v108_v33 = vadd.f32 %v1023_v21, %v107_v32 }
  0xd2   :  { %v1140_v23 = vpop.f32.mrf.mxu0 }
  0xd4   :  { %1145 = vmatpush3.xpose.msk.msra.mxu1 %vm245_vm1, %v180_v27  ;;  %v230_v26 = vpop.f32.mrf.mxu0  ;;  %v239_v27 = vadd.f32 %v1140_v23, %v1029_v25 }
  0xd5   :  { %1146 = vmatprep.subr.msk.mxu1 %vm245_vm1, %v175_v29  ;;  %v231_v30 = vadd.f32 %v1029_v25, %v230_v26 }
  0xd6   :  { %v1141_v28 = vpop.f32.mrf.mxu0 }
  0xd8   :  { %1147 = vmatpush3.xpose.msk.msra.mxu1 %vm245_vm1, %v175_v29  ;;  %v242_v29 = vadd.f32 %v1141_v28, %v1029_v25  ;;  %v233_v32 = vpop.f32.mrf.mxu0 }
  0xd9   :  { %1148 = vmatprep.subr.msk.mxu1 %vm245_vm1, %v172_v31 }
  0xdc   :  { %1149 = vmatpush3.xpose.msk.msra.mxu1 %vm245_vm1, %v172_v31  ;;  %v411_v31 = vpack.c.bf16 %v242_v29, %v239_v27 }
  0xdd   :  { %1170 = vmatprep.subr.bf16.mxu1 %v535_v61 }
  0xde   :  { %1156 = vmatprep.subr.bf16.mxu0 %v411_v31 }
  0xdf   :  { %1151 = vmatmul.mubr.msk.f32.vlgmr.msra.gmra.mxu1 %vm245_vm1, %v108_v33  ;;  %v234_v33 = vadd.f32 %v1029_v25, %v233_v32  ;;  %1157 = vmatpush3.bf16.msra.mxu0 %v411_v31  ;;  %v1055_v25 = vld [vmem:[%s1551_s5 + $0x18] sm:$0xff] }
  0xe0   :  { %1153 = vmatprep.mubr.msk.f32.mxu1 %vm245_vm1, %v113_v34  ;;  %1171 = vmatpush3.bf16.msra.mxu1 %v535_v61 }
  0xe1   :  { %v410_v34 = vpack.c.bf16 %v234_v33, %v231_v30 }
  0xe3   :  { %1154 = vmatmul.mubr.msk.f32.gmra.mxu1 %vm245_vm1, %v116_v35  ;;  %1158 = vmatprep.subr.bf16.mxu0 %v410_v34  ;;  %v1042_v35 = vld [vmem:[%s1547_s3 + $0x10] sm:$0xff] }
  0xe4   :  { %1172 = vmatprep.mubr.msk.bf16.mxu1 %vm63_vm0, %v121_v7  ;;  %1159 = vmatpush3.bf16.msra.mxu0 %v410_v34  ;;  %v474_v37 = vpack.c.bf16 %v1043_v36, %v1042_v35 }
  0xe6   :  { %1164 = vmatprep.subr.bf16.mxu0 %v474_v37 }
  0xe7   :  { %1173 = vmatmul.mubr.msk.bf16.vlgmr.msra.gmra.mxu1 %vm63_vm0, %v1357_v11 }
 0x19f   :  { %v1152_v39 = vpop.f32.mrf.mxu1 }
 0x1a0   :  { %v356_v42 = vmul.f32 0.35355338, %v1152_v39  ;;  %v1051_v39 = vld [vmem:[%s1550_s7 + $0x1] ss:$0 sm:$0xff] }
 0x1a1   :  { %v336_v40 = vpop.f32.mrf.mxu1 }
 0x1a2   :  { %v355_v43 = vmul.f32 0.35355338, %v336_v40  ;;  %v360_v52 = vadd.f32 %v356_v42, %v1416_v45 }
 0x1a3   :  { %v1155_v44 = vpop.f32.mrf.mxu1 }
 0x1a4   :  { %v359_v46 = vadd.f32 %v355_v43, %v1411_v41  ;;  %v358_v49 = vmul.f32 0.35355338, %v1155_v44  ;;  %v367_v55 = vsel %vm363_vm2, %v360_v52, -inf }
 0x1a5   :  { %v346_v47 = vpop.f32.mrf.mxu1 }
 0x1a6   :  { %v357_v50 = vmul.f32 0.35355338, %v346_v47  ;;  %v364_v51 = vsel %vm363_vm2, %v359_v46, -inf  ;;  %v362_v57 = vadd.f32 %v358_v49, %v1429_v53 }
 0x1a7   :  { %365 = vmax.xlane.f32.xlu0 %v364_v51  ;;  %v1174_v38 = vpop.f32.mrf.mxu1 }
 0x1a8   :  { %v361_v54 = vadd.f32 %v357_v50, %v1422_v48  ;;  %v373_v58 = vsel %vm363_vm2, %v362_v57, -inf  ;;  %v587_v43 = vadd.f32 %v1174_v38, %v1051_v39 }
 0x1a9   :  { %v578_v40 = vpop.f32.mrf.mxu1 }
 0x1aa   :  { %v370_v56 = vsel %vm363_vm2, %v361_v54, -inf  ;;  %v579_v49 = vadd.f32 %v1051_v39, %v578_v40 }
 0x1ab   :  { %368 = vmax.xlane.f32.xlu0 %v367_v55  ;;  %371 = vmax.xlane.f32.xlu1 %v370_v56  ;;  %v1175_v42 = vpop.f32.mrf.mxu1 }
 0x1ac   :  { %v590_v44 = vadd.f32 %v1175_v42, %v1051_v39 }
 0x1ae   :  { %1182 = vmatprep.subr.msk.mxu1 %vm245_vm1, %v590_v44 }
 0x1af   :  { %374 = vmax.xlane.f32.xlu1 %v373_v58  ;;  %1183 = vmatpush3.xpose.msk.msra.mxu1 %vm245_vm1, %v590_v44 }
 0x1b0   :  { %1184 = vmatprep.subr.msk.mxu1 %vm245_vm1, %v587_v43 }
 0x1b3   :  { %1185 = vmatpush3.xpose.msk.msra.mxu1 %vm245_vm1, %v587_v43 }
 0x230   :  { %v366_v62 = vpop.xlane.xlu0 %365 }
 0x231   :  { %v376_v63 = vsub.f32 %v359_v46, %v366_v62  ;;  %v581_v46 = vpop.f32.mrf.mxu1 }
 0x232   :  { %v582_v47 = vadd.f32 %v1051_v39, %v581_v46 }
 0x233   :  { %v380_v0 = vmul.f32 1.442695, %v376_v63 }
 0x234   :  { %v369_v1 = vpop.xlane.xlu0 %368  ;;  %v372_v3 = vpop.xlane.xlu1 %371  ;;  %1186 = vmatprep.subr.msk.mxu1 %vm245_vm1, %v582_v47 }
 0x235   :  { %1218 = vpow2.f32 %v380_v0  ;;  %v377_v7 = vsub.f32 %v360_v52, %v369_v1  ;;  %v378_v8 = vsub.f32 %v361_v54, %v372_v3  ;;  %1187 = vmatpush3.xpose.msk.msra.mxu1 %vm245_vm1, %v582_v47  ;;  %v467_v1 = vld [vmem:[%s1554_s9] sm:$0xff] }
 0x236   :  { %1188 = vmatprep.subr.msk.mxu1 %vm245_vm1, %v579_v49  ;;  %v470_v3 = vpack.c.bf16 %v467_v1, %v467_v1 }
 0x237   :  { %v382_v9 = vmul.f32 1.442695, %v377_v7  ;;  %v384_v10 = vmul.f32 1.442695, %v378_v8 }
 0x238   :  { %v375_v12 = vpop.xlane.xlu1 %374 }
 0x239   :  { %1220 = vpow2.f32 %v382_v9  ;;  %v379_v13 = vsub.f32 %v362_v57, %v375_v12  ;;  %1189 = vmatpush3.xpose.msk.msra.mxu1 %vm245_vm1, %v579_v49 }
 0x23a   :  { %1222 = vpow2.f32 %v384_v10  ;;  %1217 = vmatprep.subr.msk.bf16.mxu1 %vm885_vm3, %v470_v3 }
 0x23b   :  { %v386_v14 = vmul.f32 1.442695, %v379_v13  ;;  %v1045_v13 = vld [vmem:[%s1549_s6 + $0x1] ss:$0 sm:$0xff] }
 0x23d   :  { %1224 = vpow2.f32 %v386_v14 }
 0x242   :  { %v1219_v15 = vpop.eup %1218 }
 0x243   :  { %v388_v18 = vsel %vm363_vm2, %v1219_v15, 0.0 }
 0x244   :  { %389 = vadd.xlane.f32.xlu0 %v388_v18 }
 0x246   :  { %v1221_v11 = vpop.eup %1220 }
 0x247   :  { %v1223_v19 = vpop.eup %1222  ;;  %v391_v20 = vsel %vm363_vm2, %v1221_v11, 0.0 }
 0x248   :  { %392 = vadd.xlane.f32.xlu1 %v391_v20  ;;  %v394_v21 = vsel %vm363_vm2, %v1223_v19, 0.0 }
 0x249   :  { %395 = vadd.xlane.f32.xlu0 %v394_v21 }
 0x24a   :  { %v1225_v22 = vpop.eup %1224 }
 0x24b   :  { %v397_v24 = vsel %vm363_vm2, %v1225_v22, 0.0 }
 0x24c   :  { %398 = vadd.xlane.f32.xlu1 %v397_v24  ;;  %v1054_v24 = vld [vmem:[%s1551_s5 + $0x10] sm:$0xff] }
 0x24d   :  { %v596_v26 = vpack.c.bf16 %v1055_v25, %v1054_v24 }
 0x2cd   :  { %v390_v50 = vpop.xlane.xlu0 %389 }
 0x2ce   :  { %1226 = vrcp.f32 %v390_v50 }
 0x2d1   :  { %v393_v51 = vpop.xlane.xlu1 %392 }
 0x2d2   :  { %v396_v52 = vpop.xlane.xlu0 %395  ;;  %1228 = vrcp.f32 %v393_v51 }
 0x2d3   :  { %1230 = vrcp.f32 %v396_v52 }
 0x2d5   :  { %v399_v54 = vpop.xlane.xlu1 %398 }
 0x2d6   :  { %1232 = vrcp.f32 %v399_v54 }
 0x2db   :  { %v1227_v55 = vpop.eup %1226 }
 0x2dc   :  { %v404_v57 = vmul.f32 %v1227_v55, %v1219_v15 }
 0x2df   :  { %v1229_v56 = vpop.eup %1228 }
 0x2e0   :  { %v405_v58 = vmul.f32 %v1229_v56, %v1221_v11  ;;  %v1231_v59 = vpop.eup %1230 }
 0x2e1   :  { %v406_v62 = vmul.f32 %v1231_v59, %v1223_v19  ;;  %v945_v19 = vsel %vm885_vm3, %v470_v3, 0 }
 0x2e2   :  { %v408_v60 = vpack.c.bf16 %v405_v58, %v404_v57 }
 0x2e3   :  { %v1233_v61 = vpop.eup %1232 }
 0x2e4   :  { %1160 = vmatprep.mubr.msk.bf16.mxu0 %vm363_vm2, %v408_v60  ;;  %v407_v63 = vmul.f32 %v1233_v61, %v1225_v22 }
 0x2e6   :  { %v409_v0 = vpack.c.bf16 %v407_v63, %v406_v62  ;;  %v1057_v63 = vld [vmem:[%s1553_s8 + $0x1] ss:$0 sm:$0xff] }
 0x2e8   :  { %1161 = vmatmul.mubr.msk.bf16.vlgmr.msra.gmra.mxu0 %vm363_vm2, %v409_v0 }
 0x2e9   :  { %1165 = vmatpush3.bf16.msra.mxu0 %v474_v37  ;;  %1166 = vmatprep.mubr.msk.bf16.mxu0 %vm63_vm0, %v1369_v16 }
 0x2ea   :  { %1176 = vmatprep.subr.bf16.mxu0 %v596_v26 }
 0x2f0   :  { %1167 = vmatmul.mubr.msk.bf16.vlgmr.msra.gmra.mxu0 %vm63_vm0, %v1371_v17 }
 0x2f1   :  { %1178 = vmatprep.mubr.msk.bf16.mxu0 %vm63_vm0, %v1369_v16  ;;  %1177 = vmatpush3.bf16.msra.mxu0 %v596_v26 }
 0x2f8   :  { %1179 = vmatmul.mubr.msk.bf16.vlgmr.msra.gmra.mxu0 %vm63_vm0, %v1371_v17 }
 0x3a8   :  { %v1162_v7 = vpop.f32.mrf.mxu0 }
 0x3aa   :  { %v452_v8 = vpop.f32.mrf.mxu0 }
 0x3ac   :  { %v1163_v9 = vpop.f32.mrf.mxu0 }
 0x3ad   :  { %v469_v23 = vpack.c.bf16 %v1163_v9, %v1162_v7 }
 0x3ae   :  { %v455_v10 = vpop.f32.mrf.mxu0 }
 0x3af   :  { %v468_v22 = vpack.c.bf16 %v455_v10, %v452_v8 }
 0x3b0   :  { %v1168_v12 = vpop.f32.mrf.mxu0 }
 0x3b1   :  { %v526_v20 = vadd.f32 %v1168_v12, %v1045_v13 }
 0x3b2   :  { %v517_v14 = vpop.f32.mrf.mxu0 }
 0x3b3   :  { %v518_v15 = vadd.f32 %v1045_v13, %v517_v14 }
 0x3b4   :  { %v1169_v16 = vpop.f32.mrf.mxu0 }
 0x3b5   :  { %1190 = vmatprep.mubr.msk.f32.mxu1 %vm245_vm1, %v518_v15  ;;  %v529_v21 = vadd.f32 %v1169_v16, %v1045_v13 }
 0x3b6   :  { %v520_v18 = vpop.f32.mrf.mxu0 }
 0x3b7   :  { %v521_v11 = vadd.f32 %v1045_v13, %v520_v18 }
 0x3b8   :  { %v1180_v59 = vpop.f32.mrf.mxu0 }
 0x3b9   :  { %1191 = vmatmul.mubr.msk.f32.vlgmr.msra.gmra.mxu1 %vm245_vm1, %v521_v11  ;;  %v648_v1 = vadd.f32 %v1180_v59, %v1057_v63 }
 0x3ba   :  { %1193 = vmatprep.mubr.msk.f32.mxu1 %vm245_vm1, %v526_v20  ;;  %1211 = vmatpush3.bf16.msra.mxu1 %v945_v19  ;;  %v639_v0 = vpop.f32.mrf.mxu0 }
 0x3bb   :  { %v640_v9 = vadd.f32 %v1057_v63, %v639_v0 }
 0x3bc   :  { %v1181_v3 = vpop.f32.mrf.mxu0 }
 0x3bd   :  { %1194 = vmatmul.mubr.msk.f32.gmra.mxu1 %vm245_vm1, %v529_v21  ;;  %v651_v7 = vadd.f32 %v1181_v3, %v1057_v63 }
 0x3be   :  { %1212 = vmatprep.mubr.msk.bf16.mxu1 %vm245_vm1, %v468_v22  ;;  %v642_v10 = vpop.f32.mrf.mxu0 }
 0x3bf   :  { %v818_v8 = vpack.c.bf16 %v651_v7, %v648_v1  ;;  %v643_v12 = vadd.f32 %v1057_v63, %v642_v10 }
 0x3c1   :  { %1213 = vmatmul.mubr.msk.bf16.vlgmr.msra.gmra.mxu1 %vm245_vm1, %v469_v23  ;;  %1196 = vmatprep.subr.bf16.mxu0 %v818_v8  ;;  %v817_v13 = vpack.c.bf16 %v643_v12, %v640_v9 }
 0x3c2   :  { %1197 = vmatpush3.bf16.msra.mxu0 %v818_v8 }
 0x3c3   :  { %1198 = vmatprep.subr.bf16.mxu0 %v817_v13 }
 0x3c6   :  { %1199 = vmatpush3.bf16.msra.mxu0 %v817_v13 }
 0x479   :  { %v1192_v27 = vpop.f32.mrf.mxu1 }
 0x47a   :  { %v764_v28 = vmul.f32 0.35355338, %v1192_v27 }
 0x47b   :  { %v744_v29 = vpop.f32.mrf.mxu1 }
 0x47c   :  { %v763_v30 = vmul.f32 0.35355338, %v744_v29  ;;  %v768_v31 = vadd.f32 %v764_v28, %v1416_v45  ;;  %v1070_v28 = vld [vmem:[%s1554_s9 + $0x8] sm:$0xff] }
 0x47d   :  { %v1195_v32 = vpop.f32.mrf.mxu1  ;;  %v878_v29 = vpack.c.bf16 %v1070_v28, %v1070_v28 }
 0x47e   :  { %v766_v33 = vmul.f32 0.35355338, %v1195_v32  ;;  %v774_v34 = vsel %vm363_vm2, %v768_v31, -inf  ;;  %v767_v35 = vadd.f32 %v763_v30, %v1411_v41 }
 0x47f   :  { %775 = vmax.xlane.f32.xlu1 %v774_v34  ;;  %v754_v36 = vpop.f32.mrf.mxu1  ;;  %1216 = vmatprep.subr.msk.bf16.mxu0 %vm885_vm3, %v878_v29  ;;  %v887_v30 = vsel %vm885_vm3, %v878_v29, 0 }
 0x480   :  { %v765_v37 = vmul.f32 0.35355338, %v754_v36  ;;  %v771_v38 = vsel %vm363_vm2, %v767_v35, -inf  ;;  %v770_v39 = vadd.f32 %v766_v33, %v1429_v53 }
 0x481   :  { %772 = vmax.xlane.f32.xlu0 %v771_v38 }
 0x482   :  { %v780_v17 = vsel %vm363_vm2, %v770_v39, -inf  ;;  %v769_v40 = vadd.f32 %v765_v37, %v1422_v48  ;;  %v1214_v37 = vpop.f32.mrf.mxu1 }
 0x483   :  { %781 = vmax.xlane.f32.xlu1 %v780_v17 }
 0x484   :  { %v777_v45 = vsel %vm363_vm2, %v769_v40, -inf  ;;  %v981_v38 = vpop.f32.mrf.mxu1 }
 0x485   :  { %778 = vmax.xlane.f32.xlu0 %v777_v45  ;;  %v1075_v45 = vld [vmem:[%s1555_s10] ss:$0 sm:$0xff] }
 0x508   :  { %v776_v42 = vpop.xlane.xlu1 %775 }
 0x509   :  { %v784_v43 = vsub.f32 %v768_v31, %v776_v42 }
 0x50a   :  { %v773_v44 = vpop.xlane.xlu0 %772 }
 0x50b   :  { %v789_v41 = vmul.f32 1.442695, %v784_v43  ;;  %v783_v46 = vsub.f32 %v767_v35, %v773_v44 }
 0x50c   :  { %v782_v47 = vpop.xlane.xlu1 %781 }
 0x50d   :  { %1234 = vpow2.f32 %v789_v41  ;;  %v787_v49 = vmul.f32 1.442695, %v783_v46  ;;  %v786_v50 = vsub.f32 %v770_v39, %v782_v47 }
 0x50e   :  { %v779_v51 = vpop.xlane.xlu0 %778 }
 0x50f   :  { %1236 = vpow2.f32 %v787_v49  ;;  %v793_v53 = vmul.f32 1.442695, %v786_v50  ;;  %v785_v52 = vsub.f32 %v769_v40, %v779_v51  ;;  %v1215_v40 = vpop.f32.mrf.mxu1 }
 0x511   :  { %1238 = vpow2.f32 %v793_v53  ;;  %v791_v54 = vmul.f32 1.442695, %v785_v52  ;;  %v984_v50 = vpop.f32.mrf.mxu1 }
 0x513   :  { %1240 = vpow2.f32 %v791_v54 }
 0x51a   :  { %v1235_v48 = vpop.eup %1234 }
 0x51b   :  { %v798_v55 = vsel %vm363_vm2, %v1235_v48, 0.0 }
 0x51c   :  { %v1237_v56 = vpop.eup %1236  ;;  %799 = vadd.xlane.f32.xlu1 %v798_v55 }
 0x51d   :  { %v795_v57 = vsel %vm363_vm2, %v1237_v56, 0.0 }
 0x51e   :  { %v1239_v58 = vpop.eup %1238  ;;  %796 = vadd.xlane.f32.xlu0 %v795_v57 }
 0x51f   :  { %v804_v60 = vsel %vm363_vm2, %v1239_v58, 0.0 }
 0x520   :  { %v1241_v61 = vpop.eup %1240  ;;  %805 = vadd.xlane.f32.xlu1 %v804_v60 }
 0x521   :  { %v801_v62 = vsel %vm363_vm2, %v1241_v61, 0.0 }
 0x522   :  { %802 = vadd.xlane.f32.xlu0 %v801_v62 }
 0x5a5   :  { %v800_v14 = vpop.xlane.xlu1 %799 }
 0x5a6   :  { %1242 = vrcp.f32 %v800_v14 }
 0x5a7   :  { %v797_v15 = vpop.xlane.xlu0 %796 }
 0x5a8   :  { %1244 = vrcp.f32 %v797_v15 }
 0x5a9   :  { %v806_v16 = vpop.xlane.xlu1 %805 }
 0x5aa   :  { %1246 = vrcp.f32 %v806_v16 }
 0x5ab   :  { %v803_v18 = vpop.xlane.xlu0 %802 }
 0x5ac   :  { %1248 = vrcp.f32 %v803_v18 }
 0x5b3   :  { %v1243_v11 = vpop.eup %1242 }
 0x5b4   :  { %v812_v21 = vmul.f32 %v1243_v11, %v1235_v48 }
 0x5b5   :  { %v1245_v19 = vpop.eup %1244 }
 0x5b6   :  { %v811_v20 = vmul.f32 %v1245_v19, %v1237_v56 }
 0x5b7   :  { %v1247_v22 = vpop.eup %1246 }
 0x5b8   :  { %v815_v23 = vpack.c.bf16 %v812_v21, %v811_v20  ;;  %v814_v25 = vmul.f32 %v1247_v22, %v1239_v58 }
 0x5b9   :  { %v1249_v24 = vpop.eup %1248 }
 0x5ba   :  { %v813_v26 = vmul.f32 %v1249_v24, %v1241_v61  ;;  %1200 = vmatprep.mubr.msk.bf16.mxu0 %vm363_vm2, %v815_v23 }
 0x5bc   :  { %v816_v27 = vpack.c.bf16 %v814_v25, %v813_v26 }
 0x5be   :  { %1201 = vmatmul.mubr.msk.bf16.vlgmr.msra.gmra.mxu0 %vm363_vm2, %v816_v27 }
 0x5bf   :  { %1205 = vmatpush3.bf16.msra.mxu0 %v887_v30 }
 0x67e   :  { %v1202_v31 = vpop.f32.mrf.mxu0 }
 0x680   :  { %v859_v32 = vpop.f32.mrf.mxu0 }
 0x682   :  { %v1203_v33 = vpop.f32.mrf.mxu0 }
 0x683   :  { %v877_v36 = vpack.c.bf16 %v1203_v33, %v1202_v31 }
 0x684   :  { %v862_v34 = vpop.f32.mrf.mxu0 }
 0x685   :  { %v876_v35 = vpack.c.bf16 %v862_v34, %v859_v32 }
 0x687   :  { %1206 = vmatprep.mubr.msk.bf16.mxu0 %vm245_vm1, %v876_v35 }
 0x688   :  { %1207 = vmatmul.mubr.msk.bf16.vlgmr.msra.gmra.mxu0 %vm245_vm1, %v877_v36 }
 0x748   :  { %v1208_v39 = vpop.f32.mrf.mxu0 }
 0x749   :  { %v990_v17 = vadd.f32 %v1214_v37, %v1208_v39 }
 0x74a   :  { %v923_v42 = vpop.f32.mrf.mxu0 }
 0x74b   :  { %v998_v43 = vadd.f32 %v990_v17, %v1337_v5  ;;  %v982_v44 = vadd.f32 %v981_v38, %v923_v42 }
 0x74c   :  { %v1209_v41 = vpop.f32.mrf.mxu0 }
 0x74d   :  { %v1009_v46 = vadd.f32 %v1075_v45, %v998_v43  ;;  %v996_v47 = vadd.f32 %v982_v44, %v1327_v2  ;;  %v993_v49 = vadd.f32 %v1215_v40, %v1209_v41 }
 0x74e   :  { %v926_v51 = vpop.f32.mrf.mxu0 }
 0x74f   :  { %1250 = vtanh.f32 %v1009_v46  ;;  %v1007_v53 = vadd.f32 %v1075_v45, %v996_v47  ;;  %v999_v52 = vadd.f32 %v993_v49, %v1342_v6  ;;  %v985_v54 = vadd.f32 %v984_v50, %v926_v51 }
 0x751   :  { %1252 = vtanh.f32 %v1007_v53  ;;  %v1010_v48 = vadd.f32 %v1075_v45, %v999_v52  ;;  %v997_v55 = vadd.f32 %v985_v54, %v1332_v4 }
 0x753   :  { %1254 = vtanh.f32 %v1010_v48  ;;  %v1008_v56 = vadd.f32 %v1075_v45, %v997_v55 }
 0x755   :  { %1256 = vtanh.f32 %v1008_v56 }
 0x75c   :  { %v1251_v5 = vpop.eup %1250 }
 0x75d   :  { %1017 = vst.msk [vmem:[%s1556_s11 + $0x10] sm:$0xff] %vm63_vm0, %v1251_v5 }
 0x75e   :  { %v1253_v2 = vpop.eup %1252 }
 0x75f   :  { %1015 = vst.msk [vmem:[%s1556_s11] sm:$0xff] %vm63_vm0, %v1253_v2 }
 0x760   :  { %v1255_v6 = vpop.eup %1254 }
 0x761   :  { %1018 = vst.msk [vmem:[%s1556_s11 + $0x18] sm:$0xff] %vm63_vm0, %v1255_v6 }
 0x762   :  { %v1257_v4 = vpop.eup %1256 }
 0x763   :  { %1016 = vst.msk [vmem:[%s1556_s11 + $0x8] sm:$0xff] %vm63_vm0, %v1257_v4 }

// kernel: _lambda_.37
= control target key start
LH: loop header
LB: loop body
LE: loop exit
PB: predicated region body
PF: predicated region fallthrough
CT: control target
= control target key end

     0   :  { %v283_v3 = vmov 0   ;;  %vm64_vm0 = vcmask 785408   ;;  %vm207_vm1 = vcmask 130048   ;;  %s392_s0 = inlined_call_operand.vmem [shape: f32[96,16], index: 0, kind: input, shape index: {}]   ;;  %s393_s1 = inlined_call_operand.vmem [shape: f32[2,32,96], index: 1, kind: input, shape index: {}]   ;;  %s394_s2 = inlined_call_operand.vmem [shape: f32[32,1], index: 2, kind: input, shape index: {}]   ;;  %s395_s3 = inlined_call_operand.vmem [shape: f32[32,16], index: 3, kind: output, shape index: {}]  }
   0x1   :  { %v25_v0 = vld [vmem:[%s392_s0 + $0x50] sm:$0xff]  ;;  %v26_v1 = vld [vmem:[%s392_s0 + $0x58] sm:$0xff]  ;;  %v23_v2 = vld [vmem:[%s392_s0 + $0x40] sm:$0xff]  ;;  %274 = vset.pattern.permute.xlu1 %v283_v3  ;;  %273 = vset.pattern.permute.xlu0 %v283_v3 }
   0x2   :  { %v38_v4 = vpack.c.bf16 %v26_v1, %v25_v0  ;;  %v49_v5 = vmul.f32 %v25_v0, %v25_v0  ;;  %v50_v6 = vmul.f32 %v26_v1, %v26_v1  ;;  %v24_v7 = vld [vmem:[%s392_s0 + $0x48] sm:$0xff]  ;;  %v47_v8 = vmul.f32 %v23_v2, %v23_v2  ;;  %v21_v9 = vld [vmem:[%s392_s0 + $0x30] sm:$0xff]  ;;  %v22_v10 = vld [vmem:[%s392_s0 + $0x38] sm:$0xff] }
   0x3   :  { %v37_v11 = vpack.c.bf16 %v24_v7, %v23_v2  ;;  %v48_v12 = vmul.f32 %v24_v7, %v24_v7  ;;  %v45_v14 = vmul.f32 %v21_v9, %v21_v9  ;;  %v46_v15 = vmul.f32 %v22_v10, %v22_v10  ;;  %v19_v16 = vld [vmem:[%s392_s0 + $0x20] sm:$0xff]  ;;  %v20_v18 = vld [vmem:[%s392_s0 + $0x28] sm:$0xff]  ;;  %v177_v29 = vld [vmem:[%s394_s2 + $0x10] sm:$0xff] }
   0x4   :  { %256 = vmatprep.subr.bf16.mxu1 %v38_v4  ;;  %v63_v13 = vpack.c.bf16 %v50_v6, %v49_v5  ;;  %v27_v19 = vld [vmem:[%s393_s1] sm:$0xff]  ;;  %v28_v20 = vld [vmem:[%s393_s1 + $0x8] sm:$0xff]  ;;  %v36_v21 = vpack.c.bf16 %v22_v10, %v21_v9  ;;  %v43_v26 = vmul.f32 %v19_v16, %v19_v16  ;;  %v44_v27 = vmul.f32 %v20_v18, %v20_v18  ;;  %v17_v30 = vld [vmem:[%s392_s0 + $0x10] sm:$0xff] }
   0x5   :  { %257 = vmatpush3.bf16.msra.mxu1 %v38_v4  ;;  %v62_v17 = vpack.c.bf16 %v48_v12, %v47_v8  ;;  %v216_v22 = vld [vmem:[%s393_s1 + $0x20] sm:$0xff]  ;;  %v217_v23 = vld [vmem:[%s393_s1 + $0x28] sm:$0xff]  ;;  %v31_v24 = vpack.c.bf16 %v28_v20, %v27_v19  ;;  %v61_v25 = vpack.c.bf16 %v46_v15, %v45_v14  ;;  %v18_v31 = vld [vmem:[%s392_s0 + $0x18] sm:$0xff]  ;;  %v35_v33 = vpack.c.bf16 %v20_v18, %v19_v16 }
   0x6   :  { %240 = vmatprep.subr.bf16.mxu0 %v63_v13  ;;  %258 = vmatprep.subr.bf16.mxu1 %v37_v11  ;;  %v56_v28 = vpack.c.bf16 %v217_v23, %v216_v22  ;;  %v175_v32 = vld [vmem:[%s394_s2] sm:$0xff]  ;;  %v60_v34 = vpack.c.bf16 %v44_v27, %v43_v26  ;;  %v41_v35 = vmul.f32 %v17_v30, %v17_v30  ;;  %v178_v37 = vld [vmem:[%s394_s2 + $0x18] sm:$0xff]  ;;  %v16_v39 = vld [vmem:[%s392_s0 + $0x8] sm:$0xff] }
   0x7   :  { %241 = vmatpush3.bf16.msra.mxu0 %v63_v13  ;;  %268 = vmatprep.mubr.msk.bf16.mxu1 %vm64_vm0, %v31_v24  ;;  %v42_v36 = vmul.f32 %v18_v31, %v18_v31  ;;  %v15_v38 = vld [vmem:[%s392_s0] sm:$0xff]  ;;  %v176_v40 = vld [vmem:[%s394_s2 + $0x8] sm:$0xff]  ;;  %v34_v41 = vpack.c.bf16 %v18_v31, %v17_v30  ;;  %v40_v44 = vmul.f32 %v16_v39, %v16_v39  ;;  %v29_v47 = vld [vmem:[%s393_s1 + $0x10] sm:$0xff] }
   0x8   :  { %242 = vmatprep.subr.bf16.mxu0 %v62_v17  ;;  %252 = vmatprep.mubr.msk.bf16.mxu0 %vm64_vm0, %v56_v28  ;;  %v39_v43 = vmul.f32 %v15_v38, %v15_v38  ;;  %v33_v45 = vpack.c.bf16 %v16_v39, %v15_v38  ;;  %v30_v48 = vld [vmem:[%s393_s1 + $0x18] sm:$0xff]  ;;  %v218_v49 = vld [vmem:[%s393_s1 + $0x30] sm:$0xff] }
   0x9   :  { %259 = vmatpush3.bf16.msra.mxu1 %v37_v11  ;;  %191 = vperm.xlu1 %274, %v177_v29   ;;  %v59_v42 = vpack.c.bf16 %v42_v36, %v41_v35  ;;  %v219_v50 = vld [vmem:[%s393_s1 + $0x38] sm:$0xff]  ;;  %v32_v51 = vpack.c.bf16 %v30_v48, %v29_v47 }
   0xa   :  { %260 = vmatprep.subr.bf16.mxu1 %v36_v21  ;;  %181 = vperm.xlu0 %273, %v175_v32   ;;  %v58_v46 = vpack.c.bf16 %v40_v44, %v39_v43  ;;  %v57_v52 = vpack.c.bf16 %v219_v50, %v218_v49 }
   0xb   :  { %243 = vmatpush3.bf16.msra.mxu0 %v62_v17 }
   0xc   :  { %244 = vmatprep.subr.bf16.mxu0 %v61_v25 }
   0xd   :  { %261 = vmatpush3.bf16.msra.mxu1 %v36_v21  ;;  %196 = vperm.xlu1 %274, %v178_v37  }
   0xe   :  { %262 = vmatprep.subr.bf16.mxu1 %v35_v33  ;;  %186 = vperm.xlu0 %273, %v176_v40  }
   0xf   :  { %245 = vmatpush3.bf16.msra.mxu0 %v61_v25 }
  0x10   :  { %246 = vmatprep.subr.bf16.mxu0 %v60_v34 }
  0x11   :  { %263 = vmatpush3.bf16.msra.mxu1 %v35_v33 }
  0x12   :  { %264 = vmatprep.subr.bf16.mxu1 %v34_v41 }
  0x13   :  { %247 = vmatpush3.bf16.msra.mxu0 %v60_v34 }
  0x14   :  { %248 = vmatprep.subr.bf16.mxu0 %v59_v42 }
  0x15   :  { %265 = vmatpush3.bf16.msra.mxu1 %v34_v41 }
  0x16   :  { %266 = vmatprep.subr.bf16.mxu1 %v33_v45 }
  0x17   :  { %249 = vmatpush3.bf16.msra.mxu0 %v59_v42 }
  0x18   :  { %250 = vmatprep.subr.bf16.mxu0 %v58_v46 }
  0x19   :  { %267 = vmatpush3.bf16.msra.mxu1 %v33_v45 }
  0x1b   :  { %251 = vmatpush3.bf16.msra.mxu0 %v58_v46 }
  0x1c   :  { %269 = vmatmul.mubr.msk.bf16.vlgmr.msra.gmra.mxu1 %vm64_vm0, %v32_v51 }
  0x1e   :  { %253 = vmatmul.mubr.msk.bf16.vlgmr.msra.gmra.mxu0 %vm64_vm0, %v57_v52 }
  0x84   :  { %v192_v54 = vpop.permute.xlu1 %191 }
  0x85   :  { %v182_v57 = vpop.permute.xlu0 %181 }
  0x88   :  { %v197_v1 = vpop.permute.xlu1 %196 }
  0x89   :  { %v187_v7 = vpop.permute.xlu0 %186 }
  0xdc   :  { %v270_v53 = vpop.f32.mrf.mxu1 }
  0xde   :  { %v254_v55 = vpop.f32.mrf.mxu0  ;;  %v160_v56 = vpop.f32.mrf.mxu1 }
  0xdf   :  { %v169_v58 = vadd.f32 %v270_v53, %v254_v55 }
  0xe0   :  { %v105_v59 = vpop.f32.mrf.mxu0  ;;  %v271_v60 = vpop.f32.mrf.mxu1 }
  0xe1   :  { %v201_v61 = vadd.f32 %v192_v54, %v169_v58  ;;  %v161_v62 = vadd.f32 %v160_v56, %v105_v59 }
  0xe2   :  { %v255_v63 = vpop.f32.mrf.mxu0  ;;  %v163_v3 = vpop.f32.mrf.mxu1 }
  0xe3   :  { %275 = vtanh.f32 %v201_v61  ;;  %v199_v0 = vadd.f32 %v182_v57, %v161_v62  ;;  %v172_v2 = vadd.f32 %v271_v60, %v255_v63 }
  0xe4   :  { %v108_v4 = vpop.f32.mrf.mxu0 }
  0xe5   :  { %277 = vtanh.f32 %v199_v0  ;;  %v202_v5 = vadd.f32 %v197_v1, %v172_v2  ;;  %v164_v6 = vadd.f32 %v163_v3, %v108_v4 }
  0xe7   :  { %279 = vtanh.f32 %v202_v5  ;;  %v200_v8 = vadd.f32 %v187_v7, %v164_v6 }
  0xe9   :  { %281 = vtanh.f32 %v200_v8 }
  0xf0   :  { %v276_v9 = vpop.eup %275 }
  0xf1   :  { %210 = vst.msk [vmem:[%s395_s3 + $0x10] sm:$0xff] %vm207_vm1, %v276_v9 }
  0xf2   :  { %v278_v10 = vpop.eup %277 }
  0xf3   :  { %208 = vst.msk [vmem:[%s395_s3] sm:$0xff] %vm207_vm1, %v278_v10 }
  0xf4   :  { %v280_v11 = vpop.eup %279 }
  0xf5   :  { %211 = vst.msk [vmem:[%s395_s3 + $0x18] sm:$0xff] %vm207_vm1, %v280_v11 }
  0xf6   :  { %v282_v12 = vpop.eup %281 }
  0xf7   :  { %209 = vst.msk [vmem:[%s395_s3 + $0x8] sm:$0xff] %vm207_vm1, %v282_v12 }

// kernel: _lambda_.36
= control target key start
LH: loop header
LB: loop body
LE: loop exit
PB: predicated region body
PF: predicated region fallthrough
CT: control target
= control target key end

     0   :  { %v368_v3 = vmov 0   ;;  %vm70_vm0 = vcmask 785408   ;;  %vm218_vm1 = vcmask 130048   ;;  %s511_s0 = inlined_call_operand.vmem [shape: f32[96,16], index: 0, kind: input, shape index: {}]   ;;  %s512_s1 = inlined_call_operand.vmem [shape: f32[2,32,96], index: 1, kind: input, shape index: {}]   ;;  %s513_s2 = inlined_call_operand.vmem [shape: f32[32,1], index: 2, kind: input, shape index: {}]   ;;  %s514_s3 = inlined_call_operand.vmem [shape: f32[16,16], index: 3, kind: input, shape index: {}]   ;;  %s515_s4 = inlined_call_operand.vmem [shape: f32[32,16], index: 4, kind: input, shape index: {}]   ;;  %s516_s5 = inlined_call_operand.vmem [shape: f32[32,16], index: 5, kind: output, shape index: {}]  }
   0x1   :  { %v31_v0 = vld [vmem:[%s511_s0 + $0x50] sm:$0xff]  ;;  %v32_v1 = vld [vmem:[%s511_s0 + $0x58] sm:$0xff]  ;;  %v29_v2 = vld [vmem:[%s511_s0 + $0x40] sm:$0xff]  ;;  %359 = vset.pattern.permute.xlu1 %v368_v3  ;;  %358 = vset.pattern.permute.xlu0 %v368_v3 }
   0x2   :  { %v44_v4 = vpack.c.bf16 %v32_v1, %v31_v0  ;;  %v55_v5 = vmul.f32 %v31_v0, %v31_v0  ;;  %v56_v6 = vmul.f32 %v32_v1, %v32_v1  ;;  %v30_v7 = vld [vmem:[%s511_s0 + $0x48] sm:$0xff]  ;;  %v53_v8 = vmul.f32 %v29_v2, %v29_v2  ;;  %v27_v9 = vld [vmem:[%s511_s0 + $0x30] sm:$0xff]  ;;  %v28_v10 = vld [vmem:[%s511_s0 + $0x38] sm:$0xff] }
   0x3   :  { %v43_v11 = vpack.c.bf16 %v30_v7, %v29_v2  ;;  %v54_v12 = vmul.f32 %v30_v7, %v30_v7  ;;  %v51_v14 = vmul.f32 %v27_v9, %v27_v9  ;;  %v52_v15 = vmul.f32 %v28_v10, %v28_v10  ;;  %v25_v16 = vld [vmem:[%s511_s0 + $0x20] sm:$0xff]  ;;  %v26_v17 = vld [vmem:[%s511_s0 + $0x28] sm:$0xff]  ;;  %v23_v29 = vld [vmem:[%s511_s0 + $0x10] sm:$0xff] }
   0x4   :  { %335 = vmatprep.subr.bf16.mxu1 %v44_v4  ;;  %v69_v13 = vpack.c.bf16 %v56_v6, %v55_v5  ;;  %v33_v19 = vld [vmem:[%s512_s1] sm:$0xff]  ;;  %v34_v20 = vld [vmem:[%s512_s1 + $0x8] sm:$0xff]  ;;  %v42_v22 = vpack.c.bf16 %v28_v10, %v27_v9  ;;  %v49_v26 = vmul.f32 %v25_v16, %v25_v16  ;;  %v50_v27 = vmul.f32 %v26_v17, %v26_v17  ;;  %v24_v30 = vld [vmem:[%s511_s0 + $0x18] sm:$0xff] }
   0x5   :  { %336 = vmatpush3.bf16.msra.mxu1 %v44_v4  ;;  %v68_v18 = vpack.c.bf16 %v54_v12, %v53_v8  ;;  %v290_v21 = vld [vmem:[%s512_s1 + $0x20] sm:$0xff]  ;;  %v291_v23 = vld [vmem:[%s512_s1 + $0x28] sm:$0xff]  ;;  %v37_v24 = vpack.c.bf16 %v34_v20, %v33_v19  ;;  %v67_v25 = vpack.c.bf16 %v52_v15, %v51_v14  ;;  %v183_v31 = vld [vmem:[%s513_s2 + $0x10] sm:$0xff]  ;;  %v41_v32 = vpack.c.bf16 %v26_v17, %v25_v16 }
   0x6   :  { %319 = vmatprep.subr.bf16.mxu0 %v69_v13  ;;  %337 = vmatprep.subr.bf16.mxu1 %v43_v11  ;;  %v62_v28 = vpack.c.bf16 %v291_v23, %v290_v21  ;;  %v181_v33 = vld [vmem:[%s513_s2] sm:$0xff]  ;;  %v66_v34 = vpack.c.bf16 %v50_v27, %v49_v26  ;;  %v47_v35 = vmul.f32 %v23_v29, %v23_v29  ;;  %v184_v37 = vld [vmem:[%s513_s2 + $0x18] sm:$0xff]  ;;  %v22_v39 = vld [vmem:[%s511_s0 + $0x8] sm:$0xff] }
   0x7   :  { %320 = vmatpush3.bf16.msra.mxu0 %v69_v13  ;;  %347 = vmatprep.mubr.msk.bf16.mxu1 %vm70_vm0, %v37_v24  ;;  %v48_v36 = vmul.f32 %v24_v30, %v24_v30  ;;  %v21_v38 = vld [vmem:[%s511_s0] sm:$0xff]  ;;  %v182_v40 = vld [vmem:[%s513_s2 + $0x8] sm:$0xff]  ;;  %v40_v41 = vpack.c.bf16 %v24_v30, %v23_v29  ;;  %v46_v44 = vmul.f32 %v22_v39, %v22_v39  ;;  %v35_v47 = vld [vmem:[%s512_s1 + $0x10] sm:$0xff] }
   0x8   :  { %321 = vmatprep.subr.bf16.mxu0 %v68_v18  ;;  %331 = vmatprep.mubr.msk.bf16.mxu0 %vm70_vm0, %v62_v28  ;;  %v45_v43 = vmul.f32 %v21_v38, %v21_v38  ;;  %v39_v45 = vpack.c.bf16 %v22_v39, %v21_v38  ;;  %v36_v48 = vld [vmem:[%s512_s1 + $0x18] sm:$0xff]  ;;  %v213_v49 = vld [vmem:[%s514_s3] sm:$0xff]  ;;  %v214_v50 = vld [vmem:[%s514_s3 + $0x8] sm:$0xff] }
   0x9   :  { %338 = vmatpush3.bf16.msra.mxu1 %v43_v11  ;;  %197 = vperm.xlu1 %359, %v183_v31   ;;  %v65_v42 = vpack.c.bf16 %v48_v36, %v47_v35  ;;  %v292_v51 = vld [vmem:[%s512_s1 + $0x30] sm:$0xff]  ;;  %v293_v52 = vld [vmem:[%s512_s1 + $0x38] sm:$0xff]  ;;  %v38_v53 = vpack.c.bf16 %v36_v48, %v35_v47  ;;  %v217_v54 = vpack.c.bf16 %v214_v50, %v213_v49  ;;  %v209_v55 = vld [vmem:[%s515_s4] sm:$0xff] }
   0xa   :  { %339 = vmatprep.subr.bf16.mxu1 %v42_v22  ;;  %187 = vperm.xlu0 %358, %v181_v33   ;;  %v64_v46 = vpack.c.bf16 %v46_v44, %v45_v43  ;;  %v210_v56 = vld [vmem:[%s515_s4 + $0x8] sm:$0xff]  ;;  %v63_v57 = vpack.c.bf16 %v293_v52, %v292_v51  ;;  %v211_v59 = vld [vmem:[%s515_s4 + $0x10] sm:$0xff]  ;;  %v212_v60 = vld [vmem:[%s515_s4 + $0x18] sm:$0xff] }
   0xb   :  { %322 = vmatpush3.bf16.msra.mxu0 %v68_v18  ;;  %v215_v58 = vpack.c.bf16 %v210_v56, %v209_v55  ;;  %v216_v61 = vpack.c.bf16 %v212_v60, %v211_v59 }
   0xc   :  { %323 = vmatprep.subr.bf16.mxu0 %v67_v25 }
   0xd   :  { %340 = vmatpush3.bf16.msra.mxu1 %v42_v22  ;;  %202 = vperm.xlu1 %359, %v184_v37  }
   0xe   :  { %341 = vmatprep.subr.bf16.mxu1 %v41_v32  ;;  %192 = vperm.xlu0 %358, %v182_v40  }
   0xf   :  { %324 = vmatpush3.bf16.msra.mxu0 %v67_v25 }
  0x10   :  { %325 = vmatprep.subr.bf16.mxu0 %v66_v34 }
  0x11   :  { %342 = vmatpush3.bf16.msra.mxu1 %v41_v32 }
  0x12   :  { %343 = vmatprep.subr.bf16.mxu1 %v40_v41 }
  0x13   :  { %326 = vmatpush3.bf16.msra.mxu0 %v66_v34 }
  0x14   :  { %327 = vmatprep.subr.bf16.mxu0 %v65_v42 }
  0x15   :  { %344 = vmatpush3.bf16.msra.mxu1 %v40_v41 }
  0x16   :  { %345 = vmatprep.subr.bf16.mxu1 %v39_v45 }
  0x17   :  { %328 = vmatpush3.bf16.msra.mxu0 %v65_v42 }
  0x18   :  { %329 = vmatprep.subr.bf16.mxu0 %v64_v46 }
  0x19   :  { %346 = vmatpush3.bf16.msra.mxu1 %v39_v45 }
  0x1b   :  { %330 = vmatpush3.bf16.msra.mxu0 %v64_v46 }
  0x1c   :  { %348 = vmatmul.mubr.msk.bf16.vlgmr.msra.gmra.mxu1 %vm70_vm0, %v38_v53  ;;  %351 = vmatprep.subr.bf16.mxu0 %v217_v54 }
  0x1e   :  { %332 = vmatmul.mubr.msk.bf16.vlgmr.msra.gmra.mxu0 %vm70_vm0, %v63_v57 }
  0x1f   :  { %352 = vmatpush3.bf16.msra.mxu0 %v217_v54  ;;  %353 = vmatprep.mubr.msk.bf16.mxu0 %vm218_vm1, %v215_v58 }
  0x26   :  { %354 = vmatmul.mubr.msk.bf16.vlgmr.msra.gmra.mxu0 %vm218_vm1, %v216_v61 }
  0x84   :  { %v198_v1 = vpop.permute.xlu1 %197 }
  0x85   :  { %v188_v4 = vpop.permute.xlu0 %187 }
  0x88   :  { %v203_v11 = vpop.permute.xlu1 %202 }
  0x89   :  { %v193_v17 = vpop.permute.xlu0 %192 }
  0xdc   :  { %v349_v62 = vpop.f32.mrf.mxu1 }
  0xde   :  { %v333_v63 = vpop.f32.mrf.mxu0  ;;  %v166_v0 = vpop.f32.mrf.mxu1 }
  0xdf   :  { %v175_v3 = vadd.f32 %v349_v62, %v333_v63 }
  0xe0   :  { %v111_v2 = vpop.f32.mrf.mxu0  ;;  %v350_v5 = vpop.f32.mrf.mxu1 }
  0xe1   :  { %v167_v7 = vadd.f32 %v166_v0, %v111_v2  ;;  %v207_v9 = vadd.f32 %v198_v1, %v175_v3 }
  0xe2   :  { %v334_v6 = vpop.f32.mrf.mxu0  ;;  %v169_v12 = vpop.f32.mrf.mxu1 }
  0xe3   :  { %v178_v10 = vadd.f32 %v350_v5, %v334_v6  ;;  %v205_v14 = vadd.f32 %v188_v4, %v167_v7 }
  0xe4   :  { %v114_v8 = vpop.f32.mrf.mxu0 }
  0xe5   :  { %v170_v15 = vadd.f32 %v169_v12, %v114_v8  ;;  %v208_v19 = vadd.f32 %v203_v11, %v178_v10 }
  0xe6   :  { %v355_v13 = vpop.f32.mrf.mxu0 }
  0xe7   :  { %v276_v16 = vadd.f32 %v355_v13, %v207_v9  ;;  %v206_v22 = vadd.f32 %v193_v17, %v170_v15 }
  0xe8   :  { %v259_v18 = vpop.f32.mrf.mxu0 }
  0xe9   :  { %360 = vtanh.f32 %v276_v16  ;;  %v274_v20 = vadd.f32 %v259_v18, %v205_v14 }
  0xea   :  { %v356_v21 = vpop.f32.mrf.mxu0 }
  0xeb   :  { %362 = vtanh.f32 %v274_v20  ;;  %v277_v23 = vadd.f32 %v356_v21, %v208_v19 }
  0xec   :  { %v262_v24 = vpop.f32.mrf.mxu0 }
  0xed   :  { %364 = vtanh.f32 %v277_v23  ;;  %v275_v25 = vadd.f32 %v262_v24, %v206_v22 }
  0xef   :  { %366 = vtanh.f32 %v275_v25 }
  0xf6   :  { %v361_v26 = vpop.eup %360 }
  0xf7   :  { %284 = vst.msk [vmem:[%s516_s5 + $0x10] sm:$0xff] %vm218_vm1, %v361_v26 }
  0xf8   :  { %v363_v27 = vpop.eup %362 }
  0xf9   :  { %282 = vst.msk [vmem:[%s516_s5] sm:$0xff] %vm218_vm1, %v363_v27 }
  0xfa   :  { %v365_v28 = vpop.eup %364 }
  0xfb   :  { %285 = vst.msk [vmem:[%s516_s5 + $0x18] sm:$0xff] %vm218_vm1, %v365_v28 }
  0xfc   :  { %v367_v29 = vpop.eup %366 }
  0xfd   :  { %283 = vst.msk [vmem:[%s516_s5 + $0x8] sm:$0xff] %vm218_vm1, %v367_v29 }

// kernel: _lambda_.38
= control target key start
LH: loop header
LB: loop body
LE: loop exit
PB: predicated region body
PF: predicated region fallthrough
CT: control target
= control target key end

     0   :  { %v271_v3 = vmov 0   ;;  %vm64_vm0 = vcmask 785408   ;;  %vm203_vm1 = vcmask 130048   ;;  %s384_s0 = inlined_call_operand.vmem [shape: f32[96,16], index: 0, kind: input, shape index: {}]   ;;  %s385_s1 = inlined_call_operand.vmem [shape: f32[2,32,96], index: 1, kind: input, shape index: {}]   ;;  %s386_s2 = inlined_call_operand.vmem [shape: f32[32,1], index: 2, kind: input, shape index: {}]   ;;  %s387_s3 = inlined_call_operand.vmem [shape: f32[32,16], index: 3, kind: output, shape index: {}]  }
   0x1   :  { %v25_v0 = vld [vmem:[%s384_s0 + $0x50] sm:$0xff]  ;;  %v26_v1 = vld [vmem:[%s384_s0 + $0x58] sm:$0xff]  ;;  %v23_v2 = vld [vmem:[%s384_s0 + $0x40] sm:$0xff]  ;;  %270 = vset.pattern.permute.xlu1 %v271_v3  ;;  %269 = vset.pattern.permute.xlu0 %v271_v3 }
   0x2   :  { %v38_v4 = vpack.c.bf16 %v26_v1, %v25_v0  ;;  %v49_v5 = vmul.f32 %v25_v0, %v25_v0  ;;  %v50_v6 = vmul.f32 %v26_v1, %v26_v1  ;;  %v24_v7 = vld [vmem:[%s384_s0 + $0x48] sm:$0xff]  ;;  %v47_v8 = vmul.f32 %v23_v2, %v23_v2  ;;  %v21_v9 = vld [vmem:[%s384_s0 + $0x30] sm:$0xff]  ;;  %v22_v10 = vld [vmem:[%s384_s0 + $0x38] sm:$0xff] }
   0x3   :  { %v37_v11 = vpack.c.bf16 %v24_v7, %v23_v2  ;;  %v48_v12 = vmul.f32 %v24_v7, %v24_v7  ;;  %v45_v14 = vmul.f32 %v21_v9, %v21_v9  ;;  %v46_v15 = vmul.f32 %v22_v10, %v22_v10  ;;  %v19_v16 = vld [vmem:[%s384_s0 + $0x20] sm:$0xff]  ;;  %v20_v18 = vld [vmem:[%s384_s0 + $0x28] sm:$0xff]  ;;  %v177_v29 = vld [vmem:[%s386_s2 + $0x10] sm:$0xff] }
   0x4   :  { %252 = vmatprep.subr.bf16.mxu1 %v38_v4  ;;  %v63_v13 = vpack.c.bf16 %v50_v6, %v49_v5  ;;  %v27_v19 = vld [vmem:[%s385_s1] sm:$0xff]  ;;  %v28_v20 = vld [vmem:[%s385_s1 + $0x8] sm:$0xff]  ;;  %v36_v21 = vpack.c.bf16 %v22_v10, %v21_v9  ;;  %v43_v26 = vmul.f32 %v19_v16, %v19_v16  ;;  %v44_v27 = vmul.f32 %v20_v18, %v20_v18  ;;  %v17_v30 = vld [vmem:[%s384_s0 + $0x10] sm:$0xff] }
   0x5   :  { %253 = vmatpush3.bf16.msra.mxu1 %v38_v4  ;;  %v62_v17 = vpack.c.bf16 %v48_v12, %v47_v8  ;;  %v212_v22 = vld [vmem:[%s385_s1 + $0x20] sm:$0xff]  ;;  %v213_v23 = vld [vmem:[%s385_s1 + $0x28] sm:$0xff]  ;;  %v31_v24 = vpack.c.bf16 %v28_v20, %v27_v19  ;;  %v61_v25 = vpack.c.bf16 %v46_v15, %v45_v14  ;;  %v18_v31 = vld [vmem:[%s384_s0 + $0x18] sm:$0xff]  ;;  %v35_v33 = vpack.c.bf16 %v20_v18, %v19_v16 }
   0x6   :  { %236 = vmatprep.subr.bf16.mxu0 %v63_v13  ;;  %254 = vmatprep.subr.bf16.mxu1 %v37_v11  ;;  %v56_v28 = vpack.c.bf16 %v213_v23, %v212_v22  ;;  %v175_v32 = vld [vmem:[%s386_s2] sm:$0xff]  ;;  %v60_v34 = vpack.c.bf16 %v44_v27, %v43_v26  ;;  %v41_v35 = vmul.f32 %v17_v30, %v17_v30  ;;  %v178_v37 = vld [vmem:[%s386_s2 + $0x18] sm:$0xff]  ;;  %v16_v39 = vld [vmem:[%s384_s0 + $0x8] sm:$0xff] }
   0x7   :  { %237 = vmatpush3.bf16.msra.mxu0 %v63_v13  ;;  %264 = vmatprep.mubr.msk.bf16.mxu1 %vm64_vm0, %v31_v24  ;;  %v42_v36 = vmul.f32 %v18_v31, %v18_v31  ;;  %v15_v38 = vld [vmem:[%s384_s0] sm:$0xff]  ;;  %v176_v40 = vld [vmem:[%s386_s2 + $0x8] sm:$0xff]  ;;  %v34_v41 = vpack.c.bf16 %v18_v31, %v17_v30  ;;  %v40_v44 = vmul.f32 %v16_v39, %v16_v39  ;;  %v29_v47 = vld [vmem:[%s385_s1 + $0x10] sm:$0xff] }
   0x8   :  { %238 = vmatprep.subr.bf16.mxu0 %v62_v17  ;;  %248 = vmatprep.mubr.msk.bf16.mxu0 %vm64_vm0, %v56_v28  ;;  %v39_v43 = vmul.f32 %v15_v38, %v15_v38  ;;  %v33_v45 = vpack.c.bf16 %v16_v39, %v15_v38  ;;  %v30_v48 = vld [vmem:[%s385_s1 + $0x18] sm:$0xff]  ;;  %v214_v49 = vld [vmem:[%s385_s1 + $0x30] sm:$0xff] }
   0x9   :  { %255 = vmatpush3.bf16.msra.mxu1 %v37_v11  ;;  %191 = vperm.xlu1 %270, %v177_v29   ;;  %v59_v42 = vpack.c.bf16 %v42_v36, %v41_v35  ;;  %v215_v50 = vld [vmem:[%s385_s1 + $0x38] sm:$0xff]  ;;  %v32_v51 = vpack.c.bf16 %v30_v48, %v29_v47 }
   0xa   :  { %256 = vmatprep.subr.bf16.mxu1 %v36_v21  ;;  %181 = vperm.xlu0 %269, %v175_v32   ;;  %v58_v46 = vpack.c.bf16 %v40_v44, %v39_v43  ;;  %v57_v52 = vpack.c.bf16 %v215_v50, %v214_v49 }
   0xb   :  { %239 = vmatpush3.bf16.msra.mxu0 %v62_v17 }
   0xc   :  { %240 = vmatprep.subr.bf16.mxu0 %v61_v25 }
   0xd   :  { %257 = vmatpush3.bf16.msra.mxu1 %v36_v21  ;;  %196 = vperm.xlu1 %270, %v178_v37  }
   0xe   :  { %258 = vmatprep.subr.bf16.mxu1 %v35_v33  ;;  %186 = vperm.xlu0 %269, %v176_v40  }
   0xf   :  { %241 = vmatpush3.bf16.msra.mxu0 %v61_v25 }
  0x10   :  { %242 = vmatprep.subr.bf16.mxu0 %v60_v34 }
  0x11   :  { %259 = vmatpush3.bf16.msra.mxu1 %v35_v33 }
  0x12   :  { %260 = vmatprep.subr.bf16.mxu1 %v34_v41 }
  0x13   :  { %243 = vmatpush3.bf16.msra.mxu0 %v60_v34 }
  0x14   :  { %244 = vmatprep.subr.bf16.mxu0 %v59_v42 }
  0x15   :  { %261 = vmatpush3.bf16.msra.mxu1 %v34_v41 }
  0x16   :  { %262 = vmatprep.subr.bf16.mxu1 %v33_v45 }
  0x17   :  { %245 = vmatpush3.bf16.msra.mxu0 %v59_v42 }
  0x18   :  { %246 = vmatprep.subr.bf16.mxu0 %v58_v46 }
  0x19   :  { %263 = vmatpush3.bf16.msra.mxu1 %v33_v45 }
  0x1b   :  { %247 = vmatpush3.bf16.msra.mxu0 %v58_v46 }
  0x1c   :  { %265 = vmatmul.mubr.msk.bf16.vlgmr.msra.gmra.mxu1 %vm64_vm0, %v32_v51 }
  0x1e   :  { %249 = vmatmul.mubr.msk.bf16.vlgmr.msra.gmra.mxu0 %vm64_vm0, %v57_v52 }
  0x84   :  { %v192_v54 = vpop.permute.xlu1 %191 }
  0x85   :  { %v182_v57 = vpop.permute.xlu0 %181 }
  0x88   :  { %v197_v1 = vpop.permute.xlu1 %196 }
  0x89   :  { %v187_v7 = vpop.permute.xlu0 %186 }
  0xdc   :  { %v266_v53 = vpop.f32.mrf.mxu1 }
  0xde   :  { %v250_v55 = vpop.f32.mrf.mxu0  ;;  %v160_v56 = vpop.f32.mrf.mxu1 }
  0xdf   :  { %v169_v58 = vadd.f32 %v266_v53, %v250_v55 }
  0xe0   :  { %v105_v59 = vpop.f32.mrf.mxu0  ;;  %v267_v60 = vpop.f32.mrf.mxu1 }
  0xe1   :  { %v201_v61 = vadd.f32 %v192_v54, %v169_v58  ;;  %v161_v62 = vadd.f32 %v160_v56, %v105_v59 }
  0xe2   :  { %v251_v63 = vpop.f32.mrf.mxu0  ;;  %v163_v3 = vpop.f32.mrf.mxu1 }
  0xe3   :  { %206 = vst.msk [vmem:[%s387_s3 + $0x10] sm:$0xff] %vm203_vm1, %v201_v61  ;;  %v199_v0 = vadd.f32 %v182_v57, %v161_v62  ;;  %v172_v2 = vadd.f32 %v267_v60, %v251_v63 }
  0xe4   :  { %v108_v4 = vpop.f32.mrf.mxu0 }
  0xe5   :  { %204 = vst.msk [vmem:[%s387_s3] sm:$0xff] %vm203_vm1, %v199_v0  ;;  %v202_v5 = vadd.f32 %v197_v1, %v172_v2  ;;  %v164_v6 = vadd.f32 %v163_v3, %v108_v4 }
  0xe7   :  { %207 = vst.msk [vmem:[%s387_s3 + $0x18] sm:$0xff] %vm203_vm1, %v202_v5  ;;  %v200_v8 = vadd.f32 %v187_v7, %v164_v6 }
  0xe9   :  { %205 = vst.msk [vmem:[%s387_s3 + $0x8] sm:$0xff] %vm203_vm1, %v200_v8 }

// kernel: _lambda_.39
= control target key start
LH: loop header
LB: loop body
LE: loop exit
PB: predicated region body
PF: predicated region fallthrough
CT: control target
= control target key end

     0   :  { %vm89_vm0 = vcmask 1043456   ;;  %vm76_vm1 = vcmask 64512   ;;  %vm328_vm2 = vcmask 31744   ;;  %vm498_vm3 = vcmask 523264   ;;  %s2451_s4 = inlined_call_operand.vmem [shape: f32[2,8,4], index: 4, kind: input, shape index: {}]   ;;  %s2452_s1 = inlined_call_operand.vmem [shape: f32[64,8], index: 1, kind: input, shape index: {}]   ;;  %s2453_s3 = inlined_call_operand.vmem [shape: f32[2,8,4], index: 3, kind: input, shape index: {}]   ;;  %s2454_s0 = inlined_call_operand.vmem [shape: f32[64,8], index: 0, kind: input, shape index: {}]   ;;  %s2455_s6 = inlined_call_operand.vmem [shape: f32[2,1,4], index: 6, kind: input, shape index: {}]   ;;  %s2456_s7 = inlined_call_operand.vmem [shape: f32[2,1,4], index: 7, kind: input, shape index: {}]   ;;  %s2457_s5 = inlined_call_operand.vmem [shape: f32[2,8,4], index: 5, kind: input, shape index: {}]   ;;  %s2458_s2 = inlined_call_operand.vmem [shape: f32[64,64], index: 2, kind: input, shape index: {}]   ;;  %s2459_s8 = inlined_call_operand.vmem [shape: f32[2,1,4], index: 8, kind: input, shape index: {}]   ;;  %s2460_s9 = inlined_call_operand.vmem [shape: f32[2,4,8], index: 9, kind: input, shape index: {}]   ;;  %s2461_s10 = inlined_call_operand.vmem [shape: f32[1,8], index: 10, kind: input, shape index: {}]   ;;  %s2462_s11 = inlined_call_operand.vmem [shape: f32[64,8], index: 11, kind: output, shape index: {}]  }
   0x1   :  { %v158_v0 = vld [vmem:[%s2451_s4] sm:$0xff]  ;;  %v48_v3 = vld [vmem:[%s2452_s1 + $0x8] sm:$0xff]  ;;  %v49_v4 = vld [vmem:[%s2452_s1 + $0x10] sm:$0xff]  ;;  %vm1276_vm4 = vcmask 1041408  }
   0x2   :  { %v47_v1 = vld [vmem:[%s2452_s1] sm:$0xff]  ;;  %v163_v2 = vpack.c.bf16 %v158_v0, %v158_v0  ;;  %v50_v5 = vld [vmem:[%s2452_s1 + $0x18] sm:$0xff]  ;;  %v52_v8 = vld [vmem:[%s2452_s1 + $0x28] sm:$0xff] }
   0x3   :  { %v1981_v6 = vpack.c.bf16 %v48_v3, %v47_v1  ;;  %v51_v7 = vld [vmem:[%s2452_s1 + $0x20] sm:$0xff]  ;;  %v1991_v10 = vpack.c.bf16 %v50_v5, %v49_v4  ;;  %v40_v15 = vld [vmem:[%s2454_s0 + $0x8] sm:$0xff]  ;;  %v41_v16 = vld [vmem:[%s2454_s0 + $0x10] sm:$0xff] }
   0x4   :  { %1811 = vmatprep.subr.msk.bf16.mxu1 %vm89_vm0, %v163_v2  ;;  %v184_v9 = vsel %vm89_vm0, %v163_v2, 0  ;;  %v63_v11 = vld [vmem:[%s2453_s3] sm:$0xff]  ;;  %v1998_v12 = vpack.c.bf16 %v52_v8, %v51_v7  ;;  %v42_v18 = vld [vmem:[%s2454_s0 + $0x18] sm:$0xff]  ;;  %v44_v20 = vld [vmem:[%s2454_s0 + $0x28] sm:$0xff] }
   0x5   :  { %1653 = vmatpush3.bf16.msra.mxu1 %v184_v9  ;;  %1654 = vmatprep.mubr.msk.bf16.mxu1 %vm76_vm1, %v1981_v6  ;;  %v68_v13 = vpack.c.bf16 %v63_v11, %v63_v11  ;;  %v39_v14 = vld [vmem:[%s2454_s0] sm:$0xff]  ;;  %v2022_v22 = vpack.c.bf16 %v42_v18, %v41_v16  ;;  %v53_v24 = vld [vmem:[%s2452_s1 + $0x30] sm:$0xff]  ;;  %v54_v25 = vld [vmem:[%s2452_s1 + $0x38] sm:$0xff] }
   0x6   :  { %v2009_v17 = vpack.c.bf16 %v40_v15, %v39_v14  ;;  %v43_v19 = vld [vmem:[%s2454_s0 + $0x20] sm:$0xff]  ;;  %v2040_v26 = vpack.c.bf16 %v54_v25, %v53_v24  ;;  %v45_v27 = vld [vmem:[%s2454_s0 + $0x30] sm:$0xff]  ;;  %v46_v28 = vld [vmem:[%s2454_s0 + $0x38] sm:$0xff] }
   0x7   :  { %1810 = vmatprep.subr.msk.bf16.mxu0 %vm89_vm0, %v68_v13  ;;  %v91_v21 = vsel %vm89_vm0, %v68_v13, 0  ;;  %v2026_v23 = vpack.c.bf16 %v44_v20, %v43_v19  ;;  %v2050_v29 = vpack.c.bf16 %v46_v28, %v45_v27  ;;  %v1468_v33 = vld [vmem:[%s2455_s6] ss:$0 sm:$0xff]  ;;  %v1510_v52 = vld [vmem:[%s2451_s4 + $0x8] sm:$0xff]  ;;  %v2116_v13 = vld [vmem:[%s2458_s2 + $0x18] sm:$0xff] }
   0x8   :  { %1655 = vmatmul.mubr.msk.bf16.vlgmr.msra.gmra.mxu1 %vm76_vm1, %v1991_v10  ;;  %1643 = vmatpush3.bf16.msra.mxu0 %v91_v21  ;;  %v1473_v40 = vld [vmem:[%s2456_s7] ss:$0 sm:$0xff]  ;;  %v2082_v55 = vpack.c.bf16 %v1510_v52, %v1510_v52  ;;  %v2121_v14 = vld [vmem:[%s2458_s2 + $0x8] sm:$0xff]  ;;  %v2129_v19 = vld [vmem:[%s2458_s2 + $0x10] sm:$0xff] }
   0x9   :  { %1658 = vmatprep.mubr.msk.bf16.mxu1 %vm76_vm1, %v1998_v12  ;;  %1644 = vmatprep.mubr.msk.bf16.mxu0 %vm76_vm1, %v2009_v17  ;;  %v251_v2 = vld [vmem:[%s2457_s5] sm:$0xff] }
   0xa   :  { %v252_v3 = vpack.c.bf16 %v251_v2, %v251_v2  ;;  %v2111_v7 = vld [vmem:[%s2458_s2] sm:$0xff]  ;;  %v769_v52 = vsel %vm89_vm0, %v2082_v55, 0 }
   0xb   :  { %1645 = vmatmul.mubr.msk.bf16.vlgmr.msra.gmra.mxu0 %vm76_vm1, %v2022_v22 }
   0xc   :  { %1648 = vmatprep.mubr.msk.bf16.mxu0 %vm76_vm1, %v2026_v23  ;;  %1812 = vmatprep.subr.msk.bf16.mxu0 %vm89_vm0, %v252_v3  ;;  %v261_v4 = vsel %vm89_vm0, %v252_v3, 0 }
   0xd   :  { %1663 = vmatpush3.bf16.msra.mxu0 %v261_v4 }
  0x10   :  { %1659 = vmatmul.mubr.msk.bf16.gmra.mxu1 %vm76_vm1, %v2040_v26 }
  0x13   :  { %1649 = vmatmul.mubr.msk.bf16.gmra.mxu0 %vm76_vm1, %v2050_v29 }
  0x14   :  { %1664 = vmatprep.mubr.msk.bf16.mxu0 %vm76_vm1, %v2009_v17 }
  0x1b   :  { %1665 = vmatmul.mubr.msk.bf16.vlgmr.msra.gmra.mxu0 %vm76_vm1, %v2022_v22 }
  0x1c   :  { %1668 = vmatprep.mubr.msk.bf16.mxu0 %vm76_vm1, %v2026_v23 }
  0x23   :  { %1669 = vmatmul.mubr.msk.bf16.gmra.mxu0 %vm76_vm1, %v2050_v29 }
  0xc8   :  { %v1656_v30 = vpop.f32.mrf.mxu1 }
  0xc9   :  { %v229_v48 = vadd.f32 %v1656_v30, %v1473_v40 }
  0xca   :  { %v220_v31 = vpop.f32.mrf.mxu1 }
  0xcb   :  { %v1646_v32 = vpop.f32.mrf.mxu0  ;;  %v221_v54 = vadd.f32 %v1473_v40, %v220_v31 }
  0xcc   :  { %v1657_v34 = vpop.f32.mrf.mxu1  ;;  %v136_v58 = vadd.f32 %v1646_v32, %v1468_v33 }
  0xcd   :  { %v127_v35 = vpop.f32.mrf.mxu0  ;;  %v232_v47 = vadd.f32 %v1657_v34, %v1473_v40  ;;  %v2152_v34 = vld [vmem:[%s2458_s2 + $0x28] sm:$0xff] }
  0xce   :  { %v223_v36 = vpop.f32.mrf.mxu1  ;;  %v128_v37 = vadd.f32 %v1468_v33, %v127_v35 }
  0xcf   :  { %v1647_v49 = vpop.f32.mrf.mxu0  ;;  %v224_v50 = vadd.f32 %v1473_v40, %v223_v36 }
  0xd0   :  { %v1660_v38 = vpop.f32.mrf.mxu1  ;;  %1688 = vmatprep.mubr.msk.f32.mxu1 %vm328_vm2, %v128_v37  ;;  %v139_v61 = vadd.f32 %v1647_v49, %v1468_v33 }
  0xd1   :  { %v245_v43 = vadd.f32 %v1660_v38, %v1473_v40  ;;  %v130_v51 = vpop.f32.mrf.mxu0 }
  0xd2   :  { %v236_v39 = vpop.f32.mrf.mxu1  ;;  %v131_v57 = vadd.f32 %v1468_v33, %v130_v51 }
  0xd3   :  { %v237_v46 = vadd.f32 %v1473_v40, %v236_v39  ;;  %v1650_v53 = vpop.f32.mrf.mxu0 }
  0xd4   :  { %v1661_v41 = vpop.f32.mrf.mxu1  ;;  %v152_v0 = vadd.f32 %v1650_v53, %v1468_v33 }
  0xd5   :  { %v248_v42 = vadd.f32 %v1661_v41, %v1473_v40  ;;  %v143_v56 = vpop.f32.mrf.mxu0 }
  0xd6   :  { %v239_v44 = vpop.f32.mrf.mxu1  ;;  %v144_v60 = vadd.f32 %v1468_v33, %v143_v56 }
  0xd7   :  { %1672 = vmatprep.subr.msk.mxu1 %vm328_vm2, %v248_v42  ;;  %v240_v45 = vadd.f32 %v1473_v40, %v239_v44  ;;  %v1651_v59 = vpop.f32.mrf.mxu0  ;;  %v2172_v44 = vld [vmem:[%s2458_s2 + $0x38] sm:$0xff] }
  0xd8   :  { %1673 = vmatpush3.xpose.msk.msra.mxu1 %vm328_vm2, %v248_v42  ;;  %v155_v1 = vadd.f32 %v1651_v59, %v1468_v33 }
  0xd9   :  { %1674 = vmatprep.subr.msk.mxu1 %vm328_vm2, %v245_v43  ;;  %v146_v62 = vpop.f32.mrf.mxu0 }
  0xda   :  { %v147_v63 = vadd.f32 %v1468_v33, %v146_v62  ;;  %v2147_v33 = vld [vmem:[%s2458_s2 + $0x20] sm:$0xff] }
  0xdb   :  { %v1666_v53 = vpop.f32.mrf.mxu0 }
  0xdc   :  { %1675 = vmatpush3.xpose.msk.msra.mxu1 %vm328_vm2, %v245_v43  ;;  %v2167_v43 = vld [vmem:[%s2458_s2 + $0x30] sm:$0xff] }
  0xdd   :  { %1676 = vmatprep.subr.msk.mxu1 %vm328_vm2, %v240_v45 }
  0xe0   :  { %1677 = vmatpush3.xpose.msk.msra.mxu1 %vm328_vm2, %v240_v45 }
  0xe1   :  { %1678 = vmatprep.subr.msk.mxu1 %vm328_vm2, %v237_v46 }
  0xe4   :  { %1679 = vmatpush3.xpose.msk.msra.mxu1 %vm328_vm2, %v237_v46 }
  0xe5   :  { %1680 = vmatprep.subr.msk.mxu1 %vm328_vm2, %v232_v47 }
  0xe8   :  { %1681 = vmatpush3.xpose.msk.msra.mxu1 %vm328_vm2, %v232_v47 }
  0xe9   :  { %1682 = vmatprep.subr.msk.mxu1 %vm328_vm2, %v229_v48 }
  0xec   :  { %1683 = vmatpush3.xpose.msk.msra.mxu1 %vm328_vm2, %v229_v48 }
  0xed   :  { %1684 = vmatprep.subr.msk.mxu1 %vm328_vm2, %v224_v50 }
  0xf0   :  { %1685 = vmatpush3.xpose.msk.msra.mxu1 %vm328_vm2, %v224_v50 }
  0xf1   :  { %1686 = vmatprep.subr.msk.mxu1 %vm328_vm2, %v221_v54 }
  0xf4   :  { %1687 = vmatpush3.xpose.msk.msra.mxu1 %vm328_vm2, %v221_v54  ;;  %v297_v54 = vpop.f32.mrf.mxu0 }
  0xf5   :  { %1814 = vmatprep.subr.msk.bf16.mxu1 %vm89_vm0, %v2082_v55 }
  0xf6   :  { %v1667_v56 = vpop.f32.mrf.mxu0 }
  0xf7   :  { %1689 = vmatmul.mubr.msk.f32.vlgmr.msra.gmra.mxu1 %vm328_vm2, %v131_v57 }
  0xf8   :  { %1691 = vmatprep.mubr.msk.f32.mxu1 %vm328_vm2, %v136_v58  ;;  %1727 = vmatpush3.bf16.msra.mxu1 %v769_v52  ;;  %v300_v57 = vpop.f32.mrf.mxu0  ;;  %v1478_v58 = vld [vmem:[%s2459_s8] ss:$0 sm:$0xff] }
  0xf9   :  { %v298_v3 = vadd.f32 %v1478_v58, %v297_v54 }
  0xfa   :  { %v1670_v59 = vpop.f32.mrf.mxu0 }
  0xfb   :  { %1692 = vmatmul.mubr.msk.f32.gmra.mxu1 %vm328_vm2, %v139_v61 }
  0xfc   :  { %1694 = vmatprep.mubr.msk.f32.mxu1 %vm328_vm2, %v144_v60  ;;  %v313_v55 = vpop.f32.mrf.mxu0  ;;  %v322_v60 = vadd.f32 %v1670_v59, %v1478_v58 }
  0xfd   :  { %v314_v62 = vadd.f32 %v1478_v58, %v313_v55 }
  0xfe   :  { %v1671_v61 = vpop.f32.mrf.mxu0 }
  0xff   :  { %1695 = vmatmul.mubr.msk.f32.gmra.mxu1 %vm328_vm2, %v147_v63 }
 0x100   :  { %1697 = vmatprep.mubr.msk.f32.mxu1 %vm328_vm2, %v152_v0  ;;  %v316_v63 = vpop.f32.mrf.mxu0  ;;  %v306_v0 = vadd.f32 %v1666_v53, %v1478_v58 }
 0x101   :  { %v317_v2 = vadd.f32 %v1478_v58, %v316_v63 }
 0x103   :  { %1698 = vmatmul.mubr.msk.f32.gmra.mxu1 %vm328_vm2, %v155_v1 }
 0x104   :  { %1728 = vmatprep.mubr.msk.bf16.mxu1 %vm76_vm1, %v1981_v6 }
 0x107   :  { %1729 = vmatmul.mubr.msk.bf16.vlgmr.msra.gmra.mxu1 %vm76_vm1, %v1991_v10  ;;  %v325_v10 = vadd.f32 %v1671_v61, %v1478_v58 }
 0x108   :  { %1732 = vmatprep.mubr.msk.bf16.mxu1 %vm76_vm1, %v1998_v12  ;;  %v309_v12 = vadd.f32 %v1667_v56, %v1478_v58 }
 0x109   :  { %v594_v1 = vpack.c.bf16 %v325_v10, %v322_v60 }
 0x10a   :  { %v592_v4 = vpack.c.bf16 %v309_v12, %v306_v0 }
 0x10b   :  { %1700 = vmatprep.subr.bf16.mxu0 %v594_v1 }
 0x10c   :  { %1701 = vmatpush3.bf16.msra.mxu0 %v594_v1 }
 0x10f   :  { %1733 = vmatmul.mubr.msk.bf16.gmra.mxu1 %vm76_vm1, %v2040_v26  ;;  %v593_v26 = vpack.c.bf16 %v317_v2, %v314_v62 }
 0x111   :  { %1702 = vmatprep.subr.bf16.mxu0 %v593_v26 }
 0x112   :  { %1703 = vmatpush3.bf16.msra.mxu0 %v593_v26  ;;  %v1512_v26 = vld [vmem:[%s2456_s7 + $0x1] ss:$0 sm:$0xff] }
 0x113   :  { %1704 = vmatprep.subr.bf16.mxu0 %v592_v4 }
 0x116   :  { %1705 = vmatpush3.bf16.msra.mxu0 %v592_v4 }
 0x1b7   :  { %v1690_v5 = vpop.f32.mrf.mxu1 }
 0x1b8   :  { %v483_v8 = vmul.f32 0.5, %v1690_v5  ;;  %v301_v5 = vadd.f32 %v1478_v58, %v300_v57 }
 0x1b9   :  { %v443_v6 = vpop.f32.mrf.mxu1 }
 0x1ba   :  { %v482_v9 = vmul.f32 0.5, %v443_v6  ;;  %v2137_v25 = vadd.f32 %v483_v8, %v2121_v14  ;;  %v591_v6 = vpack.c.bf16 %v301_v5, %v298_v3  ;;  %v1503_v8 = vld [vmem:[%s2453_s3 + $0x8] sm:$0xff] }
 0x1bb   :  { %v1693_v11 = vpop.f32.mrf.mxu1 }
 0x1bc   :  { %v485_v15 = vmul.f32 0.5, %v1693_v11  ;;  %v2124_v16 = vadd.f32 %v482_v9, %v2111_v7  ;;  %v502_v36 = vsel %vm498_vm3, %v2137_v25, -inf  ;;  %v2202_v9 = vpack.c.bf16 %v1503_v8, %v1503_v8  ;;  %1706 = vmatprep.subr.bf16.mxu0 %v591_v6 }
 0x1bd   :  { %v453_v18 = vpop.f32.mrf.mxu1  ;;  %1707 = vmatpush3.bf16.msra.mxu0 %v591_v6 }
 0x1be   :  { %v484_v20 = vmul.f32 0.5, %v453_v18  ;;  %v499_v21 = vsel %vm498_vm3, %v2124_v16, -inf  ;;  %v2134_v24 = vadd.f32 %v485_v15, %v2116_v13  ;;  %1813 = vmatprep.subr.msk.bf16.mxu0 %vm89_vm0, %v2202_v9 }
 0x1bf   :  { %500 = vmax.xlane.f32.xlu0 %v499_v21  ;;  %v1696_v27 = vpop.f32.mrf.mxu1 }
 0x1c0   :  { %v487_v28 = vmul.f32 0.5, %v1696_v27  ;;  %v508_v30 = vsel %vm498_vm3, %v2134_v24, -inf  ;;  %v2142_v31 = vadd.f32 %v484_v20, %v2129_v19 }
 0x1c1   :  { %509 = vmax.xlane.f32.xlu1 %v508_v30  ;;  %v463_v32 = vpop.f32.mrf.mxu1 }
 0x1c2   :  { %v486_v35 = vmul.f32 0.5, %v463_v32  ;;  %v505_v39 = vsel %vm498_vm3, %v2142_v31, -inf  ;;  %v2162_v41 = vadd.f32 %v487_v28, %v2152_v34 }
 0x1c3   :  { %503 = vmax.xlane.f32.xlu0 %v502_v36  ;;  %v1699_v37 = vpop.f32.mrf.mxu1 }
 0x1c4   :  { %v489_v38 = vmul.f32 0.5, %v1699_v37  ;;  %v2159_v40 = vadd.f32 %v486_v35, %v2147_v33  ;;  %v514_v47 = vsel %vm498_vm3, %v2162_v41, -inf }
 0x1c5   :  { %506 = vmax.xlane.f32.xlu1 %v505_v39  ;;  %v473_v42 = vpop.f32.mrf.mxu1 }
 0x1c6   :  { %v488_v45 = vmul.f32 0.5, %v473_v42  ;;  %v511_v46 = vsel %vm498_vm3, %v2159_v40, -inf  ;;  %v2182_v49 = vadd.f32 %v489_v38, %v2172_v44 }
 0x1c7   :  { %512 = vmax.xlane.f32.xlu0 %v511_v46  ;;  %v1730_v63 = vpop.f32.mrf.mxu1 }
 0x1c8   :  { %v2179_v48 = vadd.f32 %v488_v45, %v2167_v43  ;;  %v520_v51 = vsel %vm498_vm3, %v2182_v49, -inf }
 0x1c9   :  { %515 = vmax.xlane.f32.xlu1 %v514_v47  ;;  %v805_v0 = vpop.f32.mrf.mxu1 }
 0x1ca   :  { %v517_v50 = vsel %vm498_vm3, %v2179_v48, -inf }
 0x1cb   :  { %518 = vmax.xlane.f32.xlu0 %v517_v50  ;;  %v1731_v12 = vpop.f32.mrf.mxu1 }
 0x1cd   :  { %521 = vmax.xlane.f32.xlu1 %v520_v51  ;;  %v808_v1 = vpop.f32.mrf.mxu1 }
 0x1cf   :  { %v1734_v2 = vpop.f32.mrf.mxu1 }
 0x1d0   :  { %v830_v5 = vadd.f32 %v1734_v2, %v1512_v26 }
 0x1d1   :  { %v821_v3 = vpop.f32.mrf.mxu1 }
 0x1d3   :  { %v1735_v4 = vpop.f32.mrf.mxu1 }
 0x1d4   :  { %v833_v6 = vadd.f32 %v1735_v4, %v1512_v26 }
 0x1d5   :  { %v824_v8 = vpop.f32.mrf.mxu1 }
 0x1d6   :  { %1746 = vmatprep.subr.msk.mxu1 %vm328_vm2, %v833_v6 }
 0x1d7   :  { %1747 = vmatpush3.xpose.msk.msra.mxu1 %vm328_vm2, %v833_v6 }
 0x1d8   :  { %1748 = vmatprep.subr.msk.mxu1 %vm328_vm2, %v830_v5 }
 0x1db   :  { %1749 = vmatpush3.xpose.msk.msra.mxu1 %vm328_vm2, %v830_v5 }
 0x248   :  { %v501_v11 = vpop.xlane.xlu0 %500 }
 0x249   :  { %v523_v15 = vsub.f32 %v2124_v16, %v501_v11  ;;  %v825_v11 = vadd.f32 %v1512_v26, %v824_v8 }
 0x24a   :  { %v510_v18 = vpop.xlane.xlu1 %509 }
 0x24b   :  { %v531_v20 = vmul.f32 1.442695, %v523_v15  ;;  %v526_v21 = vsub.f32 %v2134_v24, %v510_v18  ;;  %v822_v15 = vadd.f32 %v1512_v26, %v821_v3  ;;  %1750 = vmatprep.subr.msk.mxu1 %vm328_vm2, %v825_v11  ;;  %v817_v18 = vadd.f32 %v1731_v12, %v1512_v26 }
 0x24c   :  { %v504_v27 = vpop.xlane.xlu0 %503  ;;  %1751 = vmatpush3.xpose.msk.msra.mxu1 %vm328_vm2, %v825_v11 }
 0x24d   :  { %1818 = vpow2.f32 %v531_v20  ;;  %v524_v28 = vsub.f32 %v2137_v25, %v504_v27  ;;  %v537_v30 = vmul.f32 1.442695, %v526_v21  ;;  %1752 = vmatprep.subr.msk.mxu1 %vm328_vm2, %v822_v15  ;;  %v814_v20 = vadd.f32 %v1730_v63, %v1512_v26 }
 0x24e   :  { %v507_v32 = vpop.xlane.xlu1 %506  ;;  %v809_v21 = vadd.f32 %v1512_v26, %v808_v1  ;;  %v806_v27 = vadd.f32 %v1512_v26, %v805_v0 }
 0x24f   :  { %v533_v35 = vmul.f32 1.442695, %v524_v28  ;;  %v525_v36 = vsub.f32 %v2142_v31, %v507_v32 }
 0x250   :  { %v513_v37 = vpop.xlane.xlu0 %512  ;;  %1753 = vmatpush3.xpose.msk.msra.mxu1 %vm328_vm2, %v822_v15 }
 0x251   :  { %1820 = vpow2.f32 %v533_v35  ;;  %v535_v38 = vmul.f32 1.442695, %v525_v36  ;;  %v527_v39 = vsub.f32 %v2159_v40, %v513_v37  ;;  %1754 = vmatprep.subr.msk.mxu1 %vm328_vm2, %v817_v18 }
 0x252   :  { %1822 = vpow2.f32 %v537_v30  ;;  %v516_v16 = vpop.xlane.xlu1 %515 }
 0x253   :  { %1824 = vpow2.f32 %v535_v38  ;;  %v539_v42 = vmul.f32 1.442695, %v527_v39  ;;  %v528_v24 = vsub.f32 %v2162_v41, %v516_v16 }
 0x254   :  { %v519_v45 = vpop.xlane.xlu0 %518  ;;  %1755 = vmatpush3.xpose.msk.msra.mxu1 %vm328_vm2, %v817_v18 }
 0x255   :  { %1826 = vpow2.f32 %v539_v42  ;;  %v541_v46 = vmul.f32 1.442695, %v528_v24  ;;  %v529_v25 = vsub.f32 %v2179_v48, %v519_v45  ;;  %1756 = vmatprep.subr.msk.mxu1 %vm328_vm2, %v814_v20 }
 0x256   :  { %v522_v47 = vpop.xlane.xlu1 %521 }
 0x257   :  { %1828 = vpow2.f32 %v541_v46  ;;  %v543_v50 = vmul.f32 1.442695, %v529_v25  ;;  %v530_v31 = vsub.f32 %v2182_v49, %v522_v47 }
 0x258   :  { %1757 = vmatpush3.xpose.msk.msra.mxu1 %vm328_vm2, %v814_v20 }
 0x259   :  { %1830 = vpow2.f32 %v543_v50  ;;  %v545_v51 = vmul.f32 1.442695, %v530_v31  ;;  %1758 = vmatprep.subr.msk.mxu1 %vm328_vm2, %v809_v21 }
 0x25a   :  { %v2214_v52 = vpop.eup %1818 }
 0x25b   :  { %1832 = vpow2.f32 %v545_v51  ;;  %v547_v40 = vsel %vm498_vm3, %v2214_v52, 0.0 }
 0x25c   :  { %548 = vadd.xlane.f32.xlu0 %v547_v40  ;;  %1759 = vmatpush3.xpose.msk.msra.mxu1 %vm328_vm2, %v809_v21 }
 0x25d   :  { %1760 = vmatprep.subr.msk.mxu1 %vm328_vm2, %v806_v27 }
 0x25e   :  { %v2218_v41 = vpop.eup %1820 }
 0x25f   :  { %v2220_v53 = vpop.eup %1822  ;;  %v550_v48 = vsel %vm498_vm3, %v2218_v41, 0.0 }
 0x260   :  { %v2224_v54 = vpop.eup %1824  ;;  %551 = vadd.xlane.f32.xlu1 %v550_v48  ;;  %v556_v57 = vsel %vm498_vm3, %v2220_v53, 0.0  ;;  %1761 = vmatpush3.xpose.msk.msra.mxu1 %vm328_vm2, %v806_v27  ;;  %v690_v48 = vsel %vm89_vm0, %v2202_v9, 0  ;;  %v672_v9 = vld [vmem:[%s2460_s9] sm:$0xf] }
 0x261   :  { %v553_v49 = vsel %vm498_vm3, %v2224_v54, 0.0 }
 0x262   :  { %v2228_v56 = vpop.eup %1826  ;;  %554 = vadd.xlane.f32.xlu0 %v553_v49 }
 0x263   :  { %v559_v59 = vsel %vm498_vm3, %v2228_v56, 0.0 }
 0x264   :  { %v2232_v58 = vpop.eup %1828  ;;  %557 = vadd.xlane.f32.xlu1 %v556_v57 }
 0x265   :  { %v562_v60 = vsel %vm498_vm3, %v2232_v58, 0.0 }
 0x266   :  { %v2236_v55 = vpop.eup %1830  ;;  %560 = vadd.xlane.f32.xlu0 %v559_v59 }
 0x267   :  { %v565_v62 = vsel %vm498_vm3, %v2236_v55, 0.0 }
 0x268   :  { %v2240_v61 = vpop.eup %1832  ;;  %563 = vadd.xlane.f32.xlu1 %v562_v60 }
 0x269   :  { %v568_v10 = vsel %vm498_vm3, %v2240_v61, 0.0 }
 0x26a   :  { %566 = vadd.xlane.f32.xlu0 %v565_v62 }
 0x26c   :  { %569 = vadd.xlane.f32.xlu1 %v568_v10 }
 0x2e5   :  { %v549_v28 = vpop.xlane.xlu0 %548 }
 0x2e6   :  { %1834 = vrcp.f32 %v549_v28 }
 0x2e9   :  { %v552_v30 = vpop.xlane.xlu1 %551 }
 0x2ea   :  { %1836 = vrcp.f32 %v552_v30 }
 0x2eb   :  { %v555_v32 = vpop.xlane.xlu0 %554 }
 0x2ec   :  { %1838 = vrcp.f32 %v555_v32 }
 0x2ed   :  { %v558_v35 = vpop.xlane.xlu1 %557 }
 0x2ee   :  { %1840 = vrcp.f32 %v558_v35 }
 0x2ef   :  { %v561_v36 = vpop.xlane.xlu0 %560 }
 0x2f0   :  { %1842 = vrcp.f32 %v561_v36 }
 0x2f1   :  { %v564_v37 = vpop.xlane.xlu1 %563 }
 0x2f2   :  { %1844 = vrcp.f32 %v564_v37 }
 0x2f3   :  { %v567_v38 = vpop.xlane.xlu0 %566  ;;  %v1835_v39 = vpop.eup %1834 }
 0x2f4   :  { %1846 = vrcp.f32 %v567_v38  ;;  %v579_v24 = vmul.f32 %v1835_v39, %v2214_v52 }
 0x2f5   :  { %v570_v16 = vpop.xlane.xlu1 %569 }
 0x2f6   :  { %1848 = vrcp.f32 %v570_v16  ;;  %v1517_v16 = vld [vmem:[%s2457_s5 + $0x8] sm:$0xff] }
 0x2f7   :  { %v1837_v42 = vpop.eup %1836 }
 0x2f8   :  { %v580_v45 = vmul.f32 %v1837_v42, %v2218_v41  ;;  %v838_v42 = vpack.c.bf16 %v1517_v16, %v1517_v16 }
 0x2f9   :  { %v1839_v46 = vpop.eup %1838 }
 0x2fa   :  { %v587_v25 = vpack.c.bf16 %v580_v45, %v579_v24  ;;  %v581_v50 = vmul.f32 %v1839_v46, %v2224_v54  ;;  %v848_v24 = vsel %vm89_vm0, %v838_v42, 0 }
 0x2fb   :  { %v1841_v47 = vpop.eup %1840 }
 0x2fc   :  { %v582_v31 = vmul.f32 %v1841_v47, %v2220_v53  ;;  %1708 = vmatprep.mubr.msk.bf16.mxu0 %vm498_vm3, %v587_v25 }
 0x2fd   :  { %v1843_v51 = vpop.eup %1842 }
 0x2fe   :  { %v588_v40 = vpack.c.bf16 %v582_v31, %v581_v50  ;;  %v583_v52 = vmul.f32 %v1843_v51, %v2228_v56  ;;  %v677_v56 = vpack.c.bf16 %v672_v9, %v672_v9 }
 0x2ff   :  { %v1845_v49 = vpop.eup %1844 }
 0x300   :  { %1709 = vmatmul.mubr.msk.bf16.vlgmr.msra.gmra.mxu0 %vm498_vm3, %v588_v40  ;;  %v584_v41 = vmul.f32 %v1845_v49, %v2232_v58  ;;  %1817 = vmatprep.subr.msk.bf16.mxu1 %vm1276_vm4, %v677_v56  ;;  %v1358_v8 = vsel %vm1276_vm4, %v677_v56, 0 }
 0x301   :  { %v1847_v57 = vpop.eup %1846  ;;  %1717 = vmatpush3.bf16.msra.mxu0 %v690_v48 }
 0x302   :  { %v589_v59 = vpack.c.bf16 %v584_v41, %v583_v52  ;;  %v585_v53 = vmul.f32 %v1847_v57, %v2236_v55  ;;  %1815 = vmatprep.subr.msk.bf16.mxu0 %vm89_vm0, %v838_v42 }
 0x303   :  { %v1849_v54 = vpop.eup %1848 }
 0x304   :  { %1712 = vmatprep.mubr.msk.bf16.mxu0 %vm498_vm3, %v589_v59  ;;  %v586_v60 = vmul.f32 %v1849_v54, %v2240_v61 }
 0x306   :  { %v590_v62 = vpack.c.bf16 %v586_v60, %v585_v53 }
 0x308   :  { %1713 = vmatmul.mubr.msk.bf16.gmra.mxu0 %vm498_vm3, %v590_v62 }
 0x309   :  { %1718 = vmatprep.mubr.msk.bf16.mxu0 %vm76_vm1, %v2009_v17 }
 0x310   :  { %1719 = vmatmul.mubr.msk.bf16.vlgmr.msra.gmra.mxu0 %vm76_vm1, %v2022_v22 }
 0x311   :  { %1722 = vmatprep.mubr.msk.bf16.mxu0 %vm76_vm1, %v2026_v23  ;;  %1737 = vmatpush3.bf16.msra.mxu0 %v848_v24 }
 0x318   :  { %1723 = vmatmul.mubr.msk.bf16.gmra.mxu0 %vm76_vm1, %v2050_v29 }
 0x319   :  { %1738 = vmatprep.mubr.msk.bf16.mxu0 %vm76_vm1, %v2009_v17  ;;  %v1505_v17 = vld [vmem:[%s2455_s6 + $0x1] ss:$0 sm:$0xff] }
 0x320   :  { %1739 = vmatmul.mubr.msk.bf16.vlgmr.msra.gmra.mxu0 %vm76_vm1, %v2022_v22 }
 0x321   :  { %1742 = vmatprep.mubr.msk.bf16.mxu0 %vm76_vm1, %v2026_v23 }
 0x328   :  { %1743 = vmatmul.mubr.msk.bf16.gmra.mxu0 %vm76_vm1, %v2050_v29 }
 0x3c0   :  { %v1710_v58 = vpop.f32.mrf.mxu0 }
 0x3c2   :  { %v641_v55 = vpop.f32.mrf.mxu0 }
 0x3c4   :  { %v1711_v61 = vpop.f32.mrf.mxu0 }
 0x3c5   :  { %v674_v37 = vpack.c.bf16 %v1711_v61, %v1710_v58 }
 0x3c6   :  { %v644_v10 = vpop.f32.mrf.mxu0 }
 0x3c7   :  { %v673_v36 = vpack.c.bf16 %v644_v10, %v641_v55 }
 0x3c8   :  { %v1714_v63 = vpop.f32.mrf.mxu0 }
 0x3ca   :  { %v657_v0 = vpop.f32.mrf.mxu0 }
 0x3cc   :  { %v1715_v12 = vpop.f32.mrf.mxu0 }
 0x3cd   :  { %v676_v39 = vpack.c.bf16 %v1715_v12, %v1714_v63 }
 0x3ce   :  { %v660_v1 = vpop.f32.mrf.mxu0 }
 0x3cf   :  { %v675_v38 = vpack.c.bf16 %v660_v1, %v657_v0 }
 0x3d0   :  { %v1720_v2 = vpop.f32.mrf.mxu0 }
 0x3d1   :  { %v735_v11 = vadd.f32 %v1720_v2, %v1505_v17 }
 0x3d2   :  { %v726_v26 = vpop.f32.mrf.mxu0 }
 0x3d3   :  { %v727_v3 = vadd.f32 %v1505_v17, %v726_v26 }
 0x3d4   :  { %v1721_v4 = vpop.f32.mrf.mxu0 }
 0x3d5   :  { %1762 = vmatprep.mubr.msk.f32.mxu1 %vm328_vm2, %v727_v3  ;;  %v738_v20 = vadd.f32 %v1721_v4, %v1505_v17 }
 0x3d6   :  { %v729_v5 = vpop.f32.mrf.mxu0 }
 0x3d7   :  { %v730_v6 = vadd.f32 %v1505_v17, %v729_v5 }
 0x3d8   :  { %v1724_v15 = vpop.f32.mrf.mxu0 }
 0x3d9   :  { %1763 = vmatmul.mubr.msk.f32.vlgmr.msra.gmra.mxu1 %vm328_vm2, %v730_v6  ;;  %v751_v32 = vadd.f32 %v1724_v15, %v1505_v17 }
 0x3da   :  { %v742_v18 = vpop.f32.mrf.mxu0  ;;  %1765 = vmatprep.mubr.msk.f32.mxu1 %vm328_vm2, %v735_v11  ;;  %1801 = vmatpush3.bf16.msra.mxu1 %v1358_v8 }
 0x3db   :  { %v743_v21 = vadd.f32 %v1505_v17, %v742_v18 }
 0x3dc   :  { %v1725_v27 = vpop.f32.mrf.mxu0 }
 0x3dd   :  { %1766 = vmatmul.mubr.msk.f32.gmra.mxu1 %vm328_vm2, %v738_v20  ;;  %v754_v35 = vadd.f32 %v1725_v27, %v1505_v17 }
 0x3de   :  { %v745_v28 = vpop.f32.mrf.mxu0  ;;  %1768 = vmatprep.mubr.msk.f32.mxu1 %vm328_vm2, %v743_v21 }
 0x3df   :  { %v746_v30 = vadd.f32 %v1505_v17, %v745_v28 }
 0x3e0   :  { %v1740_v10 = vpop.f32.mrf.mxu0 }
 0x3e1   :  { %1769 = vmatmul.mubr.msk.f32.gmra.mxu1 %vm328_vm2, %v746_v30 }
 0x3e2   :  { %1771 = vmatprep.mubr.msk.f32.mxu1 %vm328_vm2, %v751_v32  ;;  %v884_v63 = vpop.f32.mrf.mxu0 }
 0x3e4   :  { %v1741_v0 = vpop.f32.mrf.mxu0 }
 0x3e5   :  { %1772 = vmatmul.mubr.msk.f32.gmra.mxu1 %vm328_vm2, %v754_v35 }
 0x3e6   :  { %1802 = vmatprep.mubr.msk.bf16.mxu1 %vm328_vm2, %v673_v36  ;;  %v887_v12 = vpop.f32.mrf.mxu0 }
 0x3e8   :  { %v1744_v1 = vpop.f32.mrf.mxu0 }
 0x3e9   :  { %1803 = vmatmul.mubr.msk.bf16.vlgmr.msra.gmra.mxu1 %vm328_vm2, %v674_v37 }
 0x3ea   :  { %1806 = vmatprep.mubr.msk.bf16.mxu1 %vm328_vm2, %v675_v38  ;;  %v900_v2 = vpop.f32.mrf.mxu0 }
 0x3ec   :  { %v1745_v26 = vpop.f32.mrf.mxu0 }
 0x3ee   :  { %v903_v4 = vpop.f32.mrf.mxu0 }
 0x3f1   :  { %1807 = vmatmul.mubr.msk.bf16.gmra.mxu1 %vm328_vm2, %v676_v39 }
 0x499   :  { %v1764_v45 = vpop.f32.mrf.mxu1 }
 0x49a   :  { %v1069_v46 = vmul.f32 0.5, %v1764_v45 }
 0x49b   :  { %v1029_v25 = vpop.f32.mrf.mxu1 }
 0x49c   :  { %v1068_v47 = vmul.f32 0.5, %v1029_v25  ;;  %v2321_v50 = vadd.f32 %v1069_v46, %v2121_v14 }
 0x49d   :  { %v1767_v31 = vpop.f32.mrf.mxu1 }
 0x49e   :  { %v1071_v51 = vmul.f32 0.5, %v1767_v31  ;;  %v1087_v40 = vsel %vm498_vm3, %v2321_v50, -inf  ;;  %v2326_v22 = vadd.f32 %v1068_v47, %v2111_v7 }
 0x49f   :  { %1088 = vmax.xlane.f32.xlu1 %v1087_v40  ;;  %v1039_v23 = vpop.f32.mrf.mxu1 }
 0x4a0   :  { %v1070_v48 = vmul.f32 0.5, %v1039_v23  ;;  %v1084_v29 = vsel %vm498_vm3, %v2326_v22, -inf  ;;  %v2331_v49 = vadd.f32 %v1071_v51, %v2116_v13 }
 0x4a1   :  { %1085 = vmax.xlane.f32.xlu0 %v1084_v29  ;;  %v1770_v14 = vpop.f32.mrf.mxu1 }
 0x4a2   :  { %v1073_v52 = vmul.f32 0.5, %v1770_v14  ;;  %v1093_v41 = vsel %vm498_vm3, %v2331_v49, -inf  ;;  %v2336_v57 = vadd.f32 %v1070_v48, %v2129_v19 }
 0x4a3   :  { %1094 = vmax.xlane.f32.xlu1 %v1093_v41  ;;  %v1049_v7 = vpop.f32.mrf.mxu1 }
 0x4a4   :  { %v1072_v59 = vmul.f32 0.5, %v1049_v7  ;;  %v1090_v54 = vsel %vm498_vm3, %v2336_v57, -inf  ;;  %v2341_v53 = vadd.f32 %v1073_v52, %v2152_v34 }
 0x4a5   :  { %1091 = vmax.xlane.f32.xlu0 %v1090_v54  ;;  %v1773_v13 = vpop.f32.mrf.mxu1 }
 0x4a6   :  { %v1075_v60 = vmul.f32 0.5, %v1773_v13  ;;  %v1099_v62 = vsel %vm498_vm3, %v2341_v53, -inf  ;;  %v2346_v9 = vadd.f32 %v1072_v59, %v2147_v33 }
 0x4a7   :  { %1100 = vmax.xlane.f32.xlu1 %v1099_v62  ;;  %v1059_v19 = vpop.f32.mrf.mxu1 }
 0x4a8   :  { %v1074_v56 = vmul.f32 0.5, %v1059_v19  ;;  %v1096_v58 = vsel %vm498_vm3, %v2346_v9, -inf  ;;  %v2351_v55 = vadd.f32 %v1075_v60, %v2172_v44  ;;  %v1519_v44 = vld [vmem:[%s2459_s8 + $0x1] ss:$0 sm:$0xff] }
 0x4a9   :  { %1097 = vmax.xlane.f32.xlu0 %v1096_v58  ;;  %v909_v17 = vadd.f32 %v1744_v1, %v1519_v44  ;;  %v901_v3 = vadd.f32 %v1519_v44, %v900_v2  ;;  %v893_v5 = vadd.f32 %v1740_v10, %v1519_v44  ;;  %v896_v6 = vadd.f32 %v1741_v0, %v1519_v44 }
 0x4aa   :  { %v1105_v34 = vsel %vm498_vm3, %v2351_v55, -inf  ;;  %v2356_v61 = vadd.f32 %v1074_v56, %v2167_v43  ;;  %v912_v43 = vadd.f32 %v1745_v26, %v1519_v44  ;;  %v904_v11 = vadd.f32 %v1519_v44, %v903_v4 }
 0x4ab   :  { %1106 = vmax.xlane.f32.xlu1 %v1105_v34  ;;  %v885_v18 = vadd.f32 %v1519_v44, %v884_v63  ;;  %v1177_v20 = vpack.c.bf16 %v896_v6, %v893_v5  ;;  %v888_v21 = vadd.f32 %v1519_v44, %v887_v12  ;;  %v1544_v34 = vld [vmem:[%s2460_s9 + $0x4] sm:$0xf] }
 0x4ac   :  { %v1102_v33 = vsel %vm498_vm3, %v2356_v61, -inf  ;;  %v1179_v8 = vpack.c.bf16 %v912_v43, %v909_v17  ;;  %v1178_v15 = vpack.c.bf16 %v904_v11, %v901_v3 }
 0x4ad   :  { %1103 = vmax.xlane.f32.xlu0 %v1102_v33  ;;  %v1176_v27 = vpack.c.bf16 %v888_v21, %v885_v18 }
 0x4ae   :  { %1774 = vmatprep.subr.bf16.mxu0 %v1179_v8 }
 0x4af   :  { %1775 = vmatpush3.bf16.msra.mxu0 %v1179_v8 }
 0x4b0   :  { %1776 = vmatprep.subr.bf16.mxu0 %v1178_v15 }
 0x4b3   :  { %1777 = vmatpush3.bf16.msra.mxu0 %v1178_v15 }
 0x4b4   :  { %1778 = vmatprep.subr.bf16.mxu0 %v1177_v20 }
 0x4b7   :  { %1779 = vmatpush3.bf16.msra.mxu0 %v1177_v20 }
 0x4b8   :  { %1780 = vmatprep.subr.bf16.mxu0 %v1176_v27 }
 0x4bb   :  { %1781 = vmatpush3.bf16.msra.mxu0 %v1176_v27 }
 0x528   :  { %v1089_v28 = vpop.xlane.xlu1 %1088 }
 0x529   :  { %v1109_v30 = vsub.f32 %v2321_v50, %v1089_v28 }
 0x52a   :  { %v1086_v32 = vpop.xlane.xlu0 %1085 }
 0x52b   :  { %v1118_v35 = vmul.f32 1.442695, %v1109_v30  ;;  %v1108_v36 = vsub.f32 %v2326_v22, %v1086_v32 }
 0x52c   :  { %v1095_v37 = vpop.xlane.xlu1 %1094 }
 0x52d   :  { %1850 = vpow2.f32 %v1118_v35  ;;  %v1116_v38 = vmul.f32 1.442695, %v1108_v36  ;;  %v1111_v39 = vsub.f32 %v2331_v49, %v1095_v37 }
 0x52e   :  { %v1092_v16 = vpop.xlane.xlu0 %1091 }
 0x52f   :  { %1852 = vpow2.f32 %v1116_v38  ;;  %v1122_v42 = vmul.f32 1.442695, %v1111_v39  ;;  %v1110_v24 = vsub.f32 %v2336_v57, %v1092_v16 }
 0x530   :  { %v1101_v45 = vpop.xlane.xlu1 %1100 }
 0x531   :  { %1854 = vpow2.f32 %v1122_v42  ;;  %v1120_v46 = vmul.f32 1.442695, %v1110_v24  ;;  %v1113_v25 = vsub.f32 %v2341_v53, %v1101_v45 }
 0x532   :  { %v1098_v47 = vpop.xlane.xlu0 %1097 }
 0x533   :  { %1856 = vpow2.f32 %v1120_v46  ;;  %v1126_v50 = vmul.f32 1.442695, %v1113_v25  ;;  %v1112_v31 = vsub.f32 %v2346_v9, %v1098_v47 }
 0x534   :  { %v1107_v51 = vpop.xlane.xlu1 %1106 }
 0x535   :  { %1858 = vpow2.f32 %v1126_v50  ;;  %v1124_v40 = vmul.f32 1.442695, %v1112_v31  ;;  %v1115_v22 = vsub.f32 %v2351_v55, %v1107_v51 }
 0x536   :  { %v1104_v23 = vpop.xlane.xlu0 %1103 }
 0x537   :  { %1860 = vpow2.f32 %v1124_v40  ;;  %v1130_v48 = vmul.f32 1.442695, %v1115_v22  ;;  %v1114_v29 = vsub.f32 %v2356_v61, %v1104_v23  ;;  %v1263_v61 = vpack.c.bf16 %v1544_v34, %v1544_v34  ;;  %v1804_v22 = vpop.f32.mrf.mxu1 }
 0x539   :  { %1862 = vpow2.f32 %v1130_v48  ;;  %v1128_v49 = vmul.f32 1.442695, %v1114_v29  ;;  %1816 = vmatprep.subr.msk.bf16.mxu0 %vm1276_vm4, %v1263_v61  ;;  %v1278_v20 = vsel %vm1276_vm4, %v1263_v61, 0  ;;  %v1394_v23 = vpop.f32.mrf.mxu1 }
 0x53a   :  { %v1851_v14 = vpop.eup %1850 }
 0x53b   :  { %1864 = vpow2.f32 %v1128_v49  ;;  %v1135_v52 = vsel %vm498_vm3, %v1851_v14, 0.0  ;;  %v1805_v48 = vpop.f32.mrf.mxu1 }
 0x53c   :  { %v1853_v41 = vpop.eup %1852  ;;  %1136 = vadd.xlane.f32.xlu1 %v1135_v52 }
 0x53d   :  { %v1132_v57 = vsel %vm498_vm3, %v1853_v41, 0.0  ;;  %v1397_v29 = vpop.f32.mrf.mxu1 }
 0x53e   :  { %v1855_v7 = vpop.eup %1854  ;;  %1133 = vadd.xlane.f32.xlu0 %v1132_v57 }
 0x53f   :  { %v1141_v59 = vsel %vm498_vm3, %v1855_v7, 0.0  ;;  %v1808_v52 = vpop.f32.mrf.mxu1 }
 0x540   :  { %v1857_v54 = vpop.eup %1856  ;;  %1142 = vadd.xlane.f32.xlu1 %v1141_v59 }
 0x541   :  { %v1138_v53 = vsel %vm498_vm3, %v1857_v54, 0.0 }
 0x542   :  { %v1859_v13 = vpop.eup %1858  ;;  %1139 = vadd.xlane.f32.xlu0 %v1138_v53 }
 0x543   :  { %v1147_v60 = vsel %vm498_vm3, %v1859_v13, 0.0 }
 0x544   :  { %v1861_v62 = vpop.eup %1860  ;;  %1148 = vadd.xlane.f32.xlu1 %v1147_v60  ;;  %v1899_v60 = vld [vmem:[%s2452_s1] sm:$0xff] }
 0x545   :  { %v1144_v9 = vsel %vm498_vm3, %v1861_v62, 0.0 }
 0x546   :  { %v1863_v19 = vpop.eup %1862  ;;  %1145 = vadd.xlane.f32.xlu0 %v1144_v9 }
 0x547   :  { %v1153_v56 = vsel %vm498_vm3, %v1863_v19, 0.0 }
 0x548   :  { %v1865_v58 = vpop.eup %1864  ;;  %1154 = vadd.xlane.f32.xlu1 %v1153_v56 }
 0x549   :  { %v1150_v55 = vsel %vm498_vm3, %v1865_v58, 0.0 }
 0x54a   :  { %1151 = vadd.xlane.f32.xlu0 %v1150_v55  ;;  %v1900_v55 = vld [vmem:[%s2452_s1 + $0x18] sm:$0xff] }
 0x5c5   :  { %v1137_v33 = vpop.xlane.xlu1 %1136 }
 0x5c6   :  { %1866 = vrcp.f32 %v1137_v33 }
 0x5c7   :  { %v1134_v10 = vpop.xlane.xlu0 %1133 }
 0x5c8   :  { %1868 = vrcp.f32 %v1134_v10 }
 0x5c9   :  { %v1143_v63 = vpop.xlane.xlu1 %1142 }
 0x5ca   :  { %1870 = vrcp.f32 %v1143_v63  ;;  %v1901_v63 = vld [vmem:[%s2452_s1 + $0x8] sm:$0xff] }
 0x5cb   :  { %v1140_v0 = vpop.xlane.xlu0 %1139 }
 0x5cc   :  { %1872 = vrcp.f32 %v1140_v0 }
 0x5cd   :  { %v1149_v12 = vpop.xlane.xlu1 %1148 }
 0x5ce   :  { %1874 = vrcp.f32 %v1149_v12 }
 0x5cf   :  { %v1146_v44 = vpop.xlane.xlu0 %1145 }
 0x5d0   :  { %1876 = vrcp.f32 %v1146_v44 }
 0x5d1   :  { %v1155_v1 = vpop.xlane.xlu1 %1154 }
 0x5d2   :  { %1878 = vrcp.f32 %v1155_v1 }
 0x5d3   :  { %v1867_v2 = vpop.eup %1866  ;;  %v1152_v17 = vpop.xlane.xlu0 %1151 }
 0x5d4   :  { %1880 = vrcp.f32 %v1152_v17  ;;  %v1165_v43 = vmul.f32 %v1867_v2, %v1851_v14  ;;  %v1902_v17 = vld [vmem:[%s2452_s1 + $0x30] sm:$0xff] }
 0x5d5   :  { %v1869_v26 = vpop.eup %1868 }
 0x5d6   :  { %v1164_v3 = vmul.f32 %v1869_v26, %v1853_v41  ;;  %v1553_v41 = vld [vmem:[%s2461_s10] ss:$0 sm:$0xff] }
 0x5d7   :  { %v1871_v4 = vpop.eup %1870 }
 0x5d8   :  { %v1172_v5 = vpack.c.bf16 %v1165_v43, %v1164_v3  ;;  %v1167_v8 = vmul.f32 %v1871_v4, %v1855_v7  ;;  %v1898_v7 = vld [vmem:[%s2452_s1 + $0x10] sm:$0xff] }
 0x5d9   :  { %v1873_v6 = vpop.eup %1872 }
 0x5da   :  { %v1166_v11 = vmul.f32 %v1873_v6, %v1857_v54  ;;  %1782 = vmatprep.mubr.msk.bf16.mxu0 %vm498_vm3, %v1172_v5  ;;  %v1903_v5 = vld [vmem:[%s2452_s1 + $0x20] sm:$0xff] }
 0x5db   :  { %v1875_v15 = vpop.eup %1874 }
 0x5dc   :  { %v1173_v18 = vpack.c.bf16 %v1167_v8, %v1166_v11  ;;  %v1169_v28 = vmul.f32 %v1875_v15, %v1859_v13 }
 0x5dd   :  { %v1877_v21 = vpop.eup %1876 }
 0x5de   :  { %1783 = vmatmul.mubr.msk.bf16.vlgmr.msra.gmra.mxu0 %vm498_vm3, %v1173_v18  ;;  %v1168_v27 = vmul.f32 %v1877_v21, %v1861_v62 }
 0x5df   :  { %v1879_v30 = vpop.eup %1878  ;;  %1791 = vmatpush3.bf16.msra.mxu0 %v1278_v20  ;;  %v1904_v20 = vld [vmem:[%s2452_s1 + $0x38] sm:$0xff] }
 0x5e0   :  { %v1174_v32 = vpack.c.bf16 %v1169_v28, %v1168_v27  ;;  %v1171_v37 = vmul.f32 %v1879_v30, %v1863_v19  ;;  %v1410_v19 = vpop.f32.mrf.mxu1  ;;  %v1905_v30 = vld [vmem:[%s2452_s1 + $0x28] sm:$0xff] }
 0x5e1   :  { %v1881_v35 = vpop.eup %1880 }
 0x5e2   :  { %1786 = vmatprep.mubr.msk.bf16.mxu0 %vm498_vm3, %v1174_v32  ;;  %v1170_v36 = vmul.f32 %v1881_v35, %v1865_v58  ;;  %v1809_v44 = vpop.f32.mrf.mxu1 }
 0x5e4   :  { %v1175_v38 = vpack.c.bf16 %v1171_v37, %v1170_v36  ;;  %v1413_v11 = vpop.f32.mrf.mxu1 }
 0x5e6   :  { %1787 = vmatmul.mubr.msk.bf16.gmra.mxu0 %vm498_vm3, %v1175_v38 }
 0x69e   :  { %v1784_v39 = vpop.f32.mrf.mxu0 }
 0x6a0   :  { %v1226_v16 = vpop.f32.mrf.mxu0 }
 0x6a2   :  { %v1785_v42 = vpop.f32.mrf.mxu0 }
 0x6a3   :  { %v1260_v46 = vpack.c.bf16 %v1785_v42, %v1784_v39 }
 0x6a4   :  { %v1229_v24 = vpop.f32.mrf.mxu0 }
 0x6a5   :  { %v1259_v45 = vpack.c.bf16 %v1229_v24, %v1226_v16 }
 0x6a6   :  { %v1788_v25 = vpop.f32.mrf.mxu0 }
 0x6a7   :  { %1792 = vmatprep.mubr.msk.bf16.mxu0 %vm328_vm2, %v1259_v45 }
 0x6a8   :  { %v1242_v47 = vpop.f32.mrf.mxu0  ;;  %1793 = vmatmul.mubr.msk.bf16.vlgmr.msra.gmra.mxu0 %vm328_vm2, %v1260_v46 }
 0x6aa   :  { %v1789_v50 = vpop.f32.mrf.mxu0 }
 0x6ab   :  { %v1262_v40 = vpack.c.bf16 %v1789_v50, %v1788_v25 }
 0x6ac   :  { %v1245_v31 = vpop.f32.mrf.mxu0 }
 0x6ad   :  { %v1261_v51 = vpack.c.bf16 %v1245_v31, %v1242_v47 }
 0x6af   :  { %1796 = vmatprep.mubr.msk.bf16.mxu0 %vm328_vm2, %v1261_v51 }
 0x6b0   :  { %1797 = vmatmul.mubr.msk.bf16.gmra.mxu0 %vm328_vm2, %v1262_v40 }
 0x768   :  { %v1794_v49 = vpop.f32.mrf.mxu0 }
 0x769   :  { %v1403_v14 = vadd.f32 %v1804_v22, %v1794_v49 }
 0x76a   :  { %v1314_v57 = vpop.f32.mrf.mxu0 }
 0x76b   :  { %v1427_v59 = vadd.f32 %v1898_v7, %v1403_v14  ;;  %v1395_v54 = vadd.f32 %v1394_v23, %v1314_v57 }
 0x76c   :  { %v1795_v53 = vpop.f32.mrf.mxu0 }
 0x76d   :  { %v1442_v13 = vadd.f32 %v1553_v41, %v1427_v59  ;;  %v1425_v62 = vadd.f32 %v1899_v60, %v1395_v54  ;;  %v1406_v9 = vadd.f32 %v1805_v48, %v1795_v53 }
 0x76e   :  { %v1317_v56 = vpop.f32.mrf.mxu0 }
 0x76f   :  { %1882 = vtanh.f32 %v1442_v13  ;;  %v1440_v58 = vadd.f32 %v1553_v41, %v1425_v62  ;;  %v1428_v34 = vadd.f32 %v1900_v55, %v1406_v9  ;;  %v1398_v61 = vadd.f32 %v1397_v29, %v1317_v56 }
 0x770   :  { %v1798_v33 = vpop.f32.mrf.mxu0 }
 0x771   :  { %1884 = vtanh.f32 %v1440_v58  ;;  %v1443_v10 = vadd.f32 %v1553_v41, %v1428_v34  ;;  %v1426_v0 = vadd.f32 %v1901_v63, %v1398_v61  ;;  %v1419_v12 = vadd.f32 %v1808_v52, %v1798_v33 }
 0x772   :  { %v1330_v1 = vpop.f32.mrf.mxu0 }
 0x773   :  { %1886 = vtanh.f32 %v1443_v10  ;;  %v1441_v2 = vadd.f32 %v1553_v41, %v1426_v0  ;;  %v1431_v26 = vadd.f32 %v1902_v17, %v1419_v12  ;;  %v1411_v3 = vadd.f32 %v1410_v19, %v1330_v1 }
 0x774   :  { %v1799_v43 = vpop.f32.mrf.mxu0 }
 0x775   :  { %1888 = vtanh.f32 %v1441_v2  ;;  %v1446_v4 = vadd.f32 %v1553_v41, %v1431_v26  ;;  %v1429_v6 = vadd.f32 %v1903_v5, %v1411_v3  ;;  %v1422_v8 = vadd.f32 %v1809_v44, %v1799_v43 }
 0x776   :  { %v1333_v15 = vpop.f32.mrf.mxu0 }
 0x777   :  { %1890 = vtanh.f32 %v1446_v4  ;;  %v1444_v18 = vadd.f32 %v1553_v41, %v1429_v6  ;;  %v1432_v21 = vadd.f32 %v1904_v20, %v1422_v8  ;;  %v1414_v27 = vadd.f32 %v1413_v11, %v1333_v15 }
 0x779   :  { %1892 = vtanh.f32 %v1444_v18  ;;  %v1447_v28 = vadd.f32 %v1553_v41, %v1432_v21  ;;  %v1430_v32 = vadd.f32 %v1905_v30, %v1414_v27 }
 0x77b   :  { %1894 = vtanh.f32 %v1447_v28  ;;  %v1445_v35 = vadd.f32 %v1553_v41, %v1430_v32 }
 0x77c   :  { %v1883_v36 = vpop.eup %1882 }
 0x77d   :  { %1458 = vst.msk [vmem:[%s2462_s11 + $0x10] sm:$0xff] %vm76_vm1, %v1883_v36  ;;  %1896 = vtanh.f32 %v1445_v35 }
 0x77e   :  { %v1885_v37 = vpop.eup %1884 }
 0x77f   :  { %1456 = vst.msk [vmem:[%s2462_s11] sm:$0xff] %vm76_vm1, %v1885_v37 }
 0x780   :  { %v1887_v38 = vpop.eup %1886 }
 0x781   :  { %1459 = vst.msk [vmem:[%s2462_s11 + $0x18] sm:$0xff] %vm76_vm1, %v1887_v38 }
 0x782   :  { %v1889_v39 = vpop.eup %1888 }
 0x783   :  { %1457 = vst.msk [vmem:[%s2462_s11 + $0x8] sm:$0xff] %vm76_vm1, %v1889_v39 }
 0x784   :  { %v1891_v16 = vpop.eup %1890 }
 0x785   :  { %1462 = vst.msk [vmem:[%s2462_s11 + $0x30] sm:$0xff] %vm76_vm1, %v1891_v16 }
 0x786   :  { %v1893_v42 = vpop.eup %1892 }
 0x787   :  { %1460 = vst.msk [vmem:[%s2462_s11 + $0x20] sm:$0xff] %vm76_vm1, %v1893_v42 }
 0x788   :  { %v1895_v24 = vpop.eup %1894 }
 0x789   :  { %1463 = vst.msk [vmem:[%s2462_s11 + $0x38] sm:$0xff] %vm76_vm1, %v1895_v24 }
 0x78a   :  { %v1897_v45 = vpop.eup %1896 }
 0x78b   :  { %1461 = vst.msk [vmem:[%s2462_s11 + $0x28] sm:$0xff] %vm76_vm1, %v1897_v45 }

// kernel: _lambda_.40
= control target key start
LH: loop header
LB: loop body
LE: loop exit
PB: predicated region body
PF: predicated region fallthrough
CT: control target
= control target key end

     0   :  { %v403_v3 = vmov 0   ;;  %vm76_vm0 = vcmask 785408   ;;  %vm295_vm1 = vcmask 64512   ;;  %s572_s0 = inlined_call_operand.vmem [shape: f32[96,8], index: 0, kind: input, shape index: {}]   ;;  %s573_s1 = inlined_call_operand.vmem [shape: f32[2,64,96], index: 1, kind: input, shape index: {}]   ;;  %s574_s2 = inlined_call_operand.vmem [shape: f32[64,1], index: 2, kind: input, shape index: {}]   ;;  %s575_s3 = inlined_call_operand.vmem [shape: f32[64,8], index: 3, kind: output, shape index: {}]  }
   0x1   :  { %v25_v0 = vld [vmem:[%s572_s0 + $0x50] sm:$0xff]  ;;  %v26_v1 = vld [vmem:[%s572_s0 + $0x58] sm:$0xff]  ;;  %v23_v2 = vld [vmem:[%s572_s0 + $0x40] sm:$0xff]  ;;  %386 = vset.pattern.permute.xlu1 %v403_v3  ;;  %385 = vset.pattern.permute.xlu0 %v403_v3 }
   0x2   :  { %v44_v4 = vpack.c.bf16 %v26_v1, %v25_v0  ;;  %v55_v5 = vmul.f32 %v25_v0, %v25_v0  ;;  %v56_v6 = vmul.f32 %v26_v1, %v26_v1  ;;  %v24_v7 = vld [vmem:[%s572_s0 + $0x48] sm:$0xff]  ;;  %v53_v8 = vmul.f32 %v23_v2, %v23_v2  ;;  %v21_v9 = vld [vmem:[%s572_s0 + $0x30] sm:$0xff]  ;;  %v22_v10 = vld [vmem:[%s572_s0 + $0x38] sm:$0xff] }
   0x3   :  { %v43_v11 = vpack.c.bf16 %v24_v7, %v23_v2  ;;  %v54_v12 = vmul.f32 %v24_v7, %v24_v7  ;;  %v51_v14 = vmul.f32 %v21_v9, %v21_v9  ;;  %v52_v15 = vmul.f32 %v22_v10, %v22_v10  ;;  %v19_v16 = vld [vmem:[%s572_s0 + $0x20] sm:$0xff]  ;;  %v20_v18 = vld [vmem:[%s572_s0 + $0x28] sm:$0xff]  ;;  %v17_v29 = vld [vmem:[%s572_s0 + $0x10] sm:$0xff] }
   0x4   :  { %364 = vmatprep.subr.bf16.mxu1 %v44_v4  ;;  %v75_v13 = vpack.c.bf16 %v56_v6, %v55_v5  ;;  %v27_v19 = vld [vmem:[%s573_s1] sm:$0xff]  ;;  %v28_v20 = vld [vmem:[%s573_s1 + $0x8] sm:$0xff]  ;;  %v42_v21 = vpack.c.bf16 %v22_v10, %v21_v9  ;;  %v49_v26 = vmul.f32 %v19_v16, %v19_v16  ;;  %v50_v27 = vmul.f32 %v20_v18, %v20_v18  ;;  %v18_v30 = vld [vmem:[%s572_s0 + $0x18] sm:$0xff] }
   0x5   :  { %365 = vmatpush3.bf16.msra.mxu1 %v44_v4  ;;  %v74_v17 = vpack.c.bf16 %v54_v12, %v53_v8  ;;  %v308_v22 = vld [vmem:[%s573_s1 + $0x40] sm:$0xff]  ;;  %v309_v23 = vld [vmem:[%s573_s1 + $0x48] sm:$0xff]  ;;  %v35_v24 = vpack.c.bf16 %v28_v20, %v27_v19  ;;  %v73_v25 = vpack.c.bf16 %v52_v15, %v51_v14  ;;  %v41_v31 = vpack.c.bf16 %v20_v18, %v19_v16  ;;  %v233_v32 = vld [vmem:[%s574_s2 + $0x10] sm:$0xff] }
   0x6   :  { %344 = vmatprep.subr.bf16.mxu0 %v75_v13  ;;  %366 = vmatprep.subr.bf16.mxu1 %v43_v11  ;;  %v66_v28 = vpack.c.bf16 %v309_v23, %v308_v22  ;;  %v231_v33 = vld [vmem:[%s574_s2] sm:$0xff]  ;;  %v72_v34 = vpack.c.bf16 %v50_v27, %v49_v26  ;;  %v47_v35 = vmul.f32 %v17_v29, %v17_v29  ;;  %v234_v37 = vld [vmem:[%s574_s2 + $0x18] sm:$0xff]  ;;  %v16_v39 = vld [vmem:[%s572_s0 + $0x8] sm:$0xff] }
   0x7   :  { %345 = vmatpush3.bf16.msra.mxu0 %v75_v13  ;;  %376 = vmatprep.mubr.msk.bf16.mxu1 %vm76_vm0, %v35_v24  ;;  %v48_v36 = vmul.f32 %v18_v30, %v18_v30  ;;  %v15_v38 = vld [vmem:[%s572_s0] sm:$0xff]  ;;  %v232_v40 = vld [vmem:[%s574_s2 + $0x8] sm:$0xff]  ;;  %v40_v41 = vpack.c.bf16 %v18_v30, %v17_v29  ;;  %v46_v44 = vmul.f32 %v16_v39, %v16_v39  ;;  %v238_v49 = vld [vmem:[%s574_s2 + $0x38] sm:$0xff] }
   0x8   :  { %346 = vmatprep.subr.bf16.mxu0 %v74_v17  ;;  %356 = vmatprep.mubr.msk.bf16.mxu0 %vm76_vm0, %v66_v28  ;;  %v45_v43 = vmul.f32 %v15_v38, %v15_v38  ;;  %v236_v45 = vld [vmem:[%s574_s2 + $0x28] sm:$0xff]  ;;  %v235_v46 = vld [vmem:[%s574_s2 + $0x20] sm:$0xff]  ;;  %v39_v47 = vpack.c.bf16 %v16_v39, %v15_v38  ;;  %v29_v50 = vld [vmem:[%s573_s1 + $0x10] sm:$0xff] }
   0x9   :  { %367 = vmatpush3.bf16.msra.mxu1 %v43_v11  ;;  %251 = vperm.xlu1 %386, %v233_v32   ;;  %v71_v42 = vpack.c.bf16 %v48_v36, %v47_v35  ;;  %v30_v51 = vld [vmem:[%s573_s1 + $0x18] sm:$0xff]  ;;  %v237_v52 = vld [vmem:[%s574_s2 + $0x30] sm:$0xff]  ;;  %v31_v53 = vld [vmem:[%s573_s1 + $0x20] sm:$0xff] }
   0xa   :  { %368 = vmatprep.subr.bf16.mxu1 %v42_v21  ;;  %241 = vperm.xlu0 %385, %v231_v33   ;;  %v70_v48 = vpack.c.bf16 %v46_v44, %v45_v43  ;;  %v32_v54 = vld [vmem:[%s573_s1 + $0x28] sm:$0xff]  ;;  %v310_v55 = vld [vmem:[%s573_s1 + $0x50] sm:$0xff]  ;;  %v311_v56 = vld [vmem:[%s573_s1 + $0x58] sm:$0xff]  ;;  %v36_v57 = vpack.c.bf16 %v30_v51, %v29_v50 }
   0xb   :  { %347 = vmatpush3.bf16.msra.mxu0 %v74_v17  ;;  %v312_v58 = vld [vmem:[%s573_s1 + $0x60] sm:$0xff]  ;;  %v313_v59 = vld [vmem:[%s573_s1 + $0x68] sm:$0xff]  ;;  %v37_v60 = vpack.c.bf16 %v32_v54, %v31_v53  ;;  %v67_v61 = vpack.c.bf16 %v311_v56, %v310_v55  ;;  %v33_v63 = vld [vmem:[%s573_s1 + $0x30] sm:$0xff] }
   0xc   :  { %348 = vmatprep.subr.bf16.mxu0 %v73_v25  ;;  %v68_v62 = vpack.c.bf16 %v313_v59, %v312_v58  ;;  %v34_v0 = vld [vmem:[%s573_s1 + $0x38] sm:$0xff]  ;;  %v314_v1 = vld [vmem:[%s573_s1 + $0x70] sm:$0xff] }
   0xd   :  { %369 = vmatpush3.bf16.msra.mxu1 %v42_v21  ;;  %256 = vperm.xlu1 %386, %v234_v37   ;;  %v315_v2 = vld [vmem:[%s573_s1 + $0x78] sm:$0xff]  ;;  %v38_v3 = vpack.c.bf16 %v34_v0, %v33_v63 }
   0xe   :  { %370 = vmatprep.subr.bf16.mxu1 %v41_v31  ;;  %246 = vperm.xlu0 %385, %v232_v40   ;;  %v69_v4 = vpack.c.bf16 %v315_v2, %v314_v1 }
   0xf   :  { %349 = vmatpush3.bf16.msra.mxu0 %v73_v25 }
  0x10   :  { %350 = vmatprep.subr.bf16.mxu0 %v72_v34 }
  0x11   :  { %371 = vmatpush3.bf16.msra.mxu1 %v41_v31  ;;  %266 = vperm.xlu1 %386, %v236_v45  }
  0x12   :  { %372 = vmatprep.subr.bf16.mxu1 %v40_v41  ;;  %261 = vperm.xlu0 %385, %v235_v46  }
  0x13   :  { %351 = vmatpush3.bf16.msra.mxu0 %v72_v34 }
  0x14   :  { %352 = vmatprep.subr.bf16.mxu0 %v71_v42 }
  0x15   :  { %373 = vmatpush3.bf16.msra.mxu1 %v40_v41  ;;  %276 = vperm.xlu1 %386, %v238_v49  }
  0x16   :  { %374 = vmatprep.subr.bf16.mxu1 %v39_v47  ;;  %271 = vperm.xlu0 %385, %v237_v52  }
  0x17   :  { %353 = vmatpush3.bf16.msra.mxu0 %v71_v42 }
  0x18   :  { %354 = vmatprep.subr.bf16.mxu0 %v70_v48 }
  0x19   :  { %375 = vmatpush3.bf16.msra.mxu1 %v39_v47 }
  0x1b   :  { %355 = vmatpush3.bf16.msra.mxu0 %v70_v48 }
  0x1c   :  { %377 = vmatmul.mubr.msk.bf16.vlgmr.msra.gmra.mxu1 %vm76_vm0, %v36_v57 }
  0x1d   :  { %380 = vmatprep.mubr.msk.bf16.mxu1 %vm76_vm0, %v37_v60 }
  0x1e   :  { %357 = vmatmul.mubr.msk.bf16.vlgmr.msra.gmra.mxu0 %vm76_vm0, %v67_v61 }
  0x1f   :  { %360 = vmatprep.mubr.msk.bf16.mxu0 %vm76_vm0, %v68_v62 }
  0x24   :  { %381 = vmatmul.mubr.msk.bf16.gmra.mxu1 %vm76_vm0, %v38_v3 }
  0x26   :  { %361 = vmatmul.mubr.msk.bf16.gmra.mxu0 %vm76_vm0, %v69_v4 }
  0x84   :  { %v252_v6 = vpop.permute.xlu1 %251 }
  0x85   :  { %v242_v5 = vpop.permute.xlu0 %241 }
  0x88   :  { %v257_v11 = vpop.permute.xlu1 %256 }
  0x89   :  { %v247_v7 = vpop.permute.xlu0 %246 }
  0x8c   :  { %v267_v24 = vpop.permute.xlu1 %266 }
  0x8d   :  { %v262_v15 = vpop.permute.xlu0 %261 }
  0x90   :  { %v277_v37 = vpop.permute.xlu1 %276 }
  0x91   :  { %v272_v29 = vpop.permute.xlu0 %271 }
  0xdc   :  { %v378_v8 = vpop.f32.mrf.mxu1 }
  0xde   :  { %v358_v9 = vpop.f32.mrf.mxu0  ;;  %v200_v10 = vpop.f32.mrf.mxu1 }
  0xdf   :  { %v209_v12 = vadd.f32 %v378_v8, %v358_v9 }
  0xe0   :  { %v123_v13 = vpop.f32.mrf.mxu0  ;;  %v379_v14 = vpop.f32.mrf.mxu1 }
  0xe1   :  { %v281_v16 = vadd.f32 %v252_v6, %v209_v12  ;;  %v201_v17 = vadd.f32 %v200_v10, %v123_v13 }
  0xe2   :  { %v359_v18 = vpop.f32.mrf.mxu0  ;;  %v203_v19 = vpop.f32.mrf.mxu1 }
  0xe3   :  { %387 = vtanh.f32 %v281_v16  ;;  %v279_v20 = vadd.f32 %v242_v5, %v201_v17  ;;  %v212_v21 = vadd.f32 %v379_v14, %v359_v18 }
  0xe4   :  { %v126_v22 = vpop.f32.mrf.mxu0  ;;  %v382_v23 = vpop.f32.mrf.mxu1 }
  0xe5   :  { %389 = vtanh.f32 %v279_v20  ;;  %v282_v25 = vadd.f32 %v257_v11, %v212_v21  ;;  %v204_v26 = vadd.f32 %v203_v19, %v126_v22 }
  0xe6   :  { %v362_v27 = vpop.f32.mrf.mxu0  ;;  %v216_v28 = vpop.f32.mrf.mxu1 }
  0xe7   :  { %391 = vtanh.f32 %v282_v25  ;;  %v280_v30 = vadd.f32 %v247_v7, %v204_v26  ;;  %v225_v31 = vadd.f32 %v382_v23, %v362_v27 }
  0xe8   :  { %v139_v32 = vpop.f32.mrf.mxu0  ;;  %v383_v33 = vpop.f32.mrf.mxu1 }
  0xe9   :  { %393 = vtanh.f32 %v280_v30  ;;  %v285_v34 = vadd.f32 %v272_v29, %v225_v31  ;;  %v217_v35 = vadd.f32 %v216_v28, %v139_v32 }
  0xea   :  { %v363_v36 = vpop.f32.mrf.mxu0  ;;  %v219_v40 = vpop.f32.mrf.mxu1 }
  0xeb   :  { %395 = vtanh.f32 %v285_v34  ;;  %v283_v38 = vadd.f32 %v262_v15, %v217_v35  ;;  %v228_v39 = vadd.f32 %v383_v33, %v363_v36 }
  0xec   :  { %v142_v41 = vpop.f32.mrf.mxu0 }
  0xed   :  { %397 = vtanh.f32 %v283_v38  ;;  %v286_v42 = vadd.f32 %v277_v37, %v228_v39  ;;  %v220_v43 = vadd.f32 %v219_v40, %v142_v41 }
  0xef   :  { %399 = vtanh.f32 %v286_v42  ;;  %v284_v44 = vadd.f32 %v267_v24, %v220_v43 }
  0xf0   :  { %v388_v45 = vpop.eup %387 }
  0xf1   :  { %298 = vst.msk [vmem:[%s575_s3 + $0x10] sm:$0xff] %vm295_vm1, %v388_v45  ;;  %401 = vtanh.f32 %v284_v44 }
  0xf2   :  { %v390_v46 = vpop.eup %389 }
  0xf3   :  { %296 = vst.msk [vmem:[%s575_s3] sm:$0xff] %vm295_vm1, %v390_v46 }
  0xf4   :  { %v392_v47 = vpop.eup %391 }
  0xf5   :  { %299 = vst.msk [vmem:[%s575_s3 + $0x18] sm:$0xff] %vm295_vm1, %v392_v47 }
  0xf6   :  { %v394_v48 = vpop.eup %393 }
  0xf7   :  { %297 = vst.msk [vmem:[%s575_s3 + $0x8] sm:$0xff] %vm295_vm1, %v394_v48 }
  0xf8   :  { %v396_v49 = vpop.eup %395 }
  0xf9   :  { %302 = vst.msk [vmem:[%s575_s3 + $0x30] sm:$0xff] %vm295_vm1, %v396_v49 }
  0xfa   :  { %v398_v50 = vpop.eup %397 }
  0xfb   :  { %300 = vst.msk [vmem:[%s575_s3 + $0x20] sm:$0xff] %vm295_vm1, %v398_v50 }
  0xfc   :  { %v400_v51 = vpop.eup %399 }
  0xfd   :  { %303 = vst.msk [vmem:[%s575_s3 + $0x38] sm:$0xff] %vm295_vm1, %v400_v51 }
  0xfe   :  { %v402_v52 = vpop.eup %401 }
  0xff   :  { %301 = vst.msk [vmem:[%s575_s3 + $0x28] sm:$0xff] %vm295_vm1, %v402_v52 }

// kernel: _lambda_.43
= control target key start
LH: loop header
LB: loop body
LE: loop exit
PB: predicated region body
PF: predicated region fallthrough
CT: control target
= control target key end

     0   :  { %v387_v0 = vmov 0   ;;  %vm136_vm0 = vcmask 523264   ;;  %vm347_vm1 = vcmask 64512   ;;  %s666_s0 = inlined_call_operand.vmem [shape: f32[192,8], index: 0, kind: input, shape index: {}]   ;;  %s667_s1 = inlined_call_operand.vmem [shape: f32[2,64,192], index: 1, kind: input, shape index: {}]   ;;  %s668_s2 = inlined_call_operand.vmem [shape: f32[64,1], index: 2, kind: input, shape index: {}]   ;;  %s669_s3 = inlined_call_operand.vmem [shape: f32[64,8], index: 3, kind: output, shape index: {}]  }
   0x1   :  { %226 = vmatprep.subr.bf16.mxu1 %v387_v0  ;;  %v29_v1 = vld [vmem:[%s666_s0 + $0x70] sm:$0xff]  ;;  %v30_v2 = vld [vmem:[%s666_s0 + $0x78] sm:$0xff]  ;;  %149 = vmatprep.subr.bf16.mxu0 %v387_v0  ;;  %v27_v3 = vld [vmem:[%s666_s0 + $0x60] sm:$0xff] }
   0x2   :  { %v70_v4 = vpack.c.bf16 %v30_v2, %v29_v1  ;;  %v89_v5 = vmul.f32 %v29_v1, %v29_v1  ;;  %v90_v6 = vmul.f32 %v30_v2, %v30_v2  ;;  %v28_v7 = vld [vmem:[%s666_s0 + $0x68] sm:$0xff]  ;;  %v87_v8 = vmul.f32 %v27_v3, %v27_v3  ;;  %385 = vset.pattern.permute.xlu0 %v387_v0  ;;  %v25_v10 = vld [vmem:[%s666_s0 + $0x50] sm:$0xff]  ;;  %v26_v11 = vld [vmem:[%s666_s0 + $0x58] sm:$0xff] }
   0x3   :  { %v88_v9 = vmul.f32 %v28_v7, %v28_v7  ;;  %386 = vset.pattern.permute.xlu1 %v387_v0  ;;  %v69_v13 = vpack.c.bf16 %v28_v7, %v27_v3  ;;  %v85_v15 = vmul.f32 %v25_v10, %v25_v10  ;;  %v86_v16 = vmul.f32 %v26_v11, %v26_v11  ;;  %v23_v17 = vld [vmem:[%s666_s0 + $0x40] sm:$0xff]  ;;  %v24_v18 = vld [vmem:[%s666_s0 + $0x48] sm:$0xff]  ;;  %v21_v23 = vld [vmem:[%s666_s0 + $0x30] sm:$0xff] }
   0x4   :  { %227 = vmatpush1.bf16.msra.mxu1 %v70_v4  ;;  %v131_v12 = vpack.c.bf16 %v90_v6, %v89_v5  ;;  %v68_v19 = vpack.c.bf16 %v26_v11, %v25_v10  ;;  %v83_v21 = vmul.f32 %v23_v17, %v23_v17  ;;  %v84_v22 = vmul.f32 %v24_v18, %v24_v18  ;;  %v40_v24 = vld [vmem:[%s667_s1 + $0x8] sm:$0xff]  ;;  %v42_v25 = vld [vmem:[%s667_s1 + $0x18] sm:$0xff]  ;;  %v19_v35 = vld [vmem:[%s666_s0 + $0x20] sm:$0xff] }
   0x5   :  { %228 = vmatprep.subr.bf16.mxu1 %v387_v0  ;;  %v130_v14 = vpack.c.bf16 %v88_v9, %v87_v8  ;;  %v129_v20 = vpack.c.bf16 %v86_v16, %v85_v15  ;;  %v22_v26 = vld [vmem:[%s666_s0 + $0x38] sm:$0xff]  ;;  %v361_v27 = vld [vmem:[%s667_s1 + $0x88] sm:$0xff]  ;;  %v67_v29 = vpack.c.bf16 %v24_v18, %v23_v17  ;;  %v56_v30 = vpack.c.bf16 %v42_v25, %v40_v24  ;;  %v17_v41 = vld [vmem:[%s666_s0 + $0x10] sm:$0xff] }
   0x6   :  { %150 = vmatpush1.bf16.msra.mxu0 %v131_v12  ;;  %v363_v28 = vld [vmem:[%s667_s1 + $0x98] sm:$0xff]  ;;  %v128_v31 = vpack.c.bf16 %v84_v22, %v83_v21  ;;  %v81_v32 = vmul.f32 %v21_v23, %v21_v23  ;;  %v82_v33 = vmul.f32 %v22_v26, %v22_v26  ;;  %v20_v36 = vld [vmem:[%s666_s0 + $0x28] sm:$0xff]  ;;  %v66_v37 = vpack.c.bf16 %v22_v26, %v21_v23  ;;  %v291_v43 = vld [vmem:[%s668_s2] sm:$0xff] }
   0x7   :  { %151 = vmatprep.subr.bf16.mxu0 %v387_v0  ;;  %v117_v34 = vpack.c.bf16 %v363_v28, %v361_v27  ;;  %380 = vmatprep.mubr.msk.bf16.mxu1 %vm136_vm0, %v56_v30  ;;  %v79_v39 = vmul.f32 %v19_v35, %v19_v35  ;;  %v80_v40 = vmul.f32 %v20_v36, %v20_v36  ;;  %v18_v42 = vld [vmem:[%s666_s0 + $0x18] sm:$0xff]  ;;  %v293_v45 = vld [vmem:[%s668_s2 + $0x10] sm:$0xff]  ;;  %v292_v46 = vld [vmem:[%s668_s2 + $0x8] sm:$0xff] }
   0x8   :  { %229 = vmatpush1.bf16.msra.mxu1 %v69_v13  ;;  %v127_v38 = vpack.c.bf16 %v82_v33, %v81_v32  ;;  %v65_v44 = vpack.c.bf16 %v20_v36, %v19_v35  ;;  %301 = vperm.xlu0 %385, %v291_v43   ;;  %v77_v48 = vmul.f32 %v17_v41, %v17_v41  ;;  %v294_v50 = vld [vmem:[%s668_s2 + $0x18] sm:$0xff]  ;;  %v15_v51 = vld [vmem:[%s666_s0] sm:$0xff]  ;;  %v16_v52 = vld [vmem:[%s666_s0 + $0x8] sm:$0xff] }
   0x9   :  { %230 = vmatprep.subr.bf16.mxu1 %v387_v0  ;;  %376 = vmatprep.mubr.msk.bf16.mxu0 %vm136_vm0, %v117_v34  ;;  %v126_v47 = vpack.c.bf16 %v80_v40, %v79_v39  ;;  %v78_v49 = vmul.f32 %v18_v42, %v18_v42  ;;  %v64_v53 = vpack.c.bf16 %v18_v42, %v17_v41  ;;  %v295_v54 = vld [vmem:[%s668_s2 + $0x20] sm:$0xff]  ;;  %v296_v58 = vld [vmem:[%s668_s2 + $0x28] sm:$0xff]  ;;  %v37_v59 = vld [vmem:[%s666_s0 + $0xb0] sm:$0xff] }
   0xa   :  { %152 = vmatpush1.bf16.msra.mxu0 %v130_v14  ;;  %311 = vperm.xlu1 %386, %v293_v45   ;;  %v75_v56 = vmul.f32 %v15_v51, %v15_v51  ;;  %v76_v57 = vmul.f32 %v16_v52, %v16_v52  ;;  %v38_v60 = vld [vmem:[%s666_s0 + $0xb8] sm:$0xff]  ;;  %v63_v61 = vpack.c.bf16 %v16_v52, %v15_v51  ;;  %v297_v62 = vld [vmem:[%s668_s2 + $0x30] sm:$0xff]  ;;  %v35_v4 = vld [vmem:[%s666_s0 + $0xa0] sm:$0xff] }
   0xb   :  { %153 = vmatprep.subr.bf16.mxu0 %v387_v0  ;;  %v125_v55 = vpack.c.bf16 %v78_v49, %v77_v48  ;;  %v97_v1 = vmul.f32 %v37_v59, %v37_v59  ;;  %v98_v2 = vmul.f32 %v38_v60, %v38_v60  ;;  %v298_v3 = vld [vmem:[%s668_s2 + $0x38] sm:$0xff]  ;;  %v36_v5 = vld [vmem:[%s666_s0 + $0xa8] sm:$0xff]  ;;  %v74_v6 = vpack.c.bf16 %v38_v60, %v37_v59  ;;  %v33_v10 = vld [vmem:[%s666_s0 + $0x90] sm:$0xff] }
   0xc   :  { %231 = vmatpush1.bf16.msra.mxu1 %v68_v19  ;;  %306 = vperm.xlu0 %385, %v292_v46   ;;  %v124_v63 = vpack.c.bf16 %v76_v57, %v75_v56  ;;  %v95_v8 = vmul.f32 %v35_v4, %v35_v4  ;;  %v96_v9 = vmul.f32 %v36_v5, %v36_v5  ;;  %v34_v11 = vld [vmem:[%s666_s0 + $0x98] sm:$0xff]  ;;  %v31_v16 = vld [vmem:[%s666_s0 + $0x80] sm:$0xff]  ;;  %v32_v17 = vld [vmem:[%s666_s0 + $0x88] sm:$0xff] }
   0xd   :  { %232 = vmatprep.subr.bf16.mxu1 %v387_v0  ;;  %v135_v7 = vpack.c.bf16 %v98_v2, %v97_v1  ;;  %v73_v12 = vpack.c.bf16 %v36_v5, %v35_v4  ;;  %v93_v14 = vmul.f32 %v33_v10, %v33_v10  ;;  %v94_v15 = vmul.f32 %v34_v11, %v34_v11  ;;  %v39_v23 = vld [vmem:[%s667_s1] sm:$0xff]  ;;  %v41_v24 = vld [vmem:[%s667_s1 + $0x10] sm:$0xff]  ;;  %v44_v25 = vld [vmem:[%s667_s1 + $0x28] sm:$0xff] }
   0xe   :  { %154 = vmatpush1.bf16.msra.mxu0 %v129_v20  ;;  %316 = vperm.xlu1 %386, %v294_v50   ;;  %v134_v13 = vpack.c.bf16 %v96_v9, %v95_v8  ;;  %v72_v18 = vpack.c.bf16 %v34_v11, %v33_v10  ;;  %v91_v20 = vmul.f32 %v31_v16, %v31_v16  ;;  %v46_v26 = vld [vmem:[%s667_s1 + $0x38] sm:$0xff]  ;;  %v360_v28 = vld [vmem:[%s667_s1 + $0x80] sm:$0xff]  ;;  %v45_v36 = vld [vmem:[%s667_s1 + $0x30] sm:$0xff] }
   0xf   :  { %155 = vmatprep.subr.bf16.mxu0 %v387_v0  ;;  %v133_v19 = vpack.c.bf16 %v94_v15, %v93_v14  ;;  %v92_v21 = vmul.f32 %v32_v17, %v32_v17  ;;  %v71_v22 = vpack.c.bf16 %v32_v17, %v31_v16  ;;  %v55_v30 = vpack.c.bf16 %v41_v24, %v39_v23  ;;  %v367_v32 = vld [vmem:[%s667_s1 + $0xb8] sm:$0xff]  ;;  %v364_v39 = vld [vmem:[%s667_s1 + $0xa0] sm:$0xff]  ;;  %v366_v40 = vld [vmem:[%s667_s1 + $0xb0] sm:$0xff] }
  0x10   :  { %233 = vmatpush1.bf16.msra.mxu1 %v67_v29  ;;  %321 = vperm.xlu0 %385, %v295_v54   ;;  %v362_v29 = vld [vmem:[%s667_s1 + $0x90] sm:$0xff]  ;;  %v58_v33 = vpack.c.bf16 %v46_v26, %v44_v25  ;;  %v369_v42 = vld [vmem:[%s667_s1 + $0xc8] sm:$0xff]  ;;  %v371_v43 = vld [vmem:[%s667_s1 + $0xd8] sm:$0xff]  ;;  %v118_v45 = vpack.c.bf16 %v366_v40, %v364_v39 }
  0x11   :  { %234 = vmatprep.subr.bf16.mxu1 %v387_v0  ;;  %v132_v27 = vpack.c.bf16 %v92_v21, %v91_v20  ;;  %v116_v34 = vpack.c.bf16 %v362_v29, %v360_v28  ;;  %v121_v46 = vpack.c.bf16 %v371_v43, %v369_v42  ;;  %v49_v48 = vld [vmem:[%s667_s1 + $0x50] sm:$0xff]  ;;  %v52_v49 = vld [vmem:[%s667_s1 + $0x68] sm:$0xff]  ;;  %v54_v50 = vld [vmem:[%s667_s1 + $0x78] sm:$0xff] }
  0x12   :  { %156 = vmatpush1.bf16.msra.mxu0 %v128_v31  ;;  %326 = vperm.xlu1 %386, %v296_v58   ;;  %v365_v31 = vld [vmem:[%s667_s1 + $0xa8] sm:$0xff]  ;;  %v368_v51 = vld [vmem:[%s667_s1 + $0xc0] sm:$0xff]  ;;  %v370_v52 = vld [vmem:[%s667_s1 + $0xd0] sm:$0xff]  ;;  %v62_v56 = vpack.c.bf16 %v54_v50, %v52_v49 }
  0x13   :  { %157 = vmatprep.subr.bf16.mxu0 %v387_v0  ;;  %v119_v35 = vpack.c.bf16 %v367_v32, %v365_v31  ;;  %v373_v54 = vld [vmem:[%s667_s1 + $0xe8] sm:$0xff]  ;;  %v120_v57 = vpack.c.bf16 %v370_v52, %v368_v51  ;;  %v51_v59 = vld [vmem:[%s667_s1 + $0x60] sm:$0xff]  ;;  %v53_v60 = vld [vmem:[%s667_s1 + $0x70] sm:$0xff] }
  0x14   :  { %235 = vmatpush1.bf16.msra.mxu1 %v66_v37  ;;  %331 = vperm.xlu0 %385, %v297_v62   ;;  %v48_v37 = vld [vmem:[%s667_s1 + $0x48] sm:$0xff]  ;;  %v374_v62 = vld [vmem:[%s667_s1 + $0xf0] sm:$0xff] }
  0x15   :  { %236 = vmatprep.subr.bf16.mxu1 %v387_v0 }
  0x16   :  { %158 = vmatpush1.bf16.msra.mxu0 %v127_v38  ;;  %336 = vperm.xlu1 %386, %v298_v3   ;;  %v50_v38 = vld [vmem:[%s667_s1 + $0x58] sm:$0xff] }
  0x17   :  { %159 = vmatprep.subr.bf16.mxu0 %v387_v0 }
  0x18   :  { %237 = vmatpush1.bf16.msra.mxu1 %v65_v44  ;;  %v60_v44 = vpack.c.bf16 %v50_v38, %v48_v37 }
  0x19   :  { %238 = vmatprep.subr.bf16.mxu1 %v387_v0 }
  0x1a   :  { %160 = vmatpush1.bf16.msra.mxu0 %v126_v47  ;;  %v47_v47 = vld [vmem:[%s667_s1 + $0x40] sm:$0xff] }
  0x1b   :  { %161 = vmatprep.subr.bf16.mxu0 %v387_v0 }
  0x1c   :  { %239 = vmatpush1.bf16.msra.mxu1 %v64_v53  ;;  %v59_v53 = vpack.c.bf16 %v49_v48, %v47_v47 }
  0x1d   :  { %240 = vmatprep.subr.bf16.mxu1 %v387_v0 }
  0x1e   :  { %162 = vmatpush1.bf16.msra.mxu0 %v125_v55  ;;  %v375_v55 = vld [vmem:[%s667_s1 + $0xf8] sm:$0xff] }
  0x1f   :  { %163 = vmatprep.subr.bf16.mxu0 %v387_v0  ;;  %v123_v58 = vpack.c.bf16 %v375_v55, %v373_v54 }
  0x20   :  { %241 = vmatpush1.bf16.msra.mxu1 %v63_v61  ;;  %v372_v61 = vld [vmem:[%s667_s1 + $0xe0] sm:$0xff] }
  0x21   :  { %250 = vmatprep.subr.bf16.mxu1 %v387_v0  ;;  %v122_v1 = vpack.c.bf16 %v374_v62, %v372_v61 }
  0x22   :  { %164 = vmatpush1.bf16.msra.mxu0 %v124_v63  ;;  %v61_v63 = vpack.c.bf16 %v53_v60, %v51_v59 }
  0x23   :  { %173 = vmatprep.subr.bf16.mxu0 %v387_v0 }
  0x24   :  { %251 = vmatpush2.bf16.msra.mxu1 %v74_v6 }
  0x25   :  { %252 = vmatprep.subr.bf16.mxu1 %v387_v0 }
  0x26   :  { %174 = vmatpush2.bf16.msra.mxu0 %v135_v7 }
  0x27   :  { %175 = vmatprep.subr.bf16.mxu0 %v387_v0 }
  0x28   :  { %253 = vmatpush2.bf16.msra.mxu1 %v73_v12 }
  0x29   :  { %254 = vmatprep.subr.bf16.mxu1 %v387_v0 }
  0x2a   :  { %176 = vmatpush2.bf16.msra.mxu0 %v134_v13 }
  0x2b   :  { %177 = vmatprep.subr.bf16.mxu0 %v387_v0 }
  0x2c   :  { %255 = vmatpush2.bf16.msra.mxu1 %v72_v18 }
  0x2d   :  { %256 = vmatprep.subr.bf16.mxu1 %v387_v0 }
  0x2e   :  { %178 = vmatpush2.bf16.msra.mxu0 %v133_v19 }
  0x2f   :  { %179 = vmatprep.subr.bf16.mxu0 %v387_v0  ;;  %v43_v0 = vld [vmem:[%s667_s1 + $0x20] sm:$0xff] }
  0x30   :  { %257 = vmatpush2.bf16.msra.mxu1 %v71_v22  ;;  %v57_v41 = vpack.c.bf16 %v45_v36, %v43_v0 }
  0x32   :  { %180 = vmatpush2.bf16.msra.mxu0 %v132_v27 }
  0x33   :  { %259 = vmatmul.mubr.bf16.vlgmr.msra.gmra.mxu1 %v55_v30 }
  0x34   :  { %381 = vmatprep.mubr.msk.bf16.mxu1 %vm136_vm0, %v58_v33 }
  0x35   :  { %182 = vmatmul.mubr.bf16.vlgmr.msra.gmra.mxu0 %v116_v34 }
  0x36   :  { %377 = vmatprep.mubr.msk.bf16.mxu0 %vm136_vm0, %v119_v35 }
  0x3b   :  { %267 = vmatmul.mubr.bf16.gmra.mxu1 %v57_v41 }
  0x3c   :  { %382 = vmatprep.mubr.msk.bf16.mxu1 %vm136_vm0, %v60_v44 }
  0x3d   :  { %190 = vmatmul.mubr.bf16.gmra.mxu0 %v118_v45 }
  0x3e   :  { %378 = vmatprep.mubr.msk.bf16.mxu0 %vm136_vm0, %v121_v46 }
  0x43   :  { %275 = vmatmul.mubr.bf16.gmra.mxu1 %v59_v53 }
  0x44   :  { %383 = vmatprep.mubr.msk.bf16.mxu1 %vm136_vm0, %v62_v56 }
  0x45   :  { %198 = vmatmul.mubr.bf16.gmra.mxu0 %v120_v57 }
  0x46   :  { %379 = vmatprep.mubr.msk.bf16.mxu0 %vm136_vm0, %v123_v58 }
  0x4b   :  { %283 = vmatmul.mubr.bf16.gmra.mxu1 %v61_v63 }
  0x4d   :  { %206 = vmatmul.mubr.bf16.gmra.mxu0 %v122_v1 }
  0x83   :  { %v302_v2 = vpop.permute.xlu0 %301 }
  0x85   :  { %v312_v16 = vpop.permute.xlu1 %311 }
  0x87   :  { %v307_v10 = vpop.permute.xlu0 %306 }
  0x89   :  { %v317_v26 = vpop.permute.xlu1 %316 }
  0x8b   :  { %v322_v33 = vpop.permute.xlu0 %321 }
  0x8d   :  { %v327_v39 = vpop.permute.xlu1 %326 }
  0x8f   :  { %v332_v46 = vpop.permute.xlu0 %331 }
  0x91   :  { %v337_v54 = vpop.permute.xlu1 %336 }
  0xf3   :  { %v260_v3 = vpop.f32.mrf.mxu1 }
  0xf5   :  { %v183_v4 = vpop.f32.mrf.mxu0  ;;  %v262_v5 = vpop.f32.mrf.mxu1 }
  0xf6   :  { %v261_v6 = vadd.f32 %v260_v3, %v183_v4 }
  0xf7   :  { %v185_v7 = vpop.f32.mrf.mxu0  ;;  %v263_v8 = vpop.f32.mrf.mxu1 }
  0xf8   :  { %v339_v9 = vadd.f32 %v302_v2, %v261_v6 }
  0xf9   :  { %v186_v11 = vpop.f32.mrf.mxu0  ;;  %v265_v12 = vpop.f32.mrf.mxu1 }
  0xfa   :  { %348 = vst.msk [vmem:[%s669_s3] sm:$0xff] %vm347_vm1, %v339_v9  ;;  %v264_v13 = vadd.f32 %v263_v8, %v186_v11 }
  0xfb   :  { %v188_v14 = vpop.f32.mrf.mxu0  ;;  %v268_v15 = vpop.f32.mrf.mxu1 }
  0xfc   :  { %v340_v17 = vadd.f32 %v307_v10, %v264_v13 }
  0xfd   :  { %v191_v18 = vpop.f32.mrf.mxu0  ;;  %v270_v19 = vpop.f32.mrf.mxu1 }
  0xfe   :  { %349 = vst.msk [vmem:[%s669_s3 + $0x8] sm:$0xff] %vm347_vm1, %v340_v17  ;;  %v269_v20 = vadd.f32 %v268_v15, %v191_v18 }
  0xff   :  { %v193_v21 = vpop.f32.mrf.mxu0  ;;  %v271_v22 = vpop.f32.mrf.mxu1 }
 0x100   :  { %v341_v23 = vadd.f32 %v312_v16, %v269_v20 }
 0x101   :  { %v194_v24 = vpop.f32.mrf.mxu0  ;;  %v273_v25 = vpop.f32.mrf.mxu1 }
 0x102   :  { %350 = vst.msk [vmem:[%s669_s3 + $0x10] sm:$0xff] %vm347_vm1, %v341_v23  ;;  %v272_v27 = vadd.f32 %v271_v22, %v194_v24 }
 0x103   :  { %v196_v28 = vpop.f32.mrf.mxu0  ;;  %v276_v29 = vpop.f32.mrf.mxu1 }
 0x104   :  { %v342_v30 = vadd.f32 %v317_v26, %v272_v27 }
 0x105   :  { %v199_v31 = vpop.f32.mrf.mxu0  ;;  %v278_v32 = vpop.f32.mrf.mxu1 }
 0x106   :  { %351 = vst.msk [vmem:[%s669_s3 + $0x18] sm:$0xff] %vm347_vm1, %v342_v30  ;;  %v277_v34 = vadd.f32 %v276_v29, %v199_v31 }
 0x107   :  { %v201_v35 = vpop.f32.mrf.mxu0  ;;  %v279_v0 = vpop.f32.mrf.mxu1 }
 0x108   :  { %v343_v36 = vadd.f32 %v322_v33, %v277_v34 }
 0x109   :  { %v202_v37 = vpop.f32.mrf.mxu0  ;;  %v281_v38 = vpop.f32.mrf.mxu1 }
 0x10a   :  { %352 = vst.msk [vmem:[%s669_s3 + $0x20] sm:$0xff] %vm347_vm1, %v343_v36  ;;  %v280_v40 = vadd.f32 %v279_v0, %v202_v37 }
 0x10b   :  { %v204_v41 = vpop.f32.mrf.mxu0  ;;  %v284_v42 = vpop.f32.mrf.mxu1 }
 0x10c   :  { %v344_v43 = vadd.f32 %v327_v39, %v280_v40 }
 0x10d   :  { %v207_v44 = vpop.f32.mrf.mxu0  ;;  %v286_v45 = vpop.f32.mrf.mxu1 }
 0x10e   :  { %353 = vst.msk [vmem:[%s669_s3 + $0x28] sm:$0xff] %vm347_vm1, %v344_v43  ;;  %v285_v47 = vadd.f32 %v284_v42, %v207_v44 }
 0x10f   :  { %v209_v48 = vpop.f32.mrf.mxu0  ;;  %v287_v49 = vpop.f32.mrf.mxu1 }
 0x110   :  { %v345_v50 = vadd.f32 %v332_v46, %v285_v47 }
 0x111   :  { %v210_v51 = vpop.f32.mrf.mxu0  ;;  %v289_v52 = vpop.f32.mrf.mxu1 }
 0x112   :  { %354 = vst.msk [vmem:[%s669_s3 + $0x30] sm:$0xff] %vm347_vm1, %v345_v50  ;;  %v288_v53 = vadd.f32 %v287_v49, %v210_v51 }
 0x113   :  { %v212_v55 = vpop.f32.mrf.mxu0 }
 0x114   :  { %v346_v56 = vadd.f32 %v337_v54, %v288_v53 }
 0x116   :  { %355 = vst.msk [vmem:[%s669_s3 + $0x38] sm:$0xff] %vm347_vm1, %v346_v56 }

// kernel: _lambda_.41
= control target key start
LH: loop header
LB: loop body
LE: loop exit
PB: predicated region body
PF: predicated region fallthrough
CT: control target
= control target key end

     0   :  { %v547_v0 = vmov 0   ;;  %vm142_vm0 = vcmask 523264   ;;  %vm371_vm1 = vcmask 261120   ;;  %vm465_vm2 = vcmask 64512   ;;  %s872_s0 = inlined_call_operand.vmem [shape: f32[192,8], index: 0, kind: input, shape index: {}]   ;;  %s873_s1 = inlined_call_operand.vmem [shape: f32[2,64,192], index: 1, kind: input, shape index: {}]   ;;  %s874_s2 = inlined_call_operand.vmem [shape: f32[64,1], index: 2, kind: input, shape index: {}]   ;;  %s875_s3 = inlined_call_operand.vmem [shape: f32[32,8], index: 3, kind: input, shape index: {}]   ;;  %s876_s4 = inlined_call_operand.vmem [shape: f32[64,32], index: 4, kind: input, shape index: {}]   ;;  %s877_s5 = inlined_call_operand.vmem [shape: f32[64,8], index: 5, kind: output, shape index: {}]  }
   0x1   :  { %232 = vmatprep.subr.bf16.mxu1 %v547_v0  ;;  %v35_v1 = vld [vmem:[%s872_s0 + $0x70] sm:$0xff]  ;;  %v36_v2 = vld [vmem:[%s872_s0 + $0x78] sm:$0xff]  ;;  %155 = vmatprep.subr.bf16.mxu0 %v547_v0  ;;  %v33_v3 = vld [vmem:[%s872_s0 + $0x60] sm:$0xff] }
   0x2   :  { %v76_v4 = vpack.c.bf16 %v36_v2, %v35_v1  ;;  %v95_v5 = vmul.f32 %v35_v1, %v35_v1  ;;  %v96_v6 = vmul.f32 %v36_v2, %v36_v2  ;;  %v34_v7 = vld [vmem:[%s872_s0 + $0x68] sm:$0xff]  ;;  %v93_v8 = vmul.f32 %v33_v3, %v33_v3  ;;  %529 = vset.pattern.permute.xlu0 %v547_v0  ;;  %v31_v10 = vld [vmem:[%s872_s0 + $0x50] sm:$0xff]  ;;  %v32_v11 = vld [vmem:[%s872_s0 + $0x58] sm:$0xff] }
   0x3   :  { %v94_v9 = vmul.f32 %v34_v7, %v34_v7  ;;  %530 = vset.pattern.permute.xlu1 %v547_v0  ;;  %v75_v13 = vpack.c.bf16 %v34_v7, %v33_v3  ;;  %v91_v15 = vmul.f32 %v31_v10, %v31_v10  ;;  %v92_v16 = vmul.f32 %v32_v11, %v32_v11  ;;  %v29_v17 = vld [vmem:[%s872_s0 + $0x40] sm:$0xff]  ;;  %v30_v18 = vld [vmem:[%s872_s0 + $0x48] sm:$0xff]  ;;  %v27_v23 = vld [vmem:[%s872_s0 + $0x30] sm:$0xff] }
   0x4   :  { %233 = vmatpush1.bf16.msra.mxu1 %v76_v4  ;;  %v137_v12 = vpack.c.bf16 %v96_v6, %v95_v5  ;;  %v74_v19 = vpack.c.bf16 %v32_v11, %v31_v10  ;;  %v89_v21 = vmul.f32 %v29_v17, %v29_v17  ;;  %v90_v22 = vmul.f32 %v30_v18, %v30_v18  ;;  %v46_v24 = vld [vmem:[%s873_s1 + $0x8] sm:$0xff]  ;;  %v48_v25 = vld [vmem:[%s873_s1 + $0x18] sm:$0xff]  ;;  %v25_v35 = vld [vmem:[%s872_s0 + $0x20] sm:$0xff] }
   0x5   :  { %234 = vmatprep.subr.bf16.mxu1 %v547_v0  ;;  %v136_v14 = vpack.c.bf16 %v94_v9, %v93_v8  ;;  %v135_v20 = vpack.c.bf16 %v92_v16, %v91_v15  ;;  %v28_v26 = vld [vmem:[%s872_s0 + $0x38] sm:$0xff]  ;;  %v479_v27 = vld [vmem:[%s873_s1 + $0x88] sm:$0xff]  ;;  %v73_v29 = vpack.c.bf16 %v30_v18, %v29_v17  ;;  %v62_v30 = vpack.c.bf16 %v48_v25, %v46_v24  ;;  %v23_v41 = vld [vmem:[%s872_s0 + $0x10] sm:$0xff] }
   0x6   :  { %156 = vmatpush1.bf16.msra.mxu0 %v137_v12  ;;  %v481_v28 = vld [vmem:[%s873_s1 + $0x98] sm:$0xff]  ;;  %v134_v31 = vpack.c.bf16 %v90_v22, %v89_v21  ;;  %v87_v32 = vmul.f32 %v27_v23, %v27_v23  ;;  %v88_v33 = vmul.f32 %v28_v26, %v28_v26  ;;  %v26_v36 = vld [vmem:[%s872_s0 + $0x28] sm:$0xff]  ;;  %v72_v37 = vpack.c.bf16 %v28_v26, %v27_v23  ;;  %v21_v47 = vld [vmem:[%s872_s0] sm:$0xff] }
   0x7   :  { %157 = vmatprep.subr.bf16.mxu0 %v547_v0  ;;  %v123_v34 = vpack.c.bf16 %v481_v28, %v479_v27  ;;  %498 = vmatprep.mubr.msk.bf16.mxu1 %vm142_vm0, %v62_v30  ;;  %v85_v39 = vmul.f32 %v25_v35, %v25_v35  ;;  %v86_v40 = vmul.f32 %v26_v36, %v26_v36  ;;  %v24_v42 = vld [vmem:[%s872_s0 + $0x18] sm:$0xff]  ;;  %v22_v48 = vld [vmem:[%s872_s0 + $0x8] sm:$0xff]  ;;  %v297_v49 = vld [vmem:[%s874_s2] sm:$0xff] }
   0x8   :  { %235 = vmatpush1.bf16.msra.mxu1 %v75_v13  ;;  %v133_v38 = vpack.c.bf16 %v88_v33, %v87_v32  ;;  %v71_v43 = vpack.c.bf16 %v26_v36, %v25_v35  ;;  %v83_v45 = vmul.f32 %v23_v41, %v23_v41  ;;  %v84_v46 = vmul.f32 %v24_v42, %v24_v42  ;;  %v299_v51 = vld [vmem:[%s874_s2 + $0x10] sm:$0xff]  ;;  %v298_v52 = vld [vmem:[%s874_s2 + $0x8] sm:$0xff]  ;;  %v300_v56 = vld [vmem:[%s874_s2 + $0x18] sm:$0xff] }
   0x9   :  { %236 = vmatprep.subr.bf16.mxu1 %v547_v0  ;;  %494 = vmatprep.mubr.msk.bf16.mxu0 %vm142_vm0, %v123_v34  ;;  %v132_v44 = vpack.c.bf16 %v86_v40, %v85_v39  ;;  %v70_v50 = vpack.c.bf16 %v24_v42, %v23_v41  ;;  %v81_v54 = vmul.f32 %v21_v47, %v21_v47  ;;  %v43_v57 = vld [vmem:[%s872_s0 + $0xb0] sm:$0xff]  ;;  %v44_v58 = vld [vmem:[%s872_s0 + $0xb8] sm:$0xff]  ;;  %v301_v60 = vld [vmem:[%s874_s2 + $0x20] sm:$0xff] }
   0xa   :  { %158 = vmatpush1.bf16.msra.mxu0 %v136_v14  ;;  %307 = vperm.xlu0 %529, %v297_v49   ;;  %v131_v53 = vpack.c.bf16 %v84_v46, %v83_v45  ;;  %v82_v55 = vmul.f32 %v22_v48, %v22_v48  ;;  %v69_v59 = vpack.c.bf16 %v22_v48, %v21_v47  ;;  %v302_v1 = vld [vmem:[%s874_s2 + $0x28] sm:$0xff]  ;;  %v41_v2 = vld [vmem:[%s872_s0 + $0xa0] sm:$0xff]  ;;  %v303_v5 = vld [vmem:[%s874_s2 + $0x30] sm:$0xff] }
   0xb   :  { %159 = vmatprep.subr.bf16.mxu0 %v547_v0  ;;  %317 = vperm.xlu1 %530, %v299_v51   ;;  %v103_v62 = vmul.f32 %v43_v57, %v43_v57  ;;  %v104_v63 = vmul.f32 %v44_v58, %v44_v58  ;;  %v42_v3 = vld [vmem:[%s872_s0 + $0xa8] sm:$0xff]  ;;  %v80_v4 = vpack.c.bf16 %v44_v58, %v43_v57  ;;  %v304_v9 = vld [vmem:[%s874_s2 + $0x38] sm:$0xff]  ;;  %v39_v10 = vld [vmem:[%s872_s0 + $0x90] sm:$0xff] }
   0xc   :  { %237 = vmatpush1.bf16.msra.mxu1 %v74_v19  ;;  %v130_v61 = vpack.c.bf16 %v82_v55, %v81_v54  ;;  %v101_v7 = vmul.f32 %v41_v2, %v41_v2  ;;  %v102_v8 = vmul.f32 %v42_v3, %v42_v3  ;;  %v40_v11 = vld [vmem:[%s872_s0 + $0x98] sm:$0xff]  ;;  %v79_v12 = vpack.c.bf16 %v42_v3, %v41_v2  ;;  %v37_v16 = vld [vmem:[%s872_s0 + $0x80] sm:$0xff]  ;;  %v38_v17 = vld [vmem:[%s872_s0 + $0x88] sm:$0xff] }
   0xd   :  { %238 = vmatprep.subr.bf16.mxu1 %v547_v0  ;;  %v141_v6 = vpack.c.bf16 %v104_v63, %v103_v62  ;;  %v99_v14 = vmul.f32 %v39_v10, %v39_v10  ;;  %v100_v15 = vmul.f32 %v40_v11, %v40_v11  ;;  %v78_v18 = vpack.c.bf16 %v40_v11, %v39_v10  ;;  %v363_v22 = vld [vmem:[%s875_s3 + $0x10] sm:$0xff]  ;;  %v364_v23 = vld [vmem:[%s875_s3 + $0x18] sm:$0xff]  ;;  %v45_v25 = vld [vmem:[%s873_s1] sm:$0xff] }
   0xe   :  { %160 = vmatpush1.bf16.msra.mxu0 %v135_v20  ;;  %312 = vperm.xlu0 %529, %v298_v52   ;;  %v140_v13 = vpack.c.bf16 %v102_v8, %v101_v7  ;;  %v97_v20 = vmul.f32 %v37_v16, %v37_v16  ;;  %v98_v21 = vmul.f32 %v38_v17, %v38_v17  ;;  %v47_v26 = vld [vmem:[%s873_s1 + $0x10] sm:$0xff]  ;;  %v478_v27 = vld [vmem:[%s873_s1 + $0x80] sm:$0xff]  ;;  %v52_v30 = vld [vmem:[%s873_s1 + $0x38] sm:$0xff] }
   0xf   :  { %161 = vmatprep.subr.bf16.mxu0 %v547_v0  ;;  %322 = vperm.xlu1 %530, %v300_v56   ;;  %v139_v19 = vpack.c.bf16 %v100_v15, %v99_v14  ;;  %v77_v24 = vpack.c.bf16 %v38_v17, %v37_v16  ;;  %v370_v28 = vpack.c.bf16 %v364_v23, %v363_v22  ;;  %v480_v32 = vld [vmem:[%s873_s1 + $0x90] sm:$0xff]  ;;  %v361_v33 = vld [vmem:[%s875_s3] sm:$0xff]  ;;  %v362_v34 = vld [vmem:[%s875_s3 + $0x8] sm:$0xff] }
  0x10   :  { %239 = vmatpush1.bf16.msra.mxu1 %v73_v29  ;;  %v50_v29 = vld [vmem:[%s873_s1 + $0x28] sm:$0xff]  ;;  %v61_v35 = vpack.c.bf16 %v47_v26, %v45_v25  ;;  %v122_v39 = vpack.c.bf16 %v480_v32, %v478_v27  ;;  %v369_v40 = vpack.c.bf16 %v362_v34, %v361_v33  ;;  %v51_v42 = vld [vmem:[%s873_s1 + $0x30] sm:$0xff]  ;;  %v482_v45 = vld [vmem:[%s873_s1 + $0xa0] sm:$0xff] }
  0x11   :  { %240 = vmatprep.subr.bf16.mxu1 %v547_v0  ;;  %v483_v36 = vld [vmem:[%s873_s1 + $0xa8] sm:$0xff]  ;;  %v484_v46 = vld [vmem:[%s873_s1 + $0xb0] sm:$0xff]  ;;  %v489_v49 = vld [vmem:[%s873_s1 + $0xd8] sm:$0xff] }
  0x12   :  { %162 = vmatpush1.bf16.msra.mxu0 %v134_v31  ;;  %327 = vperm.xlu0 %529, %v301_v60   ;;  %v138_v31 = vpack.c.bf16 %v98_v21, %v97_v20  ;;  %v487_v48 = vld [vmem:[%s873_s1 + $0xc8] sm:$0xff]  ;;  %v124_v51 = vpack.c.bf16 %v484_v46, %v482_v45  ;;  %v55_v54 = vld [vmem:[%s873_s1 + $0x50] sm:$0xff]  ;;  %v60_v56 = vld [vmem:[%s873_s1 + $0x78] sm:$0xff] }
  0x13   :  { %163 = vmatprep.subr.bf16.mxu0 %v547_v0  ;;  %332 = vperm.xlu1 %530, %v302_v1   ;;  %v127_v52 = vpack.c.bf16 %v489_v49, %v487_v48  ;;  %v58_v55 = vld [vmem:[%s873_s1 + $0x68] sm:$0xff]  ;;  %v486_v57 = vld [vmem:[%s873_s1 + $0xc0] sm:$0xff]  ;;  %v488_v58 = vld [vmem:[%s873_s1 + $0xd0] sm:$0xff] }
  0x14   :  { %241 = vmatpush1.bf16.msra.mxu1 %v72_v37  ;;  %v485_v37 = vld [vmem:[%s873_s1 + $0xb8] sm:$0xff]  ;;  %v491_v60 = vld [vmem:[%s873_s1 + $0xe8] sm:$0xff]  ;;  %v68_v62 = vpack.c.bf16 %v60_v56, %v58_v55  ;;  %v126_v63 = vpack.c.bf16 %v488_v58, %v486_v57  ;;  %v57_v2 = vld [vmem:[%s873_s1 + $0x60] sm:$0xff] }
  0x15   :  { %242 = vmatprep.subr.bf16.mxu1 %v547_v0  ;;  %v125_v41 = vpack.c.bf16 %v485_v37, %v483_v36  ;;  %v59_v3 = vld [vmem:[%s873_s1 + $0x70] sm:$0xff]  ;;  %v354_v10 = vld [vmem:[%s876_s4 + $0x8] sm:$0xff]  ;;  %v360_v15 = vld [vmem:[%s876_s4 + $0x38] sm:$0xff] }
  0x16   :  { %164 = vmatpush1.bf16.msra.mxu0 %v133_v38  ;;  %337 = vperm.xlu0 %529, %v303_v5   ;;  %v64_v38 = vpack.c.bf16 %v52_v30, %v50_v29  ;;  %v358_v5 = vld [vmem:[%s876_s4 + $0x28] sm:$0xff]  ;;  %v492_v7 = vld [vmem:[%s873_s1 + $0xf0] sm:$0xff]  ;;  %v67_v8 = vpack.c.bf16 %v59_v3, %v57_v2  ;;  %v356_v17 = vld [vmem:[%s876_s4 + $0x18] sm:$0xff] }
  0x17   :  { %165 = vmatprep.subr.bf16.mxu0 %v547_v0  ;;  %342 = vperm.xlu1 %530, %v304_v9   ;;  %v353_v9 = vld [vmem:[%s876_s4] sm:$0xff]  ;;  %v359_v14 = vld [vmem:[%s876_s4 + $0x30] sm:$0xff] }
  0x18   :  { %243 = vmatpush1.bf16.msra.mxu1 %v71_v43  ;;  %v54_v43 = vld [vmem:[%s873_s1 + $0x48] sm:$0xff]  ;;  %v355_v16 = vld [vmem:[%s876_s4 + $0x10] sm:$0xff] }
  0x19   :  { %244 = vmatprep.subr.bf16.mxu1 %v547_v0 }
  0x1a   :  { %166 = vmatpush1.bf16.msra.mxu0 %v132_v44  ;;  %v56_v44 = vld [vmem:[%s873_s1 + $0x58] sm:$0xff] }
  0x1b   :  { %167 = vmatprep.subr.bf16.mxu0 %v547_v0 }
  0x1c   :  { %245 = vmatpush1.bf16.msra.mxu1 %v70_v50  ;;  %v66_v50 = vpack.c.bf16 %v56_v44, %v54_v43 }
  0x1d   :  { %246 = vmatprep.subr.bf16.mxu1 %v547_v0 }
  0x1e   :  { %168 = vmatpush1.bf16.msra.mxu0 %v131_v53  ;;  %v53_v53 = vld [vmem:[%s873_s1 + $0x40] sm:$0xff] }
  0x1f   :  { %169 = vmatprep.subr.bf16.mxu0 %v547_v0 }
  0x20   :  { %247 = vmatpush1.bf16.msra.mxu1 %v69_v59  ;;  %v65_v59 = vpack.c.bf16 %v55_v54, %v53_v53 }
  0x21   :  { %256 = vmatprep.subr.bf16.mxu1 %v547_v0 }
  0x22   :  { %170 = vmatpush1.bf16.msra.mxu0 %v130_v61  ;;  %v493_v61 = vld [vmem:[%s873_s1 + $0xf8] sm:$0xff] }
  0x23   :  { %179 = vmatprep.subr.bf16.mxu0 %v547_v0  ;;  %v129_v1 = vpack.c.bf16 %v493_v61, %v491_v60 }
  0x24   :  { %257 = vmatpush2.bf16.msra.mxu1 %v80_v4  ;;  %v357_v4 = vld [vmem:[%s876_s4 + $0x20] sm:$0xff] }
  0x25   :  { %258 = vmatprep.subr.bf16.mxu1 %v547_v0  ;;  %v367_v11 = vpack.c.bf16 %v358_v5, %v357_v4 }
  0x26   :  { %180 = vmatpush2.bf16.msra.mxu0 %v141_v6  ;;  %v490_v6 = vld [vmem:[%s873_s1 + $0xe0] sm:$0xff] }
  0x27   :  { %181 = vmatprep.subr.bf16.mxu0 %v547_v0 }
  0x28   :  { %259 = vmatpush2.bf16.msra.mxu1 %v79_v12  ;;  %v128_v12 = vpack.c.bf16 %v492_v7, %v490_v6 }
  0x29   :  { %260 = vmatprep.subr.bf16.mxu1 %v547_v0 }
  0x2a   :  { %182 = vmatpush2.bf16.msra.mxu0 %v140_v13  ;;  %v365_v13 = vpack.c.bf16 %v354_v10, %v353_v9 }
  0x2b   :  { %183 = vmatprep.subr.bf16.mxu0 %v547_v0 }
  0x2c   :  { %261 = vmatpush2.bf16.msra.mxu1 %v78_v18  ;;  %v368_v18 = vpack.c.bf16 %v360_v15, %v359_v14 }
  0x2d   :  { %262 = vmatprep.subr.bf16.mxu1 %v547_v0 }
  0x2e   :  { %184 = vmatpush2.bf16.msra.mxu0 %v139_v19  ;;  %v366_v19 = vpack.c.bf16 %v356_v17, %v355_v16 }
  0x2f   :  { %185 = vmatprep.subr.bf16.mxu0 %v547_v0  ;;  %v49_v0 = vld [vmem:[%s873_s1 + $0x20] sm:$0xff] }
  0x30   :  { %263 = vmatpush2.bf16.msra.mxu1 %v77_v24  ;;  %v63_v47 = vpack.c.bf16 %v51_v42, %v49_v0 }
  0x31   :  { %524 = vmatprep.subr.bf16.mxu1 %v370_v28 }
  0x32   :  { %186 = vmatpush2.bf16.msra.mxu0 %v138_v31 }
  0x33   :  { %265 = vmatmul.mubr.bf16.vlgmr.msra.gmra.mxu1 %v61_v35  ;;  %512 = vmatprep.subr.bf16.mxu0 %v370_v28 }
  0x34   :  { %526 = vmatpush3.bf16.msra.mxu1 %v370_v28  ;;  %499 = vmatprep.mubr.msk.bf16.mxu1 %vm142_vm0, %v64_v38 }
  0x35   :  { %188 = vmatmul.mubr.bf16.vlgmr.msra.gmra.mxu0 %v122_v39  ;;  %525 = vmatprep.subr.bf16.mxu1 %v369_v40 }
  0x36   :  { %513 = vmatpush3.bf16.msra.mxu0 %v370_v28  ;;  %495 = vmatprep.mubr.msk.bf16.mxu0 %vm142_vm0, %v125_v41 }
  0x37   :  { %514 = vmatprep.subr.bf16.mxu0 %v369_v40 }
  0x38   :  { %527 = vmatpush3.bf16.msra.mxu1 %v369_v40 }
  0x3a   :  { %515 = vmatpush3.bf16.msra.mxu0 %v369_v40 }
  0x3b   :  { %273 = vmatmul.mubr.bf16.gmra.mxu1 %v63_v47 }
  0x3c   :  { %500 = vmatprep.mubr.msk.bf16.mxu1 %vm142_vm0, %v66_v50 }
  0x3d   :  { %196 = vmatmul.mubr.bf16.gmra.mxu0 %v124_v51 }
  0x3e   :  { %496 = vmatprep.mubr.msk.bf16.mxu0 %vm142_vm0, %v127_v52 }
  0x43   :  { %281 = vmatmul.mubr.bf16.gmra.mxu1 %v65_v59 }
  0x44   :  { %501 = vmatprep.mubr.msk.bf16.mxu1 %vm142_vm0, %v68_v62 }
  0x45   :  { %204 = vmatmul.mubr.bf16.gmra.mxu0 %v126_v63 }
  0x46   :  { %497 = vmatprep.mubr.msk.bf16.mxu0 %vm142_vm0, %v129_v1 }
  0x4b   :  { %289 = vmatmul.mubr.bf16.gmra.mxu1 %v67_v8 }
  0x4c   :  { %520 = vmatprep.mubr.msk.bf16.mxu1 %vm371_vm1, %v367_v11 }
  0x4d   :  { %212 = vmatmul.mubr.bf16.gmra.mxu0 %v128_v12 }
  0x4e   :  { %516 = vmatprep.mubr.msk.bf16.mxu0 %vm371_vm1, %v365_v13 }
  0x53   :  { %521 = vmatmul.mubr.msk.bf16.vlgmr.msra.gmra.mxu1 %vm371_vm1, %v368_v18 }
  0x55   :  { %517 = vmatmul.mubr.msk.bf16.vlgmr.msra.gmra.mxu0 %vm371_vm1, %v366_v19 }
  0x85   :  { %v308_v35 = vpop.permute.xlu0 %307 }
  0x86   :  { %v318_v38 = vpop.permute.xlu1 %317 }
  0x89   :  { %v313_v42 = vpop.permute.xlu0 %312 }
  0x8a   :  { %v323_v45 = vpop.permute.xlu1 %322 }
  0x8d   :  { %v328_v48 = vpop.permute.xlu0 %327 }
  0x8e   :  { %v333_v51 = vpop.permute.xlu1 %332 }
  0x91   :  { %v338_v57 = vpop.permute.xlu0 %337 }
  0x92   :  { %v343_v6 = vpop.permute.xlu1 %342 }
  0xf3   :  { %v266_v20 = vpop.f32.mrf.mxu1 }
  0xf5   :  { %v189_v21 = vpop.f32.mrf.mxu0  ;;  %v268_v22 = vpop.f32.mrf.mxu1 }
  0xf6   :  { %v267_v58 = vadd.f32 %v266_v20, %v189_v21 }
  0xf7   :  { %v191_v23 = vpop.f32.mrf.mxu0  ;;  %v269_v24 = vpop.f32.mrf.mxu1 }
  0xf8   :  { %v345_v8 = vadd.f32 %v308_v35, %v267_v58 }
  0xf9   :  { %v192_v25 = vpop.f32.mrf.mxu0  ;;  %v271_v26 = vpop.f32.mrf.mxu1 }
  0xfa   :  { %v270_v9 = vadd.f32 %v269_v24, %v192_v25 }
  0xfb   :  { %v194_v27 = vpop.f32.mrf.mxu0  ;;  %v274_v28 = vpop.f32.mrf.mxu1 }
  0xfc   :  { %v346_v23 = vadd.f32 %v313_v42, %v270_v9 }
  0xfd   :  { %v197_v29 = vpop.f32.mrf.mxu0  ;;  %v276_v30 = vpop.f32.mrf.mxu1 }
  0xfe   :  { %v275_v55 = vadd.f32 %v274_v28, %v197_v29 }
  0xff   :  { %v199_v31 = vpop.f32.mrf.mxu0  ;;  %v277_v32 = vpop.f32.mrf.mxu1 }
 0x100   :  { %v347_v3 = vadd.f32 %v318_v38, %v275_v55 }
 0x101   :  { %v200_v33 = vpop.f32.mrf.mxu0  ;;  %v279_v34 = vpop.f32.mrf.mxu1 }
 0x102   :  { %v278_v63 = vadd.f32 %v277_v32, %v200_v33 }
 0x103   :  { %v202_v36 = vpop.f32.mrf.mxu0  ;;  %v282_v37 = vpop.f32.mrf.mxu1 }
 0x104   :  { %v348_v15 = vadd.f32 %v323_v45, %v278_v63 }
 0x105   :  { %v205_v39 = vpop.f32.mrf.mxu0  ;;  %v284_v40 = vpop.f32.mrf.mxu1 }
 0x106   :  { %v283_v56 = vadd.f32 %v282_v37, %v205_v39 }
 0x107   :  { %v207_v41 = vpop.f32.mrf.mxu0  ;;  %v285_v0 = vpop.f32.mrf.mxu1 }
 0x108   :  { %v349_v4 = vadd.f32 %v328_v48, %v283_v56 }
 0x109   :  { %v208_v43 = vpop.f32.mrf.mxu0  ;;  %v287_v44 = vpop.f32.mrf.mxu1 }
 0x10a   :  { %v286_v5 = vadd.f32 %v285_v0, %v208_v43 }
 0x10b   :  { %v210_v46 = vpop.f32.mrf.mxu0  ;;  %v290_v47 = vpop.f32.mrf.mxu1 }
 0x10c   :  { %v350_v18 = vadd.f32 %v333_v51, %v286_v5 }
 0x10d   :  { %v213_v49 = vpop.f32.mrf.mxu0  ;;  %v292_v50 = vpop.f32.mrf.mxu1 }
 0x10e   :  { %v291_v52 = vadd.f32 %v290_v47, %v213_v49 }
 0x10f   :  { %v215_v53 = vpop.f32.mrf.mxu0  ;;  %v293_v54 = vpop.f32.mrf.mxu1 }
 0x110   :  { %v351_v61 = vadd.f32 %v338_v57, %v291_v52 }
 0x111   :  { %v216_v59 = vpop.f32.mrf.mxu0  ;;  %v295_v60 = vpop.f32.mrf.mxu1 }
 0x112   :  { %v294_v62 = vadd.f32 %v293_v54, %v216_v59 }
 0x113   :  { %v218_v1 = vpop.f32.mrf.mxu0  ;;  %v522_v2 = vpop.f32.mrf.mxu1 }
 0x114   :  { %v455_v7 = vadd.f32 %v522_v2, %v351_v61  ;;  %v352_v14 = vadd.f32 %v343_v6, %v294_v62 }
 0x115   :  { %v518_v10 = vpop.f32.mrf.mxu0  ;;  %v434_v11 = vpop.f32.mrf.mxu1 }
 0x116   :  { %531 = vtanh.f32 %v455_v7  ;;  %v451_v12 = vadd.f32 %v518_v10, %v347_v3  ;;  %v453_v13 = vadd.f32 %v434_v11, %v349_v4 }
 0x117   :  { %v418_v16 = vpop.f32.mrf.mxu0  ;;  %v523_v17 = vpop.f32.mrf.mxu1 }
 0x118   :  { %533 = vtanh.f32 %v451_v12  ;;  %v449_v19 = vadd.f32 %v418_v16, %v345_v8  ;;  %v456_v20 = vadd.f32 %v523_v17, %v352_v14 }
 0x119   :  { %535 = vtanh.f32 %v453_v13  ;;  %v519_v21 = vpop.f32.mrf.mxu0  ;;  %v437_v22 = vpop.f32.mrf.mxu1 }
 0x11a   :  { %537 = vtanh.f32 %v449_v19  ;;  %v452_v26 = vadd.f32 %v519_v21, %v348_v15  ;;  %v454_v24 = vadd.f32 %v437_v22, %v350_v18 }
 0x11b   :  { %539 = vtanh.f32 %v456_v20  ;;  %v421_v25 = vpop.f32.mrf.mxu0 }
 0x11c   :  { %541 = vtanh.f32 %v452_v26  ;;  %v450_v27 = vadd.f32 %v421_v25, %v346_v23 }
 0x11d   :  { %543 = vtanh.f32 %v454_v24 }
 0x11e   :  { %545 = vtanh.f32 %v450_v27 }
 0x123   :  { %v532_v28 = vpop.eup %531 }
 0x124   :  { %472 = vst.msk [vmem:[%s877_s5 + $0x30] sm:$0xff] %vm465_vm2, %v532_v28 }
 0x125   :  { %v534_v29 = vpop.eup %533 }
 0x126   :  { %v536_v30 = vpop.eup %535  ;;  %468 = vst.msk [vmem:[%s877_s5 + $0x10] sm:$0xff] %vm465_vm2, %v534_v29 }
 0x127   :  { %v538_v31 = vpop.eup %537  ;;  %470 = vst.msk [vmem:[%s877_s5 + $0x20] sm:$0xff] %vm465_vm2, %v536_v30 }
 0x128   :  { %v540_v32 = vpop.eup %539  ;;  %466 = vst.msk [vmem:[%s877_s5] sm:$0xff] %vm465_vm2, %v538_v31 }
 0x129   :  { %v542_v33 = vpop.eup %541  ;;  %473 = vst.msk [vmem:[%s877_s5 + $0x38] sm:$0xff] %vm465_vm2, %v540_v32 }
 0x12a   :  { %v544_v34 = vpop.eup %543  ;;  %469 = vst.msk [vmem:[%s877_s5 + $0x18] sm:$0xff] %vm465_vm2, %v542_v33 }
 0x12b   :  { %v546_v35 = vpop.eup %545  ;;  %471 = vst.msk [vmem:[%s877_s5 + $0x28] sm:$0xff] %vm465_vm2, %v544_v34 }
 0x12c   :  { %467 = vst.msk [vmem:[%s877_s5 + $0x8] sm:$0xff] %vm465_vm2, %v546_v35 }

// kernel: _lambda_.42
= control target key start
LH: loop header
LB: loop body
LE: loop exit
PB: predicated region body
PF: predicated region fallthrough
CT: control target
= control target key end

     0   :  { %v411_v0 = vmov 0   ;;  %vm136_vm0 = vcmask 523264   ;;  %vm355_vm1 = vcmask 64512   ;;  %s690_s0 = inlined_call_operand.vmem [shape: f32[192,8], index: 0, kind: input, shape index: {}]   ;;  %s691_s1 = inlined_call_operand.vmem [shape: f32[2,64,192], index: 1, kind: input, shape index: {}]   ;;  %s692_s2 = inlined_call_operand.vmem [shape: f32[64,1], index: 2, kind: input, shape index: {}]   ;;  %s693_s3 = inlined_call_operand.vmem [shape: f32[64,8], index: 3, kind: output, shape index: {}]  }
   0x1   :  { %226 = vmatprep.subr.bf16.mxu1 %v411_v0  ;;  %v29_v1 = vld [vmem:[%s690_s0 + $0x70] sm:$0xff]  ;;  %v30_v2 = vld [vmem:[%s690_s0 + $0x78] sm:$0xff]  ;;  %149 = vmatprep.subr.bf16.mxu0 %v411_v0  ;;  %v27_v3 = vld [vmem:[%s690_s0 + $0x60] sm:$0xff] }
   0x2   :  { %v70_v4 = vpack.c.bf16 %v30_v2, %v29_v1  ;;  %v89_v5 = vmul.f32 %v29_v1, %v29_v1  ;;  %v90_v6 = vmul.f32 %v30_v2, %v30_v2  ;;  %v28_v7 = vld [vmem:[%s690_s0 + $0x68] sm:$0xff]  ;;  %v87_v8 = vmul.f32 %v27_v3, %v27_v3  ;;  %393 = vset.pattern.permute.xlu0 %v411_v0  ;;  %v25_v10 = vld [vmem:[%s690_s0 + $0x50] sm:$0xff]  ;;  %v26_v11 = vld [vmem:[%s690_s0 + $0x58] sm:$0xff] }
   0x3   :  { %v88_v9 = vmul.f32 %v28_v7, %v28_v7  ;;  %394 = vset.pattern.permute.xlu1 %v411_v0  ;;  %v69_v13 = vpack.c.bf16 %v28_v7, %v27_v3  ;;  %v85_v15 = vmul.f32 %v25_v10, %v25_v10  ;;  %v86_v16 = vmul.f32 %v26_v11, %v26_v11  ;;  %v23_v17 = vld [vmem:[%s690_s0 + $0x40] sm:$0xff]  ;;  %v24_v18 = vld [vmem:[%s690_s0 + $0x48] sm:$0xff]  ;;  %v21_v23 = vld [vmem:[%s690_s0 + $0x30] sm:$0xff] }
   0x4   :  { %227 = vmatpush1.bf16.msra.mxu1 %v70_v4  ;;  %v131_v12 = vpack.c.bf16 %v90_v6, %v89_v5  ;;  %v68_v19 = vpack.c.bf16 %v26_v11, %v25_v10  ;;  %v83_v21 = vmul.f32 %v23_v17, %v23_v17  ;;  %v84_v22 = vmul.f32 %v24_v18, %v24_v18  ;;  %v40_v24 = vld [vmem:[%s691_s1 + $0x8] sm:$0xff]  ;;  %v42_v25 = vld [vmem:[%s691_s1 + $0x18] sm:$0xff]  ;;  %v19_v35 = vld [vmem:[%s690_s0 + $0x20] sm:$0xff] }
   0x5   :  { %228 = vmatprep.subr.bf16.mxu1 %v411_v0  ;;  %v130_v14 = vpack.c.bf16 %v88_v9, %v87_v8  ;;  %v129_v20 = vpack.c.bf16 %v86_v16, %v85_v15  ;;  %v22_v26 = vld [vmem:[%s690_s0 + $0x38] sm:$0xff]  ;;  %v369_v27 = vld [vmem:[%s691_s1 + $0x88] sm:$0xff]  ;;  %v67_v29 = vpack.c.bf16 %v24_v18, %v23_v17  ;;  %v56_v30 = vpack.c.bf16 %v42_v25, %v40_v24  ;;  %v17_v41 = vld [vmem:[%s690_s0 + $0x10] sm:$0xff] }
   0x6   :  { %150 = vmatpush1.bf16.msra.mxu0 %v131_v12  ;;  %v371_v28 = vld [vmem:[%s691_s1 + $0x98] sm:$0xff]  ;;  %v128_v31 = vpack.c.bf16 %v84_v22, %v83_v21  ;;  %v81_v32 = vmul.f32 %v21_v23, %v21_v23  ;;  %v82_v33 = vmul.f32 %v22_v26, %v22_v26  ;;  %v20_v36 = vld [vmem:[%s690_s0 + $0x28] sm:$0xff]  ;;  %v66_v37 = vpack.c.bf16 %v22_v26, %v21_v23  ;;  %v291_v43 = vld [vmem:[%s692_s2] sm:$0xff] }
   0x7   :  { %151 = vmatprep.subr.bf16.mxu0 %v411_v0  ;;  %v117_v34 = vpack.c.bf16 %v371_v28, %v369_v27  ;;  %388 = vmatprep.mubr.msk.bf16.mxu1 %vm136_vm0, %v56_v30  ;;  %v79_v39 = vmul.f32 %v19_v35, %v19_v35  ;;  %v80_v40 = vmul.f32 %v20_v36, %v20_v36  ;;  %v18_v42 = vld [vmem:[%s690_s0 + $0x18] sm:$0xff]  ;;  %v293_v45 = vld [vmem:[%s692_s2 + $0x10] sm:$0xff]  ;;  %v292_v46 = vld [vmem:[%s692_s2 + $0x8] sm:$0xff] }
   0x8   :  { %229 = vmatpush1.bf16.msra.mxu1 %v69_v13  ;;  %v127_v38 = vpack.c.bf16 %v82_v33, %v81_v32  ;;  %v65_v44 = vpack.c.bf16 %v20_v36, %v19_v35  ;;  %301 = vperm.xlu0 %393, %v291_v43   ;;  %v77_v48 = vmul.f32 %v17_v41, %v17_v41  ;;  %v294_v50 = vld [vmem:[%s692_s2 + $0x18] sm:$0xff]  ;;  %v15_v51 = vld [vmem:[%s690_s0] sm:$0xff]  ;;  %v16_v52 = vld [vmem:[%s690_s0 + $0x8] sm:$0xff] }
   0x9   :  { %230 = vmatprep.subr.bf16.mxu1 %v411_v0  ;;  %384 = vmatprep.mubr.msk.bf16.mxu0 %vm136_vm0, %v117_v34  ;;  %v126_v47 = vpack.c.bf16 %v80_v40, %v79_v39  ;;  %v78_v49 = vmul.f32 %v18_v42, %v18_v42  ;;  %v64_v53 = vpack.c.bf16 %v18_v42, %v17_v41  ;;  %v295_v54 = vld [vmem:[%s692_s2 + $0x20] sm:$0xff]  ;;  %v296_v58 = vld [vmem:[%s692_s2 + $0x28] sm:$0xff]  ;;  %v37_v59 = vld [vmem:[%s690_s0 + $0xb0] sm:$0xff] }
   0xa   :  { %152 = vmatpush1.bf16.msra.mxu0 %v130_v14  ;;  %311 = vperm.xlu1 %394, %v293_v45   ;;  %v75_v56 = vmul.f32 %v15_v51, %v15_v51  ;;  %v76_v57 = vmul.f32 %v16_v52, %v16_v52  ;;  %v38_v60 = vld [vmem:[%s690_s0 + $0xb8] sm:$0xff]  ;;  %v63_v61 = vpack.c.bf16 %v16_v52, %v15_v51  ;;  %v297_v62 = vld [vmem:[%s692_s2 + $0x30] sm:$0xff]  ;;  %v35_v4 = vld [vmem:[%s690_s0 + $0xa0] sm:$0xff] }
   0xb   :  { %153 = vmatprep.subr.bf16.mxu0 %v411_v0  ;;  %v125_v55 = vpack.c.bf16 %v78_v49, %v77_v48  ;;  %v97_v1 = vmul.f32 %v37_v59, %v37_v59  ;;  %v98_v2 = vmul.f32 %v38_v60, %v38_v60  ;;  %v298_v3 = vld [vmem:[%s692_s2 + $0x38] sm:$0xff]  ;;  %v36_v5 = vld [vmem:[%s690_s0 + $0xa8] sm:$0xff]  ;;  %v74_v6 = vpack.c.bf16 %v38_v60, %v37_v59  ;;  %v33_v10 = vld [vmem:[%s690_s0 + $0x90] sm:$0xff] }
   0xc   :  { %231 = vmatpush1.bf16.msra.mxu1 %v68_v19  ;;  %306 = vperm.xlu0 %393, %v292_v46   ;;  %v124_v63 = vpack.c.bf16 %v76_v57, %v75_v56  ;;  %v95_v8 = vmul.f32 %v35_v4, %v35_v4  ;;  %v96_v9 = vmul.f32 %v36_v5, %v36_v5  ;;  %v34_v11 = vld [vmem:[%s690_s0 + $0x98] sm:$0xff]  ;;  %v31_v16 = vld [vmem:[%s690_s0 + $0x80] sm:$0xff]  ;;  %v32_v17 = vld [vmem:[%s690_s0 + $0x88] sm:$0xff] }
   0xd   :  { %232 = vmatprep.subr.bf16.mxu1 %v411_v0  ;;  %v135_v7 = vpack.c.bf16 %v98_v2, %v97_v1  ;;  %v73_v12 = vpack.c.bf16 %v36_v5, %v35_v4  ;;  %v93_v14 = vmul.f32 %v33_v10, %v33_v10  ;;  %v94_v15 = vmul.f32 %v34_v11, %v34_v11  ;;  %v39_v23 = vld [vmem:[%s691_s1] sm:$0xff]  ;;  %v41_v24 = vld [vmem:[%s691_s1 + $0x10] sm:$0xff]  ;;  %v44_v25 = vld [vmem:[%s691_s1 + $0x28] sm:$0xff] }
   0xe   :  { %154 = vmatpush1.bf16.msra.mxu0 %v129_v20  ;;  %316 = vperm.xlu1 %394, %v294_v50   ;;  %v134_v13 = vpack.c.bf16 %v96_v9, %v95_v8  ;;  %v72_v18 = vpack.c.bf16 %v34_v11, %v33_v10  ;;  %v91_v20 = vmul.f32 %v31_v16, %v31_v16  ;;  %v46_v26 = vld [vmem:[%s691_s1 + $0x38] sm:$0xff]  ;;  %v368_v28 = vld [vmem:[%s691_s1 + $0x80] sm:$0xff]  ;;  %v45_v36 = vld [vmem:[%s691_s1 + $0x30] sm:$0xff] }
   0xf   :  { %155 = vmatprep.subr.bf16.mxu0 %v411_v0  ;;  %v133_v19 = vpack.c.bf16 %v94_v15, %v93_v14  ;;  %v92_v21 = vmul.f32 %v32_v17, %v32_v17  ;;  %v71_v22 = vpack.c.bf16 %v32_v17, %v31_v16  ;;  %v55_v30 = vpack.c.bf16 %v41_v24, %v39_v23  ;;  %v375_v32 = vld [vmem:[%s691_s1 + $0xb8] sm:$0xff]  ;;  %v372_v39 = vld [vmem:[%s691_s1 + $0xa0] sm:$0xff]  ;;  %v374_v40 = vld [vmem:[%s691_s1 + $0xb0] sm:$0xff] }
  0x10   :  { %233 = vmatpush1.bf16.msra.mxu1 %v67_v29  ;;  %321 = vperm.xlu0 %393, %v295_v54   ;;  %v370_v29 = vld [vmem:[%s691_s1 + $0x90] sm:$0xff]  ;;  %v58_v33 = vpack.c.bf16 %v46_v26, %v44_v25  ;;  %v377_v42 = vld [vmem:[%s691_s1 + $0xc8] sm:$0xff]  ;;  %v379_v43 = vld [vmem:[%s691_s1 + $0xd8] sm:$0xff]  ;;  %v118_v45 = vpack.c.bf16 %v374_v40, %v372_v39 }
  0x11   :  { %234 = vmatprep.subr.bf16.mxu1 %v411_v0  ;;  %v132_v27 = vpack.c.bf16 %v92_v21, %v91_v20  ;;  %v116_v34 = vpack.c.bf16 %v370_v29, %v368_v28  ;;  %v121_v46 = vpack.c.bf16 %v379_v43, %v377_v42  ;;  %v49_v48 = vld [vmem:[%s691_s1 + $0x50] sm:$0xff]  ;;  %v52_v49 = vld [vmem:[%s691_s1 + $0x68] sm:$0xff]  ;;  %v54_v50 = vld [vmem:[%s691_s1 + $0x78] sm:$0xff] }
  0x12   :  { %156 = vmatpush1.bf16.msra.mxu0 %v128_v31  ;;  %326 = vperm.xlu1 %394, %v296_v58   ;;  %v373_v31 = vld [vmem:[%s691_s1 + $0xa8] sm:$0xff]  ;;  %v376_v51 = vld [vmem:[%s691_s1 + $0xc0] sm:$0xff]  ;;  %v378_v52 = vld [vmem:[%s691_s1 + $0xd0] sm:$0xff]  ;;  %v62_v56 = vpack.c.bf16 %v54_v50, %v52_v49 }
  0x13   :  { %157 = vmatprep.subr.bf16.mxu0 %v411_v0  ;;  %v119_v35 = vpack.c.bf16 %v375_v32, %v373_v31  ;;  %v381_v54 = vld [vmem:[%s691_s1 + $0xe8] sm:$0xff]  ;;  %v120_v57 = vpack.c.bf16 %v378_v52, %v376_v51  ;;  %v51_v59 = vld [vmem:[%s691_s1 + $0x60] sm:$0xff]  ;;  %v53_v60 = vld [vmem:[%s691_s1 + $0x70] sm:$0xff] }
  0x14   :  { %235 = vmatpush1.bf16.msra.mxu1 %v66_v37  ;;  %331 = vperm.xlu0 %393, %v297_v62   ;;  %v48_v37 = vld [vmem:[%s691_s1 + $0x48] sm:$0xff]  ;;  %v382_v62 = vld [vmem:[%s691_s1 + $0xf0] sm:$0xff] }
  0x15   :  { %236 = vmatprep.subr.bf16.mxu1 %v411_v0 }
  0x16   :  { %158 = vmatpush1.bf16.msra.mxu0 %v127_v38  ;;  %336 = vperm.xlu1 %394, %v298_v3   ;;  %v50_v38 = vld [vmem:[%s691_s1 + $0x58] sm:$0xff] }
  0x17   :  { %159 = vmatprep.subr.bf16.mxu0 %v411_v0 }
  0x18   :  { %237 = vmatpush1.bf16.msra.mxu1 %v65_v44  ;;  %v60_v44 = vpack.c.bf16 %v50_v38, %v48_v37 }
  0x19   :  { %238 = vmatprep.subr.bf16.mxu1 %v411_v0 }
  0x1a   :  { %160 = vmatpush1.bf16.msra.mxu0 %v126_v47  ;;  %v47_v47 = vld [vmem:[%s691_s1 + $0x40] sm:$0xff] }
  0x1b   :  { %161 = vmatprep.subr.bf16.mxu0 %v411_v0 }
  0x1c   :  { %239 = vmatpush1.bf16.msra.mxu1 %v64_v53  ;;  %v59_v53 = vpack.c.bf16 %v49_v48, %v47_v47 }
  0x1d   :  { %240 = vmatprep.subr.bf16.mxu1 %v411_v0 }
  0x1e   :  { %162 = vmatpush1.bf16.msra.mxu0 %v125_v55  ;;  %v383_v55 = vld [vmem:[%s691_s1 + $0xf8] sm:$0xff] }
  0x1f   :  { %163 = vmatprep.subr.bf16.mxu0 %v411_v0  ;;  %v123_v58 = vpack.c.bf16 %v383_v55, %v381_v54 }
  0x20   :  { %241 = vmatpush1.bf16.msra.mxu1 %v63_v61  ;;  %v380_v61 = vld [vmem:[%s691_s1 + $0xe0] sm:$0xff] }
  0x21   :  { %250 = vmatprep.subr.bf16.mxu1 %v411_v0  ;;  %v122_v1 = vpack.c.bf16 %v382_v62, %v380_v61 }
  0x22   :  { %164 = vmatpush1.bf16.msra.mxu0 %v124_v63  ;;  %v61_v63 = vpack.c.bf16 %v53_v60, %v51_v59 }
  0x23   :  { %173 = vmatprep.subr.bf16.mxu0 %v411_v0 }
  0x24   :  { %251 = vmatpush2.bf16.msra.mxu1 %v74_v6 }
  0x25   :  { %252 = vmatprep.subr.bf16.mxu1 %v411_v0 }
  0x26   :  { %174 = vmatpush2.bf16.msra.mxu0 %v135_v7 }
  0x27   :  { %175 = vmatprep.subr.bf16.mxu0 %v411_v0 }
  0x28   :  { %253 = vmatpush2.bf16.msra.mxu1 %v73_v12 }
  0x29   :  { %254 = vmatprep.subr.bf16.mxu1 %v411_v0 }
  0x2a   :  { %176 = vmatpush2.bf16.msra.mxu0 %v134_v13 }
  0x2b   :  { %177 = vmatprep.subr.bf16.mxu0 %v411_v0 }
  0x2c   :  { %255 = vmatpush2.bf16.msra.mxu1 %v72_v18 }
  0x2d   :  { %256 = vmatprep.subr.bf16.mxu1 %v411_v0 }
  0x2e   :  { %178 = vmatpush2.bf16.msra.mxu0 %v133_v19 }
  0x2f   :  { %179 = vmatprep.subr.bf16.mxu0 %v411_v0  ;;  %v43_v0 = vld [vmem:[%s691_s1 + $0x20] sm:$0xff] }
  0x30   :  { %257 = vmatpush2.bf16.msra.mxu1 %v71_v22  ;;  %v57_v41 = vpack.c.bf16 %v45_v36, %v43_v0 }
  0x32   :  { %180 = vmatpush2.bf16.msra.mxu0 %v132_v27 }
  0x33   :  { %259 = vmatmul.mubr.bf16.vlgmr.msra.gmra.mxu1 %v55_v30 }
  0x34   :  { %389 = vmatprep.mubr.msk.bf16.mxu1 %vm136_vm0, %v58_v33 }
  0x35   :  { %182 = vmatmul.mubr.bf16.vlgmr.msra.gmra.mxu0 %v116_v34 }
  0x36   :  { %385 = vmatprep.mubr.msk.bf16.mxu0 %vm136_vm0, %v119_v35 }
  0x3b   :  { %267 = vmatmul.mubr.bf16.gmra.mxu1 %v57_v41 }
  0x3c   :  { %390 = vmatprep.mubr.msk.bf16.mxu1 %vm136_vm0, %v60_v44 }
  0x3d   :  { %190 = vmatmul.mubr.bf16.gmra.mxu0 %v118_v45 }
  0x3e   :  { %386 = vmatprep.mubr.msk.bf16.mxu0 %vm136_vm0, %v121_v46 }
  0x43   :  { %275 = vmatmul.mubr.bf16.gmra.mxu1 %v59_v53 }
  0x44   :  { %391 = vmatprep.mubr.msk.bf16.mxu1 %vm136_vm0, %v62_v56 }
  0x45   :  { %198 = vmatmul.mubr.bf16.gmra.mxu0 %v120_v57 }
  0x46   :  { %387 = vmatprep.mubr.msk.bf16.mxu0 %vm136_vm0, %v123_v58 }
  0x4b   :  { %283 = vmatmul.mubr.bf16.gmra.mxu1 %v61_v63 }
  0x4d   :  { %206 = vmatmul.mubr.bf16.gmra.mxu0 %v122_v1 }
  0x83   :  { %v302_v2 = vpop.permute.xlu0 %301 }
  0x85   :  { %v312_v16 = vpop.permute.xlu1 %311 }
  0x87   :  { %v307_v10 = vpop.permute.xlu0 %306 }
  0x89   :  { %v317_v26 = vpop.permute.xlu1 %316 }
  0x8b   :  { %v322_v33 = vpop.permute.xlu0 %321 }
  0x8d   :  { %v327_v40 = vpop.permute.xlu1 %326 }
  0x8f   :  { %v332_v48 = vpop.permute.xlu0 %331 }
  0x91   :  { %v337_v58 = vpop.permute.xlu1 %336 }
  0xf3   :  { %v260_v3 = vpop.f32.mrf.mxu1 }
  0xf5   :  { %v183_v4 = vpop.f32.mrf.mxu0  ;;  %v262_v5 = vpop.f32.mrf.mxu1 }
  0xf6   :  { %v261_v6 = vadd.f32 %v260_v3, %v183_v4 }
  0xf7   :  { %v185_v7 = vpop.f32.mrf.mxu0  ;;  %v263_v8 = vpop.f32.mrf.mxu1 }
  0xf8   :  { %v339_v9 = vadd.f32 %v302_v2, %v261_v6 }
  0xf9   :  { %v186_v11 = vpop.f32.mrf.mxu0  ;;  %v265_v12 = vpop.f32.mrf.mxu1 }
  0xfa   :  { %395 = vtanh.f32 %v339_v9  ;;  %v264_v13 = vadd.f32 %v263_v8, %v186_v11 }
  0xfb   :  { %v188_v14 = vpop.f32.mrf.mxu0  ;;  %v268_v15 = vpop.f32.mrf.mxu1 }
  0xfc   :  { %v340_v17 = vadd.f32 %v307_v10, %v264_v13 }
  0xfd   :  { %v191_v18 = vpop.f32.mrf.mxu0  ;;  %v270_v19 = vpop.f32.mrf.mxu1 }
  0xfe   :  { %397 = vtanh.f32 %v340_v17  ;;  %v269_v20 = vadd.f32 %v268_v15, %v191_v18 }
  0xff   :  { %v193_v21 = vpop.f32.mrf.mxu0  ;;  %v271_v22 = vpop.f32.mrf.mxu1 }
 0x100   :  { %v341_v23 = vadd.f32 %v312_v16, %v269_v20 }
 0x101   :  { %v194_v24 = vpop.f32.mrf.mxu0  ;;  %v273_v25 = vpop.f32.mrf.mxu1 }
 0x102   :  { %399 = vtanh.f32 %v341_v23  ;;  %v272_v27 = vadd.f32 %v271_v22, %v194_v24 }
 0x103   :  { %v196_v28 = vpop.f32.mrf.mxu0  ;;  %v276_v29 = vpop.f32.mrf.mxu1 }
 0x104   :  { %v342_v30 = vadd.f32 %v317_v26, %v272_v27 }
 0x105   :  { %v199_v31 = vpop.f32.mrf.mxu0  ;;  %v278_v32 = vpop.f32.mrf.mxu1 }
 0x106   :  { %401 = vtanh.f32 %v342_v30  ;;  %v277_v34 = vadd.f32 %v276_v29, %v199_v31 }
 0x107   :  { %v396_v35 = vpop.eup %395  ;;  %v201_v0 = vpop.f32.mrf.mxu0 }
 0x108   :  { %v279_v36 = vpop.f32.mrf.mxu1  ;;  %356 = vst.msk [vmem:[%s693_s3] sm:$0xff] %vm355_vm1, %v396_v35  ;;  %v343_v37 = vadd.f32 %v322_v33, %v277_v34 }
 0x109   :  { %v202_v38 = vpop.f32.mrf.mxu0 }
 0x10a   :  { %v281_v39 = vpop.f32.mrf.mxu1  ;;  %403 = vtanh.f32 %v343_v37  ;;  %v280_v41 = vadd.f32 %v279_v36, %v202_v38 }
 0x10b   :  { %v398_v42 = vpop.eup %397  ;;  %v204_v43 = vpop.f32.mrf.mxu0 }
 0x10c   :  { %v284_v44 = vpop.f32.mrf.mxu1  ;;  %357 = vst.msk [vmem:[%s693_s3 + $0x8] sm:$0xff] %vm355_vm1, %v398_v42  ;;  %v344_v45 = vadd.f32 %v327_v40, %v280_v41 }
 0x10d   :  { %v207_v46 = vpop.f32.mrf.mxu0 }
 0x10e   :  { %v286_v47 = vpop.f32.mrf.mxu1  ;;  %405 = vtanh.f32 %v344_v45  ;;  %v285_v49 = vadd.f32 %v284_v44, %v207_v46 }
 0x10f   :  { %v400_v50 = vpop.eup %399  ;;  %v209_v51 = vpop.f32.mrf.mxu0 }
 0x110   :  { %v287_v52 = vpop.f32.mrf.mxu1  ;;  %358 = vst.msk [vmem:[%s693_s3 + $0x10] sm:$0xff] %vm355_vm1, %v400_v50  ;;  %v345_v53 = vadd.f32 %v332_v48, %v285_v49 }
 0x111   :  { %v210_v54 = vpop.f32.mrf.mxu0 }
 0x112   :  { %v289_v55 = vpop.f32.mrf.mxu1  ;;  %407 = vtanh.f32 %v345_v53  ;;  %v288_v56 = vadd.f32 %v287_v52, %v210_v54 }
 0x113   :  { %v402_v57 = vpop.eup %401  ;;  %v212_v59 = vpop.f32.mrf.mxu0 }
 0x114   :  { %359 = vst.msk [vmem:[%s693_s3 + $0x18] sm:$0xff] %vm355_vm1, %v402_v57  ;;  %v346_v60 = vadd.f32 %v337_v58, %v288_v56 }
 0x116   :  { %409 = vtanh.f32 %v346_v60 }
 0x117   :  { %v404_v61 = vpop.eup %403 }
 0x118   :  { %360 = vst.msk [vmem:[%s693_s3 + $0x20] sm:$0xff] %vm355_vm1, %v404_v61 }
 0x11b   :  { %v406_v62 = vpop.eup %405 }
 0x11c   :  { %361 = vst.msk [vmem:[%s693_s3 + $0x28] sm:$0xff] %vm355_vm1, %v406_v62 }
 0x11f   :  { %v408_v63 = vpop.eup %407 }
 0x120   :  { %362 = vst.msk [vmem:[%s693_s3 + $0x30] sm:$0xff] %vm355_vm1, %v408_v63 }
 0x123   :  { %v410_v1 = vpop.eup %409 }
 0x124   :  { %363 = vst.msk [vmem:[%s693_s3 + $0x38] sm:$0xff] %vm355_vm1, %v410_v1 }

// kernel: _lambda_.45
= control target key start
LH: loop header
LB: loop body
LE: loop exit
PB: predicated region body
PF: predicated region fallthrough
CT: control target
= control target key end

     0   :  { %vm31_vm0 = vcmask 31744   ;;  %s516_s0 = inlined_call_operand.vmem [shape: f32[2,64,4], index: 0, kind: input, shape index: {}]   ;;  %s517_s1 = inlined_call_operand.vmem [shape: f32[64,5], index: 1, kind: input, shape index: {}]   ;;  %s518_s2 = inlined_call_operand.vmem [shape: f32[1,5], index: 2, kind: input, shape index: {}]   ;;  %s519_s3 = inlined_call_operand.hbm [shape: f32[2,5], index: 3, kind: output, shape index: {}]  }
   0x1   :  { %v23_v0 = vld [vmem:[%s516_s0 + $0x40] sm:$0xff]  ;;  %v24_v2 = vld [vmem:[%s516_s0 + $0x48] sm:$0xff]  ;;  %v25_v8 = vld [vmem:[%s516_s0 + $0x50] sm:$0xff] }
   0x2   :  { %v15_v1 = vld [vmem:[%s516_s0] sm:$0xff]  ;;  %v56_v3 = vsel %vm31_vm0, %v23_v0, 0.0  ;;  %v16_v5 = vld [vmem:[%s516_s0 + $0x8] sm:$0xff]  ;;  %v59_v6 = vsel %vm31_vm0, %v24_v2, 0.0  ;;  %v17_v9 = vld [vmem:[%s516_s0 + $0x10] sm:$0xff] }
   0x3   :  { %v32_v4 = vsel %vm31_vm0, %v15_v1, 0.0  ;;  %57 = vadd.xlane.f32.xlu1 %v56_v3  ;;  %v35_v7 = vsel %vm31_vm0, %v16_v5, 0.0 }
   0x4   :  { %33 = vadd.xlane.f32.xlu0 %v32_v4 }
   0x7   :  { %60 = vadd.xlane.f32.xlu1 %v59_v6 }
   0x8   :  { %36 = vadd.xlane.f32.xlu0 %v35_v7 }
   0x9   :  { %8 = vsyncpa [#allocation3], 0  ;;  %v62_v10 = vsel %vm31_vm0, %v25_v8, 0.0  ;;  %v38_v11 = vsel %vm31_vm0, %v17_v9, 0.0  ;;  %v26_v12 = vld [vmem:[%s516_s0 + $0x58] sm:$0xff]  ;;  %v27_v16 = vld [vmem:[%s516_s0 + $0x60] sm:$0xff]  ;;  %v128_v45 = vlaneseq }
   0xa   :  { %v18_v13 = vld [vmem:[%s516_s0 + $0x18] sm:$0xff]  ;;  %v65_v14 = vsel %vm31_vm0, %v26_v12, 0.0  ;;  %v19_v17 = vld [vmem:[%s516_s0 + $0x20] sm:$0xff]  ;;  %v68_v18 = vsel %vm31_vm0, %v27_v16, 0.0  ;;  %v28_v20 = vld [vmem:[%s516_s0 + $0x68] sm:$0xff]  ;;  %v384_v33 = vmov 0.0  }
   0xb   :  { %63 = vadd.xlane.f32.xlu1 %v62_v10  ;;  %v41_v15 = vsel %vm31_vm0, %v18_v13, 0.0  ;;  %v44_v19 = vsel %vm31_vm0, %v19_v17, 0.0  ;;  %v20_v21 = vld [vmem:[%s516_s0 + $0x28] sm:$0xff]  ;;  %v71_v22 = vsel %vm31_vm0, %v28_v20, 0.0  ;;  %v29_v24 = vld [vmem:[%s516_s0 + $0x70] sm:$0xff]  ;;  %v30_v28 = vld [vmem:[%s516_s0 + $0x78] sm:$0xff]  ;;  %336 = vmatprep.subr.mxu0 %v384_v33 }
   0xc   :  { %39 = vadd.xlane.f32.xlu0 %v38_v11  ;;  %v47_v23 = vsel %vm31_vm0, %v20_v21, 0.0  ;;  %v21_v25 = vld [vmem:[%s516_s0 + $0x30] sm:$0xff]  ;;  %v74_v26 = vsel %vm31_vm0, %v29_v24, 0.0  ;;  %v22_v29 = vld [vmem:[%s516_s0 + $0x38] sm:$0xff]  ;;  %v77_v30 = vsel %vm31_vm0, %v30_v28, 0.0  ;;  %v102_v35 = vld [vmem:[%s517_s1 + $0x28] sm:$0xff] }
   0xd   :  { %v50_v27 = vsel %vm31_vm0, %v21_v25, 0.0  ;;  %v53_v31 = vsel %vm31_vm0, %v22_v29, 0.0  ;;  %v104_v32 = vld [vmem:[%s517_s1 + $0x38] sm:$0xff]  ;;  %v103_v34 = vld [vmem:[%s517_s1 + $0x30] sm:$0xff]  ;;  %v101_v36 = vld [vmem:[%s517_s1 + $0x20] sm:$0xff]  ;;  %vm385_vm1 = vmmov 0  }
   0xe   :  { %337 = vmatpush3.msra.mxu0 %v104_v32  ;;  %v100_v37 = vld [vmem:[%s517_s1 + $0x18] sm:$0xff]  ;;  %v99_v38 = vld [vmem:[%s517_s1 + $0x10] sm:$0xff]  ;;  %v98_v39 = vld [vmem:[%s517_s1 + $0x8] sm:$0xff]  ;;  %352 = vmatprep.mubr.msk.f32.mxu0 %vm385_vm1, %v384_v33  ;;  %v129_v48 = vand.u32 127, %v128_v45  ;;  %v131_v49 = vshrl.u32 %v128_v45, 7  ;;  %vm139_vm2 = vcmask 130112  }
   0xf   :  { %66 = vadd.xlane.f32.xlu1 %v65_v14  ;;  %338 = vmatprep.subr.mxu0 %v384_v33  ;;  %v97_v40 = vld [vmem:[%s517_s1] sm:$0xff]  ;;  %vm146_vm3 = vcmask 195712   ;;  %vm153_vm4 = vcmask 261312   ;;  %vm160_vm5 = vcmask 326912   ;;  %vm167_vm6 = vcmask 392512   ;;  %s386_s6 = smov [#allocation2]  }
  0x10   :  { %42 = vadd.xlane.f32.xlu0 %v41_v15  ;;  %339 = vmatpush3.msra.mxu0 %v103_v34  ;;  %v134_v52 = vadd.s32 4294967288, %v129_v48  ;;  %v141_v53 = vadd.s32 4294967280, %v129_v48  ;;  %v148_v54 = vadd.s32 4294967272, %v129_v48  ;;  %v155_v55 = vadd.s32 4294967264, %v129_v48 }
  0x11   :  { %340 = vmatprep.subr.mxu0 %v384_v33  ;;  %v132_v56 = vsub.s32 %v129_v48, %v131_v49  ;;  %v162_v61 = vadd.s32 4294967256, %v129_v48  ;;  %v169_v63 = vadd.s32 4294967248, %v129_v48  ;;  %v176_v15 = vadd.s32 4294967240, %v129_v48 }
  0x12   :  { %341 = vmatpush3.msra.mxu0 %v102_v35  ;;  %v137_v59 = vsub.s32 %v134_v52, %v131_v49  ;;  %v144_v60 = vsub.s32 %v141_v53, %v131_v49  ;;  %v151_v62 = vsub.s32 %v148_v54, %v131_v49  ;;  %v158_v2 = vsub.s32 %v155_v55, %v131_v49 }
  0x13   :  { %69 = vadd.xlane.f32.xlu1 %v68_v18  ;;  %342 = vmatprep.subr.mxu0 %v384_v33  ;;  %v165_v11 = vsub.s32 %v162_v61, %v131_v49  ;;  %v172_v14 = vsub.s32 %v169_v63, %v131_v49  ;;  %vm174_vm7 = vcmask 458112   ;;  %v179_v32 = vsub.s32 %v176_v15, %v131_v49 }
  0x14   :  { %45 = vadd.xlane.f32.xlu0 %v44_v19  ;;  %343 = vmatpush3.msra.mxu0 %v101_v36  ;;  %vm181_vm8 = vcmask 523712   ;;  %vm222_vm9 = vcmask 1041409   ;;  %vm224_vm10 = vcmask 523264   ;;  %vm297_vm11 = vcmask 33792  }
  0x15   :  { %344 = vmatprep.subr.mxu0 %v384_v33 }
  0x16   :  { %345 = vmatpush3.msra.mxu0 %v100_v37 }
  0x17   :  { %72 = vadd.xlane.f32.xlu1 %v71_v22  ;;  %346 = vmatprep.subr.mxu0 %v384_v33 }
  0x18   :  { %48 = vadd.xlane.f32.xlu0 %v47_v23  ;;  %347 = vmatpush3.msra.mxu0 %v99_v38 }
  0x19   :  { %348 = vmatprep.subr.mxu0 %v384_v33 }
  0x1a   :  { %349 = vmatpush3.msra.mxu0 %v98_v39 }
  0x1b   :  { %75 = vadd.xlane.f32.xlu1 %v74_v26  ;;  %350 = vmatprep.subr.mxu0 %v384_v33 }
  0x1c   :  { %51 = vadd.xlane.f32.xlu0 %v50_v27  ;;  %351 = vmatpush3.msra.mxu0 %v97_v40 }
  0x1f   :  { %78 = vadd.xlane.f32.xlu1 %v77_v30 }
  0x20   :  { %54 = vadd.xlane.f32.xlu0 %v53_v31 }
  0x8c   :  { %v58_v41 = vpop.xlane.xlu1 %57 }
  0x8d   :  { %v34_v42 = vpop.xlane.xlu0 %33  ;;  %v89_v3 = vmul.f32 0.25, %v58_v41 }
  0x8e   :  { %v81_v4 = vmul.f32 0.25, %v34_v42 }
  0x8f   :  { %v186_v20 = vrot.slane %v89_v3, %v132_v56 }
  0x90   :  { %v61_v43 = vpop.xlane.xlu1 %60  ;;  %v133_v21 = vrot.slane %v81_v4, %v132_v56 }
  0x91   :  { %v37_v44 = vpop.xlane.xlu0 %36  ;;  %v90_v0 = vmul.f32 0.25, %v61_v43 }
  0x92   :  { %v82_v1 = vmul.f32 0.25, %v37_v44 }
  0x93   :  { %v190_v16 = vrot.slane %v90_v0, %v137_v59 }
  0x94   :  { %v64_v46 = vpop.xlane.xlu1 %63  ;;  %v138_v17 = vrot.slane %v82_v1, %v137_v59 }
  0x95   :  { %v40_v47 = vpop.xlane.xlu0 %39  ;;  %v91_v5 = vmul.f32 0.25, %v64_v46  ;;  %v191_v33 = vsel %vm139_vm2, %v190_v16, %v186_v20 }
  0x96   :  { %v83_v6 = vmul.f32 0.25, %v40_v47  ;;  %v140_v34 = vsel %vm139_vm2, %v138_v17, %v133_v21 }
  0x97   :  { %v195_v22 = vrot.slane %v91_v5, %v144_v60 }
  0x98   :  { %v67_v50 = vpop.xlane.xlu1 %66  ;;  %v145_v23 = vrot.slane %v83_v6, %v144_v60 }
  0x99   :  { %v43_v51 = vpop.xlane.xlu0 %42  ;;  %v92_v9 = vmul.f32 0.25, %v67_v50  ;;  %v196_v37 = vsel %vm146_vm3, %v195_v22, %v191_v33 }
  0x9a   :  { %v84_v10 = vmul.f32 0.25, %v43_v51  ;;  %v147_v38 = vsel %vm146_vm3, %v145_v23, %v140_v34 }
  0x9b   :  { %v200_v26 = vrot.slane %v92_v9, %v151_v62 }
  0x9c   :  { %v70_v57 = vpop.xlane.xlu1 %69  ;;  %v152_v27 = vrot.slane %v84_v10, %v151_v62 }
  0x9d   :  { %v46_v58 = vpop.xlane.xlu0 %45  ;;  %v93_v12 = vmul.f32 0.25, %v70_v57  ;;  %v201_v43 = vsel %vm153_vm4, %v200_v26, %v196_v37 }
  0x9e   :  { %v85_v13 = vmul.f32 0.25, %v46_v58  ;;  %v154_v44 = vsel %vm153_vm4, %v152_v27, %v147_v38  ;;  %v325_v58 = vld [vmem:[%s518_s2] ss:$0 sm:$0xff]  ;;  %s317_s2 = sshll.u32 %s386_s6, 4  ;;  %s318_s2 = int_to_ptr.vmem [resolvable:$true] %s317_s2 }
  0x9f   :  { %v205_v30 = vrot.slane %v93_v12, %v158_v2  ;;  %s362_s7 = scalar_lea.vmem %s318_s2, 32  ;;  %p367_p1 = scmp.lt.s32.totalorder %s318_s2, %s318_s2 }
  0xa0   :  { %v73_v7 = vpop.xlane.xlu1 %72  ;;  %v159_v31 = vrot.slane %v85_v13, %v158_v2  ;;  %p363_p0 = scmp.ne.s32.totalorder %s318_s2, %s362_s7  ;;  %p368_p2 = scmp.lt.s32.totalorder %s362_s7, %s362_s7 }
  0xa1   :  { %v49_v8 = vpop.xlane.xlu0 %48  ;;  %v94_v18 = vmul.f32 0.25, %v73_v7  ;;  %v206_v47 = vsel %vm160_vm5, %v205_v30, %v201_v43 }
  0xa2   :  { %v86_v19 = vmul.f32 0.25, %v49_v8  ;;  %v161_v48 = vsel %vm160_vm5, %v159_v31, %v154_v44  ;;  %p369_p3 = por %p368_p2, %p367_p1 }
  0xa3   :  { %v210_v35 = vrot.slane %v94_v18, %v165_v11 }
  0xa4   :  { %v76_v24 = vpop.xlane.xlu1 %75  ;;  %v166_v36 = vrot.slane %v86_v19, %v165_v11  ;;  %p370_p4 = pnand %p369_p3, %p363_p0 }
  0xa5   :  { %v52_v25 = vpop.xlane.xlu0 %51  ;;  %v95_v28 = vmul.f32 0.25, %v76_v24  ;;  %v211_v49 = vsel %vm167_vm6, %v210_v35, %v206_v47 }
  0xa6   :  { %v87_v29 = vmul.f32 0.25, %v52_v25  ;;  %v168_v50 = vsel %vm167_vm6, %v166_v36, %v161_v48 }
  0xa7   :  { %v215_v39 = vrot.slane %v95_v28, %v172_v14 }
  0xa8   :  { %v173_v40 = vrot.slane %v87_v29, %v172_v14  ;;  %v79_v41 = vpop.xlane.xlu1 %78 }
  0xa9   :  { %v55_v42 = vpop.xlane.xlu0 %54  ;;  %v96_v45 = vmul.f32 0.25, %v79_v41  ;;  %v216_v53 = vsel %vm174_vm7, %v215_v39, %v211_v49 }
  0xaa   :  { %v88_v46 = vmul.f32 0.25, %v55_v42  ;;  %v175_v54 = vsel %vm174_vm7, %v173_v40, %v168_v50 }
  0xab   :  { %v220_v51 = vrot.slane %v96_v45, %v179_v32 }
  0xac   :  { %v180_v52 = vrot.slane %v88_v46, %v179_v32 }
  0xad   :  { %v221_v56 = vsel %vm181_vm8, %v220_v51, %v216_v53 }
  0xae   :  { %v182_v55 = vsel %vm181_vm8, %v180_v52, %v175_v54 }
  0xaf   :  { %v223_v57 = vsel %vm222_vm9, %v221_v56, %v182_v55 }
  0xb0   :  { %353 = vmatmul.mubr.msk.f32.vlgmr.msra.gmra.mxu0 %vm224_vm10, %v223_v57 }
 0x170   :  { %v293_v59 = vpop.f32.mrf.mxu0 }
 0x171   :  { %v294_v60 = vadd.f32 %v325_v58, %v293_v59 }
 0x172   :  { %v354_v61 = vpop.f32.mrf.mxu0 }
 0x173   :  { %v298_v62 = vsel %vm297_vm11, %v294_v60, -inf }
 0x174   :  { %299 = vmax.xlane.f32.xlu0 %v298_v62 }
 0x1fd   :  { %v300_v63 = vpop.xlane.xlu0 %299 }
 0x1fe   :  { %v301_v0 = vsub.f32 %v294_v60, %v300_v63 }
 0x200   :  { %v302_v1 = vmul.f32 1.442695, %v301_v0 }
 0x202   :  { %358 = vpow2.f32 %v302_v1 }
 0x20f   :  { %v359_v2 = vpop.eup %358 }
 0x210   :  { %v304_v3 = vsel %vm297_vm11, %v359_v2, 0.0 }
 0x211   :  { %305 = vadd.xlane.f32.xlu1 %v304_v3 }
 0x29a   :  { %v306_v4 = vpop.xlane.xlu1 %305 }
 0x29b   :  { %360 = vlog2.f32 %v306_v4 }
 0x2a8   :  { %v361_v5 = vpop.eup %360 }
 0x2a9   :  { %v308_v6 = vmul.f32 0.6931472, %v361_v5 }
 0x2ab   :  { %v309_v7 = vsub.f32 %v301_v0, %v308_v6 }
 0x2ad   :  { %310 = vst.msk [vmem:[#allocation2] sm:$0x3] %vm297_vm11, %v309_v7 }
 0x2ae   :  { %373 = shalt.err (!%p370_p4)
}
 0x2af   :  { %320 = dma.vmem_to_hbm [thread:$0]  %s318_s2, 32, %s519_s3, [#allocation3]  }
 0x2b0   :  { %382 = dma.done.wait [#allocation3], 32  }
 0x2b1   :  { %383 = vsyncadd [#allocation3], 4294967264 }
 0x2b2   :  { %324 = vsyncpa [#allocation3], 1 }

// kernel: _lambda_.44
= control target key start
LH: loop header
LB: loop body
LE: loop exit
PB: predicated region body
PF: predicated region fallthrough
CT: control target
= control target key end

     0   :  { %vm129_vm0 = vcmask 1041408   ;;  %vm104_vm1 = vcmask 31744   ;;  %vm480_vm2 = vcmask 15360   ;;  %vm1919_vm3 = vcmask 1040384   ;;  %s4116_s4 = inlined_call_operand.vmem [shape: f32[2,4,2], index: 4, kind: input, shape index: {}]   ;;  %s4117_s1 = inlined_call_operand.vmem [shape: f32[128,4], index: 1, kind: input, shape index: {}]   ;;  %s4118_s3 = inlined_call_operand.vmem [shape: f32[2,4,2], index: 3, kind: input, shape index: {}]   ;;  %s4119_s0 = inlined_call_operand.vmem [shape: f32[128,4], index: 0, kind: input, shape index: {}]   ;;  %s4120_s6 = inlined_call_operand.vmem [shape: f32[2,1,2], index: 6, kind: input, shape index: {}]   ;;  %s4121_s7 = inlined_call_operand.vmem [shape: f32[2,1,2], index: 7, kind: input, shape index: {}]   ;;  %s4122_s5 = inlined_call_operand.vmem [shape: f32[2,4,2], index: 5, kind: input, shape index: {}]   ;;  %s4123_s2 = inlined_call_operand.vmem [shape: f32[128,128], index: 2, kind: input, shape index: {}]   ;;  %s4124_s8 = inlined_call_operand.vmem [shape: f32[2,1,2], index: 8, kind: input, shape index: {}]   ;;  %s4125_s9 = inlined_call_operand.vmem [shape: f32[2,2,4], index: 9, kind: input, shape index: {}]   ;;  %s4126_s10 = inlined_call_operand.vmem [shape: f32[1,4], index: 10, kind: input, shape index: {}]   ;;  %s4127_s11 = inlined_call_operand.vmem [shape: f32[128,4], index: 11, kind: output, shape index: {}]  }
   0x1   :  { %v230_v0 = vld [vmem:[%s4116_s4] sm:$0xf]  ;;  %v56_v3 = vld [vmem:[%s4117_s1 + $0x8] sm:$0xff]  ;;  %v57_v4 = vld [vmem:[%s4117_s1 + $0x10] sm:$0xff] }
   0x2   :  { %v55_v1 = vld [vmem:[%s4117_s1] sm:$0xff]  ;;  %v239_v2 = vpack.c.bf16 %v230_v0, %v230_v0  ;;  %v58_v5 = vld [vmem:[%s4117_s1 + $0x18] sm:$0xff]  ;;  %v60_v8 = vld [vmem:[%s4117_s1 + $0x28] sm:$0xff] }
   0x3   :  { %v3108_v6 = vpack.c.bf16 %v56_v3, %v55_v1  ;;  %v59_v7 = vld [vmem:[%s4117_s1 + $0x20] sm:$0xff]  ;;  %v3118_v10 = vpack.c.bf16 %v58_v5, %v57_v4  ;;  %v61_v12 = vld [vmem:[%s4117_s1 + $0x30] sm:$0xff]  ;;  %v40_v16 = vld [vmem:[%s4119_s0 + $0x8] sm:$0xff] }
   0x4   :  { %2850 = vmatprep.subr.msk.bf16.mxu1 %vm129_vm0, %v239_v2  ;;  %v272_v9 = vsel %vm129_vm0, %v239_v2, 0  ;;  %v3122_v11 = vpack.c.bf16 %v60_v8, %v59_v7  ;;  %v87_v13 = vld [vmem:[%s4118_s3] sm:$0xf]  ;;  %v41_v17 = vld [vmem:[%s4119_s0 + $0x10] sm:$0xff]  ;;  %v42_v18 = vld [vmem:[%s4119_s0 + $0x18] sm:$0xff] }
   0x5   :  { %2548 = vmatpush3.bf16.msra.mxu1 %v272_v9  ;;  %2549 = vmatprep.mubr.msk.bf16.mxu1 %vm104_vm1, %v3108_v6  ;;  %v39_v14 = vld [vmem:[%s4119_s0] sm:$0xff]  ;;  %v96_v15 = vpack.c.bf16 %v87_v13, %v87_v13  ;;  %v62_v19 = vld [vmem:[%s4117_s1 + $0x38] sm:$0xff]  ;;  %v44_v22 = vld [vmem:[%s4119_s0 + $0x28] sm:$0xff]  ;;  %v3165_v26 = vpack.c.bf16 %v42_v18, %v41_v17 }
   0x6   :  { %v3149_v20 = vpack.c.bf16 %v40_v16, %v39_v14  ;;  %v43_v21 = vld [vmem:[%s4119_s0 + $0x20] sm:$0xff]  ;;  %v64_v24 = vld [vmem:[%s4117_s1 + $0x48] sm:$0xff]  ;;  %v3171_v28 = vpack.c.bf16 %v62_v19, %v61_v12  ;;  %v45_v30 = vld [vmem:[%s4119_s0 + $0x30] sm:$0xff] }
   0x7   :  { %v63_v23 = vld [vmem:[%s4117_s1 + $0x40] sm:$0xff]  ;;  %2849 = vmatprep.subr.msk.bf16.mxu0 %vm129_vm0, %v96_v15  ;;  %v131_v25 = vsel %vm129_vm0, %v96_v15, 0  ;;  %v3169_v27 = vpack.c.bf16 %v44_v22, %v43_v21  ;;  %v46_v31 = vld [vmem:[%s4119_s0 + $0x38] sm:$0xff]  ;;  %v48_v33 = vld [vmem:[%s4119_s0 + $0x48] sm:$0xff] }
   0x8   :  { %2550 = vmatmul.mubr.msk.bf16.vlgmr.msra.gmra.mxu1 %vm104_vm1, %v3118_v10  ;;  %2530 = vmatpush3.bf16.msra.mxu0 %v131_v25  ;;  %v3173_v29 = vpack.c.bf16 %v64_v24, %v63_v23  ;;  %v47_v32 = vld [vmem:[%s4119_s0 + $0x40] sm:$0xff]  ;;  %v65_v34 = vld [vmem:[%s4117_s1 + $0x50] sm:$0xff]  ;;  %v66_v35 = vld [vmem:[%s4117_s1 + $0x58] sm:$0xff]  ;;  %v3207_v38 = vpack.c.bf16 %v46_v31, %v45_v30 }
   0x9   :  { %2553 = vmatprep.mubr.msk.bf16.mxu1 %vm104_vm1, %v3122_v11  ;;  %2531 = vmatprep.mubr.msk.bf16.mxu0 %vm104_vm1, %v3149_v20  ;;  %v67_v36 = vld [vmem:[%s4117_s1 + $0x60] sm:$0xff]  ;;  %v68_v37 = vld [vmem:[%s4117_s1 + $0x68] sm:$0xff]  ;;  %v3209_v39 = vpack.c.bf16 %v48_v33, %v47_v32  ;;  %v3211_v40 = vpack.c.bf16 %v66_v35, %v65_v34  ;;  %v49_v42 = vld [vmem:[%s4119_s0 + $0x50] sm:$0xff] }
   0xa   :  { %v3213_v41 = vpack.c.bf16 %v68_v37, %v67_v36  ;;  %v50_v43 = vld [vmem:[%s4119_s0 + $0x58] sm:$0xff]  ;;  %v51_v44 = vld [vmem:[%s4119_s0 + $0x60] sm:$0xff]  ;;  %v52_v45 = vld [vmem:[%s4119_s0 + $0x68] sm:$0xff] }
   0xb   :  { %2532 = vmatmul.mubr.msk.bf16.vlgmr.msra.gmra.mxu0 %vm104_vm1, %v3165_v26  ;;  %v69_v46 = vld [vmem:[%s4117_s1 + $0x70] sm:$0xff]  ;;  %v70_v47 = vld [vmem:[%s4117_s1 + $0x78] sm:$0xff]  ;;  %v3241_v48 = vpack.c.bf16 %v50_v43, %v49_v42  ;;  %v3243_v49 = vpack.c.bf16 %v52_v45, %v51_v44  ;;  %v3272_v57 = vld [vmem:[%s4120_s6] ss:$0 sm:$0xff] }
   0xc   :  { %2535 = vmatprep.mubr.msk.bf16.mxu0 %vm104_vm1, %v3169_v27  ;;  %v3245_v50 = vpack.c.bf16 %v70_v47, %v69_v46  ;;  %v53_v51 = vld [vmem:[%s4119_s0 + $0x70] sm:$0xff]  ;;  %v54_v52 = vld [vmem:[%s4119_s0 + $0x78] sm:$0xff]  ;;  %v2228_v12 = vld [vmem:[%s4121_s7] ss:$0 sm:$0xff] }
   0xd   :  { %v3259_v53 = vpack.c.bf16 %v54_v52, %v53_v51  ;;  %v2289_v45 = vld [vmem:[%s4116_s4 + $0x4] sm:$0xf] }
   0xe   :  { %v3320_v51 = vpack.c.bf16 %v2289_v45, %v2289_v45 }
  0x10   :  { %2554 = vmatmul.mubr.msk.bf16.gmra.mxu1 %vm104_vm1, %v3171_v28 }
  0x11   :  { %2557 = vmatprep.mubr.msk.bf16.mxu1 %vm104_vm1, %v3173_v29 }
  0x13   :  { %2536 = vmatmul.mubr.msk.bf16.gmra.mxu0 %vm104_vm1, %v3207_v38 }
  0x14   :  { %2539 = vmatprep.mubr.msk.bf16.mxu0 %vm104_vm1, %v3209_v39 }
  0x18   :  { %2558 = vmatmul.mubr.msk.bf16.gmra.mxu1 %vm104_vm1, %v3211_v40 }
  0x19   :  { %2561 = vmatprep.mubr.msk.bf16.mxu1 %vm104_vm1, %v3213_v41 }
  0x1b   :  { %2540 = vmatmul.mubr.msk.bf16.gmra.mxu0 %vm104_vm1, %v3241_v48 }
  0x1c   :  { %2543 = vmatprep.mubr.msk.bf16.mxu0 %vm104_vm1, %v3243_v49 }
  0x20   :  { %2562 = vmatmul.mubr.msk.bf16.gmra.mxu1 %vm104_vm1, %v3245_v50 }
  0x23   :  { %2544 = vmatmul.mubr.msk.bf16.gmra.mxu0 %vm104_vm1, %v3259_v53 }
  0x24   :  { %2567 = vmatprep.mubr.msk.bf16.mxu0 %vm104_vm1, %v3149_v20 }
  0xc8   :  { %v3265_v54 = vpop.f32.mrf.mxu1 }
  0xc9   :  { %v317_v42 = vadd.f32 %v3265_v54, %v2228_v12 }
  0xca   :  { %v3267_v55 = vpop.f32.mrf.mxu1 }
  0xcb   :  { %v2533_v59 = vpop.f32.mrf.mxu0  ;;  %v309_v47 = vadd.f32 %v2228_v12, %v3267_v55 }
  0xcc   :  { %v2552_v56 = vpop.f32.mrf.mxu1  ;;  %v3277_v60 = vadd.f32 %v2533_v59, %v3272_v57 }
  0xcd   :  { %v167_v62 = vpop.f32.mrf.mxu0  ;;  %v320_v36 = vadd.f32 %v2552_v56, %v2228_v12 }
  0xce   :  { %v3274_v58 = vpop.f32.mrf.mxu1  ;;  %v168_v63 = vadd.f32 %v3272_v57, %v167_v62 }
  0xcf   :  { %v2534_v30 = vpop.f32.mrf.mxu0  ;;  %v312_v44 = vadd.f32 %v2228_v12, %v3274_v58 }
  0xd0   :  { %v2555_v61 = vpop.f32.mrf.mxu1  ;;  %2615 = vmatprep.mubr.msk.f32.mxu1 %vm480_vm2, %v168_v63  ;;  %v179_v55 = vadd.f32 %v2534_v30, %v3272_v57  ;;  %v3393_v30 = vld [vmem:[%s4123_s2 + $0x8] sm:$0xff] }
  0xd1   :  { %v333_v25 = vadd.f32 %v2555_v61, %v2228_v12  ;;  %v170_v32 = vpop.f32.mrf.mxu0 }
  0xd2   :  { %v324_v0 = vpop.f32.mrf.mxu1  ;;  %v171_v54 = vadd.f32 %v3272_v57, %v170_v32 }
  0xd3   :  { %v2537_v33 = vpop.f32.mrf.mxu0  ;;  %v325_v34 = vadd.f32 %v2228_v12, %v324_v0 }
  0xd4   :  { %v2556_v1 = vpop.f32.mrf.mxu1  ;;  %v192_v62 = vadd.f32 %v2537_v33, %v3272_v57 }
  0xd5   :  { %v336_v24 = vadd.f32 %v2556_v1, %v2228_v12  ;;  %v183_v35 = vpop.f32.mrf.mxu0 }
  0xd6   :  { %v327_v2 = vpop.f32.mrf.mxu1  ;;  %v184_v58 = vadd.f32 %v3272_v57, %v183_v35 }
  0xd7   :  { %v328_v31 = vadd.f32 %v2228_v12, %v327_v2  ;;  %v2538_v37 = vpop.f32.mrf.mxu0 }
  0xd8   :  { %v2559_v3 = vpop.f32.mrf.mxu1 }
  0xd9   :  { %v349_v21 = vadd.f32 %v2559_v3, %v2228_v12  ;;  %v186_v43 = vpop.f32.mrf.mxu0 }
  0xda   :  { %v340_v4 = vpop.f32.mrf.mxu1  ;;  %v187_v61 = vadd.f32 %v3272_v57, %v186_v43 }
  0xdb   :  { %v341_v23 = vadd.f32 %v2228_v12, %v340_v4  ;;  %v2541_v46 = vpop.f32.mrf.mxu0 }
  0xdc   :  { %v2560_v5 = vpop.f32.mrf.mxu1  ;;  %v208_v3 = vadd.f32 %v2541_v46, %v3272_v57  ;;  %v3420_v46 = vld [vmem:[%s4123_s2 + $0x28] sm:$0xff] }
  0xdd   :  { %v352_v19 = vadd.f32 %v2560_v5, %v2228_v12  ;;  %v199_v52 = vpop.f32.mrf.mxu0 }
  0xde   :  { %v343_v7 = vpop.f32.mrf.mxu1  ;;  %v200_v0 = vadd.f32 %v3272_v57, %v199_v52 }
  0xdf   :  { %v344_v22 = vadd.f32 %v2228_v12, %v343_v7  ;;  %v2542_v56 = vpop.f32.mrf.mxu0 }
  0xe0   :  { %v2563_v8 = vpop.f32.mrf.mxu1  ;;  %v211_v7 = vadd.f32 %v2542_v56, %v3272_v57 }
  0xe1   :  { %v365_v15 = vadd.f32 %v2563_v8, %v2228_v12  ;;  %v202_v59 = vpop.f32.mrf.mxu0 }
  0xe2   :  { %v356_v9 = vpop.f32.mrf.mxu1  ;;  %v203_v2 = vadd.f32 %v3272_v57, %v202_v59 }
  0xe3   :  { %v357_v18 = vadd.f32 %v2228_v12, %v356_v9  ;;  %v2545_v63 = vpop.f32.mrf.mxu0 }
  0xe4   :  { %v2564_v13 = vpop.f32.mrf.mxu1 }
  0xe5   :  { %v368_v14 = vadd.f32 %v2564_v13, %v2228_v12  ;;  %v215_v1 = vpop.f32.mrf.mxu0 }
  0xe6   :  { %v359_v16 = vpop.f32.mrf.mxu1  ;;  %v216_v5 = vadd.f32 %v3272_v57, %v215_v1 }
  0xe7   :  { %2583 = vmatprep.subr.msk.mxu1 %vm480_vm2, %v368_v14  ;;  %v360_v17 = vadd.f32 %v2228_v12, %v359_v16  ;;  %v2546_v4 = vpop.f32.mrf.mxu0  ;;  %v224_v12 = vadd.f32 %v2545_v63, %v3272_v57 }
  0xe8   :  { %2584 = vmatpush3.xpose.msk.msra.mxu1 %vm480_vm2, %v368_v14  ;;  %v227_v13 = vadd.f32 %v2546_v4, %v3272_v57  ;;  %v371_v14 = vld [vmem:[%s4122_s5] sm:$0xf]  ;;  %v3456_v4 = vld [vmem:[%s4123_s2 + $0x48] sm:$0xff] }
  0xe9   :  { %2585 = vmatprep.subr.msk.mxu1 %vm480_vm2, %v365_v15  ;;  %v218_v8 = vpop.f32.mrf.mxu0 }
  0xea   :  { %v219_v9 = vadd.f32 %v3272_v57, %v218_v8  ;;  %v3465_v8 = vld [vmem:[%s4123_s2 + $0x50] sm:$0xff] }
  0xeb   :  { %4136 = vst [vmem:[#allocation3_spill] sm:$0xff] %v3465_v8 }
  0xec   :  { %2586 = vmatpush3.xpose.msk.msra.mxu1 %vm480_vm2, %v365_v15  ;;  %v372_v15 = vpack.c.bf16 %v371_v14, %v371_v14 }
  0xed   :  { %2587 = vmatprep.subr.msk.mxu1 %vm480_vm2, %v360_v17 }
  0xee   :  { %2851 = vmatprep.subr.msk.bf16.mxu0 %vm129_vm0, %v372_v15  ;;  %v381_v16 = vsel %vm129_vm0, %v372_v15, 0  ;;  %v3474_v15 = vld [vmem:[%s4123_s2 + $0x58] sm:$0xff] }
  0xef   :  { %2566 = vmatpush3.bf16.msra.mxu0 %v381_v16  ;;  %4137 = vst [vmem:[#allocation4_spill] sm:$0xff] %v3474_v15 }
  0xf0   :  { %2588 = vmatpush3.xpose.msk.msra.mxu1 %vm480_vm2, %v360_v17  ;;  %v3380_v17 = vld [vmem:[%s4123_s2] sm:$0xff] }
  0xf1   :  { %2589 = vmatprep.subr.msk.mxu1 %vm480_vm2, %v357_v18 }
  0xf2   :  { %2568 = vmatmul.mubr.msk.bf16.vlgmr.msra.gmra.mxu0 %vm104_vm1, %v3165_v26 }
  0xf3   :  { %2571 = vmatprep.mubr.msk.bf16.mxu0 %vm104_vm1, %v3169_v27 }
  0xf4   :  { %2590 = vmatpush3.xpose.msk.msra.mxu1 %vm480_vm2, %v357_v18 }
  0xf5   :  { %2591 = vmatprep.subr.msk.mxu1 %vm480_vm2, %v352_v19 }
  0xf8   :  { %2592 = vmatpush3.xpose.msk.msra.mxu1 %vm480_vm2, %v352_v19 }
  0xf9   :  { %2593 = vmatprep.subr.msk.mxu1 %vm480_vm2, %v349_v21 }
  0xfa   :  { %2572 = vmatmul.mubr.msk.bf16.gmra.mxu0 %vm104_vm1, %v3207_v38 }
  0xfb   :  { %2575 = vmatprep.mubr.msk.bf16.mxu0 %vm104_vm1, %v3209_v39 }
  0xfc   :  { %2594 = vmatpush3.xpose.msk.msra.mxu1 %vm480_vm2, %v349_v21  ;;  %v3385_v21 = vld [vmem:[%s4123_s2 + $0x18] sm:$0xff] }
  0xfd   :  { %2595 = vmatprep.subr.msk.mxu1 %vm480_vm2, %v344_v22 }
 0x100   :  { %2596 = vmatpush3.xpose.msk.msra.mxu1 %vm480_vm2, %v344_v22 }
 0x101   :  { %2597 = vmatprep.subr.msk.mxu1 %vm480_vm2, %v341_v23 }
 0x102   :  { %2576 = vmatmul.mubr.msk.bf16.gmra.mxu0 %vm104_vm1, %v3241_v48 }
 0x103   :  { %2579 = vmatprep.mubr.msk.bf16.mxu0 %vm104_vm1, %v3243_v49 }
 0x104   :  { %2598 = vmatpush3.xpose.msk.msra.mxu1 %vm480_vm2, %v341_v23 }
 0x105   :  { %2599 = vmatprep.subr.msk.mxu1 %vm480_vm2, %v336_v24 }
 0x108   :  { %2600 = vmatpush3.xpose.msk.msra.mxu1 %vm480_vm2, %v336_v24 }
 0x109   :  { %2601 = vmatprep.subr.msk.mxu1 %vm480_vm2, %v333_v25 }
 0x10a   :  { %2580 = vmatmul.mubr.msk.bf16.gmra.mxu0 %vm104_vm1, %v3259_v53 }
 0x10c   :  { %2602 = vmatpush3.xpose.msk.msra.mxu1 %vm480_vm2, %v333_v25 }
 0x10d   :  { %2603 = vmatprep.subr.msk.mxu1 %vm480_vm2, %v328_v31 }
 0x110   :  { %2604 = vmatpush3.xpose.msk.msra.mxu1 %vm480_vm2, %v328_v31 }
 0x111   :  { %2605 = vmatprep.subr.msk.mxu1 %vm480_vm2, %v325_v34 }
 0x114   :  { %2606 = vmatpush3.xpose.msk.msra.mxu1 %vm480_vm2, %v325_v34  ;;  %v3402_v34 = vld [vmem:[%s4123_s2 + $0x10] sm:$0xff] }
 0x115   :  { %2607 = vmatprep.subr.msk.mxu1 %vm480_vm2, %v320_v36 }
 0x118   :  { %2608 = vmatpush3.xpose.msk.msra.mxu1 %vm480_vm2, %v320_v36 }
 0x119   :  { %2609 = vmatprep.subr.msk.mxu1 %vm480_vm2, %v317_v42 }
 0x11c   :  { %2610 = vmatpush3.xpose.msk.msra.mxu1 %vm480_vm2, %v317_v42 }
 0x11d   :  { %2611 = vmatprep.subr.msk.mxu1 %vm480_vm2, %v312_v44 }
 0x120   :  { %2612 = vmatpush3.xpose.msk.msra.mxu1 %vm480_vm2, %v312_v44 }
 0x121   :  { %2613 = vmatprep.subr.msk.mxu1 %vm480_vm2, %v309_v47 }
 0x124   :  { %2614 = vmatpush3.xpose.msk.msra.mxu1 %vm480_vm2, %v309_v47 }
 0x125   :  { %2853 = vmatprep.subr.msk.bf16.mxu1 %vm129_vm0, %v3320_v51 }
 0x127   :  { %2616 = vmatmul.mubr.msk.f32.vlgmr.msra.gmra.mxu1 %vm480_vm2, %v171_v54  ;;  %v3429_v54 = vld [vmem:[%s4123_s2 + $0x30] sm:$0xff] }
 0x128   :  { %2618 = vmatprep.mubr.msk.f32.mxu1 %vm480_vm2, %v3277_v60  ;;  %v195_v60 = vadd.f32 %v2538_v37, %v3272_v57  ;;  %v3411_v37 = vld [vmem:[%s4123_s2 + $0x20] sm:$0xff] }
 0x12b   :  { %2619 = vmatmul.mubr.msk.f32.gmra.mxu1 %vm480_vm2, %v179_v55 }
 0x12c   :  { %2621 = vmatprep.mubr.msk.f32.mxu1 %vm480_vm2, %v184_v58 }
 0x12f   :  { %2622 = vmatmul.mubr.msk.f32.gmra.mxu1 %vm480_vm2, %v187_v61  ;;  %v3438_v61 = vld [vmem:[%s4123_s2 + $0x38] sm:$0xff] }
 0x130   :  { %2624 = vmatprep.mubr.msk.f32.mxu1 %vm480_vm2, %v192_v62 }
 0x133   :  { %2625 = vmatmul.mubr.msk.f32.gmra.mxu1 %vm480_vm2, %v195_v60 }
 0x134   :  { %2627 = vmatprep.mubr.msk.f32.mxu1 %vm480_vm2, %v200_v0  ;;  %v3447_v0 = vld [vmem:[%s4123_s2 + $0x40] sm:$0xff] }
 0x135   :  { %4135 = vst [vmem:[#allocation2_spill] sm:$0xff] %v3447_v0 }
 0x137   :  { %2628 = vmatmul.mubr.msk.f32.gmra.mxu1 %vm480_vm2, %v203_v2 }
 0x138   :  { %2630 = vmatprep.mubr.msk.f32.mxu1 %vm480_vm2, %v208_v3 }
 0x13b   :  { %2631 = vmatmul.mubr.msk.f32.gmra.mxu1 %vm480_vm2, %v211_v7 }
 0x13c   :  { %2633 = vmatprep.mubr.msk.f32.mxu1 %vm480_vm2, %v216_v5 }
 0x13f   :  { %2634 = vmatmul.mubr.msk.f32.gmra.mxu1 %vm480_vm2, %v219_v9 }
 0x140   :  { %2636 = vmatprep.mubr.msk.f32.mxu1 %vm480_vm2, %v224_v12 }
 0x143   :  { %2637 = vmatmul.mubr.msk.f32.gmra.mxu1 %vm480_vm2, %v227_v13 }
 0x144   :  { %2691 = vmatprep.mubr.msk.bf16.mxu1 %vm104_vm1, %v3108_v6 }
 0x1e7   :  { %v2617_v6 = vpop.f32.mrf.mxu1 }
 0x1e8   :  { %v723_v22 = vmul.f32 0.70710677, %v2617_v6 }
 0x1e9   :  { %v643_v57 = vpop.f32.mrf.mxu1 }
 0x1ea   :  { %v722_v18 = vmul.f32 0.70710677, %v643_v57  ;;  %v3406_v35 = vadd.f32 %v723_v22, %v3393_v30  ;;  %v3483_v57 = vld [vmem:[%s4123_s2 + $0x60] sm:$0xff] }
 0x1eb   :  { %v2620_v19 = vpop.f32.mrf.mxu1  ;;  %4138 = vst [vmem:[#allocation5_spill] sm:$0xff] %v3483_v57 }
 0x1ec   :  { %v725_v23 = vmul.f32 0.70710677, %v2620_v19  ;;  %v3388_v24 = vadd.f32 %v722_v18, %v3380_v17 }
 0x1ed   :  { %v653_v25 = vpop.f32.mrf.mxu1 }
 0x1ee   :  { %v724_v31 = vmul.f32 0.70710677, %v653_v25  ;;  %754 = vmax.xlane.f32.xlu0 %v3388_v24  ;;  %v3397_v32 = vadd.f32 %v725_v23, %v3385_v21  ;;  %v3492_v25 = vld [vmem:[%s4123_s2 + $0x68] sm:$0xff] }
 0x1ef   :  { %v2623_v33 = vpop.f32.mrf.mxu1  ;;  %4139 = vst [vmem:[#allocation6_spill] sm:$0xff] %v3492_v25 }
 0x1f0   :  { %760 = vmax.xlane.f32.xlu1 %v3397_v32  ;;  %v727_v42 = vmul.f32 0.70710677, %v2623_v33  ;;  %v3415_v44 = vadd.f32 %v724_v31, %v3402_v34 }
 0x1f1   :  { %v663_v36 = vpop.f32.mrf.mxu1 }
 0x1f2   :  { %v726_v43 = vmul.f32 0.70710677, %v663_v36  ;;  %756 = vmax.xlane.f32.xlu0 %v3406_v35  ;;  %v3433_v55 = vadd.f32 %v727_v42, %v3420_v46  ;;  %v3501_v36 = vld [vmem:[%s4123_s2 + $0x70] sm:$0xff] }
 0x1f3   :  { %v2626_v45 = vpop.f32.mrf.mxu1  ;;  %4140 = vst [vmem:[#allocation7_spill] sm:$0xff] %v3501_v36 }
 0x1f4   :  { %758 = vmax.xlane.f32.xlu1 %v3415_v44  ;;  %v3424_v47 = vadd.f32 %v726_v43, %v3411_v37  ;;  %v729_v56 = vmul.f32 0.70710677, %v2626_v45 }
 0x1f5   :  { %v673_v52 = vpop.f32.mrf.mxu1 }
 0x1f6   :  { %v728_v58 = vmul.f32 0.70710677, %v673_v52  ;;  %762 = vmax.xlane.f32.xlu0 %v3424_v47  ;;  %v3451_v2 = vadd.f32 %v729_v56, %v3438_v61  ;;  %v3510_v52 = vld [vmem:[%s4123_s2 + $0x78] sm:$0xff] }
 0x1f7   :  { %v2629_v59 = vpop.f32.mrf.mxu1  ;;  %4141 = vst [vmem:[#allocation8_spill] sm:$0xff] %v3510_v52 }
 0x1f8   :  { %764 = vmax.xlane.f32.xlu1 %v3433_v55  ;;  %v3442_v62 = vadd.f32 %v728_v58, %v3429_v54  ;;  %v731_v60 = vmul.f32 0.70710677, %v2629_v59  ;;  %v1144_v59 = vsel %vm129_vm0, %v3320_v51, 0  ;;  %v2569_v51 = vpop.f32.mrf.mxu0 }
 0x1f9   :  { %v683_v63 = vpop.f32.mrf.mxu1  ;;  %2690 = vmatpush3.bf16.msra.mxu1 %v1144_v59 }
 0x1fa   :  { %v730_v1 = vmul.f32 0.70710677, %v683_v63  ;;  %766 = vmax.xlane.f32.xlu0 %v3442_v62  ;;  %v3469_v13 = vadd.f32 %v731_v60, %v3456_v4  ;;  %v417_v63 = vpop.f32.mrf.mxu0 }
 0x1fb   :  { %v2632_v3 = vpop.f32.mrf.mxu1 }
 0x1fc   :  { %768 = vmax.xlane.f32.xlu1 %v3451_v2  ;;  %v3460_v5 = vadd.f32 %v730_v1, %v3447_v0  ;;  %v733_v9 = vmul.f32 0.70710677, %v2632_v3  ;;  %2692 = vmatmul.mubr.msk.bf16.vlgmr.msra.gmra.mxu1 %vm104_vm1, %v3118_v10  ;;  %v2570_v10 = vpop.f32.mrf.mxu0 }
 0x1fd   :  { %v693_v7 = vpop.f32.mrf.mxu1  ;;  %2695 = vmatprep.mubr.msk.bf16.mxu1 %vm104_vm1, %v3122_v11 }
 0x1fe   :  { %v732_v12 = vmul.f32 0.70710677, %v693_v7  ;;  %770 = vmax.xlane.f32.xlu0 %v3460_v5  ;;  %v3487_v22 = vadd.f32 %v733_v9, %v3474_v15  ;;  %v420_v60 = vpop.f32.mrf.mxu0 }
 0x1ff   :  { %v2635_v14 = vpop.f32.mrf.mxu1 }
 0x200   :  { %772 = vmax.xlane.f32.xlu1 %v3469_v13  ;;  %v3478_v16 = vadd.f32 %v732_v12, %v3465_v8  ;;  %v735_v18 = vmul.f32 0.70710677, %v2635_v14  ;;  %v2573_v11 = vpop.f32.mrf.mxu0 }
 0x201   :  { %v703_v6 = vpop.f32.mrf.mxu1 }
 0x202   :  { %v734_v19 = vmul.f32 0.70710677, %v703_v6  ;;  %774 = vmax.xlane.f32.xlu0 %v3478_v16  ;;  %v3505_v45 = vadd.f32 %v735_v18, %v3492_v25  ;;  %v433_v1 = vpop.f32.mrf.mxu0 }
 0x203   :  { %v2638_v23 = vpop.f32.mrf.mxu1 }
 0x204   :  { %776 = vmax.xlane.f32.xlu1 %v3487_v22  ;;  %v3496_v31 = vadd.f32 %v734_v19, %v3483_v57  ;;  %v737_v42 = vmul.f32 0.70710677, %v2638_v23  ;;  %2696 = vmatmul.mubr.msk.bf16.gmra.mxu1 %vm104_vm1, %v3171_v28  ;;  %v2574_v3 = vpop.f32.mrf.mxu0 }
 0x205   :  { %v713_v33 = vpop.f32.mrf.mxu1  ;;  %2699 = vmatprep.mubr.msk.bf16.mxu1 %vm104_vm1, %v3173_v29 }
 0x206   :  { %v736_v43 = vmul.f32 0.70710677, %v713_v33  ;;  %778 = vmax.xlane.f32.xlu0 %v3496_v31  ;;  %v3518_v58 = vadd.f32 %v737_v42, %v3510_v52  ;;  %v436_v28 = vpop.f32.mrf.mxu0 }
 0x208   :  { %780 = vmax.xlane.f32.xlu1 %v3505_v45  ;;  %v3514_v56 = vadd.f32 %v736_v43, %v3501_v36  ;;  %v2577_v7 = vpop.f32.mrf.mxu0 }
 0x20a   :  { %782 = vmax.xlane.f32.xlu0 %v3514_v56  ;;  %v449_v9 = vpop.f32.mrf.mxu0 }
 0x20c   :  { %784 = vmax.xlane.f32.xlu1 %v3518_v58  ;;  %2700 = vmatmul.mubr.msk.bf16.gmra.mxu1 %vm104_vm1, %v3211_v40  ;;  %v2578_v29 = vpop.f32.mrf.mxu0  ;;  %v2237_v40 = vld [vmem:[%s4124_s8] ss:$0 sm:$0xff] }
 0x20d   :  { %2703 = vmatprep.mubr.msk.bf16.mxu1 %vm104_vm1, %v3213_v41  ;;  %v458_v33 = vadd.f32 %v2577_v7, %v2237_v40  ;;  %v461_v42 = vadd.f32 %v2578_v29, %v2237_v40  ;;  %v450_v52 = vadd.f32 %v2237_v40, %v449_v9  ;;  %v442_v8 = vadd.f32 %v2573_v11, %v2237_v40 }
 0x20e   :  { %v452_v12 = vpop.f32.mrf.mxu0  ;;  %v445_v15 = vadd.f32 %v2574_v3, %v2237_v40  ;;  %v426_v7 = vadd.f32 %v2569_v51, %v2237_v40  ;;  %v429_v29 = vadd.f32 %v2570_v10, %v2237_v40  ;;  %v418_v9 = vadd.f32 %v2237_v40, %v417_v63 }
 0x20f   :  { %v911_v57 = vpack.c.bf16 %v461_v42, %v458_v33  ;;  %v453_v25 = vadd.f32 %v2237_v40, %v452_v12  ;;  %v421_v12 = vadd.f32 %v2237_v40, %v420_v60 }
 0x210   :  { %v2581_v41 = vpop.f32.mrf.mxu0 }
 0x211   :  { %v474_v6 = vadd.f32 %v2581_v41, %v2237_v40  ;;  %v910_v0 = vpack.c.bf16 %v453_v25, %v450_v52  ;;  %v434_v41 = vadd.f32 %v2237_v40, %v433_v1 }
 0x212   :  { %v465_v14 = vpop.f32.mrf.mxu0 }
 0x213   :  { %v466_v19 = vadd.f32 %v2237_v40, %v465_v14  ;;  %v909_v14 = vpack.c.bf16 %v445_v15, %v442_v8 }
 0x214   :  { %2704 = vmatmul.mubr.msk.bf16.gmra.mxu1 %vm104_vm1, %v3245_v50  ;;  %v2582_v18 = vpop.f32.mrf.mxu0 }
 0x215   :  { %v477_v50 = vadd.f32 %v2582_v18, %v2237_v40  ;;  %v437_v18 = vadd.f32 %v2237_v40, %v436_v28 }
 0x216   :  { %v468_v23 = vpop.f32.mrf.mxu0 }
 0x217   :  { %v913_v43 = vpack.c.bf16 %v477_v50, %v474_v6  ;;  %v469_v59 = vadd.f32 %v2237_v40, %v468_v23  ;;  %v908_v6 = vpack.c.bf16 %v437_v18, %v434_v41 }
 0x219   :  { %v912_v36 = vpack.c.bf16 %v469_v59, %v466_v19  ;;  %2639 = vmatprep.subr.bf16.mxu0 %v913_v43  ;;  %v907_v19 = vpack.c.bf16 %v429_v29, %v426_v7 }
 0x21a   :  { %2640 = vmatpush3.bf16.msra.mxu0 %v913_v43 }
 0x21b   :  { %2641 = vmatprep.subr.bf16.mxu0 %v912_v36 }
 0x21e   :  { %2642 = vmatpush3.bf16.msra.mxu0 %v912_v36  ;;  %v906_v36 = vpack.c.bf16 %v421_v12, %v418_v9 }
 0x21f   :  { %2643 = vmatprep.subr.bf16.mxu0 %v911_v57 }
 0x222   :  { %2644 = vmatpush3.bf16.msra.mxu0 %v911_v57  ;;  %v2278_v57 = vld [vmem:[%s4118_s3 + $0x4] sm:$0xf] }
 0x223   :  { %2645 = vmatprep.subr.bf16.mxu0 %v910_v0  ;;  %v3543_v8 = vpack.c.bf16 %v2278_v57, %v2278_v57 }
 0x226   :  { %2646 = vmatpush3.bf16.msra.mxu0 %v910_v0 }
 0x227   :  { %2647 = vmatprep.subr.bf16.mxu0 %v909_v14 }
 0x22a   :  { %2648 = vmatpush3.bf16.msra.mxu0 %v909_v14 }
 0x22b   :  { %2649 = vmatprep.subr.bf16.mxu0 %v908_v6 }
 0x22e   :  { %2650 = vmatpush3.bf16.msra.mxu0 %v908_v6 }
 0x22f   :  { %2651 = vmatprep.subr.bf16.mxu0 %v907_v19 }
 0x232   :  { %2652 = vmatpush3.bf16.msra.mxu0 %v907_v19 }
 0x233   :  { %2653 = vmatprep.subr.bf16.mxu0 %v906_v36 }
 0x236   :  { %2654 = vmatpush3.bf16.msra.mxu0 %v906_v36 }
 0x237   :  { %2852 = vmatprep.subr.msk.bf16.mxu0 %vm129_vm0, %v3543_v8 }
 0x277   :  { %v755_v0 = vpop.xlane.xlu0 %754 }
 0x278   :  { %v786_v15 = vsub.f32 %v3388_v24, %v755_v0 }
 0x279   :  { %v761_v25 = vpop.xlane.xlu1 %760 }
 0x27a   :  { %v802_v52 = vmul.f32 1.442695, %v786_v15  ;;  %v789_v63 = vsub.f32 %v3397_v32, %v761_v25 }
 0x27b   :  { %v757_v51 = vpop.xlane.xlu0 %756 }
 0x27c   :  { %2857 = vpow2.f32 %v802_v52  ;;  %v787_v10 = vsub.f32 %v3406_v35, %v757_v51  ;;  %v808_v28 = vmul.f32 1.442695, %v789_v63 }
 0x27d   :  { %v759_v60 = vpop.xlane.xlu1 %758 }
 0x27e   :  { %v804_v11 = vmul.f32 1.442695, %v787_v10  ;;  %v788_v1 = vsub.f32 %v3415_v44, %v759_v60 }
 0x27f   :  { %v763_v3 = vpop.xlane.xlu0 %762 }
 0x280   :  { %2859 = vpow2.f32 %v804_v11  ;;  %v806_v40 = vmul.f32 1.442695, %v788_v1  ;;  %v790_v50 = vsub.f32 %v3424_v47, %v763_v3 }
 0x281   :  { %v765_v23 = vpop.xlane.xlu1 %764 }
 0x282   :  { %2861 = vpow2.f32 %v806_v40  ;;  %v810_v24 = vmul.f32 1.442695, %v790_v50  ;;  %v791_v33 = vsub.f32 %v3433_v55, %v765_v23 }
 0x283   :  { %v767_v42 = vpop.xlane.xlu0 %766  ;;  %2863 = vpow2.f32 %v808_v28 }
 0x284   :  { %v812_v32 = vmul.f32 1.442695, %v791_v33  ;;  %v792_v35 = vsub.f32 %v3442_v62, %v767_v42  ;;  %2865 = vpow2.f32 %v810_v24 }
 0x285   :  { %v769_v43 = vpop.xlane.xlu1 %768 }
 0x286   :  { %v814_v59 = vmul.f32 1.442695, %v792_v35  ;;  %v793_v44 = vsub.f32 %v3451_v2, %v769_v43  ;;  %2867 = vpow2.f32 %v812_v32 }
 0x287   :  { %v771_v41 = vpop.xlane.xlu0 %770 }
 0x288   :  { %v816_v14 = vmul.f32 1.442695, %v793_v44  ;;  %v794_v47 = vsub.f32 %v3460_v5, %v771_v41  ;;  %2869 = vpow2.f32 %v814_v59 }
 0x289   :  { %v3556_v18 = vpop.eup %2857  ;;  %v773_v7 = vpop.xlane.xlu1 %772 }
 0x28a   :  { %v818_v55 = vmul.f32 1.442695, %v794_v47  ;;  %v795_v29 = vsub.f32 %v3469_v13, %v773_v7  ;;  %834 = vadd.xlane.f32.xlu0 %v3556_v18  ;;  %2871 = vpow2.f32 %v816_v14 }
 0x28b   :  { %v775_v62 = vpop.xlane.xlu0 %774 }
 0x28c   :  { %v820_v6 = vmul.f32 1.442695, %v795_v29  ;;  %v796_v9 = vsub.f32 %v3478_v16, %v775_v62  ;;  %2873 = vpow2.f32 %v818_v55 }
 0x28d   :  { %v3561_v2 = vpop.eup %2859  ;;  %v777_v19 = vpop.xlane.xlu1 %776 }
 0x28e   :  { %v822_v12 = vmul.f32 1.442695, %v796_v9  ;;  %v797_v5 = vsub.f32 %v3487_v22, %v777_v19  ;;  %836 = vadd.xlane.f32.xlu1 %v3561_v2  ;;  %2875 = vpow2.f32 %v820_v6  ;;  %v3622_v9 = vld [vmem:[%s4121_s7 + $0x1] ss:$0 sm:$0xff] }
 0x28f   :  { %v3565_v36 = vpop.eup %2861  ;;  %v779_v57 = vpop.xlane.xlu0 %778 }
 0x290   :  { %v824_v13 = vmul.f32 1.442695, %v797_v5  ;;  %v798_v0 = vsub.f32 %v3496_v31, %v779_v57  ;;  %838 = vadd.xlane.f32.xlu0 %v3565_v36  ;;  %v3569_v15 = vpop.eup %2863  ;;  %2877 = vpow2.f32 %v822_v12 }
 0x291   :  { %v781_v16 = vpop.xlane.xlu1 %780  ;;  %v3573_v22 = vpop.eup %2865 }
 0x292   :  { %v826_v25 = vmul.f32 1.442695, %v798_v0  ;;  %v799_v52 = vsub.f32 %v3505_v45, %v781_v16  ;;  %840 = vadd.xlane.f32.xlu1 %v3569_v15  ;;  %2879 = vpow2.f32 %v824_v13 }
 0x293   :  { %v783_v51 = vpop.xlane.xlu0 %782  ;;  %v3577_v31 = vpop.eup %2867 }
 0x294   :  { %v828_v63 = vmul.f32 1.442695, %v799_v52  ;;  %v800_v10 = vsub.f32 %v3514_v56, %v783_v51  ;;  %842 = vadd.xlane.f32.xlu0 %v3573_v22  ;;  %2881 = vpow2.f32 %v826_v25 }
 0x295   :  { %v785_v60 = vpop.xlane.xlu1 %784  ;;  %v3581_v45 = vpop.eup %2869 }
 0x296   :  { %v830_v11 = vmul.f32 1.442695, %v800_v10  ;;  %v801_v1 = vsub.f32 %v3518_v58, %v785_v60  ;;  %844 = vadd.xlane.f32.xlu1 %v3577_v31  ;;  %2883 = vpow2.f32 %v828_v63 }
 0x297   :  { %v3584_v28 = vpop.eup %2871 }
 0x298   :  { %v832_v3 = vmul.f32 1.442695, %v801_v1  ;;  %846 = vadd.xlane.f32.xlu0 %v3581_v45  ;;  %2885 = vpow2.f32 %v830_v11 }
 0x299   :  { %v3587_v56 = vpop.eup %2873 }
 0x29a   :  { %848 = vadd.xlane.f32.xlu1 %v3584_v28  ;;  %2887 = vpow2.f32 %v832_v3 }
 0x29b   :  { %v3590_v40 = vpop.eup %2875 }
 0x29c   :  { %850 = vadd.xlane.f32.xlu0 %v3587_v56 }
 0x29d   :  { %v3593_v58 = vpop.eup %2877 }
 0x29e   :  { %852 = vadd.xlane.f32.xlu1 %v3590_v40 }
 0x29f   :  { %v3596_v50 = vpop.eup %2879 }
 0x2a0   :  { %854 = vadd.xlane.f32.xlu0 %v3593_v58 }
 0x2a1   :  { %v3599_v23 = vpop.eup %2881 }
 0x2a2   :  { %856 = vadd.xlane.f32.xlu1 %v3596_v50 }
 0x2a3   :  { %v3602_v24 = vpop.eup %2883 }
 0x2a4   :  { %858 = vadd.xlane.f32.xlu0 %v3599_v23 }
 0x2a5   :  { %v3605_v33 = vpop.eup %2885 }
 0x2a6   :  { %860 = vadd.xlane.f32.xlu1 %v3602_v24 }
 0x2a7   :  { %v3608_v42 = vpop.eup %2887 }
 0x2a8   :  { %862 = vadd.xlane.f32.xlu0 %v3605_v33 }
 0x2aa   :  { %864 = vadd.xlane.f32.xlu1 %v3608_v42 }
 0x2bc   :  { %v3611_v32 = vpop.f32.mrf.mxu1 }
 0x2be   :  { %v3613_v35 = vpop.f32.mrf.mxu1 }
 0x2c0   :  { %v3615_v43 = vpop.f32.mrf.mxu1 }
 0x2c2   :  { %v3617_v59 = vpop.f32.mrf.mxu1 }
 0x2c4   :  { %v2697_v44 = vpop.f32.mrf.mxu1 }
 0x2c6   :  { %v1196_v41 = vpop.f32.mrf.mxu1 }
 0x2c8   :  { %v2698_v14 = vpop.f32.mrf.mxu1 }
 0x2c9   :  { %v1208_v11 = vadd.f32 %v2698_v14, %v3622_v9 }
 0x2ca   :  { %v1199_v47 = vpop.f32.mrf.mxu1 }
 0x2cb   :  { %v1200_v14 = vadd.f32 %v3622_v9, %v1199_v47 }
 0x2cc   :  { %v2701_v7 = vpop.f32.mrf.mxu1 }
 0x2cd   :  { %v1221_v52 = vadd.f32 %v2701_v7, %v3622_v9  ;;  %v1205_v7 = vadd.f32 %v2697_v44, %v3622_v9  ;;  %v1197_v44 = vadd.f32 %v3622_v9, %v1196_v41 }
 0x2ce   :  { %v1212_v55 = vpop.f32.mrf.mxu1 }
 0x2cf   :  { %v1213_v10 = vadd.f32 %v3622_v9, %v1212_v55 }
 0x2d0   :  { %v2702_v29 = vpop.f32.mrf.mxu1 }
 0x2d1   :  { %v1224_v25 = vadd.f32 %v2702_v29, %v3622_v9 }
 0x2d2   :  { %v1215_v62 = vpop.f32.mrf.mxu1 }
 0x2d3   :  { %v1216_v51 = vadd.f32 %v3622_v9, %v1215_v62 }
 0x2d4   :  { %v2705_v6 = vpop.f32.mrf.mxu1 }
 0x2d5   :  { %v1237_v5 = vadd.f32 %v2705_v6, %v3622_v9 }
 0x2d6   :  { %v1228_v19 = vpop.f32.mrf.mxu1 }
 0x2d7   :  { %v1229_v16 = vadd.f32 %v3622_v9, %v1228_v19 }
 0x2d8   :  { %v2706_v12 = vpop.f32.mrf.mxu1 }
 0x2d9   :  { %v1240_v57 = vadd.f32 %v2706_v12, %v3622_v9 }
 0x2da   :  { %v1231_v13 = vpop.f32.mrf.mxu1 }
 0x2db   :  { %2725 = vmatprep.subr.msk.mxu1 %vm480_vm2, %v1240_v57  ;;  %v1232_v0 = vadd.f32 %v3622_v9, %v1231_v13 }
 0x2dc   :  { %2726 = vmatpush3.xpose.msk.msra.mxu1 %vm480_vm2, %v1240_v57 }
 0x2dd   :  { %2727 = vmatprep.subr.msk.mxu1 %vm480_vm2, %v1237_v5 }
 0x2e0   :  { %2728 = vmatpush3.xpose.msk.msra.mxu1 %vm480_vm2, %v1237_v5 }
 0x2e1   :  { %2729 = vmatprep.subr.msk.mxu1 %vm480_vm2, %v1232_v0 }
 0x2e4   :  { %2730 = vmatpush3.xpose.msk.msra.mxu1 %vm480_vm2, %v1232_v0 }
 0x2e5   :  { %2731 = vmatprep.subr.msk.mxu1 %vm480_vm2, %v1229_v16 }
 0x2e8   :  { %2732 = vmatpush3.xpose.msk.msra.mxu1 %vm480_vm2, %v1229_v16  ;;  %v1192_v16 = vadd.f32 %v3615_v43, %v3622_v9 }
 0x2e9   :  { %2733 = vmatprep.subr.msk.mxu1 %vm480_vm2, %v1224_v25 }
 0x2ec   :  { %2734 = vmatpush3.xpose.msk.msra.mxu1 %vm480_vm2, %v1224_v25 }
 0x2ed   :  { %2735 = vmatprep.subr.msk.mxu1 %vm480_vm2, %v1221_v52 }
 0x2f0   :  { %2736 = vmatpush3.xpose.msk.msra.mxu1 %vm480_vm2, %v1221_v52 }
 0x2f1   :  { %2737 = vmatprep.subr.msk.mxu1 %vm480_vm2, %v1216_v51 }
 0x2f4   :  { %2738 = vmatpush3.xpose.msk.msra.mxu1 %vm480_vm2, %v1216_v51 }
 0x2f5   :  { %2739 = vmatprep.subr.msk.mxu1 %vm480_vm2, %v1213_v10 }
 0x2f8   :  { %2740 = vmatpush3.xpose.msk.msra.mxu1 %vm480_vm2, %v1213_v10  ;;  %v1189_v10 = vadd.f32 %v3611_v32, %v3622_v9 }
 0x2f9   :  { %2741 = vmatprep.subr.msk.mxu1 %vm480_vm2, %v1208_v11 }
 0x2fc   :  { %2742 = vmatpush3.xpose.msk.msra.mxu1 %vm480_vm2, %v1208_v11 }
 0x2fd   :  { %2743 = vmatprep.subr.msk.mxu1 %vm480_vm2, %v1205_v7 }
 0x300   :  { %2744 = vmatpush3.xpose.msk.msra.mxu1 %vm480_vm2, %v1205_v7  ;;  %v1184_v7 = vadd.f32 %v3622_v9, %v3617_v59 }
 0x301   :  { %2745 = vmatprep.subr.msk.mxu1 %vm480_vm2, %v1200_v14 }
 0x304   :  { %2746 = vmatpush3.xpose.msk.msra.mxu1 %vm480_vm2, %v1200_v14 }
 0x305   :  { %2747 = vmatprep.subr.msk.mxu1 %vm480_vm2, %v1197_v44 }
 0x308   :  { %2748 = vmatpush3.xpose.msk.msra.mxu1 %vm480_vm2, %v1197_v44 }
 0x309   :  { %2749 = vmatprep.subr.msk.mxu1 %vm480_vm2, %v1192_v16 }
 0x30c   :  { %2750 = vmatpush3.xpose.msk.msra.mxu1 %vm480_vm2, %v1192_v16 }
 0x30d   :  { %2751 = vmatprep.subr.msk.mxu1 %vm480_vm2, %v1189_v10 }
 0x310   :  { %2752 = vmatpush3.xpose.msk.msra.mxu1 %vm480_vm2, %v1189_v10 }
 0x311   :  { %2753 = vmatprep.subr.msk.mxu1 %vm480_vm2, %v1184_v7 }
 0x313   :  { %v835_v63 = vpop.xlane.xlu0 %834 }
 0x314   :  { %2889 = vrcp.f32 %v835_v63  ;;  %2754 = vmatpush3.xpose.msk.msra.mxu1 %vm480_vm2, %v1184_v7 }
 0x317   :  { %v837_v60 = vpop.xlane.xlu1 %836 }
 0x318   :  { %2891 = vrcp.f32 %v837_v60  ;;  %v1033_v60 = vsel %vm129_vm0, %v3543_v8, 0 }
 0x319   :  { %v839_v1 = vpop.xlane.xlu0 %838 }
 0x31a   :  { %2893 = vrcp.f32 %v839_v1 }
 0x31b   :  { %v841_v3 = vpop.xlane.xlu1 %840 }
 0x31c   :  { %2895 = vrcp.f32 %v841_v3 }
 0x31d   :  { %v843_v55 = vpop.xlane.xlu0 %842 }
 0x31e   :  { %2897 = vrcp.f32 %v843_v55 }
 0x31f   :  { %v845_v29 = vpop.xlane.xlu1 %844 }
 0x320   :  { %2899 = vrcp.f32 %v845_v29 }
 0x321   :  { %v847_v62 = vpop.xlane.xlu0 %846  ;;  %v2890_v6 = vpop.eup %2889 }
 0x322   :  { %2901 = vrcp.f32 %v847_v62  ;;  %v882_v57 = vmul.f32 %v2890_v6, %v3556_v18  ;;  %v1181_v6 = vadd.f32 %v3622_v9, %v3613_v35 }
 0x323   :  { %v849_v19 = vpop.xlane.xlu1 %848 }
 0x324   :  { %2903 = vrcp.f32 %v849_v19  ;;  %2755 = vmatprep.subr.msk.mxu1 %vm480_vm2, %v1181_v6 }
 0x325   :  { %v2892_v12 = vpop.eup %2891  ;;  %v851_v5 = vpop.xlane.xlu0 %850  ;;  %2756 = vmatpush3.xpose.msk.msra.mxu1 %vm480_vm2, %v1181_v6 }
 0x326   :  { %2905 = vrcp.f32 %v851_v5  ;;  %v883_v47 = vmul.f32 %v2892_v12, %v3561_v2 }
 0x327   :  { %v2894_v13 = vpop.eup %2893  ;;  %v853_v0 = vpop.xlane.xlu1 %852 }
 0x328   :  { %2907 = vrcp.f32 %v853_v0  ;;  %v898_v41 = vpack.c.bf16 %v883_v47, %v882_v57  ;;  %v884_v51 = vmul.f32 %v2894_v13, %v3565_v36 }
 0x329   :  { %v2896_v25 = vpop.eup %2895  ;;  %v855_v52 = vpop.xlane.xlu0 %854 }
 0x32a   :  { %2909 = vrcp.f32 %v855_v52  ;;  %2655 = vmatprep.mubr.bf16.mxu0 %v898_v41  ;;  %v885_v18 = vmul.f32 %v2896_v25, %v3569_v15 }
 0x32b   :  { %v2898_v2 = vpop.eup %2897  ;;  %v857_v63 = vpop.xlane.xlu1 %856 }
 0x32c   :  { %2911 = vrcp.f32 %v857_v63  ;;  %v899_v43 = vpack.c.bf16 %v885_v18, %v884_v51  ;;  %v886_v36 = vmul.f32 %v2898_v2, %v3573_v22 }
 0x32d   :  { %v2900_v11 = vpop.eup %2899  ;;  %v859_v1 = vpop.xlane.xlu0 %858 }
 0x32e   :  { %2913 = vrcp.f32 %v859_v1  ;;  %2656 = vmatmul.mubr.bf16.vlgmr.msra.gmra.mxu0 %v899_v43  ;;  %v887_v15 = vmul.f32 %v2900_v11, %v3577_v31 }
 0x32f   :  { %v2902_v3 = vpop.eup %2901  ;;  %2672 = vmatpush3.bf16.msra.mxu0 %v1033_v60  ;;  %v861_v32 = vpop.xlane.xlu1 %860 }
 0x330   :  { %2915 = vrcp.f32 %v861_v32  ;;  %v900_v8 = vpack.c.bf16 %v887_v15, %v886_v36  ;;  %v888_v22 = vmul.f32 %v2902_v3, %v3581_v45 }
 0x331   :  { %v2904_v55 = vpop.eup %2903  ;;  %v863_v29 = vpop.xlane.xlu0 %862 }
 0x332   :  { %2917 = vrcp.f32 %v863_v29  ;;  %2659 = vmatprep.mubr.bf16.mxu0 %v900_v8  ;;  %v889_v31 = vmul.f32 %v2904_v55, %v3584_v28 }
 0x333   :  { %v2906_v14 = vpop.eup %2905  ;;  %v865_v62 = vpop.xlane.xlu1 %864 }
 0x334   :  { %2919 = vrcp.f32 %v865_v62  ;;  %v901_v59 = vpack.c.bf16 %v889_v31, %v888_v22  ;;  %v890_v44 = vmul.f32 %v2906_v14, %v3587_v56  ;;  %v2280_v22 = vld [vmem:[%s4120_s6 + $0x1] ss:$0 sm:$0xff] }
 0x335   :  { %v2908_v19 = vpop.eup %2907 }
 0x336   :  { %2660 = vmatmul.mubr.bf16.gmra.mxu0 %v901_v59  ;;  %v891_v12 = vmul.f32 %v2908_v19, %v3590_v40 }
 0x337   :  { %v2910_v45 = vpop.eup %2909 }
 0x338   :  { %v902_v28 = vpack.c.bf16 %v891_v12, %v890_v44  ;;  %v892_v35 = vmul.f32 %v2910_v45, %v3593_v58 }
 0x339   :  { %v2912_v5 = vpop.eup %2911 }
 0x33a   :  { %2663 = vmatprep.mubr.bf16.mxu0 %v902_v28  ;;  %v893_v9 = vmul.f32 %v2912_v5, %v3596_v50  ;;  %v1011_v50 = vld [vmem:[%s4125_s9] sm:$0x3] }
 0x33b   :  { %v2914_v57 = vpop.eup %2913 }
 0x33c   :  { %v903_v47 = vpack.c.bf16 %v893_v9, %v892_v35  ;;  %v894_v56 = vmul.f32 %v2914_v57, %v3599_v23  ;;  %v1020_v23 = vpack.c.bf16 %v1011_v50, %v1011_v50 }
 0x33d   :  { %v2916_v13 = vpop.eup %2915 }
 0x33e   :  { %2664 = vmatmul.mubr.bf16.gmra.mxu0 %v903_v47  ;;  %v895_v40 = vmul.f32 %v2916_v13, %v3602_v24  ;;  %2856 = vmatprep.subr.msk.bf16.mxu1 %vm1919_vm3, %v1020_v23  ;;  %v2045_v19 = vsel %vm1919_vm3, %v1020_v23, 0 }
 0x33f   :  { %v2918_v0 = vpop.eup %2917 }
 0x340   :  { %v904_v16 = vpack.c.bf16 %v895_v40, %v894_v56  ;;  %v896_v25 = vmul.f32 %v2918_v0, %v3605_v33 }
 0x341   :  { %v2920_v41 = vpop.eup %2919 }
 0x342   :  { %2667 = vmatprep.mubr.bf16.mxu0 %v904_v16  ;;  %v897_v58 = vmul.f32 %v2920_v41, %v3608_v42 }
 0x344   :  { %v905_v52 = vpack.c.bf16 %v897_v58, %v896_v25 }
 0x346   :  { %2668 = vmatmul.mubr.bf16.gmra.mxu0 %v905_v52 }
 0x347   :  { %2673 = vmatprep.mubr.msk.bf16.mxu0 %vm104_vm1, %v3149_v20 }
 0x34e   :  { %2674 = vmatmul.mubr.msk.bf16.vlgmr.msra.gmra.mxu0 %vm104_vm1, %v3165_v26 }
 0x34f   :  { %2677 = vmatprep.mubr.msk.bf16.mxu0 %vm104_vm1, %v3169_v27 }
 0x356   :  { %2678 = vmatmul.mubr.msk.bf16.gmra.mxu0 %vm104_vm1, %v3207_v38 }
 0x357   :  { %2681 = vmatprep.mubr.msk.bf16.mxu0 %vm104_vm1, %v3209_v39 }
 0x35e   :  { %2682 = vmatmul.mubr.msk.bf16.gmra.mxu0 %vm104_vm1, %v3241_v48 }
 0x35f   :  { %2685 = vmatprep.mubr.msk.bf16.mxu0 %vm104_vm1, %v3243_v49 }
 0x366   :  { %2686 = vmatmul.mubr.msk.bf16.gmra.mxu0 %vm104_vm1, %v3259_v53 }
 0x367   :  { %2709 = vmatprep.mubr.msk.bf16.mxu0 %vm104_vm1, %v3149_v20 }
 0x3ee   :  { %v3716_v24 = vpop.f32.mrf.mxu0 }
 0x3f0   :  { %v3718_v33 = vpop.f32.mrf.mxu0 }
 0x3f2   :  { %v3720_v42 = vpop.f32.mrf.mxu0 }
 0x3f3   :  { %v1013_v51 = vpack.c.bf16 %v3720_v42, %v3716_v24  ;;  %v2300_v24 = vld [vmem:[%s4122_s5 + $0x4] sm:$0xf] }
 0x3f4   :  { %v3724_v18 = vpop.f32.mrf.mxu0  ;;  %v1245_v42 = vpack.c.bf16 %v2300_v24, %v2300_v24 }
 0x3f6   :  { %v3726_v20 = vpop.f32.mrf.mxu0  ;;  %2854 = vmatprep.subr.msk.bf16.mxu0 %vm129_vm0, %v1245_v42 }
 0x3f8   :  { %v3728_v2 = vpop.f32.mrf.mxu0 }
 0x3fa   :  { %v3730_v63 = vpop.f32.mrf.mxu0 }
 0x3fb   :  { %v1015_v10 = vpack.c.bf16 %v3730_v63, %v3726_v20 }
 0x3fc   :  { %v3734_v43 = vpop.f32.mrf.mxu0 }
 0x3fe   :  { %v3736_v60 = vpop.f32.mrf.mxu0 }
 0x400   :  { %v3738_v11 = vpop.f32.mrf.mxu0 }
 0x402   :  { %v3740_v1 = vpop.f32.mrf.mxu0 }
 0x403   :  { %v1017_v36 = vpack.c.bf16 %v3740_v1, %v3736_v60 }
 0x404   :  { %v3744_v15 = vpop.f32.mrf.mxu0 }
 0x406   :  { %v3746_v3 = vpop.f32.mrf.mxu0 }
 0x408   :  { %v3748_v32 = vpop.f32.mrf.mxu0 }
 0x40a   :  { %v3750_v7 = vpop.f32.mrf.mxu0 }
 0x40b   :  { %v1019_v8 = vpack.c.bf16 %v3750_v7, %v3746_v3 }
 0x40c   :  { %v3754_v55 = vpop.f32.mrf.mxu0 }
 0x40e   :  { %v2675_v29 = vpop.f32.mrf.mxu0 }
 0x40f   :  { %v1078_v44 = vadd.f32 %v2675_v29, %v2280_v22 }
 0x410   :  { %v1069_v31 = vpop.f32.mrf.mxu0 }
 0x411   :  { %v1070_v14 = vadd.f32 %v2280_v22, %v1069_v31 }
 0x412   :  { %v2676_v62 = vpop.f32.mrf.mxu0 }
 0x413   :  { %2757 = vmatprep.mubr.msk.f32.mxu1 %vm480_vm2, %v1070_v14  ;;  %v1081_v28 = vadd.f32 %v2676_v62, %v2280_v22 }
 0x414   :  { %v1072_v6 = vpop.f32.mrf.mxu0 }
 0x415   :  { %v1073_v59 = vadd.f32 %v2280_v22, %v1072_v6 }
 0x416   :  { %v2679_v12 = vpop.f32.mrf.mxu0 }
 0x417   :  { %2758 = vmatmul.mubr.msk.f32.vlgmr.msra.gmra.mxu1 %vm480_vm2, %v1073_v59  ;;  %v1094_v47 = vadd.f32 %v2679_v12, %v2280_v22 }
 0x418   :  { %v1085_v45 = vpop.f32.mrf.mxu0  ;;  %2760 = vmatprep.mubr.msk.f32.mxu1 %vm480_vm2, %v1078_v44  ;;  %2832 = vmatpush3.bf16.msra.mxu1 %v2045_v19  ;;  %v1012_v19 = vpack.c.bf16 %v3724_v18, %v3718_v33  ;;  %v1014_v44 = vpack.c.bf16 %v3734_v43, %v3728_v2  ;;  %v1018_v33 = vpack.c.bf16 %v3754_v55, %v3748_v32 }
 0x419   :  { %v1086_v5 = vadd.f32 %v2280_v22, %v1085_v45 }
 0x41a   :  { %v2680_v35 = vpop.f32.mrf.mxu0 }
 0x41b   :  { %2761 = vmatmul.mubr.msk.f32.gmra.mxu1 %vm480_vm2, %v1081_v28  ;;  %v1097_v40 = vadd.f32 %v2680_v35, %v2280_v22 }
 0x41c   :  { %v1088_v9 = vpop.f32.mrf.mxu0  ;;  %2763 = vmatprep.mubr.msk.f32.mxu1 %vm480_vm2, %v1086_v5 }
 0x41d   :  { %v1089_v57 = vadd.f32 %v2280_v22, %v1088_v9 }
 0x41e   :  { %v2683_v13 = vpop.f32.mrf.mxu0 }
 0x41f   :  { %2764 = vmatmul.mubr.msk.f32.gmra.mxu1 %vm480_vm2, %v1089_v57  ;;  %v1110_v58 = vadd.f32 %v2683_v13, %v2280_v22 }
 0x420   :  { %v1101_v56 = vpop.f32.mrf.mxu0  ;;  %2766 = vmatprep.mubr.msk.f32.mxu1 %vm480_vm2, %v1094_v47 }
 0x421   :  { %v1102_v0 = vadd.f32 %v2280_v22, %v1101_v56 }
 0x422   :  { %v2684_v16 = vpop.f32.mrf.mxu0 }
 0x423   :  { %2767 = vmatmul.mubr.msk.f32.gmra.mxu1 %vm480_vm2, %v1097_v40  ;;  %v1113_v23 = vadd.f32 %v2684_v16, %v2280_v22 }
 0x424   :  { %v1104_v41 = vpop.f32.mrf.mxu0  ;;  %2769 = vmatprep.mubr.msk.f32.mxu1 %vm480_vm2, %v1102_v0  ;;  %v4145_v0 = vld [vmem:[#allocation6_spill] sm:$0xff] }
 0x425   :  { %v1105_v25 = vadd.f32 %v2280_v22, %v1104_v41 }
 0x426   :  { %v2687_v52 = vpop.f32.mrf.mxu0 }
 0x427   :  { %2770 = vmatmul.mubr.msk.f32.gmra.mxu1 %vm480_vm2, %v1105_v25  ;;  %v1126_v6 = vadd.f32 %v2687_v52, %v2280_v22 }
 0x428   :  { %v1117_v50 = vpop.f32.mrf.mxu0  ;;  %2772 = vmatprep.mubr.msk.f32.mxu1 %vm480_vm2, %v1110_v58  ;;  %v4146_v58 = vld [vmem:[#allocation5_spill] sm:$0xff] }
 0x429   :  { %v1118_v29 = vadd.f32 %v2280_v22, %v1117_v50 }
 0x42a   :  { %v2688_v31 = vpop.f32.mrf.mxu0 }
 0x42b   :  { %2773 = vmatmul.mubr.msk.f32.gmra.mxu1 %vm480_vm2, %v1113_v23  ;;  %v1129_v59 = vadd.f32 %v2688_v31, %v2280_v22 }
 0x42c   :  { %v1120_v14 = vpop.f32.mrf.mxu0  ;;  %2775 = vmatprep.mubr.msk.f32.mxu1 %vm480_vm2, %v1118_v29  ;;  %v4147_v29 = vld [vmem:[#allocation8_spill] sm:$0xff] }
 0x42d   :  { %v1121_v62 = vadd.f32 %v2280_v22, %v1120_v14  ;;  %v1016_v22 = vpack.c.bf16 %v3744_v15, %v3738_v11  ;;  %v4148_v14 = vld [vmem:[#allocation7_spill] sm:$0xff] }
 0x42f   :  { %2776 = vmatmul.mubr.msk.f32.gmra.mxu1 %vm480_vm2, %v1121_v62 }
 0x430   :  { %2778 = vmatprep.mubr.msk.f32.mxu1 %vm480_vm2, %v1126_v6 }
 0x433   :  { %2779 = vmatmul.mubr.msk.f32.gmra.mxu1 %vm480_vm2, %v1129_v59 }
 0x434   :  { %2833 = vmatprep.mubr.msk.bf16.mxu1 %vm480_vm2, %v1012_v19 }
 0x437   :  { %2834 = vmatmul.mubr.msk.bf16.vlgmr.msra.gmra.mxu1 %vm480_vm2, %v1013_v51  ;;  %v1255_v51 = vsel %vm129_vm0, %v1245_v42, 0 }
 0x438   :  { %2837 = vmatprep.mubr.msk.bf16.mxu1 %vm480_vm2, %v1014_v44  ;;  %2708 = vmatpush3.bf16.msra.mxu0 %v1255_v51 }
 0x43b   :  { %2710 = vmatmul.mubr.msk.bf16.vlgmr.msra.gmra.mxu0 %vm104_vm1, %v3165_v26 }
 0x43c   :  { %2713 = vmatprep.mubr.msk.bf16.mxu0 %vm104_vm1, %v3169_v27 }
 0x43f   :  { %2838 = vmatmul.mubr.msk.bf16.gmra.mxu1 %vm480_vm2, %v1015_v10 }
 0x440   :  { %2841 = vmatprep.mubr.msk.bf16.mxu1 %vm480_vm2, %v1016_v22 }
 0x443   :  { %2714 = vmatmul.mubr.msk.bf16.gmra.mxu0 %vm104_vm1, %v3207_v38 }
 0x444   :  { %2717 = vmatprep.mubr.msk.bf16.mxu0 %vm104_vm1, %v3209_v39 }
 0x447   :  { %2842 = vmatmul.mubr.msk.bf16.gmra.mxu1 %vm480_vm2, %v1017_v36 }
 0x448   :  { %2845 = vmatprep.mubr.msk.bf16.mxu1 %vm480_vm2, %v1018_v33 }
 0x44b   :  { %2718 = vmatmul.mubr.msk.bf16.gmra.mxu0 %vm104_vm1, %v3241_v48 }
 0x44c   :  { %2721 = vmatprep.mubr.msk.bf16.mxu0 %vm104_vm1, %v3243_v49 }
 0x44f   :  { %2846 = vmatmul.mubr.msk.bf16.gmra.mxu1 %vm480_vm2, %v1019_v8 }
 0x453   :  { %2722 = vmatmul.mubr.msk.bf16.gmra.mxu0 %vm104_vm1, %v3259_v53 }
 0x4d7   :  { %v2759_v18 = vpop.f32.mrf.mxu1 }
 0x4d8   :  { %v1596_v26 = vmul.f32 0.70710677, %v2759_v18 }
 0x4d9   :  { %v1516_v20 = vpop.f32.mrf.mxu1 }
 0x4da   :  { %v1595_v2 = vmul.f32 0.70710677, %v1516_v20  ;;  %v3824_v27 = vadd.f32 %v1596_v26, %v3393_v30 }
 0x4db   :  { %v2762_v38 = vpop.f32.mrf.mxu1 }
 0x4dc   :  { %v1598_v63 = vmul.f32 0.70710677, %v2762_v38  ;;  %1629 = vmax.xlane.f32.xlu1 %v3824_v27  ;;  %v3828_v39 = vadd.f32 %v1595_v2, %v3380_v17  ;;  %v2302_v2 = vld [vmem:[%s4124_s8 + $0x1] ss:$0 sm:$0xff] }
 0x4dd   :  { %v1526_v48 = vpop.f32.mrf.mxu1 }
 0x4de   :  { %v1597_v10 = vmul.f32 0.70710677, %v1526_v48  ;;  %1627 = vmax.xlane.f32.xlu0 %v3828_v39  ;;  %v3832_v49 = vadd.f32 %v1598_v63, %v3385_v21 }
 0x4df   :  { %v2765_v53 = vpop.f32.mrf.mxu1 }
 0x4e0   :  { %v1600_v43 = vmul.f32 0.70710677, %v2765_v53  ;;  %1633 = vmax.xlane.f32.xlu1 %v3832_v49  ;;  %v3836_v30 = vadd.f32 %v1597_v10, %v3402_v34 }
 0x4e1   :  { %v1536_v60 = vpop.f32.mrf.mxu1 }
 0x4e2   :  { %v1599_v11 = vmul.f32 0.70710677, %v1536_v60  ;;  %1631 = vmax.xlane.f32.xlu0 %v3836_v30  ;;  %v3840_v17 = vadd.f32 %v1600_v43, %v3420_v46 }
 0x4e3   :  { %v2768_v1 = vpop.f32.mrf.mxu1 }
 0x4e4   :  { %v1602_v36 = vmul.f32 0.70710677, %v2768_v1  ;;  %1637 = vmax.xlane.f32.xlu1 %v3840_v17  ;;  %v3844_v21 = vadd.f32 %v1599_v11, %v3411_v37 }
 0x4e5   :  { %v1546_v15 = vpop.f32.mrf.mxu1 }
 0x4e6   :  { %v1601_v3 = vmul.f32 0.70710677, %v1546_v15  ;;  %1635 = vmax.xlane.f32.xlu0 %v3844_v21  ;;  %v3848_v34 = vadd.f32 %v1602_v36, %v3438_v61  ;;  %v4142_v61 = vld [vmem:[#allocation2_spill] sm:$0xff] }
 0x4e7   :  { %v2771_v32 = vpop.f32.mrf.mxu1 }
 0x4e8   :  { %v1604_v7 = vmul.f32 0.70710677, %v2771_v32  ;;  %1641 = vmax.xlane.f32.xlu1 %v3848_v34  ;;  %v3852_v46 = vadd.f32 %v1601_v3, %v3429_v54  ;;  %v4143_v54 = vld [vmem:[#allocation4_spill] sm:$0xff] }
 0x4e9   :  { %v1556_v8 = vpop.f32.mrf.mxu1 }
 0x4ea   :  { %v1603_v55 = vmul.f32 0.70710677, %v1556_v8  ;;  %1639 = vmax.xlane.f32.xlu0 %v3852_v46  ;;  %v3856_v37 = vadd.f32 %v1604_v7, %v3456_v4  ;;  %v4144_v4 = vld [vmem:[#allocation3_spill] sm:$0xff] }
 0x4eb   :  { %v2774_v12 = vpop.f32.mrf.mxu1 }
 0x4ec   :  { %v1606_v45 = vmul.f32 0.70710677, %v2774_v12  ;;  %1645 = vmax.xlane.f32.xlu1 %v3856_v37  ;;  %v3860_v28 = vadd.f32 %v1603_v55, %v4142_v61 }
 0x4ed   :  { %v1566_v5 = vpop.f32.mrf.mxu1 }
 0x4ee   :  { %v1605_v35 = vmul.f32 0.70710677, %v1566_v5  ;;  %1643 = vmax.xlane.f32.xlu0 %v3860_v28  ;;  %v3864_v9 = vadd.f32 %v1606_v45, %v4143_v54 }
 0x4ef   :  { %v2777_v57 = vpop.f32.mrf.mxu1 }
 0x4f0   :  { %v1608_v47 = vmul.f32 0.70710677, %v2777_v57  ;;  %1649 = vmax.xlane.f32.xlu1 %v3864_v9  ;;  %v3868_v13 = vadd.f32 %v1605_v35, %v4144_v4 }
 0x4f1   :  { %v1576_v56 = vpop.f32.mrf.mxu1 }
 0x4f2   :  { %v1607_v40 = vmul.f32 0.70710677, %v1576_v56  ;;  %1647 = vmax.xlane.f32.xlu0 %v3868_v13  ;;  %v3872_v16 = vadd.f32 %v1608_v47, %v4145_v0 }
 0x4f3   :  { %v2780_v41 = vpop.f32.mrf.mxu1 }
 0x4f4   :  { %v1610_v25 = vmul.f32 0.70710677, %v2780_v41  ;;  %1653 = vmax.xlane.f32.xlu1 %v3872_v16  ;;  %v3876_v52 = vadd.f32 %v1607_v40, %v4146_v58 }
 0x4f5   :  { %v1586_v50 = vpop.f32.mrf.mxu1 }
 0x4f6   :  { %v1609_v23 = vmul.f32 0.70710677, %v1586_v50  ;;  %1651 = vmax.xlane.f32.xlu0 %v3876_v52  ;;  %v3880_v31 = vadd.f32 %v1610_v25, %v4147_v29 }
 0x4f8   :  { %1657 = vmax.xlane.f32.xlu1 %v3880_v31  ;;  %v3884_v62 = vadd.f32 %v1609_v23, %v4148_v14 }
 0x4fa   :  { %1655 = vmax.xlane.f32.xlu0 %v3884_v62 }
 0x4fb   :  { %v2711_v6 = vpop.f32.mrf.mxu0 }
 0x4fc   :  { %v1300_v54 = vadd.f32 %v2711_v6, %v2302_v2 }
 0x4fd   :  { %v1291_v59 = vpop.f32.mrf.mxu0 }
 0x4fe   :  { %v1292_v4 = vadd.f32 %v2302_v2, %v1291_v59 }
 0x4ff   :  { %v2712_v19 = vpop.f32.mrf.mxu0 }
 0x500   :  { %v1303_v57 = vadd.f32 %v2712_v19, %v2302_v2 }
 0x501   :  { %v1294_v44 = vpop.f32.mrf.mxu0 }
 0x502   :  { %v1780_v56 = vpack.c.bf16 %v1303_v57, %v1300_v54  ;;  %v1295_v40 = vadd.f32 %v2302_v2, %v1294_v44 }
 0x503   :  { %v2715_v22 = vpop.f32.mrf.mxu0 }
 0x504   :  { %v1316_v55 = vadd.f32 %v2715_v22, %v2302_v2  ;;  %v1779_v0 = vpack.c.bf16 %v1295_v40, %v1292_v4 }
 0x505   :  { %v1307_v33 = vpop.f32.mrf.mxu0 }
 0x506   :  { %v1308_v61 = vadd.f32 %v2302_v2, %v1307_v33 }
 0x507   :  { %v2716_v24 = vpop.f32.mrf.mxu0 }
 0x508   :  { %v1319_v12 = vadd.f32 %v2716_v24, %v2302_v2 }
 0x509   :  { %v1310_v42 = vpop.f32.mrf.mxu0 }
 0x50a   :  { %v1782_v5 = vpack.c.bf16 %v1319_v12, %v1316_v55  ;;  %v1311_v35 = vadd.f32 %v2302_v2, %v1310_v42 }
 0x50b   :  { %v2719_v51 = vpop.f32.mrf.mxu0 }
 0x50c   :  { %v1332_v11 = vadd.f32 %v2719_v51, %v2302_v2  ;;  %v1781_v47 = vpack.c.bf16 %v1311_v35, %v1308_v61 }
 0x50d   :  { %v1323_v18 = vpop.f32.mrf.mxu0 }
 0x50e   :  { %v1324_v32 = vadd.f32 %v2302_v2, %v1323_v18 }
 0x50f   :  { %v2720_v26 = vpop.f32.mrf.mxu0 }
 0x510   :  { %v1335_v1 = vadd.f32 %v2720_v26, %v2302_v2 }
 0x511   :  { %v1326_v20 = vpop.f32.mrf.mxu0 }
 0x512   :  { %v1784_v7 = vpack.c.bf16 %v1335_v1, %v1332_v11  ;;  %v1327_v8 = vadd.f32 %v2302_v2, %v1326_v20 }
 0x513   :  { %v2723_v38 = vpop.f32.mrf.mxu0 }
 0x514   :  { %v1348_v48 = vadd.f32 %v2723_v38, %v2302_v2  ;;  %v1783_v45 = vpack.c.bf16 %v1327_v8, %v1324_v32 }
 0x515   :  { %v1339_v63 = vpop.f32.mrf.mxu0 }
 0x516   :  { %v1340_v53 = vadd.f32 %v2302_v2, %v1339_v63 }
 0x517   :  { %v2724_v10 = vpop.f32.mrf.mxu0 }
 0x518   :  { %v1351_v43 = vadd.f32 %v2724_v10, %v2302_v2 }
 0x519   :  { %v1342_v60 = vpop.f32.mrf.mxu0 }
 0x51a   :  { %v1786_v36 = vpack.c.bf16 %v1351_v43, %v1348_v48  ;;  %v1343_v15 = vadd.f32 %v2302_v2, %v1342_v60 }
 0x51c   :  { %v1785_v3 = vpack.c.bf16 %v1343_v15, %v1340_v53  ;;  %2781 = vmatprep.subr.bf16.mxu0 %v1786_v36 }
 0x51d   :  { %2782 = vmatpush3.bf16.msra.mxu0 %v1786_v36 }
 0x51e   :  { %2783 = vmatprep.subr.bf16.mxu0 %v1785_v3 }
 0x521   :  { %2784 = vmatpush3.bf16.msra.mxu0 %v1785_v3 }
 0x522   :  { %2785 = vmatprep.subr.bf16.mxu0 %v1784_v7 }
 0x525   :  { %2786 = vmatpush3.bf16.msra.mxu0 %v1784_v7 }
 0x526   :  { %2787 = vmatprep.subr.bf16.mxu0 %v1783_v45 }
 0x529   :  { %2788 = vmatpush3.bf16.msra.mxu0 %v1783_v45 }
 0x52a   :  { %2789 = vmatprep.subr.bf16.mxu0 %v1782_v5 }
 0x52d   :  { %2790 = vmatpush3.bf16.msra.mxu0 %v1782_v5 }
 0x52e   :  { %2791 = vmatprep.subr.bf16.mxu0 %v1781_v47 }
 0x531   :  { %2792 = vmatpush3.bf16.msra.mxu0 %v1781_v47 }
 0x532   :  { %2793 = vmatprep.subr.bf16.mxu0 %v1780_v56 }
 0x535   :  { %2794 = vmatpush3.bf16.msra.mxu0 %v1780_v56 }
 0x536   :  { %2795 = vmatprep.subr.bf16.mxu0 %v1779_v0 }
 0x539   :  { %2796 = vmatpush3.bf16.msra.mxu0 %v1779_v0 }
 0x565   :  { %v1630_v41 = vpop.xlane.xlu1 %1629 }
 0x566   :  { %v1660_v25 = vsub.f32 %v3824_v27, %v1630_v41  ;;  %v2343_v41 = vld [vmem:[%s4125_s9 + $0x2] sm:$0x3] }
 0x567   :  { %v1628_v58 = vpop.xlane.xlu0 %1627 }
 0x568   :  { %v1677_v50 = vmul.f32 1.442695, %v1660_v25  ;;  %v1659_v23 = vsub.f32 %v3828_v39, %v1628_v58  ;;  %v1894_v25 = vpack.c.bf16 %v2343_v41, %v2343_v41 }
 0x569   :  { %v1634_v29 = vpop.xlane.xlu1 %1633 }
 0x56a   :  { %2921 = vpow2.f32 %v1677_v50  ;;  %v1675_v14 = vmul.f32 1.442695, %v1659_v23  ;;  %v1662_v6 = vsub.f32 %v3832_v49, %v1634_v29  ;;  %2855 = vmatprep.subr.msk.bf16.mxu0 %vm1919_vm3, %v1894_v25 }
 0x56b   :  { %v1632_v59 = vpop.xlane.xlu0 %1631 }
 0x56c   :  { %2923 = vpow2.f32 %v1675_v14  ;;  %v1681_v19 = vmul.f32 1.442695, %v1662_v6  ;;  %v1661_v44 = vsub.f32 %v3836_v30, %v1632_v59 }
 0x56d   :  { %v1638_v22 = vpop.xlane.xlu1 %1637 }
 0x56e   :  { %2925 = vpow2.f32 %v1681_v19  ;;  %v1679_v33 = vmul.f32 1.442695, %v1661_v44  ;;  %v1664_v24 = vsub.f32 %v3840_v17, %v1638_v22 }
 0x56f   :  { %v1636_v27 = vpop.xlane.xlu0 %1635 }
 0x570   :  { %2927 = vpow2.f32 %v1679_v33  ;;  %v1685_v42 = vmul.f32 1.442695, %v1664_v24  ;;  %v1663_v39 = vsub.f32 %v3844_v21, %v1636_v27 }
 0x571   :  { %v1642_v51 = vpop.xlane.xlu1 %1641 }
 0x572   :  { %2929 = vpow2.f32 %v1685_v42  ;;  %v1683_v18 = vmul.f32 1.442695, %v1663_v39  ;;  %v1666_v49 = vsub.f32 %v3848_v34, %v1642_v51 }
 0x573   :  { %v1640_v26 = vpop.xlane.xlu0 %1639 }
 0x574   :  { %2931 = vpow2.f32 %v1683_v18  ;;  %v1689_v20 = vmul.f32 1.442695, %v1666_v49  ;;  %v1665_v30 = vsub.f32 %v3852_v46, %v1640_v26 }
 0x575   :  { %v1646_v2 = vpop.xlane.xlu1 %1645 }
 0x576   :  { %2933 = vpow2.f32 %v1689_v20  ;;  %v1687_v38 = vmul.f32 1.442695, %v1665_v30  ;;  %v1668_v17 = vsub.f32 %v3856_v37, %v1646_v2 }
 0x577   :  { %v3899_v63 = vpop.eup %2921  ;;  %v1644_v48 = vpop.xlane.xlu0 %1643 }
 0x578   :  { %2935 = vpow2.f32 %v1687_v38  ;;  %v1693_v21 = vmul.f32 1.442695, %v1668_v17  ;;  %v1667_v10 = vsub.f32 %v3860_v28, %v1644_v48  ;;  %1709 = vadd.xlane.f32.xlu1 %v3899_v63  ;;  %v1921_v17 = vsel %vm1919_vm3, %v1894_v25, 0 }
 0x579   :  { %v3903_v34 = vpop.eup %2923  ;;  %v1650_v53 = vpop.xlane.xlu1 %1649 }
 0x57a   :  { %2937 = vpow2.f32 %v1693_v21  ;;  %v1691_v43 = vmul.f32 1.442695, %v1667_v10  ;;  %v1670_v46 = vsub.f32 %v3864_v9, %v1650_v53  ;;  %1707 = vadd.xlane.f32.xlu0 %v3903_v34 }
 0x57b   :  { %v3907_v60 = vpop.eup %2925  ;;  %v1648_v37 = vpop.xlane.xlu0 %1647 }
 0x57c   :  { %2939 = vpow2.f32 %v1691_v43  ;;  %v1697_v11 = vmul.f32 1.442695, %v1670_v46  ;;  %v1669_v1 = vsub.f32 %v3868_v13, %v1648_v37  ;;  %1713 = vadd.xlane.f32.xlu1 %v3907_v60 }
 0x57d   :  { %v3911_v28 = vpop.eup %2927  ;;  %v1654_v36 = vpop.xlane.xlu1 %1653 }
 0x57e   :  { %2941 = vpow2.f32 %v1697_v11  ;;  %v1695_v15 = vmul.f32 1.442695, %v1669_v1  ;;  %v1672_v3 = vsub.f32 %v3872_v16, %v1654_v36  ;;  %1711 = vadd.xlane.f32.xlu0 %v3911_v28 }
 0x57f   :  { %v3915_v9 = vpop.eup %2929  ;;  %v1652_v32 = vpop.xlane.xlu0 %1651 }
 0x580   :  { %2943 = vpow2.f32 %v1695_v15  ;;  %v1701_v7 = vmul.f32 1.442695, %v1672_v3  ;;  %v1671_v8 = vsub.f32 %v3876_v52, %v1652_v32  ;;  %1717 = vadd.xlane.f32.xlu1 %v3915_v9 }
 0x581   :  { %v3919_v13 = vpop.eup %2931  ;;  %v1658_v55 = vpop.xlane.xlu1 %1657 }
 0x582   :  { %2945 = vpow2.f32 %v1701_v7  ;;  %v1699_v12 = vmul.f32 1.442695, %v1671_v8  ;;  %v1674_v45 = vsub.f32 %v3880_v31, %v1658_v55  ;;  %1715 = vadd.xlane.f32.xlu0 %v3919_v13 }
 0x583   :  { %v3923_v16 = vpop.eup %2933  ;;  %v1656_v61 = vpop.xlane.xlu0 %1655 }
 0x584   :  { %2947 = vpow2.f32 %v1699_v12  ;;  %v1705_v5 = vmul.f32 1.442695, %v1674_v45  ;;  %v1673_v35 = vsub.f32 %v3884_v62, %v1656_v61  ;;  %1721 = vadd.xlane.f32.xlu1 %v3923_v16 }
 0x585   :  { %v3927_v52 = vpop.eup %2935 }
 0x586   :  { %2949 = vpow2.f32 %v1705_v5  ;;  %v1703_v54 = vmul.f32 1.442695, %v1673_v35  ;;  %1719 = vadd.xlane.f32.xlu0 %v3927_v52 }
 0x587   :  { %v3930_v57 = vpop.eup %2937 }
 0x588   :  { %2951 = vpow2.f32 %v1703_v54  ;;  %1725 = vadd.xlane.f32.xlu1 %v3930_v57 }
 0x589   :  { %v3933_v31 = vpop.eup %2939 }
 0x58a   :  { %1723 = vadd.xlane.f32.xlu0 %v3933_v31 }
 0x58b   :  { %v3936_v47 = vpop.eup %2941 }
 0x58c   :  { %1729 = vadd.xlane.f32.xlu1 %v3936_v47 }
 0x58d   :  { %v3939_v62 = vpop.eup %2943 }
 0x58e   :  { %1727 = vadd.xlane.f32.xlu0 %v3939_v62 }
 0x58f   :  { %v3942_v4 = vpop.eup %2945 }
 0x590   :  { %1733 = vadd.xlane.f32.xlu1 %v3942_v4 }
 0x591   :  { %v3945_v56 = vpop.eup %2947 }
 0x592   :  { %1731 = vadd.xlane.f32.xlu0 %v3945_v56 }
 0x593   :  { %v3948_v40 = vpop.eup %2949 }
 0x594   :  { %1737 = vadd.xlane.f32.xlu1 %v3948_v40 }
 0x595   :  { %v3951_v0 = vpop.eup %2951 }
 0x596   :  { %1735 = vadd.xlane.f32.xlu0 %v3951_v0 }
 0x601   :  { %v1710_v58 = vpop.xlane.xlu1 %1709 }
 0x602   :  { %2953 = vrcp.f32 %v1710_v58 }
 0x603   :  { %v1708_v50 = vpop.xlane.xlu0 %1707 }
 0x604   :  { %2955 = vrcp.f32 %v1708_v50 }
 0x605   :  { %v1714_v23 = vpop.xlane.xlu1 %1713 }
 0x606   :  { %2957 = vrcp.f32 %v1714_v23 }
 0x607   :  { %v1712_v29 = vpop.xlane.xlu0 %1711 }
 0x608   :  { %2959 = vrcp.f32 %v1712_v29 }
 0x609   :  { %v1718_v14 = vpop.xlane.xlu1 %1717 }
 0x60a   :  { %2961 = vrcp.f32 %v1718_v14 }
 0x60b   :  { %v1716_v6 = vpop.xlane.xlu0 %1715 }
 0x60c   :  { %2963 = vrcp.f32 %v1716_v6 }
 0x60d   :  { %v1722_v59 = vpop.xlane.xlu1 %1721 }
 0x60e   :  { %2965 = vrcp.f32 %v1722_v59 }
 0x60f   :  { %v2954_v19 = vpop.eup %2953  ;;  %v1720_v44 = vpop.xlane.xlu0 %1719 }
 0x610   :  { %2967 = vrcp.f32 %v1720_v44  ;;  %v1756_v27 = vmul.f32 %v2954_v19, %v3899_v63 }
 0x611   :  { %v2956_v22 = vpop.eup %2955  ;;  %v1726_v33 = vpop.xlane.xlu1 %1725 }
 0x612   :  { %2969 = vrcp.f32 %v1726_v33  ;;  %v1755_v24 = vmul.f32 %v2956_v22, %v3903_v34 }
 0x613   :  { %v2958_v42 = vpop.eup %2957  ;;  %v1724_v39 = vpop.xlane.xlu0 %1723 }
 0x614   :  { %2971 = vrcp.f32 %v1724_v39  ;;  %v1771_v51 = vpack.c.bf16 %v1756_v27, %v1755_v24  ;;  %v1758_v20 = vmul.f32 %v2958_v42, %v3907_v60 }
 0x615   :  { %v2960_v18 = vpop.eup %2959  ;;  %v1730_v49 = vpop.xlane.xlu1 %1729 }
 0x616   :  { %2973 = vrcp.f32 %v1730_v49  ;;  %2797 = vmatprep.mubr.bf16.mxu0 %v1771_v51  ;;  %v1757_v26 = vmul.f32 %v2960_v18, %v3911_v28  ;;  %v2835_v49 = vpop.f32.mrf.mxu1 }
 0x617   :  { %v2962_v30 = vpop.eup %2961  ;;  %v1728_v2 = vpop.xlane.xlu0 %1727 }
 0x618   :  { %2975 = vrcp.f32 %v1728_v2  ;;  %v1772_v38 = vpack.c.bf16 %v1758_v20, %v1757_v26  ;;  %v1760_v10 = vmul.f32 %v2962_v30, %v3915_v9  ;;  %v2081_v26 = vpop.f32.mrf.mxu1 }
 0x619   :  { %v2964_v48 = vpop.eup %2963  ;;  %v1734_v63 = vpop.xlane.xlu1 %1733 }
 0x61a   :  { %2977 = vrcp.f32 %v1734_v63  ;;  %2798 = vmatmul.mubr.bf16.vlgmr.msra.gmra.mxu0 %v1772_v38  ;;  %v1759_v21 = vmul.f32 %v2964_v48, %v3919_v13  ;;  %v2836_v20 = vpop.f32.mrf.mxu1 }
 0x61b   :  { %v2966_v34 = vpop.eup %2965  ;;  %v1732_v53 = vpop.xlane.xlu0 %1731  ;;  %2814 = vmatpush3.bf16.msra.mxu0 %v1921_v17 }
 0x61c   :  { %2979 = vrcp.f32 %v1732_v53  ;;  %v1773_v43 = vpack.c.bf16 %v1760_v10, %v1759_v21  ;;  %v1762_v11 = vmul.f32 %v2966_v34, %v3923_v16  ;;  %v2084_v30 = vpop.f32.mrf.mxu1  ;;  %v3986_v34 = vld [vmem:[%s4126_s10] ss:$0 sm:$0xff] }
 0x61d   :  { %v2968_v46 = vpop.eup %2967  ;;  %v1738_v60 = vpop.xlane.xlu1 %1737 }
 0x61e   :  { %2981 = vrcp.f32 %v1738_v60  ;;  %2801 = vmatprep.mubr.bf16.mxu0 %v1773_v43  ;;  %v1761_v37 = vmul.f32 %v2968_v46, %v3927_v52  ;;  %v2839_v2 = vpop.f32.mrf.mxu1  ;;  %v3017_v43 = vld [vmem:[%s4117_s1 + $0x10] sm:$0xff] }
 0x61f   :  { %v2970_v1 = vpop.eup %2969  ;;  %v1736_v28 = vpop.xlane.xlu0 %1735 }
 0x620   :  { %2983 = vrcp.f32 %v1736_v28  ;;  %v1774_v36 = vpack.c.bf16 %v1762_v11, %v1761_v37  ;;  %v1764_v9 = vmul.f32 %v2970_v1, %v3930_v57  ;;  %v2097_v38 = vpop.f32.mrf.mxu1  ;;  %v3018_v1 = vld [vmem:[%s4117_s1] sm:$0xff] }
 0x621   :  { %v2972_v15 = vpop.eup %2971 }
 0x622   :  { %2802 = vmatmul.mubr.bf16.gmra.mxu0 %v1774_v36  ;;  %v1763_v3 = vmul.f32 %v2972_v15, %v3933_v31  ;;  %v2840_v17 = vpop.f32.mrf.mxu1 }
 0x623   :  { %v2974_v32 = vpop.eup %2973 }
 0x624   :  { %v1775_v7 = vpack.c.bf16 %v1764_v9, %v1763_v3  ;;  %v1766_v55 = vmul.f32 %v2974_v32, %v3936_v47  ;;  %v2100_v48 = vpop.f32.mrf.mxu1  ;;  %v3019_v32 = vld [vmem:[%s4117_s1 + $0x18] sm:$0xff] }
 0x625   :  { %v2976_v8 = vpop.eup %2975 }
 0x626   :  { %2805 = vmatprep.mubr.bf16.mxu0 %v1775_v7  ;;  %v1765_v13 = vmul.f32 %v2976_v8, %v3939_v62  ;;  %v2843_v10 = vpop.f32.mrf.mxu1 }
 0x627   :  { %v2978_v12 = vpop.eup %2977 }
 0x628   :  { %v1776_v45 = vpack.c.bf16 %v1766_v55, %v1765_v13  ;;  %v1768_v5 = vmul.f32 %v2978_v12, %v3942_v4  ;;  %v2113_v15 = vpop.f32.mrf.mxu1  ;;  %v3020_v12 = vld [vmem:[%s4117_s1 + $0x8] sm:$0xff] }
 0x629   :  { %v2980_v16 = vpop.eup %2979 }
 0x62a   :  { %2806 = vmatmul.mubr.bf16.gmra.mxu0 %v1776_v45  ;;  %v1767_v61 = vmul.f32 %v2980_v16, %v3945_v56 }
 0x62b   :  { %v2982_v35 = vpop.eup %2981 }
 0x62c   :  { %v1777_v52 = vpack.c.bf16 %v1768_v5, %v1767_v61  ;;  %v1770_v31 = vmul.f32 %v2982_v35, %v3948_v40  ;;  %v2844_v61 = vpop.f32.mrf.mxu1 }
 0x62d   :  { %v2984_v54 = vpop.eup %2983 }
 0x62e   :  { %2809 = vmatprep.mubr.bf16.mxu0 %v1777_v52  ;;  %v1769_v57 = vmul.f32 %v2984_v54, %v3951_v0  ;;  %v3021_v52 = vld [vmem:[%s4117_s1 + $0x30] sm:$0xff] }
 0x630   :  { %v1778_v41 = vpack.c.bf16 %v1770_v31, %v1769_v57 }
 0x632   :  { %2810 = vmatmul.mubr.bf16.gmra.mxu0 %v1778_v41 }
 0x6da   :  { %v2799_v62 = vpop.f32.mrf.mxu0 }
 0x6dc   :  { %v1821_v47 = vpop.f32.mrf.mxu0 }
 0x6de   :  { %v2800_v25 = vpop.f32.mrf.mxu0 }
 0x6df   :  { %v1887_v23 = vpack.c.bf16 %v2800_v25, %v2799_v62  ;;  %v3022_v62 = vld [vmem:[%s4117_s1 + $0x20] sm:$0xff] }
 0x6e0   :  { %v1824_v58 = vpop.f32.mrf.mxu0 }
 0x6e1   :  { %v1886_v50 = vpack.c.bf16 %v1824_v58, %v1821_v47  ;;  %v2116_v58 = vpop.f32.mrf.mxu1 }
 0x6e2   :  { %v2803_v29 = vpop.f32.mrf.mxu0 }
 0x6e3   :  { %2815 = vmatprep.mubr.msk.bf16.mxu0 %vm480_vm2, %v1886_v50 }
 0x6e4   :  { %v1837_v4 = vpop.f32.mrf.mxu0  ;;  %2816 = vmatmul.mubr.msk.bf16.vlgmr.msra.gmra.mxu0 %vm480_vm2, %v1887_v23 }
 0x6e6   :  { %v2804_v56 = vpop.f32.mrf.mxu0 }
 0x6e7   :  { %v1889_v0 = vpack.c.bf16 %v2804_v56, %v2803_v29  ;;  %v3023_v29 = vld [vmem:[%s4117_s1 + $0x38] sm:$0xff] }
 0x6e8   :  { %v1840_v14 = vpop.f32.mrf.mxu0 }
 0x6e9   :  { %v1888_v6 = vpack.c.bf16 %v1840_v14, %v1837_v4 }
 0x6ea   :  { %v2807_v59 = vpop.f32.mrf.mxu0 }
 0x6eb   :  { %2819 = vmatprep.mubr.msk.bf16.mxu0 %vm480_vm2, %v1888_v6 }
 0x6ec   :  { %v1853_v40 = vpop.f32.mrf.mxu0  ;;  %2820 = vmatmul.mubr.msk.bf16.gmra.mxu0 %vm480_vm2, %v1889_v0  ;;  %v3024_v0 = vld [vmem:[%s4117_s1 + $0x28] sm:$0xff] }
 0x6ee   :  { %v2808_v19 = vpop.f32.mrf.mxu0 }
 0x6ef   :  { %v1891_v33 = vpack.c.bf16 %v2808_v19, %v2807_v59  ;;  %v2847_v19 = vpop.f32.mrf.mxu1 }
 0x6f0   :  { %v1856_v44 = vpop.f32.mrf.mxu0 }
 0x6f1   :  { %v1890_v22 = vpack.c.bf16 %v1856_v44, %v1853_v40 }
 0x6f2   :  { %v2811_v24 = vpop.f32.mrf.mxu0 }
 0x6f3   :  { %2823 = vmatprep.mubr.msk.bf16.mxu0 %vm480_vm2, %v1890_v22 }
 0x6f4   :  { %v1869_v27 = vpop.f32.mrf.mxu0  ;;  %2824 = vmatmul.mubr.msk.bf16.gmra.mxu0 %vm480_vm2, %v1891_v33  ;;  %v3025_v33 = vld [vmem:[%s4117_s1 + $0x50] sm:$0xff] }
 0x6f6   :  { %v2812_v42 = vpop.f32.mrf.mxu0 }
 0x6f7   :  { %v1893_v18 = vpack.c.bf16 %v2812_v42, %v2811_v24 }
 0x6f8   :  { %v1872_v39 = vpop.f32.mrf.mxu0 }
 0x6f9   :  { %v1892_v51 = vpack.c.bf16 %v1872_v39, %v1869_v27 }
 0x6fb   :  { %2827 = vmatprep.mubr.msk.bf16.mxu0 %vm480_vm2, %v1892_v51 }
 0x6fc   :  { %2828 = vmatmul.mubr.msk.bf16.gmra.mxu0 %vm480_vm2, %v1893_v18  ;;  %v3026_v18 = vld [vmem:[%s4117_s1 + $0x40] sm:$0xff] }
 0x7a4   :  { %v2817_v63 = vpop.f32.mrf.mxu0 }
 0x7a5   :  { %v2090_v21 = vadd.f32 %v2835_v49, %v2817_v63 }
 0x7a6   :  { %v1957_v53 = vpop.f32.mrf.mxu0 }
 0x7a7   :  { %v2146_v46 = vadd.f32 %v3017_v43, %v2090_v21  ;;  %v2082_v60 = vadd.f32 %v2081_v26, %v1957_v53  ;;  %v3028_v43 = vld [vmem:[%s4117_s1 + $0x48] sm:$0xff] }
 0x7a8   :  { %v2818_v37 = vpop.f32.mrf.mxu0 }
 0x7a9   :  { %v2169_v11 = vadd.f32 %v3986_v34, %v2146_v46  ;;  %v2144_v28 = vadd.f32 %v3018_v1, %v2082_v60  ;;  %v2093_v36 = vadd.f32 %v2836_v20, %v2818_v37 }
 0x7aa   :  { %v1960_v3 = vpop.f32.mrf.mxu0 }
 0x7ab   :  { %2985 = vtanh.f32 %v2169_v11  ;;  %v2167_v9 = vadd.f32 %v3986_v34, %v2144_v28  ;;  %v2147_v7 = vadd.f32 %v3019_v32, %v2093_v36  ;;  %v2085_v8 = vadd.f32 %v2084_v30, %v1960_v3  ;;  %v2129_v30 = vpop.f32.mrf.mxu1  ;;  %v3029_v36 = vld [vmem:[%s4117_s1 + $0x70] sm:$0xff] }
 0x7ac   :  { %v2821_v13 = vpop.f32.mrf.mxu0 }
 0x7ad   :  { %2987 = vtanh.f32 %v2167_v9  ;;  %v2170_v55 = vadd.f32 %v3986_v34, %v2147_v7  ;;  %v2145_v45 = vadd.f32 %v3020_v12, %v2085_v8  ;;  %v2106_v16 = vadd.f32 %v2839_v2, %v2821_v13  ;;  %v2848_v11 = vpop.f32.mrf.mxu1  ;;  %v3030_v8 = vld [vmem:[%s4117_s1 + $0x60] sm:$0xff] }
 0x7ae   :  { %v1973_v5 = vpop.f32.mrf.mxu0 }
 0x7af   :  { %2989 = vtanh.f32 %v2170_v55  ;;  %v2168_v35 = vadd.f32 %v3986_v34, %v2145_v45  ;;  %v2150_v54 = vadd.f32 %v3021_v52, %v2106_v16  ;;  %v2098_v57 = vadd.f32 %v2097_v38, %v1973_v5  ;;  %v2132_v45 = vpop.f32.mrf.mxu1  ;;  %v3031_v5 = vld [vmem:[%s4117_s1 + $0x78] sm:$0xff] }
 0x7b0   :  { %v2822_v31 = vpop.f32.mrf.mxu0 }
 0x7b1   :  { %2991 = vtanh.f32 %v2168_v35  ;;  %v2173_v41 = vadd.f32 %v3986_v34, %v2150_v54  ;;  %v2148_v47 = vadd.f32 %v3022_v62, %v2098_v57  ;;  %v2109_v25 = vadd.f32 %v2840_v17, %v2822_v31  ;;  %v3027_v17 = vld [vmem:[%s4117_s1 + $0x58] sm:$0xff]  ;;  %v3032_v31 = vld [vmem:[%s4117_s1 + $0x68] sm:$0xff] }
 0x7b2   :  { %v1976_v50 = vpop.f32.mrf.mxu0 }
 0x7b3   :  { %2993 = vtanh.f32 %v2173_v41  ;;  %v2171_v23 = vadd.f32 %v3986_v34, %v2148_v47  ;;  %v2151_v4 = vadd.f32 %v3023_v29, %v2109_v25  ;;  %v2101_v56 = vadd.f32 %v2100_v48, %v1976_v50 }
 0x7b4   :  { %v2825_v14 = vpop.f32.mrf.mxu0 }
 0x7b5   :  { %2995 = vtanh.f32 %v2171_v23  ;;  %v2174_v6 = vadd.f32 %v3986_v34, %v2151_v4  ;;  %v2149_v59 = vadd.f32 %v3024_v0, %v2101_v56  ;;  %v2122_v40 = vadd.f32 %v2843_v10, %v2825_v14 }
 0x7b6   :  { %v1989_v44 = vpop.f32.mrf.mxu0 }
 0x7b7   :  { %2997 = vtanh.f32 %v2174_v6  ;;  %v2172_v22 = vadd.f32 %v3986_v34, %v2149_v59  ;;  %v2154_v24 = vadd.f32 %v3025_v33, %v2122_v40  ;;  %v2114_v27 = vadd.f32 %v2113_v15, %v1989_v44 }
 0x7b8   :  { %v2986_v42 = vpop.eup %2985  ;;  %v2826_v39 = vpop.f32.mrf.mxu0 }
 0x7b9   :  { %2201 = vst.msk [vmem:[%s4127_s11 + $0x10] sm:$0xff] %vm104_vm1, %v2986_v42  ;;  %2999 = vtanh.f32 %v2172_v22  ;;  %v2177_v51 = vadd.f32 %v3986_v34, %v2154_v24  ;;  %v2152_v49 = vadd.f32 %v3026_v18, %v2114_v27  ;;  %v2125_v26 = vadd.f32 %v2844_v61, %v2826_v39 }
 0x7ba   :  { %v2988_v20 = vpop.eup %2987  ;;  %v1992_v2 = vpop.f32.mrf.mxu0 }
 0x7bb   :  { %2199 = vst.msk [vmem:[%s4127_s11] sm:$0xff] %vm104_vm1, %v2988_v20  ;;  %3001 = vtanh.f32 %v2177_v51  ;;  %v2175_v38 = vadd.f32 %v3986_v34, %v2152_v49  ;;  %v2155_v48 = vadd.f32 %v3027_v17, %v2125_v26  ;;  %v2117_v63 = vadd.f32 %v2116_v58, %v1992_v2 }
 0x7bc   :  { %v2990_v21 = vpop.eup %2989  ;;  %v2829_v10 = vpop.f32.mrf.mxu0 }
 0x7bd   :  { %2202 = vst.msk [vmem:[%s4127_s11 + $0x18] sm:$0xff] %vm104_vm1, %v2990_v21  ;;  %3003 = vtanh.f32 %v2175_v38  ;;  %v2178_v53 = vadd.f32 %v3986_v34, %v2155_v48  ;;  %v2153_v46 = vadd.f32 %v3028_v43, %v2117_v63  ;;  %v2138_v60 = vadd.f32 %v2847_v19, %v2829_v10 }
 0x7be   :  { %v2992_v37 = vpop.eup %2991  ;;  %v2005_v1 = vpop.f32.mrf.mxu0 }
 0x7bf   :  { %2200 = vst.msk [vmem:[%s4127_s11 + $0x8] sm:$0xff] %vm104_vm1, %v2992_v37  ;;  %3005 = vtanh.f32 %v2178_v53  ;;  %v2176_v28 = vadd.f32 %v3986_v34, %v2153_v46  ;;  %v2158_v15 = vadd.f32 %v3029_v36, %v2138_v60  ;;  %v2130_v3 = vadd.f32 %v2129_v30, %v2005_v1 }
 0x7c0   :  { %v2994_v9 = vpop.eup %2993  ;;  %v2830_v32 = vpop.f32.mrf.mxu0 }
 0x7c1   :  { %2205 = vst.msk [vmem:[%s4127_s11 + $0x30] sm:$0xff] %vm104_vm1, %v2994_v9  ;;  %3007 = vtanh.f32 %v2176_v28  ;;  %v2181_v7 = vadd.f32 %v3986_v34, %v2158_v15  ;;  %v2156_v13 = vadd.f32 %v3030_v8, %v2130_v3  ;;  %v2141_v55 = vadd.f32 %v2848_v11, %v2830_v32 }
 0x7c2   :  { %v2996_v12 = vpop.eup %2995  ;;  %v2008_v16 = vpop.f32.mrf.mxu0 }
 0x7c3   :  { %2203 = vst.msk [vmem:[%s4127_s11 + $0x20] sm:$0xff] %vm104_vm1, %v2996_v12  ;;  %3009 = vtanh.f32 %v2181_v7  ;;  %v2179_v61 = vadd.f32 %v3986_v34, %v2156_v13  ;;  %v2159_v35 = vadd.f32 %v3031_v5, %v2141_v55  ;;  %v2133_v52 = vadd.f32 %v2132_v45, %v2008_v16 }
 0x7c4   :  { %v2998_v54 = vpop.eup %2997 }
 0x7c5   :  { %2206 = vst.msk [vmem:[%s4127_s11 + $0x38] sm:$0xff] %vm104_vm1, %v2998_v54  ;;  %3011 = vtanh.f32 %v2179_v61  ;;  %v2182_v57 = vadd.f32 %v3986_v34, %v2159_v35  ;;  %v2157_v41 = vadd.f32 %v3032_v31, %v2133_v52 }
 0x7c6   :  { %v3000_v62 = vpop.eup %2999 }
 0x7c7   :  { %2204 = vst.msk [vmem:[%s4127_s11 + $0x28] sm:$0xff] %vm104_vm1, %v3000_v62  ;;  %3013 = vtanh.f32 %v2182_v57  ;;  %v2180_v47 = vadd.f32 %v3986_v34, %v2157_v41 }
 0x7c8   :  { %v3002_v25 = vpop.eup %3001 }
 0x7c9   :  { %2209 = vst.msk [vmem:[%s4127_s11 + $0x50] sm:$0xff] %vm104_vm1, %v3002_v25  ;;  %3015 = vtanh.f32 %v2180_v47 }
 0x7ca   :  { %v3004_v58 = vpop.eup %3003 }
 0x7cb   :  { %2207 = vst.msk [vmem:[%s4127_s11 + $0x40] sm:$0xff] %vm104_vm1, %v3004_v58 }
 0x7cc   :  { %v3006_v50 = vpop.eup %3005 }
 0x7cd   :  { %2210 = vst.msk [vmem:[%s4127_s11 + $0x58] sm:$0xff] %vm104_vm1, %v3006_v50 }
 0x7ce   :  { %v3008_v34 = vpop.eup %3007 }
 0x7cf   :  { %2208 = vst.msk [vmem:[%s4127_s11 + $0x48] sm:$0xff] %vm104_vm1, %v3008_v34 }
 0x7d0   :  { %v3010_v23 = vpop.eup %3009 }
 0x7d1   :  { %2213 = vst.msk [vmem:[%s4127_s11 + $0x70] sm:$0xff] %vm104_vm1, %v3010_v23 }
 0x7d2   :  { %v3012_v29 = vpop.eup %3011 }
 0x7d3   :  { %2211 = vst.msk [vmem:[%s4127_s11 + $0x60] sm:$0xff] %vm104_vm1, %v3012_v29 }
 0x7d4   :  { %v3014_v4 = vpop.eup %3013 }
 0x7d5   :  { %2214 = vst.msk [vmem:[%s4127_s11 + $0x78] sm:$0xff] %vm104_vm1, %v3014_v4 }
 0x7d6   :  { %v3016_v56 = vpop.eup %3015 }
 0x7d7   :  { %2212 = vst.msk [vmem:[%s4127_s11 + $0x68] sm:$0xff] %vm104_vm1, %v3016_v56 }

</bundles_post_ra>
